<compile_context>
chip_gen: v7x
topology: tpu7x:2x2x1
jax: 0.10.0
libtpu: 0.0.40
codegen_flags: <defaults>
</compile_context>

<pallas_src>
import math

import jax
import jax.numpy as jnp
from jax import lax
from jax.experimental import pallas as pl
from jax.experimental.pallas import tpu as pltpu


def _pick_batch_block(b_pad, w):
    """Batch block: multiple of 8, divides b_pad, W*Bblk ~ 512-1024 rows, and
    leaves >=2 grid steps when the batch allows (v7x has 2 TensorCores)."""
    target = max(8, ((1024 // max(w, 1)) // 8) * 8)
    if b_pad >= 16:
        target = min(target, max(8, ((b_pad // 2) // 8) * 8))
    target = min(target, b_pad)
    best = 8
    d = 8
    while d <= target:
        if b_pad % d == 0:
            best = d
        d += 8
    return best


# ---------------------------------------------------------------------------
# Fused kernel: conv encoders (query + reference) + position encoder + feature
# layer + hidden layers + folded dueling head.  grid = (batch blocks,), parallel.
# ---------------------------------------------------------------------------
def _fused_kernel(x_ref, pos_ref,
                  c1w_ref, c1b_ref, c2w_ref, c2b_ref,
                  fw3_ref, fwp_ref, fb_ref,
                  pw1_ref, pb1_ref, pw2_ref, pb2_ref,
                  hw_ref, hb_ref, ow_ref, ob_ref,
                  o_ref):
    f32 = jnp.float32
    _, wp4, bblk, _ = x_ref.shape
    w_len = wp4 - 4
    bw = w_len * bblk

    def encode(s):
        # (W+4, Bblk, 5) -> ((W+4)*Bblk, 5): rows ordered (window pos, batch).
        # Layout-trivial merge because Bblk is a multiple of 8.
        xp = x_ref[s].reshape(wp4 * bblk, 5)

        # conv1 (k=5, pad=2): 5 accumulating MXU dots on row-shifted windows.
        acc1 = jnp.dot(xp[0:bw, :], c1w_ref[s, 0], preferred_element_type=f32)
        for k in range(1, 5):
            acc1 = acc1 + jnp.dot(xp[k * bblk:k * bblk + bw, :], c1w_ref[s, k],
                                  preferred_element_type=f32)
        h1 = jnp.maximum(acc1 + c1b_ref[s], 0.0)                    # (BW, 128)

        # conv2 (k=3, pad=1): one zero row-block per side, 3 accumulating dots
        # on tile-aligned row slices -- no 384-wide im2col buffer.
        zb = jnp.zeros((bblk, 128), f32)
        h1p = jnp.concatenate([zb, h1, zb], axis=0)                 # ((W+2)*Bblk, 128)
        acc2 = jnp.dot(h1p[0:bw, :], c2w_ref[s, 0], preferred_element_type=f32)
        for k in range(1, 3):
            acc2 = acc2 + jnp.dot(h1p[k * bblk:k * bblk + bw, :], c2w_ref[s, k],
                                  preferred_element_type=f32)
        h2 = jnp.maximum(acc2 + c2b_ref[s], 0.0)                    # (BW, 256)

        # Feature-layer contribution of this segment: accumulate per-position
        # (Bblk,256)@(256,H) dots -- no flatten, no HBM round trip.
        xf = jnp.dot(h2[0:bblk, :], fw3_ref[s, 0], preferred_element_type=f32)
        for i in range(1, w_len):
            xf = xf + jnp.dot(h2[i * bblk:(i + 1) * bblk, :], fw3_ref[s, i],
                              preferred_element_type=f32)
        return xf                                                   # (Bblk, H)

    xq = encode(0)
    xr = encode(1)

    # position encoder: Linear(4,64) -> ReLU -> Linear(64,128)
    ph = jnp.maximum(jnp.dot(pos_ref[...], pw1_ref[...], preferred_element_type=f32)
                     + pb1_ref[...], 0.0)
    pe = jnp.dot(ph, pw2_ref[...], preferred_element_type=f32) + pb2_ref[...]

    # feature layer (eval mode: NoisyLinear = mu weights, Dropout = identity)
    x = jnp.maximum(xq + xr
                    + jnp.dot(pe, fwp_ref[...], preferred_element_type=f32)
                    + fb_ref[...], 0.0)

    for i in range(hw_ref.shape[0]):                                # hidden layers
        x = jnp.maximum(jnp.dot(x, hw_ref[i], preferred_element_type=f32)
                        + hb_ref[i], 0.0)

    # dueling heads folded into a single (H,4) matmul at convert time
    o_ref[...] = jnp.dot(x, ow_ref[...], preferred_element_type=f32) + ob_ref[...]


def reference_dqn_forward(state, kp, window_size):
    w = window_size
    b = state.shape[0]
    q = jnp.transpose(state[:, :5, :w], (2, 0, 1))                  # (W, B, 5)
    r = jnp.transpose(state[:, :5, w:2 * w], (2, 0, 1))             # (W, B, 5)
    pos = state[:, 5, :4]                                           # (B, 4)

    # Pad batch to a multiple of 8 so every in-kernel row slice is tile-aligned.
    b_pad = ((b + 7) // 8) * 8
    pad = b_pad - b
    x = jnp.stack([q, r], axis=0)                                   # (2, W, B, 5)
    x = jnp.pad(x, ((0, 0), (2, 2), (0, pad), (0, 0)))              # (2, W+4, Bp, 5)
    pos = jnp.pad(pos, ((0, pad), (0, 0)))                          # (Bp, 4)

    bblk = _pick_batch_block(b_pad, w)
    grid = (b_pad // bblk,)

    def full_spec(a):
        return pl.BlockSpec(a.shape, lambda i, nd=a.ndim: (0,) * nd)

    out = pl.pallas_call(
        _fused_kernel,
        out_shape=jax.ShapeDtypeStruct((b_pad, 4), jnp.float32),
        grid=grid,
        in_specs=[
            pl.BlockSpec((2, w + 4, bblk, 5), lambda i: (0, 0, i, 0)),
            pl.BlockSpec((bblk, 4), lambda i: (i, 0)),
            full_spec(kp['c1_w']), full_spec(kp['c1_b']),
            full_spec(kp['c2_w']), full_spec(kp['c2_b']),
            full_spec(kp['f_w3']), full_spec(kp['f_wp']), full_spec(kp['f_b']),
            full_spec(kp['p_w1']), full_spec(kp['p_b1']),
            full_spec(kp['p_w2']), full_spec(kp['p_b2']),
            full_spec(kp['h_w']), full_spec(kp['h_b']),
            full_spec(kp['o_w']), full_spec(kp['o_b']),
        ],
        out_specs=pl.BlockSpec((bblk, 4), lambda i: (i, 0)),
        compiler_params=pltpu.CompilerParams(
            dimension_semantics=("parallel",),
            vmem_limit_bytes=56 * 1024 * 1024),
    )(x, pos,
      kp['c1_w'], kp['c1_b'], kp['c2_w'], kp['c2_b'],
      kp['f_w3'], kp['f_wp'], kp['f_b'],
      kp['p_w1'], kp['p_b1'], kp['p_w2'], kp['p_b2'],
      kp['h_w'], kp['h_b'], kp['o_w'], kp['o_b'])
    return out[:b]


# ---------------------------------------------------------------------------
# Deterministic parameter init (PyTorch layouts) and conversion to kernel layouts
# ---------------------------------------------------------------------------
def init_torch_params(key, w, h, num_layers):
    keys = iter(jax.random.split(key, 32))

    def mk(shape, fan_in):
        return jax.random.normal(next(keys), shape, jnp.float32) / math.sqrt(fan_in)

    p = {}
    for pref in ('q', 'r'):
        p[f'{pref}_c1_w'] = mk((128, 5, 5), 25)
        p[f'{pref}_c1_b'] = mk((128,), 25)
        p[f'{pref}_c2_w'] = mk((256, 128, 3), 384)
        p[f'{pref}_c2_b'] = mk((256,), 384)
    p['p_l1_w'] = mk((64, 4), 4)
    p['p_l1_b'] = mk((64,), 4)
    p['p_l2_w'] = mk((128, 64), 64)
    p['p_l2_b'] = mk((128,), 64)
    in_sz = 256 * w * 2 + 128
    p['f_w'] = mk((h, in_sz), in_sz)
    p['f_b'] = mk((h,), in_sz)
    p['h_w'] = mk((num_layers - 1, h, h), h)
    p['h_b'] = mk((num_layers - 1, h), h)
    p['v_w'] = mk((1, h), h)
    p['v_b'] = mk((1,), h)
    p['a_w'] = mk((4, h), h)
    p['a_b'] = mk((4,), h)
    return p


def convert_params(tp, w, h):
    kp = {}
    c1_w, c1_b, c2_w, c2_b, f_w3 = [], [], [], [], []
    fw = tp['f_w'].T                                   # (in_sz, H), torch feature order
    n = 256 * w
    for idx, pref in enumerate(('q', 'r')):
        # conv weights (out,in,k) -> (k,in,out): tap k is a leading index in-kernel.
        c1_w.append(jnp.transpose(tp[f'{pref}_c1_w'], (2, 1, 0)))        # (5, 5, 128)
        c1_b.append(tp[f'{pref}_c1_b'].reshape(1, 128))
        c2_w.append(jnp.transpose(tp[f'{pref}_c2_w'], (2, 1, 0)))        # (3, 128, 256)
        c2_b.append(tp[f'{pref}_c2_b'].reshape(1, 256))
        # torch flatten(1) of (B,256,W) is channel-major (c*W + l); the kernel
        # contracts channels-last per window position, so permute feature-weight
        # rows to (l, c) order and keep the position axis leading.
        blk = fw[idx * n:(idx + 1) * n]                                  # (256*W, H)
        f_w3.append(blk.reshape(256, w, h).transpose(1, 0, 2))           # (W, 256, H)
    kp['c1_w'] = jnp.stack(c1_w)            # (2, 5, 5, 128)   [query, reference]
    kp['c1_b'] = jnp.stack(c1_b)            # (2, 1, 128)
    kp['c2_w'] = jnp.stack(c2_w)            # (2, 3, 128, 256)
    kp['c2_b'] = jnp.stack(c2_b)            # (2, 1, 256)
    kp['f_w3'] = jnp.stack(f_w3)            # (2, W, 256, H)
    kp['f_wp'] = fw[2 * n:]                 # (128, H)
    kp['f_b'] = tp['f_b'].reshape(1, h)

    kp['p_w1'] = tp['p_l1_w'].T
    kp['p_b1'] = tp['p_l1_b'].reshape(1, 64)
    kp['p_w2'] = tp['p_l2_w'].T
    kp['p_b2'] = tp['p_l2_b'].reshape(1, 128)

    kp['h_w'] = jnp.transpose(tp['h_w'], (0, 2, 1))
    kp['h_b'] = tp['h_b'].reshape(tp['h_b'].shape[0], 1, h)

    # Dueling combine folded into the output weights (exact algebra):
    #   q_j = x @ (v_w + a_w[j] - mean_k a_w[k]) + (v_b + a_b[j] - mean_k a_b[k])
    a_w, a_b, v_w, v_b = tp['a_w'], tp['a_b'], tp['v_w'], tp['v_b']
    kp['o_w'] = v_w[0][:, None] + a_w.T - jnp.mean(a_w, axis=0)[:, None]   # (H, 4)
    kp['o_b'] = (v_b[0] + a_b - jnp.mean(a_b)).reshape(1, 4)
    return kp


# Pure-JAX reference mirroring the PyTorch (NCL / torch-layout) math exactly.
def torch_style_reference(state, tp, w, num_layers):
    b = state.shape[0]
    q = state[:, :5, :w]
    r = state[:, :5, w:2 * w]
    pos = state[:, 5, :4]

    def enc(x, w1, b1, w2, b2):
        y = lax.conv_general_dilated(x, w1, (1,), [(2, 2)],
                                     dimension_numbers=('NCH', 'OIH', 'NCH'),
                                     precision=lax.Precision.HIGHEST)
        y = jax.nn.relu(y + b1[None, :, None])
        y = lax.conv_general_dilated(y, w2, (1,), [(1, 1)],
                                     dimension_numbers=('NCH', 'OIH', 'NCH'),
                                     precision=lax.Precision.HIGHEST)
        return jax.nn.relu(y + b2[None, :, None])

    qe = enc(q, tp['q_c1_w'], tp['q_c1_b'], tp['q_c2_w'], tp['q_c2_b']).reshape(b, -1)
    re = enc(r, tp['r_c1_w'], tp['r_c1_b'], tp['r_c2_w'], tp['r_c2_b']).reshape(b, -1)
    ph = jax.nn.relu(pos @ tp['p_l1_w'].T + tp['p_l1_b'])
    pe = ph @ tp['p_l2_w'].T + tp['p_l2_b']
    feat = jnp.concatenate([qe, re, pe], axis=1)
    x = jax.nn.relu(feat @ tp['f_w'].T + tp['f_b'])
    for i in range(num_layers - 1):
        x = jax.nn.relu(x @ tp['h_w'][i].T + tp['h_b'][i])
    v = x @ tp['v_w'].T + tp['v_b']
    a = x @ tp['a_w'].T + tp['a_b']
    return v + a - a.mean(axis=1, keepdims=True)


if __name__ == "__main__":
    # Small DQNAlignerConfig: window_size=16, hidden_size=128, num_layers=3,
    # dueling_dqn=True, noisy_networks=True (eval mode), batch=2.
    B, W, H, NUM_LAYERS = 2, 16, 128, 3
    key = jax.random.PRNGKey(0)
    k_state, k_params = jax.random.split(key)
    state = jax.random.normal(k_state, (B, 6, 2 * W), jnp.float32)

    tp = init_torch_params(k_params, W, H, NUM_LAYERS)
    kp = convert_params(tp, W, H)

    q_values = reference_dqn_forward(state, kp, W)
    q_values = jax.block_until_ready(q_values)

    with jax.default_matmul_precision("float32"):
        ref = jax.block_until_ready(torch_style_reference(state, tp, W, NUM_LAYERS))

    assert q_values.shape == (B, 4)
    # tolerance allows for MXU f32 multi-pass accumulation-order differences
    assert jnp.allclose(q_values, ref, rtol=1e-2, atol=1e-2), (q_values, ref)
    print("KERNEL_OK")
</pallas_src>

<mosaic_0001>
module attributes {stable_mosaic.version = 11 : i64} {
  func.func @_fused_kernel(%arg0: i32, %arg1: memref<2x20x8x5xf32, #tpu.memory_space<vmem>>, %arg2: memref<8x4xf32, #tpu.memory_space<vmem>>, %arg3: memref<2x5x5x128xf32, #tpu.memory_space<vmem>>, %arg4: memref<2x1x128xf32, #tpu.memory_space<vmem>>, %arg5: memref<2x3x128x256xf32, #tpu.memory_space<vmem>>, %arg6: memref<2x1x256xf32, #tpu.memory_space<vmem>>, %arg7: memref<2x16x256x128xf32, #tpu.memory_space<vmem>>, %arg8: memref<128x128xf32, #tpu.memory_space<vmem>>, %arg9: memref<1x128xf32, #tpu.memory_space<vmem>>, %arg10: memref<4x64xf32, #tpu.memory_space<vmem>>, %arg11: memref<1x64xf32, #tpu.memory_space<vmem>>, %arg12: memref<64x128xf32, #tpu.memory_space<vmem>>, %arg13: memref<1x128xf32, #tpu.memory_space<vmem>>, %arg14: memref<2x128x128xf32, #tpu.memory_space<vmem>>, %arg15: memref<2x1x128xf32, #tpu.memory_space<vmem>>, %arg16: memref<128x4xf32, #tpu.memory_space<vmem>>, %arg17: memref<1x4xf32, #tpu.memory_space<vmem>>, %arg18: memref<8x4xf32, #tpu.memory_space<vmem>>) attributes {dimension_semantics = [#tpu.dimension_semantics<parallel>], iteration_bounds = array<i64: 1>, scalar_prefetch = 0 : i64, scratch_operands = 0 : i64, tpu.core_type = #tpu.core_type<tc>, window_params = [{transform_indices = @transform_0, window_bounds = array<i64: 2, 20, 8, 5>}, {transform_indices = @transform_1, window_bounds = array<i64: 8, 4>}, {pipeline_mode = #tpu.pipeline_mode<synchronous>, transform_indices = @transform_2, window_bounds = array<i64: 2, 5, 5, 128>}, {pipeline_mode = #tpu.pipeline_mode<synchronous>, transform_indices = @transform_3, window_bounds = array<i64: 2, 1, 128>}, {pipeline_mode = #tpu.pipeline_mode<synchronous>, transform_indices = @transform_4, window_bounds = array<i64: 2, 3, 128, 256>}, {pipeline_mode = #tpu.pipeline_mode<synchronous>, transform_indices = @transform_5, window_bounds = array<i64: 2, 1, 256>}, {pipeline_mode = #tpu.pipeline_mode<synchronous>, transform_indices = @transform_6, window_bounds = array<i64: 2, 16, 256, 128>}, {pipeline_mode = #tpu.pipeline_mode<synchronous>, transform_indices = @transform_7, window_bounds = array<i64: 128, 128>}, {pipeline_mode = #tpu.pipeline_mode<synchronous>, transform_indices = @transform_8, window_bounds = array<i64: 1, 128>}, {pipeline_mode = #tpu.pipeline_mode<synchronous>, transform_indices = @transform_9, window_bounds = array<i64: 4, 64>}, {pipeline_mode = #tpu.pipeline_mode<synchronous>, transform_indices = @transform_10, window_bounds = array<i64: 1, 64>}, {pipeline_mode = #tpu.pipeline_mode<synchronous>, transform_indices = @transform_11, window_bounds = array<i64: 64, 128>}, {pipeline_mode = #tpu.pipeline_mode<synchronous>, transform_indices = @transform_12, window_bounds = array<i64: 1, 128>}, {pipeline_mode = #tpu.pipeline_mode<synchronous>, transform_indices = @transform_13, window_bounds = array<i64: 2, 128, 128>}, {pipeline_mode = #tpu.pipeline_mode<synchronous>, transform_indices = @transform_14, window_bounds = array<i64: 2, 1, 128>}, {pipeline_mode = #tpu.pipeline_mode<synchronous>, transform_indices = @transform_15, window_bounds = array<i64: 128, 4>}, {pipeline_mode = #tpu.pipeline_mode<synchronous>, transform_indices = @transform_16, window_bounds = array<i64: 1, 4>}, {transform_indices = @transform_17, window_bounds = array<i64: 8, 4>}]} {
    %c0 = arith.constant 0 : index
    %c0_0 = arith.constant 0 : index
    %c0_1 = arith.constant 0 : index
    %c0_2 = arith.constant 0 : index
    %0 = vector.load %arg1[%c0, %c0_0, %c0_1, %c0_2] : memref<2x20x8x5xf32, #tpu.memory_space<vmem>>, vector<1x20x8x5xf32>
    %1 = vector.shape_cast %0 : vector<1x20x8x5xf32> to vector<20x8x5xf32>
    %2 = vector.shape_cast %1 : vector<20x8x5xf32> to vector<160x5xf32>
    %3 = vector.extract_strided_slice %2 {offsets = [0, 0], sizes = [128, 5], strides = [1, 1]} : vector<160x5xf32> to vector<128x5xf32>
    %c0_3 = arith.constant 0 : index
    %c0_4 = arith.constant 0 : index
    %c0_5 = arith.constant 0 : index
    %c0_6 = arith.constant 0 : index
    %4 = vector.load %arg3[%c0_3, %c0_4, %c0_5, %c0_6] : memref<2x5x5x128xf32, #tpu.memory_space<vmem>>, vector<1x1x5x128xf32>
    %5 = vector.shape_cast %4 : vector<1x1x5x128xf32> to vector<5x128xf32>
    %cst = arith.constant dense<0.000000e+00> : vector<128x128xf32>
    %6 = tpu.matmul %3, %5, %cst {dimension_numbers = #tpu.dot_dimension_numbers<[1], [0], [0], [1], [0, 0, 1, 1], [], []>} : vector<128x5xf32>, vector<5x128xf32>, vector<128x128xf32> -> vector<128x128xf32>
    %7 = vector.extract_strided_slice %2 {offsets = [8, 0], sizes = [128, 5], strides = [1, 1]} : vector<160x5xf32> to vector<128x5xf32>
    %c0_7 = arith.constant 0 : index
    %c1 = arith.constant 1 : index
    %c0_8 = arith.constant 0 : index
    %c0_9 = arith.constant 0 : index
    %8 = vector.load %arg3[%c0_7, %c1, %c0_8, %c0_9] : memref<2x5x5x128xf32, #tpu.memory_space<vmem>>, vector<1x1x5x128xf32>
    %9 = vector.shape_cast %8 : vector<1x1x5x128xf32> to vector<5x128xf32>
    %cst_10 = arith.constant dense<0.000000e+00> : vector<128x128xf32>
    %10 = tpu.matmul %7, %9, %cst_10 {dimension_numbers = #tpu.dot_dimension_numbers<[1], [0], [0], [1], [0, 0, 1, 1], [], []>} : vector<128x5xf32>, vector<5x128xf32>, vector<128x128xf32> -> vector<128x128xf32>
    %11 = arith.addf %6, %10 : vector<128x128xf32>
    %12 = vector.extract_strided_slice %2 {offsets = [16, 0], sizes = [128, 5], strides = [1, 1]} : vector<160x5xf32> to vector<128x5xf32>
    %c0_11 = arith.constant 0 : index
    %c2 = arith.constant 2 : index
    %c0_12 = arith.constant 0 : index
    %c0_13 = arith.constant 0 : index
    %13 = vector.load %arg3[%c0_11, %c2, %c0_12, %c0_13] : memref<2x5x5x128xf32, #tpu.memory_space<vmem>>, vector<1x1x5x128xf32>
    %14 = vector.shape_cast %13 : vector<1x1x5x128xf32> to vector<5x128xf32>
    %cst_14 = arith.constant dense<0.000000e+00> : vector<128x128xf32>
    %15 = tpu.matmul %12, %14, %cst_14 {dimension_numbers = #tpu.dot_dimension_numbers<[1], [0], [0], [1], [0, 0, 1, 1], [], []>} : vector<128x5xf32>, vector<5x128xf32>, vector<128x128xf32> -> vector<128x128xf32>
    %16 = arith.addf %11, %15 : vector<128x128xf32>
    %17 = vector.extract_strided_slice %2 {offsets = [24, 0], sizes = [128, 5], strides = [1, 1]} : vector<160x5xf32> to vector<128x5xf32>
    %c0_15 = arith.constant 0 : index
    %c3 = arith.constant 3 : index
    %c0_16 = arith.constant 0 : index
    %c0_17 = arith.constant 0 : index
    %18 = vector.load %arg3[%c0_15, %c3, %c0_16, %c0_17] : memref<2x5x5x128xf32, #tpu.memory_space<vmem>>, vector<1x1x5x128xf32>
    %19 = vector.shape_cast %18 : vector<1x1x5x128xf32> to vector<5x128xf32>
    %cst_18 = arith.constant dense<0.000000e+00> : vector<128x128xf32>
    %20 = tpu.matmul %17, %19, %cst_18 {dimension_numbers = #tpu.dot_dimension_numbers<[1], [0], [0], [1], [0, 0, 1, 1], [], []>} : vector<128x5xf32>, vector<5x128xf32>, vector<128x128xf32> -> vector<128x128xf32>
    %21 = arith.addf %16, %20 : vector<128x128xf32>
    %22 = vector.extract_strided_slice %2 {offsets = [32, 0], sizes = [128, 5], strides = [1, 1]} : vector<160x5xf32> to vector<128x5xf32>
    %c0_19 = arith.constant 0 : index
    %c4 = arith.constant 4 : index
    %c0_20 = arith.constant 0 : index
    %c0_21 = arith.constant 0 : index
    %23 = vector.load %arg3[%c0_19, %c4, %c0_20, %c0_21] : memref<2x5x5x128xf32, #tpu.memory_space<vmem>>, vector<1x1x5x128xf32>
    %24 = vector.shape_cast %23 : vector<1x1x5x128xf32> to vector<5x128xf32>
    %cst_22 = arith.constant dense<0.000000e+00> : vector<128x128xf32>
    %25 = tpu.matmul %22, %24, %cst_22 {dimension_numbers = #tpu.dot_dimension_numbers<[1], [0], [0], [1], [0, 0, 1, 1], [], []>} : vector<128x5xf32>, vector<5x128xf32>, vector<128x128xf32> -> vector<128x128xf32>
    %26 = arith.addf %21, %25 : vector<128x128xf32>
    %c0_23 = arith.constant 0 : index
    %c0_24 = arith.constant 0 : index
    %c0_25 = arith.constant 0 : index
    %27 = vector.load %arg4[%c0_23, %c0_24, %c0_25] : memref<2x1x128xf32, #tpu.memory_space<vmem>>, vector<1x1x128xf32>
    %28 = vector.shape_cast %27 : vector<1x1x128xf32> to vector<1x128xf32>
    %29 = vector.broadcast %28 : vector<1x128xf32> to vector<128x128xf32>
    %30 = arith.addf %26, %29 : vector<128x128xf32>
    %cst_26 = arith.constant 0.000000e+00 : f32
    %31 = vector.broadcast %cst_26 : f32 to vector<128x128xf32>
    %32 = arith.maximumf %30, %31 : vector<128x128xf32>
    %cst_27 = arith.constant 0.000000e+00 : f32
    %33 = vector.broadcast %cst_27 : f32 to vector<8x128xf32>
    %34 = tpu.concatenate %33, %32, %33 in 0 : vector<8x128xf32>, vector<128x128xf32>, vector<8x128xf32> -> vector<144x128xf32>
    %35 = vector.extract_strided_slice %34 {offsets = [0, 0], sizes = [128, 128], strides = [1, 1]} : vector<144x128xf32> to vector<128x128xf32>
    %c0_28 = arith.constant 0 : index
    %c0_29 = arith.constant 0 : index
    %c0_30 = arith.constant 0 : index
    %c0_31 = arith.constant 0 : index
    %36 = vector.load %arg5[%c0_28, %c0_29, %c0_30, %c0_31] : memref<2x3x128x256xf32, #tpu.memory_space<vmem>>, vector<1x1x128x256xf32>
    %37 = vector.shape_cast %36 : vector<1x1x128x256xf32> to vector<128x256xf32>
    %cst_32 = arith.constant dense<0.000000e+00> : vector<128x256xf32>
    %38 = tpu.matmul %35, %37, %cst_32 {dimension_numbers = #tpu.dot_dimension_numbers<[1], [0], [0], [1], [0, 0, 1, 1], [], []>} : vector<128x128xf32>, vector<128x256xf32>, vector<128x256xf32> -> vector<128x256xf32>
    %39 = vector.extract_strided_slice %34 {offsets = [8, 0], sizes = [128, 128], strides = [1, 1]} : vector<144x128xf32> to vector<128x128xf32>
    %c0_33 = arith.constant 0 : index
    %c1_34 = arith.constant 1 : index
    %c0_35 = arith.constant 0 : index
    %c0_36 = arith.constant 0 : index
    %40 = vector.load %arg5[%c0_33, %c1_34, %c0_35, %c0_36] : memref<2x3x128x256xf32, #tpu.memory_space<vmem>>, vector<1x1x128x256xf32>
    %41 = vector.shape_cast %40 : vector<1x1x128x256xf32> to vector<128x256xf32>
    %cst_37 = arith.constant dense<0.000000e+00> : vector<128x256xf32>
    %42 = tpu.matmul %39, %41, %cst_37 {dimension_numbers = #tpu.dot_dimension_numbers<[1], [0], [0], [1], [0, 0, 1, 1], [], []>} : vector<128x128xf32>, vector<128x256xf32>, vector<128x256xf32> -> vector<128x256xf32>
    %43 = arith.addf %38, %42 : vector<128x256xf32>
    %44 = vector.extract_strided_slice %34 {offsets = [16, 0], sizes = [128, 128], strides = [1, 1]} : vector<144x128xf32> to vector<128x128xf32>
    %c0_38 = arith.constant 0 : index
    %c2_39 = arith.constant 2 : index
    %c0_40 = arith.constant 0 : index
    %c0_41 = arith.constant 0 : index
    %45 = vector.load %arg5[%c0_38, %c2_39, %c0_40, %c0_41] : memref<2x3x128x256xf32, #tpu.memory_space<vmem>>, vector<1x1x128x256xf32>
    %46 = vector.shape_cast %45 : vector<1x1x128x256xf32> to vector<128x256xf32>
    %cst_42 = arith.constant dense<0.000000e+00> : vector<128x256xf32>
    %47 = tpu.matmul %44, %46, %cst_42 {dimension_numbers = #tpu.dot_dimension_numbers<[1], [0], [0], [1], [0, 0, 1, 1], [], []>} : vector<128x128xf32>, vector<128x256xf32>, vector<128x256xf32> -> vector<128x256xf32>
    %48 = arith.addf %43, %47 : vector<128x256xf32>
    %c0_43 = arith.constant 0 : index
    %c0_44 = arith.constant 0 : index
    %c0_45 = arith.constant 0 : index
    %49 = vector.load %arg6[%c0_43, %c0_44, %c0_45] : memref<2x1x256xf32, #tpu.memory_space<vmem>>, vector<1x1x256xf32>
    %50 = vector.shape_cast %49 : vector<1x1x256xf32> to vector<1x256xf32>
    %51 = vector.broadcast %50 : vector<1x256xf32> to vector<128x256xf32>
    %52 = arith.addf %48, %51 : vector<128x256xf32>
    %cst_46 = arith.constant 0.000000e+00 : f32
    %53 = vector.broadcast %cst_46 : f32 to vector<128x256xf32>
    %54 = arith.maximumf %52, %53 : vector<128x256xf32>
    %55 = vector.extract_strided_slice %54 {offsets = [0, 0], sizes = [8, 256], strides = [1, 1]} : vector<128x256xf32> to vector<8x256xf32>
    %c0_47 = arith.constant 0 : index
    %c0_48 = arith.constant 0 : index
    %c0_49 = arith.constant 0 : index
    %c0_50 = arith.constant 0 : index
    %56 = vector.load %arg7[%c0_47, %c0_48, %c0_49, %c0_50] : memref<2x16x256x128xf32, #tpu.memory_space<vmem>>, vector<1x1x256x128xf32>
    %57 = vector.shape_cast %56 : vector<1x1x256x128xf32> to vector<256x128xf32>
    %cst_51 = arith.constant dense<0.000000e+00> : vector<8x128xf32>
    %58 = tpu.matmul %55, %57, %cst_51 {dimension_numbers = #tpu.dot_dimension_numbers<[1], [0], [0], [1], [0, 0, 1, 1], [], []>} : vector<8x256xf32>, vector<256x128xf32>, vector<8x128xf32> -> vector<8x128xf32>
    %59 = vector.extract_strided_slice %54 {offsets = [8, 0], sizes = [8, 256], strides = [1, 1]} : vector<128x256xf32> to vector<8x256xf32>
    %c0_52 = arith.constant 0 : index
    %c1_53 = arith.constant 1 : index
    %c0_54 = arith.constant 0 : index
    %c0_55 = arith.constant 0 : index
    %60 = vector.load %arg7[%c0_52, %c1_53, %c0_54, %c0_55] : memref<2x16x256x128xf32, #tpu.memory_space<vmem>>, vector<1x1x256x128xf32>
    %61 = vector.shape_cast %60 : vector<1x1x256x128xf32> to vector<256x128xf32>
    %cst_56 = arith.constant dense<0.000000e+00> : vector<8x128xf32>
    %62 = tpu.matmul %59, %61, %cst_56 {dimension_numbers = #tpu.dot_dimension_numbers<[1], [0], [0], [1], [0, 0, 1, 1], [], []>} : vector<8x256xf32>, vector<256x128xf32>, vector<8x128xf32> -> vector<8x128xf32>
    %63 = arith.addf %58, %62 : vector<8x128xf32>
    %64 = vector.extract_strided_slice %54 {offsets = [16, 0], sizes = [8, 256], strides = [1, 1]} : vector<128x256xf32> to vector<8x256xf32>
    %c0_57 = arith.constant 0 : index
    %c2_58 = arith.constant 2 : index
    %c0_59 = arith.constant 0 : index
    %c0_60 = arith.constant 0 : index
    %65 = vector.load %arg7[%c0_57, %c2_58, %c0_59, %c0_60] : memref<2x16x256x128xf32, #tpu.memory_space<vmem>>, vector<1x1x256x128xf32>
    %66 = vector.shape_cast %65 : vector<1x1x256x128xf32> to vector<256x128xf32>
    %cst_61 = arith.constant dense<0.000000e+00> : vector<8x128xf32>
    %67 = tpu.matmul %64, %66, %cst_61 {dimension_numbers = #tpu.dot_dimension_numbers<[1], [0], [0], [1], [0, 0, 1, 1], [], []>} : vector<8x256xf32>, vector<256x128xf32>, vector<8x128xf32> -> vector<8x128xf32>
    %68 = arith.addf %63, %67 : vector<8x128xf32>
    %69 = vector.extract_strided_slice %54 {offsets = [24, 0], sizes = [8, 256], strides = [1, 1]} : vector<128x256xf32> to vector<8x256xf32>
    %c0_62 = arith.constant 0 : index
    %c3_63 = arith.constant 3 : index
    %c0_64 = arith.constant 0 : index
    %c0_65 = arith.constant 0 : index
    %70 = vector.load %arg7[%c0_62, %c3_63, %c0_64, %c0_65] : memref<2x16x256x128xf32, #tpu.memory_space<vmem>>, vector<1x1x256x128xf32>
    %71 = vector.shape_cast %70 : vector<1x1x256x128xf32> to vector<256x128xf32>
    %cst_66 = arith.constant dense<0.000000e+00> : vector<8x128xf32>
    %72 = tpu.matmul %69, %71, %cst_66 {dimension_numbers = #tpu.dot_dimension_numbers<[1], [0], [0], [1], [0, 0, 1, 1], [], []>} : vector<8x256xf32>, vector<256x128xf32>, vector<8x128xf32> -> vector<8x128xf32>
    %73 = arith.addf %68, %72 : vector<8x128xf32>
    %74 = vector.extract_strided_slice %54 {offsets = [32, 0], sizes = [8, 256], strides = [1, 1]} : vector<128x256xf32> to vector<8x256xf32>
    %c0_67 = arith.constant 0 : index
    %c4_68 = arith.constant 4 : index
    %c0_69 = arith.constant 0 : index
    %c0_70 = arith.constant 0 : index
    %75 = vector.load %arg7[%c0_67, %c4_68, %c0_69, %c0_70] : memref<2x16x256x128xf32, #tpu.memory_space<vmem>>, vector<1x1x256x128xf32>
    %76 = vector.shape_cast %75 : vector<1x1x256x128xf32> to vector<256x128xf32>
    %cst_71 = arith.constant dense<0.000000e+00> : vector<8x128xf32>
    %77 = tpu.matmul %74, %76, %cst_71 {dimension_numbers = #tpu.dot_dimension_numbers<[1], [0], [0], [1], [0, 0, 1, 1], [], []>} : vector<8x256xf32>, vector<256x128xf32>, vector<8x128xf32> -> vector<8x128xf32>
    %78 = arith.addf %73, %77 : vector<8x128xf32>
    %79 = vector.extract_strided_slice %54 {offsets = [40, 0], sizes = [8, 256], strides = [1, 1]} : vector<128x256xf32> to vector<8x256xf32>
    %c0_72 = arith.constant 0 : index
    %c5 = arith.constant 5 : index
    %c0_73 = arith.constant 0 : index
    %c0_74 = arith.constant 0 : index
    %80 = vector.load %arg7[%c0_72, %c5, %c0_73, %c0_74] : memref<2x16x256x128xf32, #tpu.memory_space<vmem>>, vector<1x1x256x128xf32>
    %81 = vector.shape_cast %80 : vector<1x1x256x128xf32> to vector<256x128xf32>
    %cst_75 = arith.constant dense<0.000000e+00> : vector<8x128xf32>
    %82 = tpu.matmul %79, %81, %cst_75 {dimension_numbers = #tpu.dot_dimension_numbers<[1], [0], [0], [1], [0, 0, 1, 1], [], []>} : vector<8x256xf32>, vector<256x128xf32>, vector<8x128xf32> -> vector<8x128xf32>
    %83 = arith.addf %78, %82 : vector<8x128xf32>
    %84 = vector.extract_strided_slice %54 {offsets = [48, 0], sizes = [8, 256], strides = [1, 1]} : vector<128x256xf32> to vector<8x256xf32>
    %c0_76 = arith.constant 0 : index
    %c6 = arith.constant 6 : index
    %c0_77 = arith.constant 0 : index
    %c0_78 = arith.constant 0 : index
    %85 = vector.load %arg7[%c0_76, %c6, %c0_77, %c0_78] : memref<2x16x256x128xf32, #tpu.memory_space<vmem>>, vector<1x1x256x128xf32>
    %86 = vector.shape_cast %85 : vector<1x1x256x128xf32> to vector<256x128xf32>
    %cst_79 = arith.constant dense<0.000000e+00> : vector<8x128xf32>
    %87 = tpu.matmul %84, %86, %cst_79 {dimension_numbers = #tpu.dot_dimension_numbers<[1], [0], [0], [1], [0, 0, 1, 1], [], []>} : vector<8x256xf32>, vector<256x128xf32>, vector<8x128xf32> -> vector<8x128xf32>
    %88 = arith.addf %83, %87 : vector<8x128xf32>
    %89 = vector.extract_strided_slice %54 {offsets = [56, 0], sizes = [8, 256], strides = [1, 1]} : vector<128x256xf32> to vector<8x256xf32>
    %c0_80 = arith.constant 0 : index
    %c7 = arith.constant 7 : index
    %c0_81 = arith.constant 0 : index
    %c0_82 = arith.constant 0 : index
    %90 = vector.load %arg7[%c0_80, %c7, %c0_81, %c0_82] : memref<2x16x256x128xf32, #tpu.memory_space<vmem>>, vector<1x1x256x128xf32>
    %91 = vector.shape_cast %90 : vector<1x1x256x128xf32> to vector<256x128xf32>
    %cst_83 = arith.constant dense<0.000000e+00> : vector<8x128xf32>
    %92 = tpu.matmul %89, %91, %cst_83 {dimension_numbers = #tpu.dot_dimension_numbers<[1], [0], [0], [1], [0, 0, 1, 1], [], []>} : vector<8x256xf32>, vector<256x128xf32>, vector<8x128xf32> -> vector<8x128xf32>
    %93 = arith.addf %88, %92 : vector<8x128xf32>
    %94 = vector.extract_strided_slice %54 {offsets = [64, 0], sizes = [8, 256], strides = [1, 1]} : vector<128x256xf32> to vector<8x256xf32>
    %c0_84 = arith.constant 0 : index
    %c8 = arith.constant 8 : index
    %c0_85 = arith.constant 0 : index
    %c0_86 = arith.constant 0 : index
    %95 = vector.load %arg7[%c0_84, %c8, %c0_85, %c0_86] : memref<2x16x256x128xf32, #tpu.memory_space<vmem>>, vector<1x1x256x128xf32>
    %96 = vector.shape_cast %95 : vector<1x1x256x128xf32> to vector<256x128xf32>
    %cst_87 = arith.constant dense<0.000000e+00> : vector<8x128xf32>
    %97 = tpu.matmul %94, %96, %cst_87 {dimension_numbers = #tpu.dot_dimension_numbers<[1], [0], [0], [1], [0, 0, 1, 1], [], []>} : vector<8x256xf32>, vector<256x128xf32>, vector<8x128xf32> -> vector<8x128xf32>
    %98 = arith.addf %93, %97 : vector<8x128xf32>
    %99 = vector.extract_strided_slice %54 {offsets = [72, 0], sizes = [8, 256], strides = [1, 1]} : vector<128x256xf32> to vector<8x256xf32>
    %c0_88 = arith.constant 0 : index
    %c9 = arith.constant 9 : index
    %c0_89 = arith.constant 0 : index
    %c0_90 = arith.constant 0 : index
    %100 = vector.load %arg7[%c0_88, %c9, %c0_89, %c0_90] : memref<2x16x256x128xf32, #tpu.memory_space<vmem>>, vector<1x1x256x128xf32>
    %101 = vector.shape_cast %100 : vector<1x1x256x128xf32> to vector<256x128xf32>
    %cst_91 = arith.constant dense<0.000000e+00> : vector<8x128xf32>
    %102 = tpu.matmul %99, %101, %cst_91 {dimension_numbers = #tpu.dot_dimension_numbers<[1], [0], [0], [1], [0, 0, 1, 1], [], []>} : vector<8x256xf32>, vector<256x128xf32>, vector<8x128xf32> -> vector<8x128xf32>
    %103 = arith.addf %98, %102 : vector<8x128xf32>
    %104 = vector.extract_strided_slice %54 {offsets = [80, 0], sizes = [8, 256], strides = [1, 1]} : vector<128x256xf32> to vector<8x256xf32>
    %c0_92 = arith.constant 0 : index
    %c10 = arith.constant 10 : index
    %c0_93 = arith.constant 0 : index
    %c0_94 = arith.constant 0 : index
    %105 = vector.load %arg7[%c0_92, %c10, %c0_93, %c0_94] : memref<2x16x256x128xf32, #tpu.memory_space<vmem>>, vector<1x1x256x128xf32>
    %106 = vector.shape_cast %105 : vector<1x1x256x128xf32> to vector<256x128xf32>
    %cst_95 = arith.constant dense<0.000000e+00> : vector<8x128xf32>
    %107 = tpu.matmul %104, %106, %cst_95 {dimension_numbers = #tpu.dot_dimension_numbers<[1], [0], [0], [1], [0, 0, 1, 1], [], []>} : vector<8x256xf32>, vector<256x128xf32>, vector<8x128xf32> -> vector<8x128xf32>
    %108 = arith.addf %103, %107 : vector<8x128xf32>
    %109 = vector.extract_strided_slice %54 {offsets = [88, 0], sizes = [8, 256], strides = [1, 1]} : vector<128x256xf32> to vector<8x256xf32>
    %c0_96 = arith.constant 0 : index
    %c11 = arith.constant 11 : index
    %c0_97 = arith.constant 0 : index
    %c0_98 = arith.constant 0 : index
    %110 = vector.load %arg7[%c0_96, %c11, %c0_97, %c0_98] : memref<2x16x256x128xf32, #tpu.memory_space<vmem>>, vector<1x1x256x128xf32>
    %111 = vector.shape_cast %110 : vector<1x1x256x128xf32> to vector<256x128xf32>
    %cst_99 = arith.constant dense<0.000000e+00> : vector<8x128xf32>
    %112 = tpu.matmul %109, %111, %cst_99 {dimension_numbers = #tpu.dot_dimension_numbers<[1], [0], [0], [1], [0, 0, 1, 1], [], []>} : vector<8x256xf32>, vector<256x128xf32>, vector<8x128xf32> -> vector<8x128xf32>
    %113 = arith.addf %108, %112 : vector<8x128xf32>
    %114 = vector.extract_strided_slice %54 {offsets = [96, 0], sizes = [8, 256], strides = [1, 1]} : vector<128x256xf32> to vector<8x256xf32>
    %c0_100 = arith.constant 0 : index
    %c12 = arith.constant 12 : index
    %c0_101 = arith.constant 0 : index
    %c0_102 = arith.constant 0 : index
    %115 = vector.load %arg7[%c0_100, %c12, %c0_101, %c0_102] : memref<2x16x256x128xf32, #tpu.memory_space<vmem>>, vector<1x1x256x128xf32>
    %116 = vector.shape_cast %115 : vector<1x1x256x128xf32> to vector<256x128xf32>
    %cst_103 = arith.constant dense<0.000000e+00> : vector<8x128xf32>
    %117 = tpu.matmul %114, %116, %cst_103 {dimension_numbers = #tpu.dot_dimension_numbers<[1], [0], [0], [1], [0, 0, 1, 1], [], []>} : vector<8x256xf32>, vector<256x128xf32>, vector<8x128xf32> -> vector<8x128xf32>
    %118 = arith.addf %113, %117 : vector<8x128xf32>
    %119 = vector.extract_strided_slice %54 {offsets = [104, 0], sizes = [8, 256], strides = [1, 1]} : vector<128x256xf32> to vector<8x256xf32>
    %c0_104 = arith.constant 0 : index
    %c13 = arith.constant 13 : index
    %c0_105 = arith.constant 0 : index
    %c0_106 = arith.constant 0 : index
    %120 = vector.load %arg7[%c0_104, %c13, %c0_105, %c0_106] : memref<2x16x256x128xf32, #tpu.memory_space<vmem>>, vector<1x1x256x128xf32>
    %121 = vector.shape_cast %120 : vector<1x1x256x128xf32> to vector<256x128xf32>
    %cst_107 = arith.constant dense<0.000000e+00> : vector<8x128xf32>
    %122 = tpu.matmul %119, %121, %cst_107 {dimension_numbers = #tpu.dot_dimension_numbers<[1], [0], [0], [1], [0, 0, 1, 1], [], []>} : vector<8x256xf32>, vector<256x128xf32>, vector<8x128xf32> -> vector<8x128xf32>
    %123 = arith.addf %118, %122 : vector<8x128xf32>
    %124 = vector.extract_strided_slice %54 {offsets = [112, 0], sizes = [8, 256], strides = [1, 1]} : vector<128x256xf32> to vector<8x256xf32>
    %c0_108 = arith.constant 0 : index
    %c14 = arith.constant 14 : index
    %c0_109 = arith.constant 0 : index
    %c0_110 = arith.constant 0 : index
    %125 = vector.load %arg7[%c0_108, %c14, %c0_109, %c0_110] : memref<2x16x256x128xf32, #tpu.memory_space<vmem>>, vector<1x1x256x128xf32>
    %126 = vector.shape_cast %125 : vector<1x1x256x128xf32> to vector<256x128xf32>
    %cst_111 = arith.constant dense<0.000000e+00> : vector<8x128xf32>
    %127 = tpu.matmul %124, %126, %cst_111 {dimension_numbers = #tpu.dot_dimension_numbers<[1], [0], [0], [1], [0, 0, 1, 1], [], []>} : vector<8x256xf32>, vector<256x128xf32>, vector<8x128xf32> -> vector<8x128xf32>
    %128 = arith.addf %123, %127 : vector<8x128xf32>
    %129 = vector.extract_strided_slice %54 {offsets = [120, 0], sizes = [8, 256], strides = [1, 1]} : vector<128x256xf32> to vector<8x256xf32>
    %c0_112 = arith.constant 0 : index
    %c15 = arith.constant 15 : index
    %c0_113 = arith.constant 0 : index
    %c0_114 = arith.constant 0 : index
    %130 = vector.load %arg7[%c0_112, %c15, %c0_113, %c0_114] : memref<2x16x256x128xf32, #tpu.memory_space<vmem>>, vector<1x1x256x128xf32>
    %131 = vector.shape_cast %130 : vector<1x1x256x128xf32> to vector<256x128xf32>
    %cst_115 = arith.constant dense<0.000000e+00> : vector<8x128xf32>
    %132 = tpu.matmul %129, %131, %cst_115 {dimension_numbers = #tpu.dot_dimension_numbers<[1], [0], [0], [1], [0, 0, 1, 1], [], []>} : vector<8x256xf32>, vector<256x128xf32>, vector<8x128xf32> -> vector<8x128xf32>
    %133 = arith.addf %128, %132 : vector<8x128xf32>
    %c1_116 = arith.constant 1 : index
    %c0_117 = arith.constant 0 : index
    %c0_118 = arith.constant 0 : index
    %c0_119 = arith.constant 0 : index
    %134 = vector.load %arg1[%c1_116, %c0_117, %c0_118, %c0_119] : memref<2x20x8x5xf32, #tpu.memory_space<vmem>>, vector<1x20x8x5xf32>
    %135 = vector.shape_cast %134 : vector<1x20x8x5xf32> to vector<20x8x5xf32>
    %136 = vector.shape_cast %135 : vector<20x8x5xf32> to vector<160x5xf32>
    %137 = vector.extract_strided_slice %136 {offsets = [0, 0], sizes = [128, 5], strides = [1, 1]} : vector<160x5xf32> to vector<128x5xf32>
    %c1_120 = arith.constant 1 : index
    %c0_121 = arith.constant 0 : index
    %c0_122 = arith.constant 0 : index
    %c0_123 = arith.constant 0 : index
    %138 = vector.load %arg3[%c1_120, %c0_121, %c0_122, %c0_123] : memref<2x5x5x128xf32, #tpu.memory_space<vmem>>, vector<1x1x5x128xf32>
    %139 = vector.shape_cast %138 : vector<1x1x5x128xf32> to vector<5x128xf32>
    %cst_124 = arith.constant dense<0.000000e+00> : vector<128x128xf32>
    %140 = tpu.matmul %137, %139, %cst_124 {dimension_numbers = #tpu.dot_dimension_numbers<[1], [0], [0], [1], [0, 0, 1, 1], [], []>} : vector<128x5xf32>, vector<5x128xf32>, vector<128x128xf32> -> vector<128x128xf32>
    %141 = vector.extract_strided_slice %136 {offsets = [8, 0], sizes = [128, 5], strides = [1, 1]} : vector<160x5xf32> to vector<128x5xf32>
    %c1_125 = arith.constant 1 : index
    %c1_126 = arith.constant 1 : index
    %c0_127 = arith.constant 0 : index
    %c0_128 = arith.constant 0 : index
    %142 = vector.load %arg3[%c1_125, %c1_126, %c0_127, %c0_128] : memref<2x5x5x128xf32, #tpu.memory_space<vmem>>, vector<1x1x5x128xf32>
    %143 = vector.shape_cast %142 : vector<1x1x5x128xf32> to vector<5x128xf32>
    %cst_129 = arith.constant dense<0.000000e+00> : vector<128x128xf32>
    %144 = tpu.matmul %141, %143, %cst_129 {dimension_numbers = #tpu.dot_dimension_numbers<[1], [0], [0], [1], [0, 0, 1, 1], [], []>} : vector<128x5xf32>, vector<5x128xf32>, vector<128x128xf32> -> vector<128x128xf32>
    %145 = arith.addf %140, %144 : vector<128x128xf32>
    %146 = vector.extract_strided_slice %136 {offsets = [16, 0], sizes = [128, 5], strides = [1, 1]} : vector<160x5xf32> to vector<128x5xf32>
    %c1_130 = arith.constant 1 : index
    %c2_131 = arith.constant 2 : index
    %c0_132 = arith.constant 0 : index
    %c0_133 = arith.constant 0 : index
    %147 = vector.load %arg3[%c1_130, %c2_131, %c0_132, %c0_133] : memref<2x5x5x128xf32, #tpu.memory_space<vmem>>, vector<1x1x5x128xf32>
    %148 = vector.shape_cast %147 : vector<1x1x5x128xf32> to vector<5x128xf32>
    %cst_134 = arith.constant dense<0.000000e+00> : vector<128x128xf32>
    %149 = tpu.matmul %146, %148, %cst_134 {dimension_numbers = #tpu.dot_dimension_numbers<[1], [0], [0], [1], [0, 0, 1, 1], [], []>} : vector<128x5xf32>, vector<5x128xf32>, vector<128x128xf32> -> vector<128x128xf32>
    %150 = arith.addf %145, %149 : vector<128x128xf32>
    %151 = vector.extract_strided_slice %136 {offsets = [24, 0], sizes = [128, 5], strides = [1, 1]} : vector<160x5xf32> to vector<128x5xf32>
    %c1_135 = arith.constant 1 : index
    %c3_136 = arith.constant 3 : index
    %c0_137 = arith.constant 0 : index
    %c0_138 = arith.constant 0 : index
    %152 = vector.load %arg3[%c1_135, %c3_136, %c0_137, %c0_138] : memref<2x5x5x128xf32, #tpu.memory_space<vmem>>, vector<1x1x5x128xf32>
    %153 = vector.shape_cast %152 : vector<1x1x5x128xf32> to vector<5x128xf32>
    %cst_139 = arith.constant dense<0.000000e+00> : vector<128x128xf32>
    %154 = tpu.matmul %151, %153, %cst_139 {dimension_numbers = #tpu.dot_dimension_numbers<[1], [0], [0], [1], [0, 0, 1, 1], [], []>} : vector<128x5xf32>, vector<5x128xf32>, vector<128x128xf32> -> vector<128x128xf32>
    %155 = arith.addf %150, %154 : vector<128x128xf32>
    %156 = vector.extract_strided_slice %136 {offsets = [32, 0], sizes = [128, 5], strides = [1, 1]} : vector<160x5xf32> to vector<128x5xf32>
    %c1_140 = arith.constant 1 : index
    %c4_141 = arith.constant 4 : index
    %c0_142 = arith.constant 0 : index
    %c0_143 = arith.constant 0 : index
    %157 = vector.load %arg3[%c1_140, %c4_141, %c0_142, %c0_143] : memref<2x5x5x128xf32, #tpu.memory_space<vmem>>, vector<1x1x5x128xf32>
    %158 = vector.shape_cast %157 : vector<1x1x5x128xf32> to vector<5x128xf32>
    %cst_144 = arith.constant dense<0.000000e+00> : vector<128x128xf32>
    %159 = tpu.matmul %156, %158, %cst_144 {dimension_numbers = #tpu.dot_dimension_numbers<[1], [0], [0], [1], [0, 0, 1, 1], [], []>} : vector<128x5xf32>, vector<5x128xf32>, vector<128x128xf32> -> vector<128x128xf32>
    %160 = arith.addf %155, %159 : vector<128x128xf32>
    %c1_145 = arith.constant 1 : index
    %c0_146 = arith.constant 0 : index
    %c0_147 = arith.constant 0 : index
    %161 = vector.load %arg4[%c1_145, %c0_146, %c0_147] : memref<2x1x128xf32, #tpu.memory_space<vmem>>, vector<1x1x128xf32>
    %162 = vector.shape_cast %161 : vector<1x1x128xf32> to vector<1x128xf32>
    %163 = vector.broadcast %162 : vector<1x128xf32> to vector<128x128xf32>
    %164 = arith.addf %160, %163 : vector<128x128xf32>
    %cst_148 = arith.constant 0.000000e+00 : f32
    %165 = vector.broadcast %cst_148 : f32 to vector<128x128xf32>
    %166 = arith.maximumf %164, %165 : vector<128x128xf32>
    %cst_149 = arith.constant 0.000000e+00 : f32
    %167 = vector.broadcast %cst_149 : f32 to vector<8x128xf32>
    %168 = tpu.concatenate %167, %166, %167 in 0 : vector<8x128xf32>, vector<128x128xf32>, vector<8x128xf32> -> vector<144x128xf32>
    %169 = vector.extract_strided_slice %168 {offsets = [0, 0], sizes = [128, 128], strides = [1, 1]} : vector<144x128xf32> to vector<128x128xf32>
    %c1_150 = arith.constant 1 : index
    %c0_151 = arith.constant 0 : index
    %c0_152 = arith.constant 0 : index
    %c0_153 = arith.constant 0 : index
    %170 = vector.load %arg5[%c1_150, %c0_151, %c0_152, %c0_153] : memref<2x3x128x256xf32, #tpu.memory_space<vmem>>, vector<1x1x128x256xf32>
    %171 = vector.shape_cast %170 : vector<1x1x128x256xf32> to vector<128x256xf32>
    %cst_154 = arith.constant dense<0.000000e+00> : vector<128x256xf32>
    %172 = tpu.matmul %169, %171, %cst_154 {dimension_numbers = #tpu.dot_dimension_numbers<[1], [0], [0], [1], [0, 0, 1, 1], [], []>} : vector<128x128xf32>, vector<128x256xf32>, vector<128x256xf32> -> vector<128x256xf32>
    %173 = vector.extract_strided_slice %168 {offsets = [8, 0], sizes = [128, 128], strides = [1, 1]} : vector<144x128xf32> to vector<128x128xf32>
    %c1_155 = arith.constant 1 : index
    %c1_156 = arith.constant 1 : index
    %c0_157 = arith.constant 0 : index
    %c0_158 = arith.constant 0 : index
    %174 = vector.load %arg5[%c1_155, %c1_156, %c0_157, %c0_158] : memref<2x3x128x256xf32, #tpu.memory_space<vmem>>, vector<1x1x128x256xf32>
    %175 = vector.shape_cast %174 : vector<1x1x128x256xf32> to vector<128x256xf32>
    %cst_159 = arith.constant dense<0.000000e+00> : vector<128x256xf32>
    %176 = tpu.matmul %173, %175, %cst_159 {dimension_numbers = #tpu.dot_dimension_numbers<[1], [0], [0], [1], [0, 0, 1, 1], [], []>} : vector<128x128xf32>, vector<128x256xf32>, vector<128x256xf32> -> vector<128x256xf32>
    %177 = arith.addf %172, %176 : vector<128x256xf32>
    %178 = vector.extract_strided_slice %168 {offsets = [16, 0], sizes = [128, 128], strides = [1, 1]} : vector<144x128xf32> to vector<128x128xf32>
    %c1_160 = arith.constant 1 : index
    %c2_161 = arith.constant 2 : index
    %c0_162 = arith.constant 0 : index
    %c0_163 = arith.constant 0 : index
    %179 = vector.load %arg5[%c1_160, %c2_161, %c0_162, %c0_163] : memref<2x3x128x256xf32, #tpu.memory_space<vmem>>, vector<1x1x128x256xf32>
    %180 = vector.shape_cast %179 : vector<1x1x128x256xf32> to vector<128x256xf32>
    %cst_164 = arith.constant dense<0.000000e+00> : vector<128x256xf32>
    %181 = tpu.matmul %178, %180, %cst_164 {dimension_numbers = #tpu.dot_dimension_numbers<[1], [0], [0], [1], [0, 0, 1, 1], [], []>} : vector<128x128xf32>, vector<128x256xf32>, vector<128x256xf32> -> vector<128x256xf32>
    %182 = arith.addf %177, %181 : vector<128x256xf32>
    %c1_165 = arith.constant 1 : index
    %c0_166 = arith.constant 0 : index
    %c0_167 = arith.constant 0 : index
    %183 = vector.load %arg6[%c1_165, %c0_166, %c0_167] : memref<2x1x256xf32, #tpu.memory_space<vmem>>, vector<1x1x256xf32>
    %184 = vector.shape_cast %183 : vector<1x1x256xf32> to vector<1x256xf32>
    %185 = vector.broadcast %184 : vector<1x256xf32> to vector<128x256xf32>
    %186 = arith.addf %182, %185 : vector<128x256xf32>
    %cst_168 = arith.constant 0.000000e+00 : f32
    %187 = vector.broadcast %cst_168 : f32 to vector<128x256xf32>
    %188 = arith.maximumf %186, %187 : vector<128x256xf32>
    %189 = vector.extract_strided_slice %188 {offsets = [0, 0], sizes = [8, 256], strides = [1, 1]} : vector<128x256xf32> to vector<8x256xf32>
    %c1_169 = arith.constant 1 : index
    %c0_170 = arith.constant 0 : index
    %c0_171 = arith.constant 0 : index
    %c0_172 = arith.constant 0 : index
    %190 = vector.load %arg7[%c1_169, %c0_170, %c0_171, %c0_172] : memref<2x16x256x128xf32, #tpu.memory_space<vmem>>, vector<1x1x256x128xf32>
    %191 = vector.shape_cast %190 : vector<1x1x256x128xf32> to vector<256x128xf32>
    %cst_173 = arith.constant dense<0.000000e+00> : vector<8x128xf32>
    %192 = tpu.matmul %189, %191, %cst_173 {dimension_numbers = #tpu.dot_dimension_numbers<[1], [0], [0], [1], [0, 0, 1, 1], [], []>} : vector<8x256xf32>, vector<256x128xf32>, vector<8x128xf32> -> vector<8x128xf32>
    %193 = vector.extract_strided_slice %188 {offsets = [8, 0], sizes = [8, 256], strides = [1, 1]} : vector<128x256xf32> to vector<8x256xf32>
    %c1_174 = arith.constant 1 : index
    %c1_175 = arith.constant 1 : index
    %c0_176 = arith.constant 0 : index
    %c0_177 = arith.constant 0 : index
    %194 = vector.load %arg7[%c1_174, %c1_175, %c0_176, %c0_177] : memref<2x16x256x128xf32, #tpu.memory_space<vmem>>, vector<1x1x256x128xf32>
    %195 = vector.shape_cast %194 : vector<1x1x256x128xf32> to vector<256x128xf32>
    %cst_178 = arith.constant dense<0.000000e+00> : vector<8x128xf32>
    %196 = tpu.matmul %193, %195, %cst_178 {dimension_numbers = #tpu.dot_dimension_numbers<[1], [0], [0], [1], [0, 0, 1, 1], [], []>} : vector<8x256xf32>, vector<256x128xf32>, vector<8x128xf32> -> vector<8x128xf32>
    %197 = arith.addf %192, %196 : vector<8x128xf32>
    %198 = vector.extract_strided_slice %188 {offsets = [16, 0], sizes = [8, 256], strides = [1, 1]} : vector<128x256xf32> to vector<8x256xf32>
    %c1_179 = arith.constant 1 : index
    %c2_180 = arith.constant 2 : index
    %c0_181 = arith.constant 0 : index
    %c0_182 = arith.constant 0 : index
    %199 = vector.load %arg7[%c1_179, %c2_180, %c0_181, %c0_182] : memref<2x16x256x128xf32, #tpu.memory_space<vmem>>, vector<1x1x256x128xf32>
    %200 = vector.shape_cast %199 : vector<1x1x256x128xf32> to vector<256x128xf32>
    %cst_183 = arith.constant dense<0.000000e+00> : vector<8x128xf32>
    %201 = tpu.matmul %198, %200, %cst_183 {dimension_numbers = #tpu.dot_dimension_numbers<[1], [0], [0], [1], [0, 0, 1, 1], [], []>} : vector<8x256xf32>, vector<256x128xf32>, vector<8x128xf32> -> vector<8x128xf32>
    %202 = arith.addf %197, %201 : vector<8x128xf32>
    %203 = vector.extract_strided_slice %188 {offsets = [24, 0], sizes = [8, 256], strides = [1, 1]} : vector<128x256xf32> to vector<8x256xf32>
    %c1_184 = arith.constant 1 : index
    %c3_185 = arith.constant 3 : index
    %c0_186 = arith.constant 0 : index
    %c0_187 = arith.constant 0 : index
    %204 = vector.load %arg7[%c1_184, %c3_185, %c0_186, %c0_187] : memref<2x16x256x128xf32, #tpu.memory_space<vmem>>, vector<1x1x256x128xf32>
    %205 = vector.shape_cast %204 : vector<1x1x256x128xf32> to vector<256x128xf32>
    %cst_188 = arith.constant dense<0.000000e+00> : vector<8x128xf32>
    %206 = tpu.matmul %203, %205, %cst_188 {dimension_numbers = #tpu.dot_dimension_numbers<[1], [0], [0], [1], [0, 0, 1, 1], [], []>} : vector<8x256xf32>, vector<256x128xf32>, vector<8x128xf32> -> vector<8x128xf32>
    %207 = arith.addf %202, %206 : vector<8x128xf32>
    %208 = vector.extract_strided_slice %188 {offsets = [32, 0], sizes = [8, 256], strides = [1, 1]} : vector<128x256xf32> to vector<8x256xf32>
    %c1_189 = arith.constant 1 : index
    %c4_190 = arith.constant 4 : index
    %c0_191 = arith.constant 0 : index
    %c0_192 = arith.constant 0 : index
    %209 = vector.load %arg7[%c1_189, %c4_190, %c0_191, %c0_192] : memref<2x16x256x128xf32, #tpu.memory_space<vmem>>, vector<1x1x256x128xf32>
    %210 = vector.shape_cast %209 : vector<1x1x256x128xf32> to vector<256x128xf32>
    %cst_193 = arith.constant dense<0.000000e+00> : vector<8x128xf32>
    %211 = tpu.matmul %208, %210, %cst_193 {dimension_numbers = #tpu.dot_dimension_numbers<[1], [0], [0], [1], [0, 0, 1, 1], [], []>} : vector<8x256xf32>, vector<256x128xf32>, vector<8x128xf32> -> vector<8x128xf32>
    %212 = arith.addf %207, %211 : vector<8x128xf32>
    %213 = vector.extract_strided_slice %188 {offsets = [40, 0], sizes = [8, 256], strides = [1, 1]} : vector<128x256xf32> to vector<8x256xf32>
    %c1_194 = arith.constant 1 : index
    %c5_195 = arith.constant 5 : index
    %c0_196 = arith.constant 0 : index
    %c0_197 = arith.constant 0 : index
    %214 = vector.load %arg7[%c1_194, %c5_195, %c0_196, %c0_197] : memref<2x16x256x128xf32, #tpu.memory_space<vmem>>, vector<1x1x256x128xf32>
    %215 = vector.shape_cast %214 : vector<1x1x256x128xf32> to vector<256x128xf32>
    %cst_198 = arith.constant dense<0.000000e+00> : vector<8x128xf32>
    %216 = tpu.matmul %213, %215, %cst_198 {dimension_numbers = #tpu.dot_dimension_numbers<[1], [0], [0], [1], [0, 0, 1, 1], [], []>} : vector<8x256xf32>, vector<256x128xf32>, vector<8x128xf32> -> vector<8x128xf32>
    %217 = arith.addf %212, %216 : vector<8x128xf32>
    %218 = vector.extract_strided_slice %188 {offsets = [48, 0], sizes = [8, 256], strides = [1, 1]} : vector<128x256xf32> to vector<8x256xf32>
    %c1_199 = arith.constant 1 : index
    %c6_200 = arith.constant 6 : index
    %c0_201 = arith.constant 0 : index
    %c0_202 = arith.constant 0 : index
    %219 = vector.load %arg7[%c1_199, %c6_200, %c0_201, %c0_202] : memref<2x16x256x128xf32, #tpu.memory_space<vmem>>, vector<1x1x256x128xf32>
    %220 = vector.shape_cast %219 : vector<1x1x256x128xf32> to vector<256x128xf32>
    %cst_203 = arith.constant dense<0.000000e+00> : vector<8x128xf32>
    %221 = tpu.matmul %218, %220, %cst_203 {dimension_numbers = #tpu.dot_dimension_numbers<[1], [0], [0], [1], [0, 0, 1, 1], [], []>} : vector<8x256xf32>, vector<256x128xf32>, vector<8x128xf32> -> vector<8x128xf32>
    %222 = arith.addf %217, %221 : vector<8x128xf32>
    %223 = vector.extract_strided_slice %188 {offsets = [56, 0], sizes = [8, 256], strides = [1, 1]} : vector<128x256xf32> to vector<8x256xf32>
    %c1_204 = arith.constant 1 : index
    %c7_205 = arith.constant 7 : index
    %c0_206 = arith.constant 0 : index
    %c0_207 = arith.constant 0 : index
    %224 = vector.load %arg7[%c1_204, %c7_205, %c0_206, %c0_207] : memref<2x16x256x128xf32, #tpu.memory_space<vmem>>, vector<1x1x256x128xf32>
    %225 = vector.shape_cast %224 : vector<1x1x256x128xf32> to vector<256x128xf32>
    %cst_208 = arith.constant dense<0.000000e+00> : vector<8x128xf32>
    %226 = tpu.matmul %223, %225, %cst_208 {dimension_numbers = #tpu.dot_dimension_numbers<[1], [0], [0], [1], [0, 0, 1, 1], [], []>} : vector<8x256xf32>, vector<256x128xf32>, vector<8x128xf32> -> vector<8x128xf32>
    %227 = arith.addf %222, %226 : vector<8x128xf32>
    %228 = vector.extract_strided_slice %188 {offsets = [64, 0], sizes = [8, 256], strides = [1, 1]} : vector<128x256xf32> to vector<8x256xf32>
    %c1_209 = arith.constant 1 : index
    %c8_210 = arith.constant 8 : index
    %c0_211 = arith.constant 0 : index
    %c0_212 = arith.constant 0 : index
    %229 = vector.load %arg7[%c1_209, %c8_210, %c0_211, %c0_212] : memref<2x16x256x128xf32, #tpu.memory_space<vmem>>, vector<1x1x256x128xf32>
    %230 = vector.shape_cast %229 : vector<1x1x256x128xf32> to vector<256x128xf32>
    %cst_213 = arith.constant dense<0.000000e+00> : vector<8x128xf32>
    %231 = tpu.matmul %228, %230, %cst_213 {dimension_numbers = #tpu.dot_dimension_numbers<[1], [0], [0], [1], [0, 0, 1, 1], [], []>} : vector<8x256xf32>, vector<256x128xf32>, vector<8x128xf32> -> vector<8x128xf32>
    %232 = arith.addf %227, %231 : vector<8x128xf32>
    %233 = vector.extract_strided_slice %188 {offsets = [72, 0], sizes = [8, 256], strides = [1, 1]} : vector<128x256xf32> to vector<8x256xf32>
    %c1_214 = arith.constant 1 : index
    %c9_215 = arith.constant 9 : index
    %c0_216 = arith.constant 0 : index
    %c0_217 = arith.constant 0 : index
    %234 = vector.load %arg7[%c1_214, %c9_215, %c0_216, %c0_217] : memref<2x16x256x128xf32, #tpu.memory_space<vmem>>, vector<1x1x256x128xf32>
    %235 = vector.shape_cast %234 : vector<1x1x256x128xf32> to vector<256x128xf32>
    %cst_218 = arith.constant dense<0.000000e+00> : vector<8x128xf32>
    %236 = tpu.matmul %233, %235, %cst_218 {dimension_numbers = #tpu.dot_dimension_numbers<[1], [0], [0], [1], [0, 0, 1, 1], [], []>} : vector<8x256xf32>, vector<256x128xf32>, vector<8x128xf32> -> vector<8x128xf32>
    %237 = arith.addf %232, %236 : vector<8x128xf32>
    %238 = vector.extract_strided_slice %188 {offsets = [80, 0], sizes = [8, 256], strides = [1, 1]} : vector<128x256xf32> to vector<8x256xf32>
    %c1_219 = arith.constant 1 : index
    %c10_220 = arith.constant 10 : index
    %c0_221 = arith.constant 0 : index
    %c0_222 = arith.constant 0 : index
    %239 = vector.load %arg7[%c1_219, %c10_220, %c0_221, %c0_222] : memref<2x16x256x128xf32, #tpu.memory_space<vmem>>, vector<1x1x256x128xf32>
    %240 = vector.shape_cast %239 : vector<1x1x256x128xf32> to vector<256x128xf32>
    %cst_223 = arith.constant dense<0.000000e+00> : vector<8x128xf32>
    %241 = tpu.matmul %238, %240, %cst_223 {dimension_numbers = #tpu.dot_dimension_numbers<[1], [0], [0], [1], [0, 0, 1, 1], [], []>} : vector<8x256xf32>, vector<256x128xf32>, vector<8x128xf32> -> vector<8x128xf32>
    %242 = arith.addf %237, %241 : vector<8x128xf32>
    %243 = vector.extract_strided_slice %188 {offsets = [88, 0], sizes = [8, 256], strides = [1, 1]} : vector<128x256xf32> to vector<8x256xf32>
    %c1_224 = arith.constant 1 : index
    %c11_225 = arith.constant 11 : index
    %c0_226 = arith.constant 0 : index
    %c0_227 = arith.constant 0 : index
    %244 = vector.load %arg7[%c1_224, %c11_225, %c0_226, %c0_227] : memref<2x16x256x128xf32, #tpu.memory_space<vmem>>, vector<1x1x256x128xf32>
    %245 = vector.shape_cast %244 : vector<1x1x256x128xf32> to vector<256x128xf32>
    %cst_228 = arith.constant dense<0.000000e+00> : vector<8x128xf32>
    %246 = tpu.matmul %243, %245, %cst_228 {dimension_numbers = #tpu.dot_dimension_numbers<[1], [0], [0], [1], [0, 0, 1, 1], [], []>} : vector<8x256xf32>, vector<256x128xf32>, vector<8x128xf32> -> vector<8x128xf32>
    %247 = arith.addf %242, %246 : vector<8x128xf32>
    %248 = vector.extract_strided_slice %188 {offsets = [96, 0], sizes = [8, 256], strides = [1, 1]} : vector<128x256xf32> to vector<8x256xf32>
    %c1_229 = arith.constant 1 : index
    %c12_230 = arith.constant 12 : index
    %c0_231 = arith.constant 0 : index
    %c0_232 = arith.constant 0 : index
    %249 = vector.load %arg7[%c1_229, %c12_230, %c0_231, %c0_232] : memref<2x16x256x128xf32, #tpu.memory_space<vmem>>, vector<1x1x256x128xf32>
    %250 = vector.shape_cast %249 : vector<1x1x256x128xf32> to vector<256x128xf32>
    %cst_233 = arith.constant dense<0.000000e+00> : vector<8x128xf32>
    %251 = tpu.matmul %248, %250, %cst_233 {dimension_numbers = #tpu.dot_dimension_numbers<[1], [0], [0], [1], [0, 0, 1, 1], [], []>} : vector<8x256xf32>, vector<256x128xf32>, vector<8x128xf32> -> vector<8x128xf32>
    %252 = arith.addf %247, %251 : vector<8x128xf32>
    %253 = vector.extract_strided_slice %188 {offsets = [104, 0], sizes = [8, 256], strides = [1, 1]} : vector<128x256xf32> to vector<8x256xf32>
    %c1_234 = arith.constant 1 : index
    %c13_235 = arith.constant 13 : index
    %c0_236 = arith.constant 0 : index
    %c0_237 = arith.constant 0 : index
    %254 = vector.load %arg7[%c1_234, %c13_235, %c0_236, %c0_237] : memref<2x16x256x128xf32, #tpu.memory_space<vmem>>, vector<1x1x256x128xf32>
    %255 = vector.shape_cast %254 : vector<1x1x256x128xf32> to vector<256x128xf32>
    %cst_238 = arith.constant dense<0.000000e+00> : vector<8x128xf32>
    %256 = tpu.matmul %253, %255, %cst_238 {dimension_numbers = #tpu.dot_dimension_numbers<[1], [0], [0], [1], [0, 0, 1, 1], [], []>} : vector<8x256xf32>, vector<256x128xf32>, vector<8x128xf32> -> vector<8x128xf32>
    %257 = arith.addf %252, %256 : vector<8x128xf32>
    %258 = vector.extract_strided_slice %188 {offsets = [112, 0], sizes = [8, 256], strides = [1, 1]} : vector<128x256xf32> to vector<8x256xf32>
    %c1_239 = arith.constant 1 : index
    %c14_240 = arith.constant 14 : index
    %c0_241 = arith.constant 0 : index
    %c0_242 = arith.constant 0 : index
    %259 = vector.load %arg7[%c1_239, %c14_240, %c0_241, %c0_242] : memref<2x16x256x128xf32, #tpu.memory_space<vmem>>, vector<1x1x256x128xf32>
    %260 = vector.shape_cast %259 : vector<1x1x256x128xf32> to vector<256x128xf32>
    %cst_243 = arith.constant dense<0.000000e+00> : vector<8x128xf32>
    %261 = tpu.matmul %258, %260, %cst_243 {dimension_numbers = #tpu.dot_dimension_numbers<[1], [0], [0], [1], [0, 0, 1, 1], [], []>} : vector<8x256xf32>, vector<256x128xf32>, vector<8x128xf32> -> vector<8x128xf32>
    %262 = arith.addf %257, %261 : vector<8x128xf32>
    %263 = vector.extract_strided_slice %188 {offsets = [120, 0], sizes = [8, 256], strides = [1, 1]} : vector<128x256xf32> to vector<8x256xf32>
    %c1_244 = arith.constant 1 : index
    %c15_245 = arith.constant 15 : index
    %c0_246 = arith.constant 0 : index
    %c0_247 = arith.constant 0 : index
    %264 = vector.load %arg7[%c1_244, %c15_245, %c0_246, %c0_247] : memref<2x16x256x128xf32, #tpu.memory_space<vmem>>, vector<1x1x256x128xf32>
    %265 = vector.shape_cast %264 : vector<1x1x256x128xf32> to vector<256x128xf32>
    %cst_248 = arith.constant dense<0.000000e+00> : vector<8x128xf32>
    %266 = tpu.matmul %263, %265, %cst_248 {dimension_numbers = #tpu.dot_dimension_numbers<[1], [0], [0], [1], [0, 0, 1, 1], [], []>} : vector<8x256xf32>, vector<256x128xf32>, vector<8x128xf32> -> vector<8x128xf32>
    %267 = arith.addf %262, %266 : vector<8x128xf32>
    %c0_249 = arith.constant 0 : index
    %c0_250 = arith.constant 0 : index
    %268 = vector.load %arg2[%c0_249, %c0_250] : memref<8x4xf32, #tpu.memory_space<vmem>>, vector<8x4xf32>
    %c0_251 = arith.constant 0 : index
    %c0_252 = arith.constant 0 : index
    %269 = vector.load %arg10[%c0_251, %c0_252] : memref<4x64xf32, #tpu.memory_space<vmem>>, vector<4x64xf32>
    %cst_253 = arith.constant dense<0.000000e+00> : vector<8x64xf32>
    %270 = tpu.matmul %268, %269, %cst_253 {dimension_numbers = #tpu.dot_dimension_numbers<[1], [0], [0], [1], [0, 0, 1, 1], [], []>} : vector<8x4xf32>, vector<4x64xf32>, vector<8x64xf32> -> vector<8x64xf32>
    %c0_254 = arith.constant 0 : index
    %c0_255 = arith.constant 0 : index
    %271 = vector.load %arg11[%c0_254, %c0_255] : memref<1x64xf32, #tpu.memory_space<vmem>>, vector<1x64xf32>
    %272 = vector.broadcast %271 : vector<1x64xf32> to vector<8x64xf32>
    %273 = arith.addf %270, %272 : vector<8x64xf32>
    %cst_256 = arith.constant 0.000000e+00 : f32
    %274 = vector.broadcast %cst_256 : f32 to vector<8x64xf32>
    %275 = arith.maximumf %273, %274 : vector<8x64xf32>
    %c0_257 = arith.constant 0 : index
    %c0_258 = arith.constant 0 : index
    %276 = vector.load %arg12[%c0_257, %c0_258] : memref<64x128xf32, #tpu.memory_space<vmem>>, vector<64x128xf32>
    %cst_259 = arith.constant dense<0.000000e+00> : vector<8x128xf32>
    %277 = tpu.matmul %275, %276, %cst_259 {dimension_numbers = #tpu.dot_dimension_numbers<[1], [0], [0], [1], [0, 0, 1, 1], [], []>} : vector<8x64xf32>, vector<64x128xf32>, vector<8x128xf32> -> vector<8x128xf32>
    %c0_260 = arith.constant 0 : index
    %c0_261 = arith.constant 0 : index
    %278 = vector.load %arg13[%c0_260, %c0_261] : memref<1x128xf32, #tpu.memory_space<vmem>>, vector<1x128xf32>
    %279 = vector.broadcast %278 : vector<1x128xf32> to vector<8x128xf32>
    %280 = arith.addf %277, %279 : vector<8x128xf32>
    %281 = arith.addf %133, %267 : vector<8x128xf32>
    %c0_262 = arith.constant 0 : index
    %c0_263 = arith.constant 0 : index
    %282 = vector.load %arg8[%c0_262, %c0_263] : memref<128x128xf32, #tpu.memory_space<vmem>>, vector<128x128xf32>
    %cst_264 = arith.constant dense<0.000000e+00> : vector<8x128xf32>
    %283 = tpu.matmul %280, %282, %cst_264 {dimension_numbers = #tpu.dot_dimension_numbers<[1], [0], [0], [1], [0, 0, 1, 1], [], []>} : vector<8x128xf32>, vector<128x128xf32>, vector<8x128xf32> -> vector<8x128xf32>
    %284 = arith.addf %281, %283 : vector<8x128xf32>
    %c0_265 = arith.constant 0 : index
    %c0_266 = arith.constant 0 : index
    %285 = vector.load %arg9[%c0_265, %c0_266] : memref<1x128xf32, #tpu.memory_space<vmem>>, vector<1x128xf32>
    %286 = vector.broadcast %285 : vector<1x128xf32> to vector<8x128xf32>
    %287 = arith.addf %284, %286 : vector<8x128xf32>
    %cst_267 = arith.constant 0.000000e+00 : f32
    %288 = vector.broadcast %cst_267 : f32 to vector<8x128xf32>
    %289 = arith.maximumf %287, %288 : vector<8x128xf32>
    %c0_268 = arith.constant 0 : index
    %c0_269 = arith.constant 0 : index
    %c0_270 = arith.constant 0 : index
    %290 = vector.load %arg14[%c0_268, %c0_269, %c0_270] : memref<2x128x128xf32, #tpu.memory_space<vmem>>, vector<1x128x128xf32>
    %291 = vector.shape_cast %290 : vector<1x128x128xf32> to vector<128x128xf32>
    %cst_271 = arith.constant dense<0.000000e+00> : vector<8x128xf32>
    %292 = tpu.matmul %289, %291, %cst_271 {dimension_numbers = #tpu.dot_dimension_numbers<[1], [0], [0], [1], [0, 0, 1, 1], [], []>} : vector<8x128xf32>, vector<128x128xf32>, vector<8x128xf32> -> vector<8x128xf32>
    %c0_272 = arith.constant 0 : index
    %c0_273 = arith.constant 0 : index
    %c0_274 = arith.constant 0 : index
    %293 = vector.load %arg15[%c0_272, %c0_273, %c0_274] : memref<2x1x128xf32, #tpu.memory_space<vmem>>, vector<1x1x128xf32>
    %294 = vector.shape_cast %293 : vector<1x1x128xf32> to vector<1x128xf32>
    %295 = vector.broadcast %294 : vector<1x128xf32> to vector<8x128xf32>
    %296 = arith.addf %292, %295 : vector<8x128xf32>
    %cst_275 = arith.constant 0.000000e+00 : f32
    %297 = vector.broadcast %cst_275 : f32 to vector<8x128xf32>
    %298 = arith.maximumf %296, %297 : vector<8x128xf32>
    %c1_276 = arith.constant 1 : index
    %c0_277 = arith.constant 0 : index
    %c0_278 = arith.constant 0 : index
    %299 = vector.load %arg14[%c1_276, %c0_277, %c0_278] : memref<2x128x128xf32, #tpu.memory_space<vmem>>, vector<1x128x128xf32>
    %300 = vector.shape_cast %299 : vector<1x128x128xf32> to vector<128x128xf32>
    %cst_279 = arith.constant dense<0.000000e+00> : vector<8x128xf32>
    %301 = tpu.matmul %298, %300, %cst_279 {dimension_numbers = #tpu.dot_dimension_numbers<[1], [0], [0], [1], [0, 0, 1, 1], [], []>} : vector<8x128xf32>, vector<128x128xf32>, vector<8x128xf32> -> vector<8x128xf32>
    %c1_280 = arith.constant 1 : index
    %c0_281 = arith.constant 0 : index
    %c0_282 = arith.constant 0 : index
    %302 = vector.load %arg15[%c1_280, %c0_281, %c0_282] : memref<2x1x128xf32, #tpu.memory_space<vmem>>, vector<1x1x128xf32>
    %303 = vector.shape_cast %302 : vector<1x1x128xf32> to vector<1x128xf32>
    %304 = vector.broadcast %303 : vector<1x128xf32> to vector<8x128xf32>
    %305 = arith.addf %301, %304 : vector<8x128xf32>
    %cst_283 = arith.constant 0.000000e+00 : f32
    %306 = vector.broadcast %cst_283 : f32 to vector<8x128xf32>
    %307 = arith.maximumf %305, %306 : vector<8x128xf32>
    %c0_284 = arith.constant 0 : index
    %c0_285 = arith.constant 0 : index
    %308 = vector.load %arg16[%c0_284, %c0_285] : memref<128x4xf32, #tpu.memory_space<vmem>>, vector<128x4xf32>
    %cst_286 = arith.constant dense<0.000000e+00> : vector<8x4xf32>
    %309 = tpu.matmul %307, %308, %cst_286 {dimension_numbers = #tpu.dot_dimension_numbers<[1], [0], [0], [1], [0, 0, 1, 1], [], []>} : vector<8x128xf32>, vector<128x4xf32>, vector<8x4xf32> -> vector<8x4xf32>
    %c0_287 = arith.constant 0 : index
    %c0_288 = arith.constant 0 : index
    %310 = vector.load %arg17[%c0_287, %c0_288] : memref<1x4xf32, #tpu.memory_space<vmem>>, vector<1x4xf32>
    %311 = vector.broadcast %310 : vector<1x4xf32> to vector<8x4xf32>
    %312 = arith.addf %309, %311 : vector<8x4xf32>
    %c0_289 = arith.constant 0 : index
    %c0_290 = arith.constant 0 : index
    %313 = vector.load %arg18[%c0_289, %c0_290] : memref<8x4xf32, #tpu.memory_space<vmem>>, vector<8x4xf32>
    tpu.vector_store %arg18[%c0_289, %c0_290], %312 {strides = array<i32>} : memref<8x4xf32, #tpu.memory_space<vmem>>, vector<8x4xf32>,
    return
  }
  func.func @transform_0(%arg0: i32) -> (i32, i32, i32, i32) {
    %c0_i32 = arith.constant 0 : i32
    %c0_i32_0 = arith.constant 0 : i32
    %c0_i32_1 = arith.constant 0 : i32
    %c0_i32_2 = arith.constant 0 : i32
    return %c0_i32, %c0_i32_0, %arg0, %c0_i32_1 : i32, i32, i32, i32
  }
  func.func @transform_1(%arg0: i32) -> (i32, i32) {
    %c0_i32 = arith.constant 0 : i32
    %c0_i32_0 = arith.constant 0 : i32
    return %arg0, %c0_i32 : i32, i32
  }
  func.func @transform_2(%arg0: i32) -> (i32, i32, i32, i32) {
    %c0_i32 = arith.constant 0 : i32
    %c0_i32_0 = arith.constant 0 : i32
    %c0_i32_1 = arith.constant 0 : i32
    %c0_i32_2 = arith.constant 0 : i32
    %c0_i32_3 = arith.constant 0 : i32
    return %c0_i32, %c0_i32_0, %c0_i32_1, %c0_i32_2 : i32, i32, i32, i32
  }
  func.func @transform_3(%arg0: i32) -> (i32, i32, i32) {
    %c0_i32 = arith.constant 0 : i32
    %c0_i32_0 = arith.constant 0 : i32
    %c0_i32_1 = arith.constant 0 : i32
    %c0_i32_2 = arith.constant 0 : i32
    return %c0_i32, %c0_i32_0, %c0_i32_1 : i32, i32, i32
  }
  func.func @transform_4(%arg0: i32) -> (i32, i32, i32, i32) {
    %c0_i32 = arith.constant 0 : i32
    %c0_i32_0 = arith.constant 0 : i32
    %c0_i32_1 = arith.constant 0 : i32
    %c0_i32_2 = arith.constant 0 : i32
    %c0_i32_3 = arith.constant 0 : i32
    return %c0_i32, %c0_i32_0, %c0_i32_1, %c0_i32_2 : i32, i32, i32, i32
  }
  func.func @transform_5(%arg0: i32) -> (i32, i32, i32) {
    %c0_i32 = arith.constant 0 : i32
    %c0_i32_0 = arith.constant 0 : i32
    %c0_i32_1 = arith.constant 0 : i32
    %c0_i32_2 = arith.constant 0 : i32
    return %c0_i32, %c0_i32_0, %c0_i32_1 : i32, i32, i32
  }
  func.func @transform_6(%arg0: i32) -> (i32, i32, i32, i32) {
    %c0_i32 = arith.constant 0 : i32
    %c0_i32_0 = arith.constant 0 : i32
    %c0_i32_1 = arith.constant 0 : i32
    %c0_i32_2 = arith.constant 0 : i32
    %c0_i32_3 = arith.constant 0 : i32
    return %c0_i32, %c0_i32_0, %c0_i32_1, %c0_i32_2 : i32, i32, i32, i32
  }
  func.func @transform_7(%arg0: i32) -> (i32, i32) {
    %c0_i32 = arith.constant 0 : i32
    %c0_i32_0 = arith.constant 0 : i32
    %c0_i32_1 = arith.constant 0 : i32
    return %c0_i32, %c0_i32_0 : i32, i32
  }
  func.func @transform_8(%arg0: i32) -> (i32, i32) {
    %c0_i32 = arith.constant 0 : i32
    %c0_i32_0 = arith.constant 0 : i32
    %c0_i32_1 = arith.constant 0 : i32
    return %c0_i32, %c0_i32_0 : i32, i32
  }
  func.func @transform_9(%arg0: i32) -> (i32, i32) {
    %c0_i32 = arith.constant 0 : i32
    %c0_i32_0 = arith.constant 0 : i32
    %c0_i32_1 = arith.constant 0 : i32
    return %c0_i32, %c0_i32_0 : i32, i32
  }
  func.func @transform_10(%arg0: i32) -> (i32, i32) {
    %c0_i32 = arith.constant 0 : i32
    %c0_i32_0 = arith.constant 0 : i32
    %c0_i32_1 = arith.constant 0 : i32
    return %c0_i32, %c0_i32_0 : i32, i32
  }
  func.func @transform_11(%arg0: i32) -> (i32, i32) {
    %c0_i32 = arith.constant 0 : i32
    %c0_i32_0 = arith.constant 0 : i32
    %c0_i32_1 = arith.constant 0 : i32
    return %c0_i32, %c0_i32_0 : i32, i32
  }
  func.func @transform_12(%arg0: i32) -> (i32, i32) {
    %c0_i32 = arith.constant 0 : i32
    %c0_i32_0 = arith.constant 0 : i32
    %c0_i32_1 = arith.constant 0 : i32
    return %c0_i32, %c0_i32_0 : i32, i32
  }
  func.func @transform_13(%arg0: i32) -> (i32, i32, i32) {
    %c0_i32 = arith.constant 0 : i32
    %c0_i32_0 = arith.constant 0 : i32
    %c0_i32_1 = arith.constant 0 : i32
    %c0_i32_2 = arith.constant 0 : i32
    return %c0_i32, %c0_i32_0, %c0_i32_1 : i32, i32, i32
  }
  func.func @transform_14(%arg0: i32) -> (i32, i32, i32) {
    %c0_i32 = arith.constant 0 : i32
    %c0_i32_0 = arith.constant 0 : i32
    %c0_i32_1 = arith.constant 0 : i32
    %c0_i32_2 = arith.constant 0 : i32
    return %c0_i32, %c0_i32_0, %c0_i32_1 : i32, i32, i32
  }
  func.func @transform_15(%arg0: i32) -> (i32, i32) {
    %c0_i32 = arith.constant 0 : i32
    %c0_i32_0 = arith.constant 0 : i32
    %c0_i32_1 = arith.constant 0 : i32
    return %c0_i32, %c0_i32_0 : i32, i32
  }
  func.func @transform_16(%arg0: i32) -> (i32, i32) {
    %c0_i32 = arith.constant 0 : i32
    %c0_i32_0 = arith.constant 0 : i32
    %c0_i32_1 = arith.constant 0 : i32
    return %c0_i32, %c0_i32_0 : i32, i32
  }
  func.func @transform_17(%arg0: i32) -> (i32, i32) {
    %c0_i32 = arith.constant 0 : i32
    %c0_i32_0 = arith.constant 0 : i32
    return %arg0, %c0_i32 : i32, i32
  }
}

</mosaic_0001>

<bundles_post_ra>
// kernel: tpu_custom_call.1
= control target key start
LH: loop header
LB: loop body
LE: loop exit
PB: predicated region body
PF: predicated region fallthrough
CT: control target
= control target key end

     0   :  { %s12796_s0 = inlined_call_operand.vmem [shape: f32[2,20,8,5], index: 0, kind: input, shape index: {}]   ;;  %s12797_s1 = inlined_call_operand.vmem [shape: f32[8,4], index: 1, kind: input, shape index: {}]   ;;  %s12798_s2 = inlined_call_operand.vmem [shape: f32[2,5,5,128], index: 2, kind: input, shape index: {}]   ;;  %s12799_s3 = inlined_call_operand.hbm [shape: f32[2,1,128], index: 3, kind: input, shape index: {}]   ;;  %s12800_s4 = inlined_call_operand.hbm [shape: f32[2,3,128,256], index: 4, kind: input, shape index: {}]   ;;  %s12801_s5 = inlined_call_operand.hbm [shape: f32[2,1,256], index: 5, kind: input, shape index: {}]   ;;  %s12802_s6 = inlined_call_operand.hbm [shape: f32[2,16,256,128], index: 6, kind: input, shape index: {}]   ;;  %s12803_s7 = inlined_call_operand.hbm [shape: f32[128,128], index: 7, kind: input, shape index: {}]   ;;  %s12804_s8 = inlined_call_operand.hbm [shape: f32[1,128], index: 8, kind: input, shape index: {}]   ;;  %s12805_s9 = inlined_call_operand.hbm [shape: f32[4,64], index: 9, kind: input, shape index: {}]   ;;  %s12806_s10 = inlined_call_operand.hbm [shape: f32[1,64], index: 10, kind: input, shape index: {}]   ;;  %s12807_s11 = inlined_call_operand.hbm [shape: f32[64,128], index: 11, kind: input, shape index: {}]   ;;  %s12808_s12 = inlined_call_operand.hbm [shape: f32[1,128], index: 12, kind: input, shape index: {}]   ;;  %s12809_s13 = inlined_call_operand.hbm [shape: f32[2,128,128], index: 13, kind: input, shape index: {}]   ;;  %s12810_s14 = inlined_call_operand.hbm [shape: f32[2,1,128], index: 14, kind: input, shape index: {}]   ;;  %s12811_s15 = inlined_call_operand.vmem [shape: f32[128,4], index: 15, kind: input, shape index: {}]   ;;  %s12812_s16 = inlined_call_operand.hbm [shape: f32[1,4], index: 16, kind: input, shape index: {}]   ;;  %s12813_s17 = inlined_call_operand.vmem [shape: f32[8,4], index: 17, kind: output, shape index: {}]  }
   0x1   :  { %12817 = sst [smem:[#allocation29_spill]] %s12796_s0 }
   0x2   :  { %12818 = sst [smem:[#allocation30_spill]] %s12797_s1 }
   0x3   :  { %22 = vsyncpa [#allocation3], 0 }
   0x4   :  { %23 = vsyncpa [#allocation5], 0 }
   0x5   :  { %24 = vsyncpa [#allocation8], 0 }
   0x6   :  { %25 = vsyncpa [#allocation11], 0 }
   0x7   :  { %26 = vsyncpa [#allocation14], 0 }
   0x8   :  { %27 = vsyncpa [#allocation17], 0 }
   0x9   :  { %28 = vsyncpa [#allocation20], 0  ;;  %s11237_s24 = smov [#allocation4]   ;;  %s10937_s28 = scalar_lea.hbm %s12800_s4, 24576 }
   0xa   :  { %s52_s25 = sshll.u32 %s11237_s24, 4  ;;  %p10938_p0 = scmp.ne.s32.totalorder %s12800_s4, %s10937_s28  ;;  %s53_s25 = int_to_ptr.vmem [resolvable:$true] %s52_s25 }
   0xb   :  { %p10941_p1 = scmp.lt.u32.totalorder %s10937_s28, %s12800_s4 }
   0xd   :  { %p10943_p2 = pnand %p10941_p1, %p10938_p0 }
   0xf   :  { %10946 = shalt.err (!%p10943_p2)
}
  0x10   :  { %s10947_s19 = scalar_lea.vmem %s53_s25, 24576  ;;  %p10952_p4 = scmp.lt.s32.totalorder %s53_s25, %s53_s25 }
  0x11   :  { %p10948_p3 = scmp.ne.s32.totalorder %s53_s25, %s10947_s19  ;;  %p10953_p5 = scmp.lt.s32.totalorder %s10947_s19, %s10947_s19 }
  0x13   :  { %p10954_p6 = por %p10953_p5, %p10952_p4 }
  0x15   :  { %p10955_p7 = pnand %p10954_p6, %p10948_p3 }
  0x17   :  { %10958 = shalt.err (!%p10955_p7)
}
  0x18   :  { %s11238_s1 = smov 256   ;;  %s12815_s20 = smov 16  }
  0x19   :  { %58 = dma.hbm_to_vmem [thread:$0]  %s12800_s4, 24576, %s53_s25, [#allocation5], %s11238_s1, %s11238_s1, %s12815_s20  }
  0x1a   :  { %s11240_s23 = smov [#allocation7]   ;;  %s10959_s28 = scalar_lea.hbm %s12802_s6, 131072 }
  0x1b   :  { %s76_s24 = sshll.u32 %s11240_s23, 4  ;;  %p10960_p8 = scmp.ne.s32.totalorder %s12802_s6, %s10959_s28  ;;  %s77_s24 = int_to_ptr.vmem [resolvable:$true] %s76_s24 }
  0x1c   :  { %p10963_p9 = scmp.lt.u32.totalorder %s10959_s28, %s12802_s6 }
  0x1e   :  { %p10965_p10 = pnand %p10963_p9, %p10960_p8 }
  0x20   :  { %10968 = shalt.err (!%p10965_p10)
}
  0x21   :  { %s10969_s19 = scalar_lea.vmem %s77_s24, 131072  ;;  %p10974_p12 = scmp.lt.s32.totalorder %s77_s24, %s77_s24 }
  0x22   :  { %p10970_p11 = scmp.ne.s32.totalorder %s77_s24, %s10969_s19  ;;  %p10975_p13 = scmp.lt.s32.totalorder %s10969_s19, %s10969_s19 }
  0x24   :  { %p10976_p0 = por %p10975_p13, %p10974_p12 }
  0x26   :  { %p10977_p1 = pnand %p10976_p0, %p10970_p11 }
  0x28   :  { %10980 = shalt.err (!%p10977_p1)
}
  0x29   :  { %s11241_s4 = smov 128   ;;  %s11242_s25 = smov 8  }
  0x2a   :  { %82 = dma.hbm_to_vmem [thread:$0]  %s12802_s6, 131072, %s77_s24, [#allocation8], %s11241_s4, %s11241_s4, %s11242_s25  }
  0x2b   :  { %s11243_s22 = smov [#allocation10]   ;;  %s11244_s26 = smov [#allocation13]  }
  0x2c   :  { %s101_s23 = sshll.u32 %s11243_s22, 4  ;;  %s121_s27 = sshll.u32 %s11244_s26, 4  ;;  %s102_s23 = int_to_ptr.vmem [resolvable:$true] %s101_s23  ;;  %s122_s27 = int_to_ptr.vmem [resolvable:$true] %s121_s27 }
  0x2d   :  { %s10981_s0 = scalar_lea.hbm %s12804_s8, 16 }
  0x2e   :  { %p10982_p2 = scmp.ne.s32.totalorder %s12804_s8, %s10981_s0  ;;  %p10985_p3 = scmp.lt.u32.totalorder %s10981_s0, %s12804_s8 }
  0x30   :  { %p10987_p4 = pnand %p10985_p3, %p10982_p2 }
  0x32   :  { %10990 = shalt.err (!%p10987_p4)
}
  0x33   :  { %s10991_s6 = scalar_lea.vmem %s102_s23, 16  ;;  %s10995_s24 = scalar_lea.vmem %s102_s23, 32 }
  0x34   :  { %p10992_p5 = scmp.ne.s32.totalorder %s102_s23, %s10991_s6  ;;  %p10996_p6 = scmp.lt.s32.totalorder %s102_s23, %s102_s23 }
  0x35   :  { %p10997_p7 = scmp.lt.s32.totalorder %s10995_s24, %s10991_s6 }
  0x37   :  { %p10998_p8 = por %p10997_p7, %p10996_p6 }
  0x39   :  { %p10999_p9 = pnand %p10998_p8, %p10992_p5 }
  0x3b   :  { %11002 = shalt.err (!%p10999_p9)
}
  0x3c   :  { %104 = dma.hbm_to_vmem [thread:$0]  %s12804_s8, 16, %s102_s23, [#allocation11]  }
  0x3d   :  { %s11003_s28 = scalar_lea.hbm %s12806_s10, 16 }
  0x3e   :  { %p11004_p10 = scmp.ne.s32.totalorder %s12806_s10, %s11003_s28  ;;  %p11007_p11 = scmp.lt.u32.totalorder %s11003_s28, %s12806_s10 }
  0x40   :  { %p11009_p12 = pnand %p11007_p11, %p11004_p10 }
  0x42   :  { %11012 = shalt.err (!%p11009_p12)
}
  0x43   :  { %s11013_s18 = scalar_lea.vmem %s122_s27, 16  ;;  %s11017_s19 = scalar_lea.vmem %s122_s27, 32 }
  0x44   :  { %p11014_p13 = scmp.ne.s32.totalorder %s122_s27, %s11013_s18  ;;  %p11018_p0 = scmp.lt.s32.totalorder %s122_s27, %s122_s27 }
  0x45   :  { %p11019_p1 = scmp.lt.s32.totalorder %s11017_s19, %s11013_s18 }
  0x47   :  { %p11020_p2 = por %p11019_p1, %p11018_p0 }
  0x49   :  { %p11021_p3 = pnand %p11020_p2, %p11014_p13 }
  0x4b   :  { %11024 = shalt.err (!%p11021_p3)
}
  0x4c   :  { %124 = dma.hbm_to_vmem [thread:$0]  %s12806_s10, 16, %s122_s27, [#allocation14]  }
  0x4d   :  { %s11245_s6 = smov [#allocation16]   ;;  %s11246_s1 = smov [#allocation19]  }
  0x4e   :  { %s143_s24 = sshll.u32 %s11245_s6, 4  ;;  %s164_s21 = sshll.u32 %s11246_s1, 4  ;;  %s144_s24 = int_to_ptr.vmem [resolvable:$true] %s143_s24  ;;  %s165_s21 = int_to_ptr.vmem [resolvable:$true] %s164_s21 }
  0x4f   :  { %s11025_s28 = scalar_lea.hbm %s12808_s12, 16 }
  0x50   :  { %p11026_p4 = scmp.ne.s32.totalorder %s12808_s12, %s11025_s28  ;;  %p11029_p5 = scmp.lt.u32.totalorder %s11025_s28, %s12808_s12 }
  0x52   :  { %p11031_p6 = pnand %p11029_p5, %p11026_p4 }
  0x54   :  { %11034 = shalt.err (!%p11031_p6)
}
  0x55   :  { %s11035_s10 = scalar_lea.vmem %s144_s24, 16  ;;  %s11039_s27 = scalar_lea.vmem %s144_s24, 32 }
  0x56   :  { %p11036_p7 = scmp.ne.s32.totalorder %s144_s24, %s11035_s10  ;;  %p11040_p8 = scmp.lt.s32.totalorder %s144_s24, %s144_s24 }
  0x57   :  { %p11041_p9 = scmp.lt.s32.totalorder %s11039_s27, %s11035_s10 }
  0x59   :  { %p11042_p10 = por %p11041_p9, %p11040_p8 }
  0x5b   :  { %p11043_p11 = pnand %p11042_p10, %p11036_p7 }
  0x5d   :  { %11046 = shalt.err (!%p11043_p11)
}
  0x5e   :  { %146 = dma.hbm_to_vmem [thread:$0]  %s12808_s12, 16, %s144_s24, [#allocation17]  }
  0x5f   :  { %s11047_s6 = scalar_lea.hbm %s12810_s14, 32 }
  0x60   :  { %p11048_p12 = scmp.ne.s32.totalorder %s12810_s14, %s11047_s6  ;;  %p11051_p13 = scmp.lt.u32.totalorder %s11047_s6, %s12810_s14 }
  0x62   :  { %p11053_p0 = pnand %p11051_p13, %p11048_p12 }
  0x64   :  { %11056 = shalt.err (!%p11053_p0)
}
  0x65   :  { %s11057_s20 = scalar_lea.vmem %s165_s21, 32  ;;  %p11062_p2 = scmp.lt.s32.totalorder %s165_s21, %s165_s21 }
  0x66   :  { %p11058_p1 = scmp.ne.s32.totalorder %s165_s21, %s11057_s20  ;;  %p11063_p3 = scmp.lt.s32.totalorder %s11057_s20, %s11057_s20 }
  0x68   :  { %p11064_p4 = por %p11063_p3, %p11062_p2 }
  0x6a   :  { %p11065_p5 = pnand %p11064_p4, %p11058_p1 }
  0x6c   :  { %11068 = shalt.err (!%p11065_p5)
}
  0x6d   :  { %s11247_s12 = smov 1   ;;  %s12819_s24 = smov 16  }
  0x6e   :  { %170 = dma.hbm_to_vmem [thread:$0]  %s12810_s14, 32, %s165_s21, [#allocation20], %s12819_s24, %s12819_s24, %s11247_s12  }
  0x6f   :  { %s11248_s30 = smov [#allocation2]   ;;  %s11249_s27 = smov [#allocation6]  }
  0x70   :  { %s40_s10 = sshll.u32 %s11248_s30, 4  ;;  %s64_s18 = sshll.u32 %s11249_s27, 4  ;;  %s41_s10 = int_to_ptr.vmem [resolvable:$true] %s40_s10  ;;  %s65_s18 = int_to_ptr.vmem [resolvable:$true] %s64_s18 }
  0x71   :  { %s11069_s23 = scalar_lea.hbm %s12799_s3, 32 }
  0x72   :  { %p11070_p6 = scmp.ne.s32.totalorder %s12799_s3, %s11069_s23  ;;  %p11073_p7 = scmp.lt.u32.totalorder %s11069_s23, %s12799_s3 }
  0x74   :  { %p11075_p8 = pnand %p11073_p7, %p11070_p6 }
  0x76   :  { %11078 = shalt.err (!%p11075_p8)
}
  0x77   :  { %s11079_s14 = scalar_lea.vmem %s41_s10, 32  ;;  %p11084_p10 = scmp.lt.s32.totalorder %s41_s10, %s41_s10 }
  0x78   :  { %p11080_p9 = scmp.ne.s32.totalorder %s41_s10, %s11079_s14  ;;  %p11085_p11 = scmp.lt.s32.totalorder %s11079_s14, %s11079_s14 }
  0x7a   :  { %p11086_p12 = por %p11085_p11, %p11084_p10 }
  0x7c   :  { %p11087_p13 = pnand %p11086_p12, %p11080_p9 }
  0x7e   :  { %11090 = shalt.err (!%p11087_p13)
}
  0x7f   :  { %46 = dma.hbm_to_vmem [thread:$0]  %s12799_s3, 32, %s41_s10, [#allocation3], %s12819_s24, %s12819_s24, %s11247_s12  }
  0x80   :  { %s11091_s0 = scalar_lea.hbm %s12801_s5, 64 }
  0x81   :  { %p11092_p0 = scmp.ne.s32.totalorder %s12801_s5, %s11091_s0  ;;  %p11095_p1 = scmp.lt.u32.totalorder %s11091_s0, %s12801_s5 }
  0x83   :  { %p11097_p2 = pnand %p11095_p1, %p11092_p0 }
  0x85   :  { %11100 = shalt.err (!%p11097_p2)
}
  0x86   :  { %s11101_s23 = scalar_lea.vmem %s65_s18, 64  ;;  %p11106_p4 = scmp.lt.s32.totalorder %s65_s18, %s65_s18 }
  0x87   :  { %p11102_p3 = scmp.ne.s32.totalorder %s65_s18, %s11101_s23  ;;  %p11107_p5 = scmp.lt.s32.totalorder %s11101_s23, %s11101_s23 }
  0x89   :  { %p11108_p6 = por %p11107_p5, %p11106_p4 }
  0x8b   :  { %p11109_p7 = pnand %p11108_p6, %p11102_p3 }
  0x8d   :  { %11112 = shalt.err (!%p11109_p7)
}
  0x8e   :  { %s11250_s3 = smov 32   ;;  %s11251_s12 = smov 2  }
  0x8f   :  { %70 = dma.hbm_to_vmem [thread:$0]  %s12801_s5, 64, %s65_s18, [#allocation5], %s11250_s3, %s11250_s3, %s11251_s12  }
  0x90   :  { %s11252_s6 = smov [#allocation9]   ;;  %s11253_s22 = smov [#allocation12]  }
  0x91   :  { %s88_s1 = sshll.u32 %s11252_s6, 4  ;;  %s111_s26 = sshll.u32 %s11253_s22, 4  ;;  %s89_s1 = int_to_ptr.vmem [resolvable:$true] %s88_s1  ;;  %s112_s26 = int_to_ptr.vmem [resolvable:$true] %s111_s26 }
  0x92   :  { %s11113_s28 = scalar_lea.hbm %s12803_s7, 2048 }
  0x93   :  { %p11114_p8 = scmp.ne.s32.totalorder %s12803_s7, %s11113_s28  ;;  %p11117_p9 = scmp.lt.u32.totalorder %s11113_s28, %s12803_s7 }
  0x95   :  { %p11119_p10 = pnand %p11117_p9, %p11114_p8 }
  0x97   :  { %11122 = shalt.err (!%p11119_p10)
}
  0x98   :  { %s11123_s5 = scalar_lea.vmem %s89_s1, 2048  ;;  %p11128_p12 = scmp.lt.s32.totalorder %s89_s1, %s89_s1 }
  0x99   :  { %p11124_p11 = scmp.ne.s32.totalorder %s89_s1, %s11123_s5  ;;  %p11129_p13 = scmp.lt.s32.totalorder %s11123_s5, %s11123_s5 }
  0x9b   :  { %p11130_p0 = por %p11129_p13, %p11128_p12 }
  0x9d   :  { %p11131_p1 = pnand %p11130_p0, %p11124_p11 }
  0x9f   :  { %11134 = shalt.err (!%p11131_p1)
}
  0xa0   :  { %94 = dma.hbm_to_vmem [thread:$0]  %s12803_s7, 2048, %s89_s1, [#allocation8], %s11241_s4, %s11241_s4, %s11242_s25  }
  0xa1   :  { %s11135_s23 = scalar_lea.hbm %s12805_s9, 64 }
  0xa2   :  { %p11136_p2 = scmp.ne.s32.totalorder %s12805_s9, %s11135_s23  ;;  %p11139_p3 = scmp.lt.u32.totalorder %s11135_s23, %s12805_s9 }
  0xa4   :  { %p11141_p4 = pnand %p11139_p3, %p11136_p2 }
  0xa6   :  { %11144 = shalt.err (!%p11141_p4)
}
  0xa7   :  { %s11145_s6 = scalar_lea.vmem %s112_s26, 64  ;;  %p11150_p6 = scmp.lt.s32.totalorder %s112_s26, %s112_s26 }
  0xa8   :  { %p11146_p5 = scmp.ne.s32.totalorder %s112_s26, %s11145_s6  ;;  %p11151_p7 = scmp.lt.s32.totalorder %s11145_s6, %s11145_s6 }
  0xaa   :  { %p11152_p8 = por %p11151_p7, %p11150_p6 }
  0xac   :  { %p11153_p9 = pnand %p11152_p8, %p11146_p5 }
  0xae   :  { %11156 = shalt.err (!%p11153_p9)
}
  0xaf   :  { %114 = dma.hbm_to_vmem [thread:$0]  %s12805_s9, 64, %s112_s26, [#allocation11]  }
  0xb0   :  { %s11254_s22 = smov [#allocation15]   ;;  %s11255_s21 = smov [#allocation18]  }
  0xb1   :  { %s130_s14 = sshll.u32 %s11254_s22, 4  ;;  %s152_s28 = sshll.u32 %s11255_s21, 4  ;;  %s131_s14 = int_to_ptr.vmem [resolvable:$true] %s130_s14  ;;  %s153_s28 = int_to_ptr.vmem [resolvable:$true] %s152_s28 }
  0xb2   :  { %s11157_s0 = scalar_lea.hbm %s12807_s11, 1024 }
  0xb3   :  { %p11158_p10 = scmp.ne.s32.totalorder %s12807_s11, %s11157_s0  ;;  %p11161_p11 = scmp.lt.u32.totalorder %s11157_s0, %s12807_s11 }
  0xb5   :  { %p11163_p12 = pnand %p11161_p11, %p11158_p10 }
  0xb7   :  { %11166 = shalt.err (!%p11163_p12)
}
  0xb8   :  { %s11167_s9 = scalar_lea.vmem %s131_s14, 1024  ;;  %p11172_p0 = scmp.lt.s32.totalorder %s131_s14, %s131_s14 }
  0xb9   :  { %p11168_p13 = scmp.ne.s32.totalorder %s131_s14, %s11167_s9  ;;  %p11173_p1 = scmp.lt.s32.totalorder %s11167_s9, %s11167_s9 }
  0xbb   :  { %p11174_p2 = por %p11173_p1, %p11172_p0 }
  0xbd   :  { %p11175_p3 = pnand %p11174_p2, %p11168_p13 }
  0xbf   :  { %11178 = shalt.err (!%p11175_p3)
}
  0xc0   :  { %136 = dma.hbm_to_vmem [thread:$0]  %s12807_s11, 1024, %s131_s14, [#allocation14], %s11241_s4, %s11241_s4, %s11242_s25  }
  0xc1   :  { %s11179_s3 = scalar_lea.hbm %s12809_s13, 4096 }
  0xc2   :  { %p11180_p4 = scmp.ne.s32.totalorder %s12809_s13, %s11179_s3  ;;  %p11183_p5 = scmp.lt.u32.totalorder %s11179_s3, %s12809_s13 }
  0xc4   :  { %p11185_p6 = pnand %p11183_p5, %p11180_p4 }
  0xc6   :  { %11188 = shalt.err (!%p11185_p6)
}
  0xc7   :  { %s11189_s7 = scalar_lea.vmem %s153_s28, 4096  ;;  %p11194_p8 = scmp.lt.s32.totalorder %s153_s28, %s153_s28 }
  0xc8   :  { %p11190_p7 = scmp.ne.s32.totalorder %s153_s28, %s11189_s7  ;;  %p11195_p9 = scmp.lt.s32.totalorder %s11189_s7, %s11189_s7 }
  0xca   :  { %p11196_p10 = por %p11195_p9, %p11194_p8 }
  0xcc   :  { %p11197_p11 = pnand %p11196_p10, %p11190_p7 }
  0xce   :  { %11200 = shalt.err (!%p11197_p11)
}
  0xcf   :  { %158 = dma.hbm_to_vmem [thread:$0]  %s12809_s13, 4096, %s153_s28, [#allocation17], %s11241_s4, %s11241_s4, %s11242_s25  }
  0xd0   :  { %s11256_s22 = smov [#allocation21]   ;;  %s11201_s29 = scalar_lea.hbm %s12812_s16, 16 }
  0xd1   :  { %s179_s14 = sshll.u32 %s11256_s22, 4  ;;  %p11202_p12 = scmp.ne.s32.totalorder %s12812_s16, %s11201_s29  ;;  %s180_s14 = int_to_ptr.vmem [resolvable:$true] %s179_s14 }
  0xd2   :  { %p11205_p13 = scmp.lt.u32.totalorder %s11201_s29, %s12812_s16 }
  0xd4   :  { %p11207_p0 = pnand %p11205_p13, %p11202_p12 }
  0xd6   :  { %11210 = shalt.err (!%p11207_p0)
}
  0xd7   :  { %s11211_s27 = scalar_lea.vmem %s180_s14, 16  ;;  %s11215_s13 = scalar_lea.vmem %s180_s14, 32 }
  0xd8   :  { %p11212_p1 = scmp.ne.s32.totalorder %s180_s14, %s11211_s27  ;;  %p11216_p2 = scmp.lt.s32.totalorder %s180_s14, %s180_s14 }
  0xd9   :  { %p11217_p3 = scmp.lt.s32.totalorder %s11215_s13, %s11211_s27 }
  0xdb   :  { %p11218_p4 = por %p11217_p3, %p11216_p2 }
  0xdd   :  { %p11219_p5 = pnand %p11218_p4, %p11212_p1 }
  0xdf   :  { %11222 = shalt.err (!%p11219_p5)
}
  0xe0   :  { %182 = dma.hbm_to_vmem [thread:$0]  %s12812_s16, 16, %s180_s14, [#allocation20]  }
  0xe1   :  { %11223 = dma.done.wait [#allocation3], 32  }
  0xe2   :  { %11224 = vsyncadd [#allocation3], 4294967264 }
  0xe3   :  { %11225 = dma.done.wait [#allocation5], 24640  }
  0xe4   :  { %11226 = vsyncadd [#allocation5], 4294942656 }
  0xe5   :  { %11227 = dma.done.wait [#allocation8], 133120  }
  0xe6   :  { %11228 = vsyncadd [#allocation8], 4294834176 }
  0xe7   :  { %11229 = dma.done.wait [#allocation11], 80  }
  0xe8   :  { %11230 = vsyncadd [#allocation11], 4294967216 }
  0xe9   :  { %11231 = dma.done.wait [#allocation14], 1040  }
  0xea   :  { %11232 = vsyncadd [#allocation14], 4294966256 }
  0xeb   :  { %11233 = dma.done.wait [#allocation17], 4112  }
  0xec   :  { %11234 = vsyncadd [#allocation17], 4294963184 }
  0xed   :  { %11235 = dma.done.wait [#allocation20], 48  }
  0xee   :  { %11236 = vsyncadd [#allocation20], 4294967248  ;;  %vm294_vm0 = vcmask 1044480   ;;  %vm245_vm1 = vcmask 39936   ;;  %v242_v0 = vld [vmem:[%s12798_s2] sm:$0x1f] }
  0xef   :  { %s12820_s19 = sld [smem:[#allocation29_spill]]  ;;  %8936 = vmatprep.subr.msk.mxu0 %vm294_vm0, %v242_v0  ;;  %v7366_v3 = vld [vmem:[%s12798_s2 + $0x10] sm:$0x1f]  ;;  %v11562_v7 = vld [vmem:[%s12798_s2 + $0x18] sm:$0x1f]  ;;  %v1173_v14 = vld [vmem:[#allocation4 + $0x100] sm:$0xff] }
  0xf0   :  { %8937 = vmatpush3.msk.msra.mxu0 %vm294_vm0, %v242_v0  ;;  %v7331_v9 = vld [vmem:[%s12798_s2 + $0x8] sm:$0x1f]  ;;  %v1176_v12 = vld [vmem:[#allocation4 + $0x118] sm:$0xff]  ;;  %v1175_v15 = vld [vmem:[#allocation4 + $0x110] sm:$0xff]  ;;  %vm6775_vm2 = vcmask 1043456   ;;  %vm11258_vm3 = vmmov 0  }
  0xf1   :  { %8962 = vmatprep.subr.msk.mxu0 %vm294_vm0, %v7366_v3  ;;  %8910 = vmatprep.subr.msk.mxu1 %vm294_vm0, %v7331_v9  ;;  %v1174_v11 = vld [vmem:[#allocation4 + $0x108] sm:$0xff]  ;;  %v9336_v17 = vpack.c.bf16 %v1175_v15, %v1173_v14  ;;  %v1180_v18 = vld [vmem:[#allocation4 + $0x138] sm:$0xff]  ;;  %v1177_v19 = vld [vmem:[#allocation4 + $0x120] sm:$0xff]  ;;  %s12821_s0 = sld [smem:[#allocation30_spill]]  ;;  %vm6771_vm4 = vcmask 31744   ;;  %vm6865_vm5 = vcmask 523264  }
  0xf2   :  { %8911 = vmatpush3.msk.msra.mxu1 %vm294_vm0, %v7331_v9  ;;  %v9334_v13 = vpack.c.bf16 %v1176_v12, %v1174_v11  ;;  %v1178_v16 = vld [vmem:[#allocation4 + $0x128] sm:$0xff]  ;;  %v1179_v20 = vld [vmem:[#allocation4 + $0x130] sm:$0xff]  ;;  %v1184_v23 = vld [vmem:[#allocation4 + $0x158] sm:$0xff]  ;;  %v11257_v9 = vmov 0.0  }
  0xf3   :  { %v9338_v21 = vpack.c.bf16 %v1180_v18, %v1178_v16  ;;  %v1182_v22 = vld [vmem:[#allocation4 + $0x148] sm:$0xff]  ;;  %v9340_v26 = vpack.c.bf16 %v1179_v20, %v1177_v19  ;;  %v1181_v28 = vld [vmem:[#allocation4 + $0x140] sm:$0xff]  ;;  %v1183_v29 = vld [vmem:[#allocation4 + $0x150] sm:$0xff] }
  0xf4   :  { %9335 = vmatprep.subr.bf16.mxu1 %v9334_v13  ;;  %v9342_v27 = vpack.c.bf16 %v1184_v23, %v1182_v22  ;;  %v1186_v30 = vld [vmem:[#allocation4 + $0x168] sm:$0xff]  ;;  %v1188_v31 = vld [vmem:[#allocation4 + $0x178] sm:$0xff]  ;;  %v9344_v34 = vpack.c.bf16 %v1183_v29, %v1181_v28  ;;  %v1185_v36 = vld [vmem:[#allocation4 + $0x160] sm:$0xff] }
  0xf5   :  { %v222_v1 = vld [vmem:[%s12820_s19] sm:$0xff]  ;;  %v223_v2 = vld [vmem:[%s12820_s19 + $0x8] sm:$0xff]  ;;  %v11540_v4 = vld [vmem:[%s12820_s19 + $0x10] sm:$0xff]  ;;  %v9346_v35 = vpack.c.bf16 %v1188_v31, %v1186_v30 }
  0xf6   :  { %8938 = vmatprep.mubr.msk.f32.mxu0 %vm245_vm1, %v222_v1  ;;  %8912 = vmatprep.mubr.msk.f32.mxu1 %vm245_vm1, %v223_v2  ;;  %v11552_v5 = vld [vmem:[%s12820_s19 + $0x18] sm:$0xff]  ;;  %v11557_v6 = vld [vmem:[%s12820_s19 + $0x20] sm:$0xff]  ;;  %v11569_v8 = vld [vmem:[%s12820_s19 + $0x28] sm:$0xff] }
  0xf7   :  { %8939 = vmatmul.mubr.msk.f32.vlgmr.msra.gmra.mrb[0].mxu0 %vm245_vm1, %v223_v2  ;;  %v11581_v10 = vld [vmem:[%s12820_s19 + $0x30] sm:$0xff]  ;;  %8913 = vmatmul.mubr.msk.f32.vlgmr.msra.gmra.mrb[0].mxu1 %vm245_vm1, %v11540_v4  ;;  %v11596_v24 = vld [vmem:[%s12820_s19 + $0x38] sm:$0xff]  ;;  %v11601_v25 = vld [vmem:[%s12820_s19 + $0x40] sm:$0xff] }
  0xf8   :  { %8963 = vmatpush3.msk.msra.mxu0 %vm294_vm0, %v7366_v3  ;;  %8941 = vmatprep.mubr.msk.f32.mxu0 %vm245_vm1, %v11540_v4  ;;  %v11614_v32 = vld [vmem:[%s12820_s19 + $0x48] sm:$0xff]  ;;  %v11619_v33 = vld [vmem:[%s12820_s19 + $0x50] sm:$0xff]  ;;  %v1192_v39 = vld [vmem:[#allocation4 + $0x198] sm:$0xff] }
  0xf9   :  { %8988 = vmatprep.subr.msk.mxu0 %vm294_vm0, %v11562_v7  ;;  %8915 = vmatprep.mubr.msk.f32.mxu1 %vm245_vm1, %v11552_v5  ;;  %v1187_v37 = vld [vmem:[#allocation4 + $0x170] sm:$0xff]  ;;  %v1190_v38 = vld [vmem:[#allocation4 + $0x188] sm:$0xff]  ;;  %v11637_v41 = vld [vmem:[%s12820_s19 + $0x60] sm:$0xff] }
  0xfa   :  { %9337 = vmatpush1.bf16.msra.mxu1 %v9336_v17  ;;  %v11632_v40 = vld [vmem:[%s12820_s19 + $0x58] sm:$0xff]  ;;  %v9348_v42 = vpack.c.bf16 %v1187_v37, %v1185_v36  ;;  %v9350_v43 = vpack.c.bf16 %v1192_v39, %v1190_v38  ;;  %v1189_v44 = vld [vmem:[#allocation4 + $0x180] sm:$0xff]  ;;  %v1194_v46 = vld [vmem:[#allocation4 + $0x1a8] sm:$0xff] }
  0xfb   :  { %8942 = vmatmul.mubr.msk.f32.gmra.mrb[2].mxu0 %vm245_vm1, %v11552_v5  ;;  %8916 = vmatmul.mubr.msk.f32.gmra.mrb[2].mxu1 %vm245_vm1, %v11557_v6  ;;  %v1191_v45 = vld [vmem:[#allocation4 + $0x190] sm:$0xff]  ;;  %v1196_v47 = vld [vmem:[#allocation4 + $0x1b8] sm:$0xff]  ;;  %v11650_v48 = vld [vmem:[%s12820_s19 + $0x68] sm:$0xff] }
  0xfc   :  { %8944 = vmatprep.mubr.msk.f32.mxu0 %vm245_vm1, %v11557_v6  ;;  %9339 = vmatprep.subr.bf16.mxu1 %v9338_v21  ;;  %v11655_v49 = vld [vmem:[%s12820_s19 + $0x70] sm:$0xff]  ;;  %v9352_v50 = vpack.c.bf16 %v1191_v45, %v1189_v44  ;;  %v9354_v51 = vpack.c.bf16 %v1196_v47, %v1194_v46  ;;  %v1193_v52 = vld [vmem:[#allocation4 + $0x1a0] sm:$0xff]  ;;  %v237_v54 = vld [vmem:[%s12820_s19 + $0x78] sm:$0xff] }
  0xfd   :  { %8918 = vmatprep.mubr.msk.f32.mxu1 %vm245_vm1, %v11569_v8  ;;  %v1195_v53 = vld [vmem:[#allocation4 + $0x1b0] sm:$0xff]  ;;  %v7402_v56 = vld [vmem:[%s12798_s2 + $0x20] sm:$0x1f]  ;;  %v239_v58 = vld [vmem:[%s12820_s19 + $0x88] sm:$0xff] }
  0xfe   :  { %9341 = vmatpush1.bf16.msra.mxu1 %v9340_v26  ;;  %v9356_v55 = vpack.c.bf16 %v1195_v53, %v1193_v52  ;;  %v238_v57 = vld [vmem:[%s12820_s19 + $0x80] sm:$0xff]  ;;  %v240_v59 = vld [vmem:[%s12820_s19 + $0x90] sm:$0xff]  ;;  %v241_v60 = vld [vmem:[%s12820_s19 + $0x98] sm:$0xff] }
  0xff   :  { %8945 = vmatmul.mubr.msk.f32.gmra.mrb[4].mxu0 %vm245_vm1, %v11569_v8  ;;  %8919 = vmatmul.mubr.msk.f32.gmra.mrb[4].mxu1 %vm245_vm1, %v11581_v10  ;;  %v1198_v61 = vld [vmem:[#allocation4 + $0x1c8] sm:$0xff]  ;;  %v1200_v62 = vld [vmem:[#allocation4 + $0x1d8] sm:$0xff]  ;;  %v1197_v0 = vld [vmem:[#allocation4 + $0x1c0] sm:$0xff] }
 0x100   :  { %8947 = vmatprep.mubr.msk.f32.mxu0 %vm245_vm1, %v11581_v10  ;;  %9343 = vmatprep.subr.bf16.mxu1 %v9342_v27  ;;  %v9358_v63 = vpack.c.bf16 %v1200_v62, %v1198_v61  ;;  %v1199_v1 = vld [vmem:[#allocation4 + $0x1d0] sm:$0xff]  ;;  %v1202_v3 = vld [vmem:[#allocation4 + $0x1e8] sm:$0xff]  ;;  %v1143_v11 = vld [vmem:[#allocation4 + $0x18] sm:$0xff] }
 0x101   :  { %8921 = vmatprep.mubr.msk.f32.mxu1 %vm245_vm1, %v11596_v24  ;;  %v9360_v2 = vpack.c.bf16 %v1199_v1, %v1197_v0  ;;  %v11797_v31 = vld [vmem:[#allocation2] ss:$0 sm:$0xff]  ;;  %v1145_v36 = vld [vmem:[#allocation4 + $0x28] sm:$0xff]  ;;  %v1144_v47 = vld [vmem:[#allocation4 + $0x20] sm:$0xff] }
 0x102   :  { %9345 = vmatpush1.bf16.msra.mxu1 %v9344_v34  ;;  %v1140_v34 = vld [vmem:[#allocation4] sm:$0xff]  ;;  %v1147_v37 = vld [vmem:[#allocation4 + $0x38] sm:$0xff]  ;;  %v1153_v61 = vld [vmem:[#allocation4 + $0x68] sm:$0xff] }
 0x103   :  { %8948 = vmatmul.mubr.msk.f32.gmra.mrb[6].mxu0 %vm245_vm1, %v11596_v24  ;;  %8922 = vmatmul.mubr.msk.f32.gmra.mrb[6].mxu1 %vm245_vm1, %v11601_v25  ;;  %v9370_v46 = vpack.c.bf16 %v1147_v37, %v1145_v36  ;;  %v1155_v62 = vld [vmem:[#allocation4 + $0x78] sm:$0xff] }
 0x104   :  { %8950 = vmatprep.mubr.msk.f32.mxu0 %vm245_vm1, %v11601_v25  ;;  %9347 = vmatprep.subr.bf16.mxu1 %v9346_v35  ;;  %v1142_v35 = vld [vmem:[#allocation4 + $0x10] sm:$0xff] }
 0x105   :  { %8924 = vmatprep.mubr.msk.f32.mxu1 %vm245_vm1, %v11614_v32 }
 0x106   :  { %9349 = vmatpush1.bf16.msra.mxu1 %v9348_v42  ;;  %v9368_v42 = vpack.c.bf16 %v1142_v35, %v1140_v34 }
 0x107   :  { %8951 = vmatmul.mubr.msk.f32.gmra.mrb[8].mxu0 %vm245_vm1, %v11614_v32  ;;  %8925 = vmatmul.mubr.msk.f32.gmra.mrb[8].mxu1 %vm245_vm1, %v11619_v33 }
 0x108   :  { %8953 = vmatprep.mubr.msk.f32.mxu0 %vm245_vm1, %v11619_v33  ;;  %9351 = vmatprep.subr.bf16.mxu1 %v9350_v43 }
 0x109   :  { %8927 = vmatprep.mubr.msk.f32.mxu1 %vm245_vm1, %v11632_v40 }
 0x10a   :  { %9353 = vmatpush1.bf16.msra.mxu1 %v9352_v50  ;;  %v1151_v50 = vld [vmem:[#allocation4 + $0x58] sm:$0xff] }
 0x10b   :  { %8954 = vmatmul.mubr.msk.f32.gmra.mrb[10].mxu0 %vm245_vm1, %v11632_v40  ;;  %8928 = vmatmul.mubr.msk.f32.gmra.mrb[10].mxu1 %vm245_vm1, %v11637_v41 }
 0x10c   :  { %8956 = vmatprep.mubr.msk.f32.mxu0 %vm245_vm1, %v11637_v41  ;;  %9355 = vmatprep.subr.bf16.mxu1 %v9354_v51 }
 0x10d   :  { %8930 = vmatprep.mubr.msk.f32.mxu1 %vm245_vm1, %v11650_v48 }
 0x10e   :  { %9357 = vmatpush1.bf16.msra.mxu1 %v9356_v55 }
 0x10f   :  { %8957 = vmatmul.mubr.msk.f32.gmra.mrb[12].mxu0 %vm245_vm1, %v11650_v48  ;;  %8931 = vmatmul.mubr.msk.f32.gmra.mrb[12].mxu1 %vm245_vm1, %v11655_v49 }
 0x110   :  { %8959 = vmatprep.mubr.msk.f32.mxu0 %vm245_vm1, %v11655_v49  ;;  %8933 = vmatprep.mubr.msk.f32.mxu1 %vm245_vm1, %v237_v54 }
 0x111   :  { %9359 = vmatprep.subr.bf16.mxu1 %v9358_v63 }
 0x112   :  { %9361 = vmatpush1.bf16.msra.mxu1 %v9360_v2 }
 0x113   :  { %8960 = vmatmul.mubr.msk.f32.gmra.mrb[14].mxu0 %vm245_vm1, %v237_v54  ;;  %8934 = vmatmul.mubr.msk.f32.gmra.mrb[14].mxu1 %vm245_vm1, %v238_v57 }
 0x114   :  { %8964 = vmatprep.mubr.msk.f32.mxu0 %vm245_vm1, %v11540_v4  ;;  %v1204_v4 = vld [vmem:[#allocation4 + $0x1f8] sm:$0xff]  ;;  %1269 = vmatprep.mubr.f32.mxu1 %v11257_v9 }
 0x117   :  { %8965 = vmatmul.mubr.msk.f32.vlgmr.msra.gmra.mrb[0].mxu0 %vm245_vm1, %v11552_v5 }
 0x118   :  { %8989 = vmatpush3.msk.msra.mxu0 %vm294_vm0, %v11562_v7  ;;  %8967 = vmatprep.mubr.msk.f32.mxu0 %vm245_vm1, %v11557_v6  ;;  %v1203_v7 = vld [vmem:[#allocation4 + $0x1f0] sm:$0xff] }
 0x119   :  { %9014 = vmatprep.subr.msk.mxu0 %vm294_vm0, %v7402_v56 }
 0x11b   :  { %8968 = vmatmul.mubr.msk.f32.gmra.mrb[2].mxu0 %vm245_vm1, %v11569_v8 }
 0x11c   :  { %8970 = vmatprep.mubr.msk.f32.mxu0 %vm245_vm1, %v11581_v10 }
 0x11f   :  { %8971 = vmatmul.mubr.msk.f32.gmra.mrb[4].mxu0 %vm245_vm1, %v11596_v24 }
 0x120   :  { %8973 = vmatprep.mubr.msk.f32.mxu0 %vm245_vm1, %v11601_v25 }
 0x123   :  { %8974 = vmatmul.mubr.msk.f32.gmra.mrb[6].mxu0 %vm245_vm1, %v11614_v32 }
 0x124   :  { %8976 = vmatprep.mubr.msk.f32.mxu0 %vm245_vm1, %v11619_v33 }
 0x127   :  { %8977 = vmatmul.mubr.msk.f32.gmra.mrb[8].mxu0 %vm245_vm1, %v11632_v40 }
 0x128   :  { %8979 = vmatprep.mubr.msk.f32.mxu0 %vm245_vm1, %v11637_v41 }
 0x12b   :  { %8980 = vmatmul.mubr.msk.f32.gmra.mrb[10].mxu0 %vm245_vm1, %v11650_v48 }
 0x12c   :  { %8982 = vmatprep.mubr.msk.f32.mxu0 %vm245_vm1, %v11655_v49 }
 0x12f   :  { %8983 = vmatmul.mubr.msk.f32.gmra.mrb[12].mxu0 %vm245_vm1, %v237_v54 }
 0x130   :  { %8985 = vmatprep.mubr.msk.f32.mxu0 %vm245_vm1, %v238_v57 }
 0x133   :  { %8986 = vmatmul.mubr.msk.f32.gmra.mrb[14].mxu0 %vm245_vm1, %v239_v58 }
 0x134   :  { %8990 = vmatprep.mubr.msk.f32.mxu0 %vm245_vm1, %v11552_v5  ;;  %v9362_v5 = vpack.c.bf16 %v1204_v4, %v1202_v3 }
 0x136   :  { %9363 = vmatprep.subr.bf16.mxu1 %v9362_v5 }
 0x137   :  { %8991 = vmatmul.mubr.msk.f32.vlgmr.msra.gmra.mrb[0].mxu0 %vm245_vm1, %v11557_v6 }
 0x138   :  { %9015 = vmatpush3.msk.msra.mxu0 %vm294_vm0, %v7402_v56  ;;  %8993 = vmatprep.mubr.msk.f32.mxu0 %vm245_vm1, %v11569_v8 }
 0x13b   :  { %8994 = vmatmul.mubr.msk.f32.gmra.mrb[2].mxu0 %vm245_vm1, %v11581_v10 }
 0x13c   :  { %8996 = vmatprep.mubr.msk.f32.mxu0 %vm245_vm1, %v11596_v24 }
 0x13f   :  { %8997 = vmatmul.mubr.msk.f32.gmra.mrb[4].mxu0 %vm245_vm1, %v11601_v25 }
 0x140   :  { %8999 = vmatprep.mubr.msk.f32.mxu0 %vm245_vm1, %v11614_v32 }
 0x143   :  { %9000 = vmatmul.mubr.msk.f32.gmra.mrb[6].mxu0 %vm245_vm1, %v11619_v33 }
 0x144   :  { %9002 = vmatprep.mubr.msk.f32.mxu0 %vm245_vm1, %v11632_v40 }
 0x147   :  { %9003 = vmatmul.mubr.msk.f32.gmra.mrb[8].mxu0 %vm245_vm1, %v11637_v41 }
 0x148   :  { %9005 = vmatprep.mubr.msk.f32.mxu0 %vm245_vm1, %v11650_v48 }
 0x14b   :  { %9006 = vmatmul.mubr.msk.f32.gmra.mrb[10].mxu0 %vm245_vm1, %v11655_v49 }
 0x14c   :  { %9008 = vmatprep.mubr.msk.f32.mxu0 %vm245_vm1, %v237_v54 }
 0x14f   :  { %9009 = vmatmul.mubr.msk.f32.gmra.mrb[12].mxu0 %vm245_vm1, %v238_v57 }
 0x150   :  { %9011 = vmatprep.mubr.msk.f32.mxu0 %vm245_vm1, %v239_v58 }
 0x153   :  { %9012 = vmatmul.mubr.msk.f32.gmra.mrb[14].mxu0 %vm245_vm1, %v240_v59 }
 0x154   :  { %9016 = vmatprep.mubr.msk.f32.mxu0 %vm245_vm1, %v11557_v6  ;;  %v1201_v6 = vld [vmem:[#allocation4 + $0x1e0] sm:$0xff] }
 0x157   :  { %9017 = vmatmul.mubr.msk.f32.vlgmr.msra.gmra.mrb[0].mxu0 %vm245_vm1, %v11569_v8  ;;  %v9364_v8 = vpack.c.bf16 %v1203_v7, %v1201_v6  ;;  %v9378_v6 = vpack.c.bf16 %v1155_v62, %v1153_v61  ;;  %v1152_v7 = vld [vmem:[#allocation4 + $0x60] sm:$0xff] }
 0x158   :  { %9019 = vmatprep.mubr.msk.f32.mxu0 %vm245_vm1, %v11581_v10  ;;  %v1141_v10 = vld [vmem:[#allocation4 + $0x8] sm:$0xff]  ;;  %v1168_v62 = vld [vmem:[#allocation4 + $0xe0] sm:$0xff] }
 0x159   :  { %9365 = vmatpush1.bf16.msra.mxu1 %v9364_v8  ;;  %v9366_v12 = vpack.c.bf16 %v1143_v11, %v1141_v10  ;;  %v1154_v8 = vld [vmem:[#allocation4 + $0x70] sm:$0xff]  ;;  %v1157_v10 = vld [vmem:[#allocation4 + $0x88] sm:$0xff]  ;;  %v1159_v11 = vld [vmem:[#allocation4 + $0x98] sm:$0xff] }
 0x15b   :  { %9020 = vmatmul.mubr.msk.f32.gmra.mrb[2].mxu0 %vm245_vm1, %v11596_v24  ;;  %9367 = vmatprep.subr.bf16.mxu1 %v9366_v12 }
 0x15c   :  { %9022 = vmatprep.mubr.msk.f32.mxu0 %vm245_vm1, %v11601_v25 }
 0x15f   :  { %9023 = vmatmul.mubr.msk.f32.gmra.mrb[4].mxu0 %vm245_vm1, %v11614_v32 }
 0x160   :  { %9025 = vmatprep.mubr.msk.f32.mxu0 %vm245_vm1, %v11619_v33 }
 0x163   :  { %9026 = vmatmul.mubr.msk.f32.gmra.mrb[6].mxu0 %vm245_vm1, %v11632_v40 }
 0x164   :  { %9028 = vmatprep.mubr.msk.f32.mxu0 %vm245_vm1, %v11637_v41 }
 0x167   :  { %9029 = vmatmul.mubr.msk.f32.gmra.mrb[8].mxu0 %vm245_vm1, %v11650_v48  ;;  %v1146_v48 = vld [vmem:[#allocation4 + $0x30] sm:$0xff] }
 0x168   :  { %9031 = vmatprep.mubr.msk.f32.mxu0 %vm245_vm1, %v11655_v49  ;;  %v1149_v49 = vld [vmem:[#allocation4 + $0x48] sm:$0xff] }
 0x16b   :  { %9032 = vmatmul.mubr.msk.f32.gmra.mrb[10].mxu0 %vm245_vm1, %v237_v54  ;;  %v9372_v54 = vpack.c.bf16 %v1146_v48, %v1144_v47 }
 0x16c   :  { %9034 = vmatprep.mubr.msk.f32.mxu0 %vm245_vm1, %v238_v57 }
 0x16f   :  { %9035 = vmatmul.mubr.msk.f32.gmra.mrb[12].mxu0 %vm245_vm1, %v239_v58  ;;  %v9374_v58 = vpack.c.bf16 %v1151_v50, %v1149_v49 }
 0x170   :  { %9037 = vmatprep.mubr.msk.f32.mxu0 %vm245_vm1, %v240_v59  ;;  %v1148_v59 = vld [vmem:[#allocation4 + $0x40] sm:$0xff] }
 0x173   :  { %9038 = vmatmul.mubr.msk.f32.gmra.mrb[14].mxu0 %vm245_vm1, %v241_v60  ;;  %v1150_v60 = vld [vmem:[#allocation4 + $0x50] sm:$0xff] }
 0x174   :  { %v9376_v2 = vpack.c.bf16 %v1150_v60, %v1148_v59 }
 0x1ca   :  { %v8914_v13 = vpop.f32.mrb[0].mxu1 }
 0x1cb   :  { %v364_v14 = vpop.f32.mrb[1].mxu1 }
 0x1ce   :  { %v8917_v15 = vpop.f32.mrb[2].mxu1 }
 0x1cf   :  { %v374_v16 = vpop.f32.mrb[3].mxu1 }
 0x1d2   :  { %v8920_v17 = vpop.f32.mrb[4].mxu1 }
 0x1d3   :  { %v384_v18 = vpop.f32.mrb[5].mxu1 }
 0x1d6   :  { %v8923_v19 = vpop.f32.mrb[6].mxu1 }
 0x1d7   :  { %v394_v20 = vpop.f32.mrb[7].mxu1 }
 0x1da   :  { %v11781_v21 = vpop.f32.mrb[8].mxu1 }
 0x1db   :  { %v11783_v22 = vpop.f32.mrb[9].mxu1 }
 0x1de   :  { %v11785_v23 = vpop.f32.mrb[10].mxu1 }
 0x1df   :  { %v11787_v24 = vpop.f32.mrb[11].mxu1 }
 0x1e2   :  { %v11789_v25 = vpop.f32.mrb[12].mxu1 }
 0x1e3   :  { %v11791_v26 = vpop.f32.mrb[13].mxu1 }
 0x1e6   :  { %v11793_v27 = vpop.f32.mrb[14].mxu1 }
 0x1e7   :  { %v11795_v28 = vpop.f32.mrb[15].mxu1 }
 0x22a   :  { %v9018_v29 = vpop.f32.mrb[0].mxu0 }
 0x22b   :  { %v10658_v30 = vadd.f32 %v9018_v29, %v8914_v13  ;;  %v1006_v32 = vpop.f32.mrb[1].mxu0  ;;  %v1158_v29 = vld [vmem:[#allocation4 + $0x90] sm:$0xff] }
 0x22c   :  { %v10659_v33 = vadd.f32 %v1006_v32, %v364_v14  ;;  %v1163_v32 = vld [vmem:[#allocation4 + $0xb8] sm:$0xff] }
 0x22d   :  { %v1109_v43 = vadd.f32 %v10658_v30, %v11797_v31  ;;  %v1161_v30 = vld [vmem:[#allocation4 + $0xa8] sm:$0xff] }
 0x22e   :  { %v11800_v38 = vadd.f32 %v10659_v33, %v11797_v31  ;;  %v9021_v39 = vpop.f32.mrb[2].mxu0 }
 0x22f   :  { %v10660_v40 = vadd.f32 %v9021_v39, %v8917_v15  ;;  %v1016_v41 = vpop.f32.mrb[3].mxu0  ;;  %v11807_v55 = vmax.f32 %v1109_v43, 0.0  ;;  %v9380_v15 = vpack.c.bf16 %v1154_v8, %v1152_v7  ;;  %v9386_v39 = vpack.c.bf16 %v1163_v32, %v1161_v30  ;;  %v1167_v43 = vld [vmem:[#allocation4 + $0xd8] sm:$0xff]  ;;  %v1528_v30 = vld [vmem:[#allocation4 + $0x200] sm:$0xff]  ;;  %v1530_v32 = vld [vmem:[#allocation4 + $0x210] sm:$0xff] }
 0x230   :  { %v1124_v44 = vmax.f32 %v11800_v38, 0.0  ;;  %v10661_v45 = vadd.f32 %v1016_v41, %v374_v16  ;;  %v1162_v41 = vld [vmem:[#allocation4 + $0xb0] sm:$0xff]  ;;  %v1866_v38 = vld [vmem:[#allocation7 + $0x120] sm:$0xff] }
 0x231   :  { %v1111_v3 = vadd.f32 %v10660_v40, %v11797_v31  ;;  %v1160_v40 = vld [vmem:[#allocation4 + $0xa0] sm:$0xff] }
 0x232   :  { %v9024_v51 = vpop.f32.mrb[4].mxu0  ;;  %1270 = vmatmul.mubr.f32.vlgmr.msra.gmra.mrb[16].mxu1 %v1124_v44  ;;  %v1110_v56 = vadd.f32 %v10661_v45, %v11797_v31  ;;  %v9388_v47 = vpack.c.bf16 %v1162_v41, %v1160_v40  ;;  %v1536_v40 = vld [vmem:[#allocation4 + $0x240] sm:$0xff]  ;;  %v1538_v41 = vld [vmem:[#allocation4 + $0x250] sm:$0xff] }
 0x233   :  { %v10662_v52 = vadd.f32 %v9024_v51, %v8920_v17  ;;  %v1026_v53 = vpop.f32.mrb[5].mxu0  ;;  %9369 = vmatpush1.bf16.msra.mxu1 %v9368_v42  ;;  %1275 = vmatprep.mubr.f32.mxu1 %v11257_v9  ;;  %v11822_v16 = vmax.f32 %v1111_v3, 0.0  ;;  %v1165_v42 = vld [vmem:[#allocation4 + $0xc8] sm:$0xff]  ;;  %v1164_v51 = vld [vmem:[#allocation4 + $0xc0] sm:$0xff] }
 0x234   :  { %v10663_v57 = vadd.f32 %v1026_v53, %v384_v18  ;;  %9371 = vmatprep.subr.bf16.mxu1 %v9370_v46  ;;  %v11815_v4 = vmax.f32 %v1110_v56, 0.0  ;;  %v9390_v50 = vpack.c.bf16 %v1167_v43, %v1165_v42  ;;  %v1169_v53 = vld [vmem:[#allocation4 + $0xe8] sm:$0xff] }
 0x235   :  { %v1113_v36 = vadd.f32 %v10662_v52, %v11797_v31  ;;  %v1166_v52 = vld [vmem:[#allocation4 + $0xd0] sm:$0xff]  ;;  %v1541_v43 = vld [vmem:[#allocation4 + $0x268] sm:$0xff] }
 0x236   :  { %v9027_v63 = vpop.f32.mrb[6].mxu0  ;;  %1276 = vmatmul.mubr.f32.gmra.mrb[18].mxu1 %v11807_v55  ;;  %v1112_v17 = vadd.f32 %v10663_v57, %v11797_v31 }
 0x237   :  { %v11811_v0 = vadd.f32 %v9027_v63, %v8923_v19  ;;  %v1036_v1 = vpop.f32.mrb[7].mxu0  ;;  %1281 = vmatprep.mubr.f32.mxu1 %v11257_v9  ;;  %9373 = vmatpush1.bf16.msra.mxu1 %v9372_v54  ;;  %v9382_v19 = vpack.c.bf16 %v1159_v11, %v1157_v10  ;;  %v11838_v48 = vmax.f32 %v1113_v36, 0.0  ;;  %v1171_v54 = vld [vmem:[#allocation4 + $0xf8] sm:$0xff]  ;;  %v1170_v63 = vld [vmem:[#allocation4 + $0xf0] sm:$0xff] }
 0x238   :  { %v10665_v5 = vadd.f32 %v1036_v1, %v394_v20  ;;  %9375 = vmatprep.subr.bf16.mxu1 %v9374_v58  ;;  %v1156_v20 = vld [vmem:[#allocation4 + $0x80] sm:$0xff]  ;;  %v9392_v58 = vpack.c.bf16 %v1166_v52, %v1164_v51  ;;  %v9394_v61 = vpack.c.bf16 %v1171_v54, %v1169_v53  ;;  %v1529_v1 = vld [vmem:[#allocation4 + $0x208] sm:$0xff]  ;;  %v1534_v36 = vld [vmem:[#allocation4 + $0x230] sm:$0xff] }
 0x239   :  { %v9384_v35 = vpack.c.bf16 %v1158_v29, %v1156_v20  ;;  %v1115_v59 = vadd.f32 %v11811_v0, %v11797_v31  ;;  %v1880_v51 = vld [vmem:[#allocation7 + $0x190] sm:$0xff]  ;;  %v1881_v53 = vld [vmem:[#allocation7 + $0x198] sm:$0xff] }
 0x23a   :  { %v9030_v12 = vpop.f32.mrb[8].mxu0  ;;  %1282 = vmatmul.mubr.f32.gmra.mrb[20].mxu1 %v11815_v4  ;;  %v1864_v54 = vld [vmem:[#allocation7 + $0x110] sm:$0xff] }
 0x23b   :  { %v11819_v13 = vadd.f32 %v9030_v12, %v11781_v21  ;;  %v1046_v14 = vpop.f32.mrb[9].mxu0  ;;  %1287 = vmatprep.mubr.f32.mxu1 %v11257_v9  ;;  %9377 = vmatpush1.bf16.msra.mxu1 %v9376_v2  ;;  %v1531_v2 = vld [vmem:[#allocation4 + $0x218] sm:$0xff]  ;;  %v11852_v3 = vmax.f32 %v1115_v59, 0.0  ;;  %v1883_v59 = vld [vmem:[#allocation7 + $0x1a8] sm:$0xff] }
 0x23c   :  { %v10667_v18 = vadd.f32 %v1046_v14, %v11783_v22  ;;  %9379 = vmatprep.subr.bf16.mxu1 %v9378_v6  ;;  %v11832_v22 = vmax.f32 %v1112_v17, 0.0 }
 0x23e   :  { %v9033_v33 = vpop.f32.mrb[10].mxu0  ;;  %1288 = vmatmul.mubr.f32.gmra.mrb[22].mxu1 %v11822_v16  ;;  %v1116_v0 = vadd.f32 %v10667_v18, %v11797_v31 }
 0x23f   :  { %v11828_v21 = vadd.f32 %v9033_v33, %v11785_v23  ;;  %v1056_v34 = vpop.f32.mrb[11].mxu0  ;;  %1293 = vmatprep.mubr.f32.mxu1 %v11257_v9  ;;  %9381 = vmatpush1.bf16.msra.mxu1 %v9380_v15  ;;  %v1533_v33 = vld [vmem:[#allocation4 + $0x228] sm:$0xff] }
 0x240   :  { %v10669_v37 = vadd.f32 %v1056_v34, %v11787_v24  ;;  %9383 = vmatprep.subr.bf16.mxu1 %v9382_v19  ;;  %v1114_v24 = vadd.f32 %v10665_v5, %v11797_v31  ;;  %v9398_v5 = vpack.c.bf16 %v1531_v2, %v1529_v1  ;;  %v11859_v6 = vmax.f32 %v1116_v0, 0.0  ;;  %v1547_v2 = vld [vmem:[#allocation4 + $0x298] sm:$0xff] }
 0x241   :  { %v1119_v10 = vadd.f32 %v11828_v21, %v11797_v31  ;;  %v1535_v21 = vld [vmem:[#allocation4 + $0x238] sm:$0xff]  ;;  %v9400_v34 = vpack.c.bf16 %v1530_v32, %v1528_v30 }
 0x242   :  { %v9036_v45 = vpop.f32.mrb[12].mxu0  ;;  %1294 = vmatmul.mubr.f32.gmra.mrb[24].mxu1 %v11832_v22  ;;  %v1118_v8 = vadd.f32 %v10669_v37, %v11797_v31  ;;  %v1537_v37 = vld [vmem:[#allocation4 + $0x248] sm:$0xff]  ;;  %v1884_v0 = vld [vmem:[#allocation7 + $0x1b0] sm:$0xff] }
 0x243   :  { %v10670_v23 = vadd.f32 %v9036_v45, %v11789_v25  ;;  %v1066_v46 = vpop.f32.mrb[13].mxu0  ;;  %1299 = vmatprep.mubr.f32.mxu1 %v11257_v9  ;;  %9385 = vmatpush1.bf16.msra.mxu1 %v9384_v35  ;;  %v11874_v12 = vmax.f32 %v1119_v10, 0.0  ;;  %v1532_v35 = vld [vmem:[#allocation4 + $0x220] sm:$0xff]  ;;  %v1543_v45 = vld [vmem:[#allocation4 + $0x278] sm:$0xff] }
 0x244   :  { %v10671_v49 = vadd.f32 %v1066_v46, %v11791_v26  ;;  %9387 = vmatprep.subr.bf16.mxu1 %v9386_v39  ;;  %v11847_v26 = vmax.f32 %v1114_v24, 0.0  ;;  %v11870_v11 = vmax.f32 %v1118_v8, 0.0  ;;  %v1539_v39 = vld [vmem:[#allocation4 + $0x258] sm:$0xff]  ;;  %v9404_v42 = vpack.c.bf16 %v1534_v36, %v1532_v35  ;;  %v1879_v46 = vld [vmem:[#allocation7 + $0x188] sm:$0xff]  ;;  %v1544_v10 = vld [vmem:[#allocation4 + $0x280] sm:$0xff] }
 0x245   :  { %v1121_v14 = vadd.f32 %v10670_v23, %v11797_v31  ;;  %v1878_v23 = vld [vmem:[#allocation7 + $0x180] sm:$0xff]  ;;  %v1551_v30 = vld [vmem:[#allocation4 + $0x2b8] sm:$0xff] }
 0x246   :  { %v9039_v56 = vpop.f32.mrb[14].mxu0  ;;  %1300 = vmatmul.mubr.f32.gmra.mrb[26].mxu1 %v11838_v48  ;;  %v9430_v24 = vpack.c.bf16 %v1879_v46, %v1878_v23  ;;  %v1871_v23 = vld [vmem:[#allocation7 + $0x148] sm:$0xff]  ;;  %v1888_v46 = vld [vmem:[#allocation7 + $0x1d0] sm:$0xff] }
 0x247   :  { %v10672_v25 = vadd.f32 %v9039_v56, %v11793_v27  ;;  %v1076_v57 = vpop.f32.mrb[15].mxu0  ;;  %1305 = vmatprep.mubr.f32.mxu1 %v11257_v9  ;;  %9389 = vmatpush1.bf16.msra.mxu1 %v9388_v47  ;;  %v9396_v27 = vpack.c.bf16 %v1170_v63, %v1168_v62  ;;  %v11884_v17 = vmax.f32 %v1121_v14, 0.0  ;;  %v9406_v47 = vpack.c.bf16 %v1539_v39, %v1537_v37  ;;  %v1865_v56 = vld [vmem:[#allocation7 + $0x118] sm:$0xff]  ;;  %v1542_v62 = vld [vmem:[#allocation4 + $0x270] sm:$0xff]  ;;  %v1545_v63 = vld [vmem:[#allocation4 + $0x288] sm:$0xff] }
 0x248   :  { %v10673_v60 = vadd.f32 %v1076_v57, %v11795_v28  ;;  %9391 = vmatprep.subr.bf16.mxu1 %v9390_v50  ;;  %v1117_v28 = vadd.f32 %v11819_v13, %v11797_v31  ;;  %v1120_v13 = vadd.f32 %v10671_v49, %v11797_v31  ;;  %v1862_v49 = vld [vmem:[#allocation7 + $0x100] sm:$0xff]  ;;  %v1863_v50 = vld [vmem:[#allocation7 + $0x108] sm:$0xff]  ;;  %9431 = vmatprep.subr.bf16.mxu0 %v9430_v24 }
 0x249   :  { %v11890_v19 = vadd.f32 %v10672_v25, %v11797_v31  ;;  %v9432_v52 = vpack.c.bf16 %v1863_v50, %v1862_v49  ;;  %v9434_v25 = vpack.c.bf16 %v1881_v53, %v1880_v51  ;;  %v9408_v57 = vpack.c.bf16 %v1538_v41, %v1536_v40  ;;  %v1549_v14 = vld [vmem:[#allocation4 + $0x2a8] sm:$0xff]  ;;  %v1548_v37 = vld [vmem:[#allocation4 + $0x2a0] sm:$0xff]  ;;  %v1550_v39 = vld [vmem:[#allocation4 + $0x2b0] sm:$0xff] }
 0x24a   :  { %1306 = vmatmul.mubr.f32.gmra.mrb[28].mxu1 %v11847_v26  ;;  %v11863_v7 = vmax.f32 %v1117_v28, 0.0  ;;  %v11880_v15 = vmax.f32 %v1120_v13, 0.0  ;;  %v1122_v18 = vadd.f32 %v10673_v60, %v11797_v31  ;;  %v9402_v31 = vpack.c.bf16 %v1535_v21, %v1533_v33  ;;  %v1546_v13 = vld [vmem:[#allocation4 + $0x290] sm:$0xff]  ;;  %v1869_v21 = vld [vmem:[#allocation7 + $0x138] sm:$0xff]  ;;  %v1553_v40 = vld [vmem:[#allocation4 + $0x2c8] sm:$0xff] }
 0x24b   :  { %1311 = vmatprep.mubr.f32.mxu1 %v11257_v9  ;;  %9393 = vmatpush1.bf16.msra.mxu1 %v9392_v58  ;;  %v1139_v29 = vmax.f32 %v11890_v19, 0.0  ;;  %v1882_v58 = vld [vmem:[#allocation7 + $0x1a0] sm:$0xff]  ;;  %v9410_v60 = vpack.c.bf16 %v1543_v45, %v1541_v43  ;;  %v9436_v1 = vpack.c.bf16 %v1865_v56, %v1864_v54  ;;  %v9414_v8 = vpack.c.bf16 %v1547_v2, %v1545_v63  ;;  %v1868_v33 = vld [vmem:[#allocation7 + $0x130] sm:$0xff]  ;;  %v1877_v19 = vld [vmem:[#allocation7 + $0x178] sm:$0xff] }
 0x24c   :  { %9395 = vmatprep.subr.bf16.mxu1 %v9394_v61  ;;  %v11892_v20 = vmax.f32 %v1122_v18, 0.0  ;;  %v1540_v61 = vld [vmem:[#allocation4 + $0x260] sm:$0xff]  ;;  %9433 = vmatpush3.bf16.msra.mxu0 %v9432_v52  ;;  %v9416_v35 = vpack.c.bf16 %v1546_v13, %v1544_v10  ;;  %v9418_v36 = vpack.c.bf16 %v1551_v30, %v1549_v14  ;;  %v9444_v41 = vpack.c.bf16 %v1869_v21, %v1868_v33  ;;  %v1554_v51 = vld [vmem:[#allocation4 + $0x2d0] sm:$0xff]  ;;  %v1557_v52 = vld [vmem:[#allocation4 + $0x2e8] sm:$0xff] }
 0x24d   :  { %9435 = vmatprep.subr.bf16.mxu0 %v9434_v25  ;;  %v9412_v28 = vpack.c.bf16 %v1542_v62, %v1540_v61  ;;  %v1870_v45 = vld [vmem:[#allocation7 + $0x140] sm:$0xff]  ;;  %v9420_v24 = vpack.c.bf16 %v1550_v39, %v1548_v37  ;;  %v1559_v54 = vld [vmem:[#allocation4 + $0x2f8] sm:$0xff]  ;;  %v1558_v61 = vld [vmem:[#allocation4 + $0x2f0] sm:$0xff] }
 0x24e   :  { %1312 = vmatmul.mubr.f32.gmra.mrb[30].mxu1 %v11852_v3  ;;  %v1552_v50 = vld [vmem:[#allocation4 + $0x2c0] sm:$0xff]  ;;  %v9448_v53 = vpack.c.bf16 %v1871_v23, %v1870_v45  ;;  %v1872_v25 = vld [vmem:[#allocation7 + $0x150] sm:$0xff]  ;;  %v2040_v21 = vld [vmem:[#allocation7 + $0x228] sm:$0xff] }
 0x24f   :  { %1317 = vmatprep.mubr.f32.mxu1 %v11257_v9  ;;  %9397 = vmatpush1.bf16.msra.mxu1 %v9396_v27  ;;  %v9438_v27 = vpack.c.bf16 %v1883_v59, %v1882_v58  ;;  %v9424_v58 = vpack.c.bf16 %v1554_v51, %v1552_v50  ;;  %v9426_v59 = vpack.c.bf16 %v1559_v54, %v1557_v52  ;;  %v2051_v63 = vld [vmem:[#allocation7 + $0x280] sm:$0xff]  ;;  %v2037_v10 = vld [vmem:[#allocation7 + $0x210] sm:$0xff]  ;;  %v2038_v13 = vld [vmem:[#allocation7 + $0x218] sm:$0xff] }
 0x250   :  { %9399 = vmatprep.subr.bf16.mxu1 %v9398_v5  ;;  %v1885_v5 = vld [vmem:[#allocation7 + $0x1b8] sm:$0xff]  ;;  %9437 = vmatpush3.bf16.msra.mxu0 %v9436_v1  ;;  %v2052_v1 = vld [vmem:[#allocation7 + $0x288] sm:$0xff]  ;;  %v2055_v14 = vld [vmem:[#allocation7 + $0x2a0] sm:$0xff]  ;;  %v9500_v30 = vpack.c.bf16 %v2038_v13, %v2037_v10 }
 0x251   :  { %9439 = vmatprep.subr.bf16.mxu0 %v9438_v27  ;;  %v9442_v32 = vpack.c.bf16 %v1885_v5, %v1884_v0  ;;  %v9494_v27 = vpack.c.bf16 %v2052_v1, %v2051_v63  ;;  %v2053_v0 = vld [vmem:[#allocation7 + $0x290] sm:$0xff]  ;;  %v2054_v5 = vld [vmem:[#allocation7 + $0x298] sm:$0xff]  ;;  %v2039_v33 = vld [vmem:[#allocation7 + $0x220] sm:$0xff] }
 0x252   :  { %1318 = vmatmul.mubr.f32.gmra.mrb[32].mxu1 %v11859_v6  ;;  %v2041_v37 = vld [vmem:[#allocation7 + $0x230] sm:$0xff]  ;;  %v2059_v39 = vld [vmem:[#allocation7 + $0x2c0] sm:$0xff]  ;;  %v2062_v23 = vld [vmem:[#allocation7 + $0x2d8] sm:$0xff] }
 0x253   :  { %1323 = vmatprep.mubr.f32.mxu1 %v11257_v9  ;;  %v2061_v45 = vld [vmem:[#allocation7 + $0x2d0] sm:$0xff]  ;;  %v2064_v50 = vld [vmem:[#allocation7 + $0x2e8] sm:$0xff]  ;;  %v2259_v1 = vld [vmem:[#allocation7 + $0x480] sm:$0xff] }
 0x256   :  { %1324 = vmatmul.mubr.f32.gmra.mrb[34].mxu1 %v11863_v7 }
 0x257   :  { %1329 = vmatprep.mubr.f32.mxu1 %v11257_v9 }
 0x25a   :  { %1330 = vmatmul.mubr.f32.gmra.mrb[36].mxu1 %v11870_v11 }
 0x25b   :  { %1335 = vmatprep.mubr.f32.mxu1 %v11257_v9 }
 0x25e   :  { %1336 = vmatmul.mubr.f32.gmra.mrb[38].mxu1 %v11874_v12 }
 0x25f   :  { %1341 = vmatprep.mubr.f32.mxu1 %v11257_v9 }
 0x262   :  { %1342 = vmatmul.mubr.f32.gmra.mrb[40].mxu1 %v11880_v15 }
 0x263   :  { %1347 = vmatprep.mubr.f32.mxu1 %v11257_v9 }
 0x266   :  { %1348 = vmatmul.mubr.f32.gmra.mrb[42].mxu1 %v11884_v17 }
 0x267   :  { %1353 = vmatprep.mubr.f32.mxu1 %v11257_v9 }
 0x26a   :  { %1354 = vmatmul.mubr.f32.gmra.mrb[44].mxu1 %v11892_v20 }
 0x26b   :  { %1359 = vmatprep.mubr.f32.mxu1 %v11257_v9 }
 0x26e   :  { %1360 = vmatmul.mubr.f32.gmra.mrb[46].mxu1 %v1139_v29 }
 0x26f   :  { %1430 = vmatprep.mubr.f32.mxu1 %v11257_v9 }
 0x272   :  { %1431 = vmatmul.mubr.f32.vlgmr.msra.gmra.mrb[16].mxu1 %v11257_v9 }
 0x273   :  { %9401 = vmatpush1.bf16.msra.mxu1 %v9400_v34  ;;  %1436 = vmatprep.mubr.f32.mxu1 %v11257_v9  ;;  %v1886_v34 = vld [vmem:[#allocation7 + $0x1c0] sm:$0xff] }
 0x274   :  { %9403 = vmatprep.subr.bf16.mxu1 %v9402_v31  ;;  %v1887_v31 = vld [vmem:[#allocation7 + $0x1c8] sm:$0xff] }
 0x275   :  { %v9446_v43 = vpack.c.bf16 %v1887_v31, %v1886_v34  ;;  %v2057_v34 = vld [vmem:[#allocation7 + $0x2b0] sm:$0xff]  ;;  %v2058_v31 = vld [vmem:[#allocation7 + $0x2b8] sm:$0xff] }
 0x276   :  { %1437 = vmatmul.mubr.f32.gmra.mrb[18].mxu1 %v1124_v44  ;;  %v1867_v44 = vld [vmem:[#allocation7 + $0x128] sm:$0xff] }
 0x277   :  { %1442 = vmatprep.mubr.f32.mxu1 %v11257_v9  ;;  %9405 = vmatpush1.bf16.msra.mxu1 %v9404_v42  ;;  %v9440_v18 = vpack.c.bf16 %v1867_v44, %v1866_v38  ;;  %v1555_v42 = vld [vmem:[#allocation4 + $0x2d8] sm:$0xff]  ;;  %v2035_v38 = vld [vmem:[#allocation7 + $0x200] sm:$0xff]  ;;  %v2036_v44 = vld [vmem:[#allocation7 + $0x208] sm:$0xff] }
 0x278   :  { %9407 = vmatprep.subr.bf16.mxu1 %v9406_v47  ;;  %v1889_v47 = vld [vmem:[#allocation7 + $0x1d8] sm:$0xff]  ;;  %v9422_v49 = vpack.c.bf16 %v1555_v42, %v1553_v40  ;;  %v2060_v40 = vld [vmem:[#allocation7 + $0x2c8] sm:$0xff] }
 0x279   :  { %9441 = vmatpush3.bf16.msra.mxu0 %v9440_v18  ;;  %v9450_v56 = vpack.c.bf16 %v1889_v47, %v1888_v46  ;;  %v2056_v18 = vld [vmem:[#allocation7 + $0x2a8] sm:$0xff]  ;;  %v9510_v42 = vpack.c.bf16 %v2060_v40, %v2059_v39  ;;  %v9514_v47 = vpack.c.bf16 %v2062_v23, %v2061_v45  ;;  %v1831_v40 = vld [vmem:[#allocation7 + $0x10] sm:$0xff]  ;;  %v2243_v23 = vld [vmem:[#allocation7 + $0x400] sm:$0xff] }
 0x27a   :  { %1443 = vmatmul.mubr.f32.gmra.mrb[20].mxu1 %v11807_v55  ;;  %9443 = vmatprep.subr.bf16.mxu0 %v9442_v32  ;;  %v9502_v32 = vpack.c.bf16 %v2056_v18, %v2055_v14 }
 0x27b   :  { %1448 = vmatprep.mubr.f32.mxu1 %v11257_v9  ;;  %9409 = vmatpush1.bf16.msra.mxu1 %v9408_v57  ;;  %v1873_v57 = vld [vmem:[#allocation7 + $0x158] sm:$0xff] }
 0x27c   :  { %9411 = vmatprep.subr.bf16.mxu1 %v9410_v60  ;;  %v1556_v60 = vld [vmem:[#allocation4 + $0x2e0] sm:$0xff]  ;;  %v9452_v62 = vpack.c.bf16 %v1873_v57, %v1872_v25 }
 0x27d   :  { %9445 = vmatpush3.bf16.msra.mxu0 %v9444_v41  ;;  %v9428_v2 = vpack.c.bf16 %v1558_v61, %v1556_v60  ;;  %v2066_v25 = vld [vmem:[#allocation7 + $0x2f8] sm:$0xff]  ;;  %v1845_v57 = vld [vmem:[#allocation7 + $0x80] sm:$0xff]  ;;  %v1846_v61 = vld [vmem:[#allocation7 + $0x88] sm:$0xff] }
 0x27e   :  { %1449 = vmatmul.mubr.f32.gmra.mrb[22].mxu1 %v11815_v4  ;;  %9447 = vmatprep.subr.bf16.mxu0 %v9446_v43  ;;  %v2043_v43 = vld [vmem:[#allocation7 + $0x240] sm:$0xff]  ;;  %v2050_v60 = vld [vmem:[#allocation7 + $0x278] sm:$0xff]  ;;  %v9462_v63 = vpack.c.bf16 %v1846_v61, %v1845_v57 }
 0x27f   :  { %1454 = vmatprep.mubr.f32.mxu1 %v11257_v9  ;;  %9413 = vmatpush1.bf16.msra.mxu1 %v9412_v28  ;;  %v9496_v28 = vpack.c.bf16 %v2036_v44, %v2035_v38  ;;  %v1755_v38 = vlaneseq }
 0x280   :  { %9415 = vmatprep.subr.bf16.mxu1 %v9414_v8  ;;  %v9498_v8 = vpack.c.bf16 %v2054_v5, %v2053_v0  ;;  %v1753_v5 = vld [vmem:[#allocation6] sm:$0x3] }
 0x281   :  { %9449 = vmatpush3.bf16.msra.mxu0 %v9448_v53  ;;  %v1876_v53 = vld [vmem:[#allocation7 + $0x170] sm:$0xff]  ;;  %v11965_v44 = vshrl.u32 %v1755_v38, 7 }
 0x282   :  { %1455 = vmatmul.mubr.f32.gmra.mrb[24].mxu1 %v11822_v16  ;;  %9451 = vmatprep.subr.bf16.mxu0 %v9450_v56  ;;  %v9460_v54 = vpack.c.bf16 %v1877_v19, %v1876_v53  ;;  %v2065_v56 = vld [vmem:[#allocation7 + $0x2f0] sm:$0xff]  ;;  %v2246_v53 = vld [vmem:[#allocation7 + $0x418] sm:$0xff] }
 0x283   :  { %1460 = vmatprep.mubr.f32.mxu1 %v11257_v9  ;;  %9417 = vmatpush1.bf16.msra.mxu1 %v9416_v35  ;;  %v9504_v35 = vpack.c.bf16 %v2040_v21, %v2039_v33  ;;  %v1761_v0 = vsub.s32 1, %v11965_v44  ;;  %v1829_v33 = vld [vmem:[#allocation7] sm:$0xff]  ;;  %v1830_v21 = vld [vmem:[#allocation7 + $0x8] sm:$0xff]  ;;  %v1851_v19 = vld [vmem:[#allocation7 + $0xb0] sm:$0xff] }
 0x284   :  { %9419 = vmatprep.subr.bf16.mxu1 %v9418_v36  ;;  %v9506_v36 = vpack.c.bf16 %v2058_v31, %v2057_v34  ;;  %v9464_v39 = vpack.c.bf16 %v1830_v21, %v1829_v33 }
 0x285   :  { %9453 = vmatpush3.bf16.msra.mxu0 %v9452_v62  ;;  %v11973_v13 = vrot.slane %v1753_v5, %v1761_v0 }
 0x286   :  { %1461 = vmatmul.mubr.f32.gmra.mrb[26].mxu1 %v11832_v22 }
 0x287   :  { %1466 = vmatprep.mubr.f32.mxu1 %v11257_v9  ;;  %9421 = vmatpush1.bf16.msra.mxu1 %v9420_v24  ;;  %v2045_v24 = vld [vmem:[#allocation7 + $0x250] sm:$0xff] }
 0x288   :  { %9423 = vmatprep.subr.bf16.mxu1 %v9422_v49  ;;  %v2063_v49 = vld [vmem:[#allocation7 + $0x2e0] sm:$0xff] }
 0x289   :  { %v9518_v52 = vpack.c.bf16 %v2064_v50, %v2063_v49  ;;  %v1850_v49 = vld [vmem:[#allocation7 + $0xa8] sm:$0xff]  ;;  %v2261_v50 = vld [vmem:[#allocation7 + $0x490] sm:$0xff] }
 0x28a   :  { %1467 = vmatmul.mubr.f32.gmra.mrb[28].mxu1 %v11838_v48 }
 0x28b   :  { %1472 = vmatprep.mubr.f32.mxu1 %v11257_v9  ;;  %9425 = vmatpush1.bf16.msra.mxu1 %v9424_v58  ;;  %v9522_v58 = vpack.c.bf16 %v2066_v25, %v2065_v56  ;;  %v2264_v56 = vld [vmem:[#allocation7 + $0x4a8] sm:$0xff] }
 0x28c   :  { %9427 = vmatprep.subr.bf16.mxu1 %v9426_v59  ;;  %v2049_v59 = vld [vmem:[#allocation7 + $0x270] sm:$0xff] }
 0x28d   :  { %v9524_v62 = vpack.c.bf16 %v2050_v60, %v2049_v59  ;;  %v1835_v59 = vld [vmem:[#allocation7 + $0x30] sm:$0xff]  ;;  %v1836_v60 = vld [vmem:[#allocation7 + $0x38] sm:$0xff] }
 0x28e   :  { %1473 = vmatmul.mubr.f32.gmra.mrb[30].mxu1 %v11847_v26  ;;  %v9476_v33 = vpack.c.bf16 %v1836_v60, %v1835_v59  ;;  %v2254_v59 = vld [vmem:[#allocation7 + $0x458] sm:$0xff]  ;;  %v1859_v60 = vld [vmem:[#allocation7 + $0xf0] sm:$0xff] }
 0x28f   :  { %1478 = vmatprep.mubr.f32.mxu1 %v11257_v9  ;;  %9429 = vmatpush1.bf16.msra.mxu1 %v9428_v2  ;;  %v2260_v2 = vld [vmem:[#allocation7 + $0x488] sm:$0xff] }
 0x290   :  { %9495 = vmatprep.subr.bf16.mxu1 %v9494_v27  ;;  %v9558_v27 = vpack.c.bf16 %v2260_v2, %v2259_v1  ;;  %v2247_v1 = vld [vmem:[#allocation7 + $0x420] sm:$0xff]  ;;  %v2248_v2 = vld [vmem:[#allocation7 + $0x428] sm:$0xff] }
 0x291   :  { %v9568_v21 = vpack.c.bf16 %v2248_v2, %v2247_v1  ;;  %v2272_v1 = vld [vmem:[#allocation7 + $0x4e8] sm:$0xff] }
 0x292   :  { %1479 = vmatmul.mubr.f32.gmra.mrb[32].mxu1 %v11852_v3 }
 0x293   :  { %1484 = vmatprep.mubr.f32.mxu1 %v11257_v9 }
 0x296   :  { %1485 = vmatmul.mubr.f32.gmra.mrb[34].mxu1 %v11859_v6 }
 0x297   :  { %1490 = vmatprep.mubr.f32.mxu1 %v11257_v9 }
 0x29a   :  { %1491 = vmatmul.mubr.f32.gmra.mrb[36].mxu1 %v11863_v7 }
 0x29b   :  { %1496 = vmatprep.mubr.f32.mxu1 %v11257_v9 }
 0x29e   :  { %1497 = vmatmul.mubr.f32.gmra.mrb[38].mxu1 %v11870_v11 }
 0x29f   :  { %1502 = vmatprep.mubr.f32.mxu1 %v11257_v9 }
 0x2a2   :  { %1503 = vmatmul.mubr.f32.gmra.mrb[40].mxu1 %v11874_v12 }
 0x2a3   :  { %1508 = vmatprep.mubr.f32.mxu1 %v11257_v9 }
 0x2a6   :  { %1509 = vmatmul.mubr.f32.gmra.mrb[42].mxu1 %v11880_v15 }
 0x2a7   :  { %1514 = vmatprep.mubr.f32.mxu1 %v11257_v9 }
 0x2aa   :  { %1515 = vmatmul.mubr.f32.gmra.mrb[44].mxu1 %v11884_v17 }
 0x2ab   :  { %1520 = vmatprep.mubr.f32.mxu1 %v11257_v9 }
 0x2ae   :  { %1521 = vmatmul.mubr.f32.gmra.mrb[46].mxu1 %v11892_v20 }
 0x2af   :  { %1624 = vmatprep.mubr.f32.mxu1 %v11257_v9 }
 0x2b2   :  { %1625 = vmatmul.mubr.f32.vlgmr.msra.gmra.mrb[16].mxu1 %v11807_v55  ;;  %v2042_v55 = vld [vmem:[#allocation7 + $0x238] sm:$0xff] }
 0x2b3   :  { %1630 = vmatprep.mubr.f32.mxu1 %v11257_v9  ;;  %9497 = vmatpush3.bf16.msra.mxu1 %v9496_v28  ;;  %v9508_v41 = vpack.c.bf16 %v2042_v55, %v2041_v37  ;;  %v1757_v28 = vsub.s32 0, %v11965_v44 }
 0x2b4   :  { %9499 = vmatprep.subr.bf16.mxu1 %v9498_v8 }
 0x2b5   :  { %v11977_v14 = vrot.slane %v1753_v5, %v1757_v28  ;;  %v1854_v5 = vld [vmem:[#allocation7 + $0xc8] sm:$0xff] }
 0x2b6   :  { %1631 = vmatmul.mubr.f32.gmra.mrb[18].mxu1 %v11815_v4  ;;  %v2044_v4 = vld [vmem:[#allocation7 + $0x248] sm:$0xff] }
 0x2b7   :  { %1636 = vmatprep.mubr.f32.mxu1 %v11257_v9  ;;  %9501 = vmatpush3.bf16.msra.mxu1 %v9500_v30  ;;  %v9512_v46 = vpack.c.bf16 %v2044_v4, %v2043_v43 }
 0x2b8   :  { %9503 = vmatprep.subr.bf16.mxu1 %v9502_v32 }
 0x2ba   :  { %1637 = vmatmul.mubr.f32.gmra.mrb[20].mxu1 %v11822_v16  ;;  %v2046_v16 = vld [vmem:[#allocation7 + $0x258] sm:$0xff] }
 0x2bb   :  { %1642 = vmatprep.mubr.f32.mxu1 %v11257_v9  ;;  %9505 = vmatpush3.bf16.msra.mxu1 %v9504_v35  ;;  %v9516_v51 = vpack.c.bf16 %v2046_v16, %v2045_v24  ;;  %v1847_v35 = vld [vmem:[#allocation7 + $0x90] sm:$0xff] }
 0x2bc   :  { %9507 = vmatprep.subr.bf16.mxu1 %v9506_v36  ;;  %v1848_v36 = vld [vmem:[#allocation7 + $0x98] sm:$0xff] }
 0x2bd   :  { %v9466_v45 = vpack.c.bf16 %v1848_v36, %v1847_v35 }
 0x2be   :  { %1643 = vmatmul.mubr.f32.gmra.mrb[22].mxu1 %v11832_v22  ;;  %v1890_v22 = vld [vmem:[#allocation7 + $0x1e0] sm:$0xff] }
 0x2bf   :  { %1648 = vmatprep.mubr.f32.mxu1 %v11257_v9  ;;  %9509 = vmatpush3.bf16.msra.mxu1 %v9508_v41  ;;  %v1832_v41 = vld [vmem:[#allocation7 + $0x18] sm:$0xff] }
 0x2c0   :  { %9511 = vmatprep.subr.bf16.mxu1 %v9510_v42 }
 0x2c2   :  { %1649 = vmatmul.mubr.f32.gmra.mrb[24].mxu1 %v11838_v48  ;;  %v1891_v48 = vld [vmem:[#allocation7 + $0x1e8] sm:$0xff] }
 0x2c3   :  { %1654 = vmatprep.mubr.f32.mxu1 %v11257_v9  ;;  %9513 = vmatpush3.bf16.msra.mxu1 %v9512_v46  ;;  %v2244_v46 = vld [vmem:[#allocation7 + $0x408] sm:$0xff] }
 0x2c4   :  { %9515 = vmatprep.subr.bf16.mxu1 %v9514_v47  ;;  %v1849_v47 = vld [vmem:[#allocation7 + $0xa0] sm:$0xff] }
 0x2c6   :  { %1655 = vmatmul.mubr.f32.gmra.mrb[26].mxu1 %v11847_v26  ;;  %v9454_v26 = vpack.c.bf16 %v1891_v48, %v1890_v22  ;;  %v9468_v48 = vpack.c.bf16 %v1832_v41, %v1831_v40  ;;  %v2250_v40 = vld [vmem:[#allocation7 + $0x438] sm:$0xff]  ;;  %v1855_v41 = vld [vmem:[#allocation7 + $0xd0] sm:$0xff] }
 0x2c7   :  { %1660 = vmatprep.mubr.f32.mxu1 %v11257_v9  ;;  %9517 = vmatpush3.bf16.msra.mxu1 %v9516_v51  ;;  %v2262_v51 = vld [vmem:[#allocation7 + $0x498] sm:$0xff] }
 0x2c8   :  { %9519 = vmatprep.subr.bf16.mxu1 %v9518_v52  ;;  %9455 = vmatprep.subr.bf16.mxu0 %v9454_v26  ;;  %v9560_v26 = vpack.c.bf16 %v2244_v46, %v2243_v23 }
 0x2ca   :  { %1661 = vmatmul.mubr.f32.gmra.mrb[28].mxu1 %v11852_v3  ;;  %v1874_v3 = vld [vmem:[#allocation7 + $0x160] sm:$0xff] }
 0x2cb   :  { %1666 = vmatprep.mubr.f32.mxu1 %v11257_v9 }
 0x2ce   :  { %1667 = vmatmul.mubr.f32.gmra.mrb[30].mxu1 %v11859_v6  ;;  %v1875_v6 = vld [vmem:[#allocation7 + $0x168] sm:$0xff] }
 0x2cf   :  { %1672 = vmatprep.mubr.f32.mxu1 %v11257_v9 }
 0x2d2   :  { %1673 = vmatmul.mubr.f32.gmra.mrb[32].mxu1 %v11863_v7  ;;  %v9456_v7 = vpack.c.bf16 %v1875_v6, %v1874_v3  ;;  %v1833_v3 = vld [vmem:[#allocation7 + $0x20] sm:$0xff]  ;;  %v1834_v6 = vld [vmem:[#allocation7 + $0x28] sm:$0xff] }
 0x2d3   :  { %1678 = vmatprep.mubr.f32.mxu1 %v11257_v9  ;;  %v9472_v57 = vpack.c.bf16 %v1834_v6, %v1833_v3  ;;  %v1858_v3 = vld [vmem:[#allocation7 + $0xe8] sm:$0xff]  ;;  %v2269_v6 = vld [vmem:[#allocation7 + $0x4d0] sm:$0xff] }
 0x2d4   :  { %9457 = vmatpush3.bf16.msra.mxu0 %v9456_v7 }
 0x2d6   :  { %1679 = vmatmul.mubr.f32.gmra.mrb[34].mxu1 %v11870_v11  ;;  %v2047_v11 = vld [vmem:[#allocation7 + $0x260] sm:$0xff] }
 0x2d7   :  { %1684 = vmatprep.mubr.f32.mxu1 %v11257_v9 }
 0x2da   :  { %1685 = vmatmul.mubr.f32.gmra.mrb[36].mxu1 %v11874_v12  ;;  %v2048_v12 = vld [vmem:[#allocation7 + $0x268] sm:$0xff] }
 0x2db   :  { %1690 = vmatprep.mubr.f32.mxu1 %v11257_v9 }
 0x2de   :  { %1691 = vmatmul.mubr.f32.gmra.mrb[38].mxu1 %v11880_v15  ;;  %v1892_v15 = vld [vmem:[#allocation7 + $0x1f0] sm:$0xff] }
 0x2df   :  { %1696 = vmatprep.mubr.f32.mxu1 %v11257_v9 }
 0x2e2   :  { %1697 = vmatmul.mubr.f32.gmra.mrb[40].mxu1 %v11884_v17  ;;  %v9520_v17 = vpack.c.bf16 %v2048_v12, %v2047_v11 }
 0x2e3   :  { %1702 = vmatprep.mubr.f32.mxu1 %v11257_v9 }
 0x2e4   :  { %9521 = vmatpush3.bf16.msra.mxu1 %v9520_v17  ;;  %v9562_v17 = vpack.c.bf16 %v2262_v51, %v2261_v50 }
 0x2e5   :  { %9523 = vmatprep.subr.bf16.mxu1 %v9522_v58 }
 0x2e6   :  { %1703 = vmatmul.mubr.f32.gmra.mrb[42].mxu1 %v11892_v20  ;;  %v1893_v20 = vld [vmem:[#allocation7 + $0x1f8] sm:$0xff] }
 0x2e7   :  { %1708 = vmatprep.mubr.f32.mxu1 %v11257_v9 }
 0x2e8   :  { %9525 = vmatpush3.bf16.msra.mxu1 %v9524_v62 }
 0x2e9   :  { %9559 = vmatprep.subr.bf16.mxu1 %v9558_v27  ;;  %v1853_v27 = vld [vmem:[#allocation7 + $0xc0] sm:$0xff] }
 0x2ea   :  { %1709 = vmatmul.mubr.f32.gmra.mrb[44].mxu1 %v1139_v29  ;;  %v9458_v29 = vpack.c.bf16 %v1893_v20, %v1892_v15  ;;  %v9470_v15 = vpack.c.bf16 %v1850_v49, %v1849_v47  ;;  %v2245_v20 = vld [vmem:[#allocation7 + $0x410] sm:$0xff] }
 0x2eb   :  { %1714 = vmatprep.mubr.f32.mxu1 %v11257_v9  ;;  %v9564_v58 = vpack.c.bf16 %v2246_v53, %v2245_v20  ;;  %v1841_v53 = vld [vmem:[#allocation7 + $0x60] sm:$0xff] }
 0x2ec   :  { %9459 = vmatprep.subr.bf16.mxu0 %v9458_v29  ;;  %v1852_v29 = vld [vmem:[#allocation7 + $0xb8] sm:$0xff] }
 0x2ed   :  { %9461 = vmatpush3.bf16.msra.mxu0 %v9460_v54  ;;  %v2263_v54 = vld [vmem:[#allocation7 + $0x4a0] sm:$0xff]  ;;  %v9474_v62 = vpack.c.bf16 %v1852_v29, %v1851_v19  ;;  %v1842_v19 = vld [vmem:[#allocation7 + $0x68] sm:$0xff] }
 0x2ee   :  { %1715 = vmatmul.mubr.f32.gmra.mrb[46].mxu1 %v11257_v9  ;;  %9463 = vmatprep.subr.bf16.mxu0 %v9462_v63  ;;  %v9566_v63 = vpack.c.bf16 %v2264_v56, %v2263_v54 }
 0x385   :  { %v11969_v8 = vpop.f32.mrb[16].mxu1 }
 0x386   :  { %v1628_v10 = vpop.f32.mrb[17].mxu1 }
 0x387   :  { %v1766_v34 = vadd.f32 %v11973_v13, %v1628_v10  ;;  %v2265_v10 = vld [vmem:[#allocation7 + $0x4b0] sm:$0xff] }
 0x389   :  { %v1632_v18 = vpop.f32.mrb[18].mxu1  ;;  %v1798_v24 = vmax.f32 %v1766_v34, 0.0  ;;  %v1837_v34 = vld [vmem:[#allocation7 + $0x40] sm:$0xff] }
 0x38a   :  { %v1767_v30 = vadd.f32 %v11977_v14, %v1632_v18  ;;  %v1634_v32 = vpop.f32.mrb[19].mxu1  ;;  %v2266_v18 = vld [vmem:[#allocation7 + $0x4b8] sm:$0xff] }
 0x38b   :  { %v1768_v31 = vadd.f32 %v11973_v13, %v1634_v32 }
 0x38c   :  { %v1799_v42 = vmax.f32 %v1767_v30, 0.0 }
 0x38d   :  { %v1800_v37 = vmax.f32 %v1768_v31, 0.0  ;;  %v1638_v55 = vpop.f32.mrb[20].mxu1  ;;  %v1838_v31 = vld [vmem:[#allocation7 + $0x48] sm:$0xff] }
 0x38e   :  { %v1769_v43 = vadd.f32 %v11977_v14, %v1638_v55  ;;  %v1640_v4 = vpop.f32.mrb[21].mxu1  ;;  %v9570_v55 = vpack.c.bf16 %v2266_v18, %v2265_v10  ;;  %v9480_v46 = vpack.c.bf16 %v1838_v31, %v1837_v34  ;;  %v1844_v10 = vld [vmem:[#allocation7 + $0x78] sm:$0xff]  ;;  %v2255_v18 = vld [vmem:[#allocation7 + $0x460] sm:$0xff]  ;;  %v2256_v34 = vld [vmem:[#allocation7 + $0x468] sm:$0xff] }
 0x38f   :  { %v1770_v16 = vadd.f32 %v11973_v13, %v1640_v4  ;;  %1958 = vmatprep.mubr.f32.mxu0 %v1800_v37  ;;  %v9478_v37 = vpack.c.bf16 %v1854_v5, %v1853_v27  ;;  %v2267_v4 = vld [vmem:[#allocation7 + $0x4c0] sm:$0xff]  ;;  %v9488_v27 = vpack.c.bf16 %v1842_v19, %v1841_v53  ;;  %v1843_v5 = vld [vmem:[#allocation7 + $0x70] sm:$0xff] }
 0x390   :  { %1959 = vmatmul.mubr.f32.vlgmr.msra.gmra.mrb[16].mxu0 %v1799_v42  ;;  %v1801_v7 = vmax.f32 %v1769_v43, 0.0  ;;  %v1856_v43 = vld [vmem:[#allocation7 + $0xd8] sm:$0xff]  ;;  %v2155_v31 = vld [vmem:[#allocation7 + $0x380] sm:$0xff] }
 0x391   :  { %v1802_v52 = vmax.f32 %v1770_v16, 0.0  ;;  %9465 = vmatpush3.bf16.msra.mxu0 %v9464_v39  ;;  %v1644_v22 = vpop.f32.mrb[22].mxu1  ;;  %2028 = vmatprep.mubr.f32.mxu0 %v1798_v24  ;;  %v2249_v39 = vld [vmem:[#allocation7 + $0x430] sm:$0xff]  ;;  %v1840_v16 = vld [vmem:[#allocation7 + $0x58] sm:$0xff]  ;;  %v9482_v51 = vpack.c.bf16 %v1856_v43, %v1855_v41  ;;  %v9492_v41 = vpack.c.bf16 %v1844_v10, %v1843_v5  ;;  %v9584_v43 = vpack.c.bf16 %v2256_v34, %v2255_v18  ;;  %v2144_v34 = vld [vmem:[#allocation7 + $0x328] sm:$0xff] }
 0x392   :  { %v11985_v11 = vadd.f32 %v11977_v14, %v1644_v22  ;;  %v11987_v12 = vpop.f32.mrb[23].mxu1  ;;  %9467 = vmatprep.subr.bf16.mxu0 %v9466_v45  ;;  %v2268_v45 = vld [vmem:[#allocation7 + $0x4c8] sm:$0xff]  ;;  %v9572_v47 = vpack.c.bf16 %v2250_v40, %v2249_v39  ;;  %v1839_v24 = vld [vmem:[#allocation7 + $0x50] sm:$0xff]  ;;  %v2251_v22 = vld [vmem:[#allocation7 + $0x440] sm:$0xff] }
 0x393   :  { %2131 = vmatprep.mubr.f32.mxu1 %v1802_v52  ;;  %v9574_v52 = vpack.c.bf16 %v2268_v45, %v2267_v4  ;;  %v2274_v39 = vld [vmem:[#allocation7 + $0x4f8] sm:$0xff]  ;;  %v1765_v45 = vadd.f32 %v11977_v14, %v11969_v8  ;;  %v2467_v8 = vld [vmem:[#allocation7 + $0x680] sm:$0xff] }
 0x394   :  { %2132 = vmatmul.mubr.f32.vlgmr.msra.gmra.mrb[48].mxu1 %v1801_v7  ;;  %v2270_v7 = vld [vmem:[#allocation7 + $0x4d8] sm:$0xff] }
 0x395   :  { %9469 = vmatpush3.bf16.msra.mxu0 %v9468_v48  ;;  %9561 = vmatpush3.bf16.msra.mxu1 %v9560_v26  ;;  %v11989_v25 = vpop.f32.mrb[24].mxu1  ;;  %v2252_v48 = vld [vmem:[#allocation7 + $0x448] sm:$0xff]  ;;  %v1857_v26 = vld [vmem:[#allocation7 + $0xe0] sm:$0xff]  ;;  %v2470_v5 = vld [vmem:[#allocation7 + $0x698] sm:$0xff] }
 0x396   :  { %v1652_v61 = vpop.f32.mrb[25].mxu1  ;;  %9471 = vmatprep.subr.bf16.mxu0 %v9470_v15  ;;  %9563 = vmatprep.subr.bf16.mxu1 %v9562_v17  ;;  %v9484_v17 = vpack.c.bf16 %v1840_v16, %v1839_v24  ;;  %v9576_v20 = vpack.c.bf16 %v2252_v48, %v2251_v22  ;;  %v9486_v56 = vpack.c.bf16 %v1858_v3, %v1857_v26  ;;  %v2139_v24 = vld [vmem:[#allocation7 + $0x300] sm:$0xff]  ;;  %v2140_v16 = vld [vmem:[#allocation7 + $0x308] sm:$0xff]  ;;  %v2258_v48 = vld [vmem:[#allocation7 + $0x478] sm:$0xff] }
 0x397   :  { %v1774_v38 = vadd.f32 %v11973_v13, %v1652_v61  ;;  %v2157_v26 = vld [vmem:[#allocation7 + $0x390] sm:$0xff]  ;;  %v2158_v3 = vld [vmem:[#allocation7 + $0x398] sm:$0xff] }
 0x398   :  { %v9530_v19 = vpack.c.bf16 %v2158_v3, %v2157_v26  ;;  %v2145_v26 = vld [vmem:[#allocation7 + $0x330] sm:$0xff]  ;;  %v2146_v3 = vld [vmem:[#allocation7 + $0x338] sm:$0xff] }
 0x399   :  { %v1806_v30 = vmax.f32 %v1774_v38, 0.0  ;;  %9473 = vmatpush3.bf16.msra.mxu0 %v9472_v57  ;;  %9565 = vmatpush3.bf16.msra.mxu1 %v9564_v58  ;;  %v1656_v32 = vpop.f32.mrb[26].mxu1  ;;  %v9578_v57 = vpack.c.bf16 %v2270_v7, %v2269_v6  ;;  %v2253_v58 = vld [vmem:[#allocation7 + $0x450] sm:$0xff]  ;;  %v2468_v6 = vld [vmem:[#allocation7 + $0x688] sm:$0xff] }
 0x39a   :  { %v11993_v35 = vadd.f32 %v11977_v14, %v1656_v32  ;;  %v1658_v36 = vpop.f32.mrb[27].mxu1  ;;  %9475 = vmatprep.subr.bf16.mxu0 %v9474_v62  ;;  %9567 = vmatprep.subr.bf16.mxu1 %v9566_v63  ;;  %v1860_v62 = vld [vmem:[#allocation7 + $0xf8] sm:$0xff]  ;;  %v2271_v63 = vld [vmem:[#allocation7 + $0x4e0] sm:$0xff]  ;;  %v9580_v38 = vpack.c.bf16 %v2254_v59, %v2253_v58  ;;  %v1773_v58 = vadd.f32 %v11977_v14, %v11989_v25 }
 0x39b   :  { %v11996_v42 = vadd.f32 %v11973_v13, %v1658_v36  ;;  %2339 = vmatprep.mubr.f32.mxu1 %v1806_v30  ;;  %v2156_v36 = vld [vmem:[#allocation7 + $0x388] sm:$0xff] }
 0x39c   :  { %v9526_v4 = vpack.c.bf16 %v2156_v36, %v2155_v31  ;;  %v2453_v31 = vld [vmem:[#allocation7 + $0x610] sm:$0xff]  ;;  %v1805_v36 = vmax.f32 %v1773_v58, 0.0 }
 0x39d   :  { %9477 = vmatpush3.bf16.msra.mxu0 %v9476_v33  ;;  %9569 = vmatpush3.bf16.msra.mxu1 %v9568_v21  ;;  %v1662_v23 = vpop.f32.mrb[28].mxu1  ;;  %v9490_v33 = vpack.c.bf16 %v1860_v62, %v1859_v60  ;;  %v9582_v21 = vpack.c.bf16 %v2272_v1, %v2271_v63  ;;  %v9622_v60 = vpack.c.bf16 %v2468_v6, %v2467_v8  ;;  %v2451_v62 = vld [vmem:[#allocation7 + $0x600] sm:$0xff]  ;;  %v2452_v63 = vld [vmem:[#allocation7 + $0x608] sm:$0xff] }
 0x39e   :  { %v11999_v49 = vadd.f32 %v11977_v14, %v1662_v23  ;;  %v12001_v50 = vpop.f32.mrb[29].mxu1  ;;  %9479 = vmatprep.subr.bf16.mxu0 %v9478_v37  ;;  %9571 = vmatprep.subr.bf16.mxu1 %v9570_v55  ;;  %v2273_v55 = vld [vmem:[#allocation7 + $0x4f0] sm:$0xff]  ;;  %v2159_v1 = vld [vmem:[#allocation7 + $0x3a0] sm:$0xff] }
 0x39f   :  { %v2455_v8 = vld [vmem:[#allocation7 + $0x620] sm:$0xff] }
 0x3a1   :  { %9481 = vmatpush3.bf16.msra.mxu0 %v9480_v46  ;;  %9573 = vmatpush3.bf16.msra.mxu1 %v9572_v47  ;;  %v1668_v15 = vpop.f32.mrb[30].mxu1  ;;  %v9586_v47 = vpack.c.bf16 %v2274_v39, %v2273_v55 }
 0x3a2   :  { %v12004_v29 = vadd.f32 %v11977_v14, %v1668_v15  ;;  %v1670_v54 = vpop.f32.mrb[31].mxu1  ;;  %9483 = vmatprep.subr.bf16.mxu0 %v9482_v51  ;;  %9575 = vmatprep.subr.bf16.mxu1 %v9574_v52  ;;  %v2257_v51 = vld [vmem:[#allocation7 + $0x470] sm:$0xff]  ;;  %v1772_v52 = vadd.f32 %v11973_v13, %v11987_v12  ;;  %v9528_v15 = vpack.c.bf16 %v2140_v16, %v2139_v24 }
 0x3a3   :  { %v12007_v61 = vadd.f32 %v11973_v13, %v1670_v54  ;;  %v9588_v12 = vpack.c.bf16 %v2258_v48, %v2257_v51  ;;  %v2141_v54 = vld [vmem:[#allocation7 + $0x310] sm:$0xff] }
 0x3a5   :  { %9485 = vmatpush3.bf16.msra.mxu0 %v9484_v17  ;;  %9577 = vmatpush3.bf16.msra.mxu1 %v9576_v20  ;;  %v1674_v2 = vpop.f32.mrb[32].mxu1  ;;  %v1797_v17 = vmax.f32 %v1765_v45, 0.0  ;;  %v2471_v45 = vld [vmem:[#allocation7 + $0x6a0] sm:$0xff] }
 0x3a6   :  { %v12010_v30 = vadd.f32 %v11977_v14, %v1674_v2  ;;  %v1676_v32 = vpop.f32.mrb[33].mxu1  ;;  %9487 = vmatprep.subr.bf16.mxu0 %v9486_v56  ;;  %9579 = vmatprep.subr.bf16.mxu1 %v9578_v57  ;;  %v2142_v56 = vld [vmem:[#allocation7 + $0x318] sm:$0xff]  ;;  %v1804_v57 = vmax.f32 %v1772_v52, 0.0  ;;  %v1778_v2 = vadd.f32 %v11973_v13, %v12001_v50 }
 0x3a7   :  { %v12013_v37 = vadd.f32 %v11973_v13, %v1676_v32  ;;  %v9532_v18 = vpack.c.bf16 %v2142_v56, %v2141_v54  ;;  %v9540_v56 = vpack.c.bf16 %v2146_v3, %v2145_v26 }
 0x3a9   :  { %9489 = vmatpush3.bf16.msra.mxu0 %v9488_v27  ;;  %9581 = vmatpush3.bf16.msra.mxu1 %v9580_v38  ;;  %v1680_v40 = vpop.f32.mrb[34].mxu1  ;;  %v2160_v27 = vld [vmem:[#allocation7 + $0x3a8] sm:$0xff]  ;;  %v2469_v38 = vld [vmem:[#allocation7 + $0x690] sm:$0xff] }
 0x3aa   :  { %v12018_v23 = vadd.f32 %v11977_v14, %v1680_v40  ;;  %v1682_v46 = vpop.f32.mrb[35].mxu1  ;;  %9491 = vmatprep.subr.bf16.mxu0 %v9490_v33  ;;  %9583 = vmatprep.subr.bf16.mxu1 %v9582_v21  ;;  %v9624_v33 = vpack.c.bf16 %v2452_v63, %v2451_v62  ;;  %v2143_v21 = vld [vmem:[#allocation7 + $0x320] sm:$0xff]  ;;  %v9534_v55 = vpack.c.bf16 %v2160_v27, %v2159_v1  ;;  %v2454_v40 = vld [vmem:[#allocation7 + $0x618] sm:$0xff]  ;;  %v2148_v1 = vld [vmem:[#allocation7 + $0x348] sm:$0xff] }
 0x3ab   :  { %v12023_v22 = vadd.f32 %v11973_v13, %v1682_v46  ;;  %v9626_v39 = vpack.c.bf16 %v2470_v5, %v2469_v38  ;;  %v2472_v46 = vld [vmem:[#allocation7 + $0x6a8] sm:$0xff]  ;;  %v9536_v24 = vpack.c.bf16 %v2144_v34, %v2143_v21  ;;  %v9628_v52 = vpack.c.bf16 %v2454_v40, %v2453_v31  ;;  %v2147_v63 = vld [vmem:[#allocation7 + $0x340] sm:$0xff]  ;;  %v2458_v5 = vld [vmem:[#allocation7 + $0x638] sm:$0xff] }
 0x3ac   :  { %v9544_v34 = vpack.c.bf16 %v2148_v1, %v2147_v63  ;;  %v2149_v40 = vld [vmem:[#allocation7 + $0x350] sm:$0xff]  ;;  %v2480_v63 = vld [vmem:[#allocation7 + $0x6e8] sm:$0xff] }
 0x3ad   :  { %9493 = vmatpush3.bf16.msra.mxu0 %v9492_v41  ;;  %9585 = vmatpush3.bf16.msra.mxu1 %v9584_v43  ;;  %v1686_v7 = vpop.f32.mrb[36].mxu1  ;;  %v2161_v41 = vld [vmem:[#allocation7 + $0x3b0] sm:$0xff]  ;;  %v2162_v43 = vld [vmem:[#allocation7 + $0x3b8] sm:$0xff] }
 0x3ae   :  { %v12026_v20 = vadd.f32 %v11977_v14, %v1686_v7  ;;  %v1688_v53 = vpop.f32.mrb[37].mxu1  ;;  %9527 = vmatprep.subr.bf16.mxu0 %v9526_v4  ;;  %9587 = vmatprep.subr.bf16.mxu1 %v9586_v47  ;;  %v1810_v4 = vmax.f32 %v1778_v2, 0.0  ;;  %v9538_v48 = vpack.c.bf16 %v2162_v43, %v2161_v41  ;;  %v9630_v7 = vpack.c.bf16 %v2472_v46, %v2471_v45  ;;  %v2457_v2 = vld [vmem:[#allocation7 + $0x630] sm:$0xff]  ;;  %v2150_v41 = vld [vmem:[#allocation7 + $0x358] sm:$0xff]  ;;  %v2459_v43 = vld [vmem:[#allocation7 + $0x640] sm:$0xff] }
 0x3af   :  { %v12031_v59 = vadd.f32 %v11973_v13, %v1688_v53  ;;  %v2164_v53 = vld [vmem:[#allocation7 + $0x3c8] sm:$0xff]  ;;  %v9548_v26 = vpack.c.bf16 %v2150_v41, %v2149_v40  ;;  %v2347_v40 = vld [vmem:[#allocation7 + $0x500] sm:$0xff] }
 0x3b0   :  { %2029 = vmatmul.mubr.f32.vlgmr.msra.gmra.mrb[18].mxu0 %v1797_v17  ;;  %v2163_v17 = vld [vmem:[#allocation7 + $0x3c0] sm:$0xff]  ;;  %v2460_v46 = vld [vmem:[#allocation7 + $0x648] sm:$0xff] }
 0x3b1   :  { %9529 = vmatpush3.bf16.msra.mxu0 %v9528_v15  ;;  %2235 = vmatprep.mubr.f32.mxu0 %v1804_v57  ;;  %v1692_v10 = vpop.f32.mrb[38].mxu1  ;;  %v2456_v15 = vld [vmem:[#allocation7 + $0x628] sm:$0xff]  ;;  %v9542_v62 = vpack.c.bf16 %v2164_v53, %v2163_v17  ;;  %v2151_v17 = vld [vmem:[#allocation7 + $0x360] sm:$0xff] }
 0x3b2   :  { %9589 = vmatpush3.bf16.msra.mxu1 %v9588_v12  ;;  %v12036_v25 = vadd.f32 %v11977_v14, %v1692_v10  ;;  %v1694_v32 = vpop.f32.mrb[39].mxu1  ;;  %9531 = vmatprep.subr.bf16.mxu0 %v9530_v19  ;;  %v2473_v12 = vld [vmem:[#allocation7 + $0x6b0] sm:$0xff]  ;;  %v2474_v19 = vld [vmem:[#allocation7 + $0x6b8] sm:$0xff]  ;;  %v2152_v53 = vld [vmem:[#allocation7 + $0x368] sm:$0xff] }
 0x3b3   :  { %v12039_v50 = vadd.f32 %v11973_v13, %v1694_v32  ;;  %9623 = vmatprep.subr.bf16.mxu1 %v9622_v60  ;;  %v9632_v60 = vpack.c.bf16 %v2456_v15, %v2455_v8  ;;  %v9634_v38 = vpack.c.bf16 %v2474_v19, %v2473_v12  ;;  %v2165_v10 = vld [vmem:[#allocation7 + $0x3d0] sm:$0xff]  ;;  %v2475_v32 = vld [vmem:[#allocation7 + $0x6c0] sm:$0xff]  ;;  %v2348_v41 = vld [vmem:[#allocation7 + $0x508] sm:$0xff] }
 0x3b4   :  { %v2461_v12 = vld [vmem:[#allocation7 + $0x650] sm:$0xff] }
 0x3b5   :  { %2340 = vmatmul.mubr.f32.vlgmr.msra.gmra.mrb[50].mxu1 %v1805_v36  ;;  %9533 = vmatpush3.bf16.msra.mxu0 %v9532_v18  ;;  %v1698_v47 = vpop.f32.mrb[40].mxu1  ;;  %v2166_v18 = vld [vmem:[#allocation7 + $0x3d8] sm:$0xff] }
 0x3b6   :  { %9625 = vmatpush3.bf16.msra.mxu1 %v9624_v33  ;;  %2547 = vmatprep.mubr.f32.mxu1 %v1810_v4  ;;  %v12042_v16 = vadd.f32 %v11977_v14, %v1698_v47  ;;  %v1700_v51 = vpop.f32.mrb[41].mxu1  ;;  %v2476_v33 = vld [vmem:[#allocation7 + $0x6c8] sm:$0xff]  ;;  %v2167_v47 = vld [vmem:[#allocation7 + $0x3e0] sm:$0xff] }
 0x3b7   :  { %v12045_v6 = vadd.f32 %v11973_v13, %v1700_v51  ;;  %9535 = vmatprep.subr.bf16.mxu0 %v9534_v55  ;;  %9627 = vmatprep.subr.bf16.mxu1 %v9626_v39  ;;  %v9636_v55 = vpack.c.bf16 %v2458_v5, %v2457_v2  ;;  %v9546_v39 = vpack.c.bf16 %v2166_v18, %v2165_v10  ;;  %v2477_v51 = vld [vmem:[#allocation7 + $0x6d0] sm:$0xff]  ;;  %v2154_v5 = vld [vmem:[#allocation7 + $0x378] sm:$0xff]  ;;  %v2463_v10 = vld [vmem:[#allocation7 + $0x660] sm:$0xff] }
 0x3b8   :  { %v9638_v45 = vpack.c.bf16 %v2476_v33, %v2475_v32  ;;  %v2363_v32 = vld [vmem:[#allocation7 + $0x580] sm:$0xff]  ;;  %v2364_v33 = vld [vmem:[#allocation7 + $0x588] sm:$0xff] }
 0x3b9   :  { %9537 = vmatpush3.bf16.msra.mxu0 %v9536_v24  ;;  %v1704_v54 = vpop.f32.mrb[42].mxu1  ;;  %v2168_v24 = vld [vmem:[#allocation7 + $0x3e8] sm:$0xff] }
 0x3ba   :  { %9629 = vmatpush3.bf16.msra.mxu1 %v9628_v52  ;;  %v12048_v57 = vadd.f32 %v11977_v14, %v1704_v54  ;;  %v1706_v58 = vpop.f32.mrb[43].mxu1  ;;  %9539 = vmatprep.subr.bf16.mxu0 %v9538_v48  ;;  %v2478_v52 = vld [vmem:[#allocation7 + $0x6d8] sm:$0xff]  ;;  %v9550_v15 = vpack.c.bf16 %v2168_v24, %v2167_v47  ;;  %v2365_v47 = vld [vmem:[#allocation7 + $0x590] sm:$0xff] }
 0x3bb   :  { %v12051_v27 = vadd.f32 %v11973_v13, %v1706_v58  ;;  %9631 = vmatprep.subr.bf16.mxu1 %v9630_v7  ;;  %v9640_v7 = vpack.c.bf16 %v2460_v46, %v2459_v43  ;;  %v9642_v54 = vpack.c.bf16 %v2478_v52, %v2477_v51  ;;  %v2169_v58 = vld [vmem:[#allocation7 + $0x3f0] sm:$0xff]  ;;  %v2466_v46 = vld [vmem:[#allocation7 + $0x678] sm:$0xff]  ;;  %v2675_v51 = vld [vmem:[#allocation7 + $0x880] sm:$0xff] }
 0x3bc   :  { %v2465_v43 = vld [vmem:[#allocation7 + $0x670] sm:$0xff]  ;;  %v2366_v24 = vld [vmem:[#allocation7 + $0x598] sm:$0xff]  ;;  %v2676_v52 = vld [vmem:[#allocation7 + $0x888] sm:$0xff] }
 0x3bd   :  { %9541 = vmatpush3.bf16.msra.mxu0 %v9540_v56  ;;  %v1710_v21 = vpop.f32.mrb[44].mxu1  ;;  %v2462_v56 = vld [vmem:[#allocation7 + $0x658] sm:$0xff] }
 0x3be   :  { %9633 = vmatpush3.bf16.msra.mxu1 %v9632_v60  ;;  %v12054_v31 = vadd.f32 %v11977_v14, %v1710_v21  ;;  %v1712_v36 = vpop.f32.mrb[45].mxu1  ;;  %9543 = vmatprep.subr.bf16.mxu0 %v9542_v62  ;;  %v2170_v60 = vld [vmem:[#allocation7 + $0x3f8] sm:$0xff]  ;;  %v2479_v62 = vld [vmem:[#allocation7 + $0x6e0] sm:$0xff]  ;;  %v9644_v1 = vpack.c.bf16 %v2462_v56, %v2461_v12  ;;  %v2481_v21 = vld [vmem:[#allocation7 + $0x6f0] sm:$0xff]  ;;  %v9686_v12 = vpack.c.bf16 %v2676_v52, %v2675_v51 }
 0x3bf   :  { %v12057_v4 = vadd.f32 %v11973_v13, %v1712_v36  ;;  %9635 = vmatprep.subr.bf16.mxu1 %v9634_v38  ;;  %v9554_v2 = vpack.c.bf16 %v2170_v60, %v2169_v58  ;;  %v2153_v38 = vld [vmem:[#allocation7 + $0x370] sm:$0xff]  ;;  %v9646_v18 = vpack.c.bf16 %v2480_v63, %v2479_v62  ;;  %v2660_v56 = vld [vmem:[#allocation7 + $0x808] sm:$0xff]  ;;  %v2367_v58 = vld [vmem:[#allocation7 + $0x5a0] sm:$0xff] }
 0x3c0   :  { %v9556_v36 = vpack.c.bf16 %v2154_v5, %v2153_v38  ;;  %v2368_v60 = vld [vmem:[#allocation7 + $0x5a8] sm:$0xff]  ;;  %v2677_v62 = vld [vmem:[#allocation7 + $0x890] sm:$0xff]  ;;  %v2678_v63 = vld [vmem:[#allocation7 + $0x898] sm:$0xff] }
 0x3c1   :  { %9545 = vmatpush3.bf16.msra.mxu0 %v9544_v34  ;;  %v1716_v48 = vpop.f32.mrb[46].mxu1  ;;  %v2482_v34 = vld [vmem:[#allocation7 + $0x6f8] sm:$0xff]  ;;  %v2661_v38 = vld [vmem:[#allocation7 + $0x810] sm:$0xff]  ;;  %v9598_v5 = vpack.c.bf16 %v2368_v60, %v2367_v58 }
 0x3c2   :  { %9637 = vmatpush3.bf16.msra.mxu1 %v9636_v55  ;;  %v12060_v3 = vadd.f32 %v11977_v14, %v1716_v48  ;;  %v1718_v8 = vpop.f32.mrb[47].mxu1  ;;  %9547 = vmatprep.subr.bf16.mxu0 %v9546_v39  ;;  %v9552_v14 = vpack.c.bf16 %v2152_v53, %v2151_v17  ;;  %v9590_v39 = vpack.c.bf16 %v2364_v33, %v2363_v32  ;;  %v2350_v17 = vld [vmem:[#allocation7 + $0x518] sm:$0xff]  ;;  %v1808_v53 = vmax.f32 %v11996_v42, 0.0 }
 0x3c3   :  { %v12063_v19 = vadd.f32 %v11973_v13, %v1718_v8  ;;  %9639 = vmatprep.subr.bf16.mxu1 %v9638_v45  ;;  %v2464_v13 = vld [vmem:[#allocation7 + $0x668] sm:$0xff]  ;;  %v9650_v45 = vpack.c.bf16 %v2482_v34, %v2481_v21  ;;  %v9592_v48 = vpack.c.bf16 %v2348_v41, %v2347_v40  ;;  %v9652_v8 = vpack.c.bf16 %v2466_v46, %v2465_v43  ;;  %v2370_v32 = vld [vmem:[#allocation7 + $0x5b8] sm:$0xff]  ;;  %v2679_v21 = vld [vmem:[#allocation7 + $0x8a0] sm:$0xff] }
 0x3c4   :  { %v9648_v55 = vpack.c.bf16 %v2464_v13, %v2463_v10  ;;  %v1809_v42 = vmax.f32 %v11999_v49, 0.0  ;;  %v9690_v10 = vpack.c.bf16 %v2678_v63, %v2677_v62  ;;  %v2369_v13 = vld [vmem:[#allocation7 + $0x5b0] sm:$0xff]  ;;  %v1814_v33 = vmax.f32 %v12013_v37, 0.0  ;;  %v2680_v34 = vld [vmem:[#allocation7 + $0x8a8] sm:$0xff]  ;;  %v2354_v41 = vld [vmem:[#allocation7 + $0x538] sm:$0xff] }
 0x3c5   :  { %9549 = vmatpush3.bf16.msra.mxu0 %v9548_v26  ;;  %v1803_v26 = vmax.f32 %v11985_v11, 0.0  ;;  %v2353_v40 = vld [vmem:[#allocation7 + $0x530] sm:$0xff]  ;;  %v2663_v49 = vld [vmem:[#allocation7 + $0x820] sm:$0xff]  ;;  %v9694_v43 = vpack.c.bf16 %v2680_v34, %v2679_v21  ;;  %v2682_v37 = vld [vmem:[#allocation7 + $0x8b8] sm:$0xff] }
 0x3c6   :  { %9641 = vmatpush3.bf16.msra.mxu1 %v9640_v7  ;;  %9551 = vmatprep.subr.bf16.mxu0 %v9550_v15  ;;  %v9594_v7 = vpack.c.bf16 %v2366_v24, %v2365_v47  ;;  %v2349_v15 = vld [vmem:[#allocation7 + $0x510] sm:$0xff]  ;;  %v2371_v46 = vld [vmem:[#allocation7 + $0x5c0] sm:$0xff]  ;;  %v2372_v47 = vld [vmem:[#allocation7 + $0x5c8] sm:$0xff]  ;;  %v9604_v51 = vpack.c.bf16 %v2354_v41, %v2353_v40 }
 0x3c7   :  { %9643 = vmatprep.subr.bf16.mxu1 %v9642_v54  ;;  %v2659_v54 = vld [vmem:[#allocation7 + $0x800] sm:$0xff]  ;;  %v9596_v11 = vpack.c.bf16 %v2350_v17, %v2349_v15  ;;  %v2681_v24 = vld [vmem:[#allocation7 + $0x8b0] sm:$0xff]  ;;  %v2666_v17 = vld [vmem:[#allocation7 + $0x838] sm:$0xff] }
 0x3c8   :  { %v9698_v15 = vpack.c.bf16 %v2682_v37, %v2681_v24  ;;  %v2357_v63 = vld [vmem:[#allocation7 + $0x550] sm:$0xff]  ;;  %v2360_v21 = vld [vmem:[#allocation7 + $0x568] sm:$0xff]  ;;  %v2378_v40 = vld [vmem:[#allocation7 + $0x5f8] sm:$0xff] }
 0x3c9   :  { %9553 = vmatpush3.bf16.msra.mxu0 %v9552_v14  ;;  %v9688_v14 = vpack.c.bf16 %v2660_v56, %v2659_v54  ;;  %v2683_v54 = vld [vmem:[#allocation7 + $0x8c0] sm:$0xff]  ;;  %v2684_v56 = vld [vmem:[#allocation7 + $0x8c8] sm:$0xff]  ;;  %v2669_v34 = vld [vmem:[#allocation7 + $0x850] sm:$0xff] }
 0x3ca   :  { %9645 = vmatpush3.bf16.msra.mxu1 %v9644_v1  ;;  %9555 = vmatprep.subr.bf16.mxu0 %v9554_v2  ;;  %v2351_v1 = vld [vmem:[#allocation7 + $0x520] sm:$0xff]  ;;  %v2352_v2 = vld [vmem:[#allocation7 + $0x528] sm:$0xff]  ;;  %v2362_v24 = vld [vmem:[#allocation7 + $0x578] sm:$0xff] }
 0x3cb   :  { %9647 = vmatprep.subr.bf16.mxu1 %v9646_v18  ;;  %v2662_v18 = vld [vmem:[#allocation7 + $0x818] sm:$0xff]  ;;  %v2687_v41 = vld [vmem:[#allocation7 + $0x8e0] sm:$0xff] }
 0x3cc   :  { %v2671_v37 = vld [vmem:[#allocation7 + $0x860] sm:$0xff] }
 0x3cd   :  { %9557 = vmatpush3.bf16.msra.mxu0 %v9556_v36  ;;  %v9600_v36 = vpack.c.bf16 %v2352_v2, %v2351_v1  ;;  %v9702_v1 = vpack.c.bf16 %v2684_v56, %v2683_v54  ;;  %v2668_v2 = vld [vmem:[#allocation7 + $0x848] sm:$0xff]  ;;  %v2673_v56 = vld [vmem:[#allocation7 + $0x870] sm:$0xff] }
 0x3ce   :  { %9649 = vmatpush3.bf16.msra.mxu1 %v9648_v55  ;;  %9591 = vmatprep.subr.bf16.mxu0 %v9590_v39  ;;  %v9692_v55 = vpack.c.bf16 %v2662_v18, %v2661_v38  ;;  %v9602_v39 = vpack.c.bf16 %v2370_v32, %v2369_v13  ;;  %v2375_v38 = vld [vmem:[#allocation7 + $0x5e0] sm:$0xff]  ;;  %v2556_v54 = vld [vmem:[#allocation7 + $0x708] sm:$0xff] }
 0x3cf   :  { %9651 = vmatprep.subr.bf16.mxu1 %v9650_v45  ;;  %v2664_v45 = vld [vmem:[#allocation7 + $0x828] sm:$0xff] }
 0x3d0   :  { %2236 = vmatmul.mubr.f32.vlgmr.msra.gmra.mrb[20].mxu0 %v1803_v26  ;;  %v9696_v52 = vpack.c.bf16 %v2664_v45, %v2663_v49  ;;  %v2355_v26 = vld [vmem:[#allocation7 + $0x540] sm:$0xff]  ;;  %v2688_v49 = vld [vmem:[#allocation7 + $0x8e8] sm:$0xff] }
 0x3d1   :  { %9593 = vmatpush3.bf16.msra.mxu0 %v9592_v48  ;;  %2443 = vmatprep.mubr.f32.mxu0 %v1808_v53  ;;  %v9606_v48 = vpack.c.bf16 %v2372_v47, %v2371_v46  ;;  %v2373_v53 = vld [vmem:[#allocation7 + $0x5d0] sm:$0xff] }
 0x3d2   :  { %9653 = vmatpush3.bf16.msra.mxu1 %v9652_v8  ;;  %9595 = vmatprep.subr.bf16.mxu0 %v9594_v7  ;;  %v2356_v8 = vld [vmem:[#allocation7 + $0x548] sm:$0xff]  ;;  %v2665_v7 = vld [vmem:[#allocation7 + $0x830] sm:$0xff] }
 0x3d3   :  { %9687 = vmatprep.subr.bf16.mxu1 %v9686_v12  ;;  %v2374_v12 = vld [vmem:[#allocation7 + $0x5d8] sm:$0xff]  ;;  %v9608_v58 = vpack.c.bf16 %v2356_v8, %v2355_v26  ;;  %v9700_v60 = vpack.c.bf16 %v2666_v17, %v2665_v7  ;;  %v2361_v47 = vld [vmem:[#allocation7 + $0x570] sm:$0xff]  ;;  %v2572_v26 = vld [vmem:[#allocation7 + $0x788] sm:$0xff] }
 0x3d4   :  { %v9610_v62 = vpack.c.bf16 %v2374_v12, %v2373_v53  ;;  %v2689_v8 = vld [vmem:[#allocation7 + $0x8f0] sm:$0xff]  ;;  %v2690_v7 = vld [vmem:[#allocation7 + $0x8f8] sm:$0xff]  ;;  %v2555_v12 = vld [vmem:[#allocation7 + $0x700] sm:$0xff] }
 0x3d5   :  { %2548 = vmatmul.mubr.f32.vlgmr.msra.gmra.mrb[52].mxu1 %v1809_v42  ;;  %9597 = vmatpush3.bf16.msra.mxu0 %v9596_v11  ;;  %v2358_v11 = vld [vmem:[#allocation7 + $0x558] sm:$0xff]  ;;  %v2376_v42 = vld [vmem:[#allocation7 + $0x5e8] sm:$0xff] }
 0x3d6   :  { %9689 = vmatpush3.bf16.msra.mxu1 %v9688_v14  ;;  %2755 = vmatprep.mubr.f32.mxu1 %v1814_v33  ;;  %v2667_v14 = vld [vmem:[#allocation7 + $0x840] sm:$0xff]  ;;  %v9612_v18 = vpack.c.bf16 %v2358_v11, %v2357_v63  ;;  %v9614_v32 = vpack.c.bf16 %v2376_v42, %v2375_v38  ;;  %v2574_v63 = vld [vmem:[#allocation7 + $0x798] sm:$0xff] }
 0x3d7   :  { %9599 = vmatprep.subr.bf16.mxu0 %v9598_v5  ;;  %9691 = vmatprep.subr.bf16.mxu1 %v9690_v10  ;;  %v2685_v5 = vld [vmem:[#allocation7 + $0x8d0] sm:$0xff]  ;;  %v2686_v10 = vld [vmem:[#allocation7 + $0x8d8] sm:$0xff]  ;;  %v9704_v13 = vpack.c.bf16 %v2668_v2, %v2667_v14  ;;  %v2359_v33 = vld [vmem:[#allocation7 + $0x560] sm:$0xff]  ;;  %v1807_v2 = vmax.f32 %v11993_v35, 0.0 }
 0x3d8   :  { %v2883_v11 = vld [vmem:[#allocation7 + $0xa80] sm:$0xff]  ;;  %v2884_v14 = vld [vmem:[#allocation7 + $0xa88] sm:$0xff] }
 0x3d9   :  { %9601 = vmatpush3.bf16.msra.mxu0 %v9600_v36  ;;  %v9706_v36 = vpack.c.bf16 %v2686_v10, %v2685_v5  ;;  %v2557_v5 = vld [vmem:[#allocation7 + $0x710] sm:$0xff]  ;;  %v2558_v10 = vld [vmem:[#allocation7 + $0x718] sm:$0xff] }
 0x3da   :  { %9693 = vmatpush3.bf16.msra.mxu1 %v9692_v55  ;;  %9603 = vmatprep.subr.bf16.mxu0 %v9602_v39  ;;  %v2670_v55 = vld [vmem:[#allocation7 + $0x858] sm:$0xff]  ;;  %v2377_v39 = vld [vmem:[#allocation7 + $0x5f0] sm:$0xff]  ;;  %v9660_v35 = vpack.c.bf16 %v2558_v10, %v2557_v5  ;;  %v2891_v5 = vld [vmem:[#allocation7 + $0xac0] sm:$0xff] }
 0x3db   :  { %9695 = vmatprep.subr.bf16.mxu1 %v9694_v43  ;;  %v9616_v43 = vpack.c.bf16 %v2360_v21, %v2359_v33  ;;  %v9708_v45 = vpack.c.bf16 %v2670_v55, %v2669_v34  ;;  %v9618_v46 = vpack.c.bf16 %v2378_v40, %v2377_v39  ;;  %v2868_v33 = vld [vmem:[#allocation7 + $0xa08] sm:$0xff]  ;;  %v2575_v21 = vld [vmem:[#allocation7 + $0x7a0] sm:$0xff]  ;;  %v2886_v55 = vld [vmem:[#allocation7 + $0xa98] sm:$0xff] }
 0x3dc   :  { %v2576_v34 = vld [vmem:[#allocation7 + $0x7a8] sm:$0xff]  ;;  %v2559_v40 = vld [vmem:[#allocation7 + $0x720] sm:$0xff] }
 0x3dd   :  { %9605 = vmatpush3.bf16.msra.mxu0 %v9604_v51  ;;  %v9710_v51 = vpack.c.bf16 %v2688_v49, %v2687_v41  ;;  %v2560_v41 = vld [vmem:[#allocation7 + $0x728] sm:$0xff]  ;;  %v2869_v49 = vld [vmem:[#allocation7 + $0xa10] sm:$0xff] }
 0x3de   :  { %9697 = vmatpush3.bf16.msra.mxu1 %v9696_v52  ;;  %9607 = vmatprep.subr.bf16.mxu0 %v9606_v48  ;;  %v2672_v52 = vld [vmem:[#allocation7 + $0x868] sm:$0xff]  ;;  %v2571_v48 = vld [vmem:[#allocation7 + $0x780] sm:$0xff] }
 0x3df   :  { %9699 = vmatprep.subr.bf16.mxu1 %v9698_v15  ;;  %v9620_v15 = vpack.c.bf16 %v2362_v24, %v2361_v47  ;;  %v9712_v17 = vpack.c.bf16 %v2672_v52, %v2671_v37  ;;  %v9654_v53 = vpack.c.bf16 %v2572_v26, %v2571_v48  ;;  %v2577_v47 = vld [vmem:[#allocation7 + $0x7b0] sm:$0xff]  ;;  %v2578_v24 = vld [vmem:[#allocation7 + $0x7b8] sm:$0xff]  ;;  %v1818_v37 = vmax.f32 %v12031_v59, 0.0  ;;  %v2888_v52 = vld [vmem:[#allocation7 + $0xaa8] sm:$0xff] }
 0x3e0   :  { %v9664_v48 = vpack.c.bf16 %v2560_v41, %v2559_v40  ;;  %v2890_v59 = vld [vmem:[#allocation7 + $0xab8] sm:$0xff]  ;;  %v2892_v10 = vld [vmem:[#allocation7 + $0xac8] sm:$0xff]  ;;  %v2893_v40 = vld [vmem:[#allocation7 + $0xad0] sm:$0xff] }
 0x3e1   :  { %9609 = vmatpush3.bf16.msra.mxu0 %v9608_v58  ;;  %v9714_v58 = vpack.c.bf16 %v2690_v7, %v2689_v8  ;;  %v9666_v8 = vpack.c.bf16 %v2578_v24, %v2577_v47  ;;  %v2561_v7 = vld [vmem:[#allocation7 + $0x730] sm:$0xff]  ;;  %v2894_v41 = vld [vmem:[#allocation7 + $0xad8] sm:$0xff] }
 0x3e2   :  { %9701 = vmatpush3.bf16.msra.mxu1 %v9700_v60  ;;  %9611 = vmatprep.subr.bf16.mxu0 %v9610_v62  ;;  %v2674_v60 = vld [vmem:[#allocation7 + $0x878] sm:$0xff]  ;;  %v2573_v62 = vld [vmem:[#allocation7 + $0x790] sm:$0xff]  ;;  %v9770_v24 = vpack.c.bf16 %v2894_v41, %v2893_v40  ;;  %v3075_v40 = vld [vmem:[#allocation7 + $0xc00] sm:$0xff] }
 0x3e3   :  { %9703 = vmatprep.subr.bf16.mxu1 %v9702_v1  ;;  %v9656_v1 = vpack.c.bf16 %v2556_v54, %v2555_v12  ;;  %v9716_v38 = vpack.c.bf16 %v2674_v60, %v2673_v56  ;;  %v9658_v42 = vpack.c.bf16 %v2574_v63, %v2573_v62  ;;  %v2579_v12 = vld [vmem:[#allocation7 + $0x7c0] sm:$0xff]  ;;  %v2580_v54 = vld [vmem:[#allocation7 + $0x7c8] sm:$0xff]  ;;  %v2889_v56 = vld [vmem:[#allocation7 + $0xab0] sm:$0xff] }
 0x3e4   :  { %v9670_v62 = vpack.c.bf16 %v2580_v54, %v2579_v12  ;;  %v2563_v63 = vld [vmem:[#allocation7 + $0x740] sm:$0xff]  ;;  %v2877_v47 = vld [vmem:[#allocation7 + $0xa50] sm:$0xff]  ;;  %v2880_v54 = vld [vmem:[#allocation7 + $0xa68] sm:$0xff] }
 0x3e5   :  { %9613 = vmatpush3.bf16.msra.mxu0 %v9612_v18  ;;  %v1812_v18 = vmax.f32 %v12007_v61, 0.0  ;;  %v1813_v61 = vmax.f32 %v12010_v30, 0.0  ;;  %v2871_v30 = vld [vmem:[#allocation7 + $0xa20] sm:$0xff]  ;;  %v3076_v41 = vld [vmem:[#allocation7 + $0xc08] sm:$0xff] }
 0x3e6   :  { %9705 = vmatpush3.bf16.msra.mxu1 %v9704_v13  ;;  %9615 = vmatprep.subr.bf16.mxu0 %v9614_v32  ;;  %v9750_v13 = vpack.c.bf16 %v2884_v14, %v2883_v11  ;;  %v2867_v32 = vld [vmem:[#allocation7 + $0xa00] sm:$0xff]  ;;  %v2564_v11 = vld [vmem:[#allocation7 + $0x748] sm:$0xff]  ;;  %v2873_v14 = vld [vmem:[#allocation7 + $0xa30] sm:$0xff] }
 0x3e7   :  { %9707 = vmatprep.subr.bf16.mxu1 %v9706_v36  ;;  %v2885_v36 = vld [vmem:[#allocation7 + $0xa90] sm:$0xff]  ;;  %v9752_v39 = vpack.c.bf16 %v2868_v33, %v2867_v32 }
 0x3e8   :  { %v2565_v33 = vld [vmem:[#allocation7 + $0x750] sm:$0xff] }
 0x3e9   :  { %9617 = vmatpush3.bf16.msra.mxu0 %v9616_v43  ;;  %v9662_v43 = vpack.c.bf16 %v2576_v34, %v2575_v21  ;;  %v2566_v21 = vld [vmem:[#allocation7 + $0x758] sm:$0xff]  ;;  %v2875_v34 = vld [vmem:[#allocation7 + $0xa40] sm:$0xff] }
 0x3ea   :  { %9709 = vmatpush3.bf16.msra.mxu1 %v9708_v45  ;;  %9619 = vmatprep.subr.bf16.mxu0 %v9618_v46  ;;  %v9754_v45 = vpack.c.bf16 %v2886_v55, %v2885_v36  ;;  %v2870_v46 = vld [vmem:[#allocation7 + $0xa18] sm:$0xff]  ;;  %v9766_v36 = vpack.c.bf16 %v2892_v10, %v2891_v5  ;;  %v2876_v55 = vld [vmem:[#allocation7 + $0xa48] sm:$0xff]  ;;  %v2781_v5 = vld [vmem:[#allocation7 + $0x990] sm:$0xff] }
 0x3eb   :  { %9711 = vmatprep.subr.bf16.mxu1 %v9710_v51  ;;  %v2887_v51 = vld [vmem:[#allocation7 + $0xaa0] sm:$0xff]  ;;  %v9756_v26 = vpack.c.bf16 %v2870_v46, %v2869_v49  ;;  %v9676_v49 = vpack.c.bf16 %v2566_v21, %v2565_v33  ;;  %v2568_v46 = vld [vmem:[#allocation7 + $0x768] sm:$0xff]  ;;  %v2782_v10 = vld [vmem:[#allocation7 + $0x998] sm:$0xff]  ;;  %v1811_v33 = vmax.f32 %v12004_v29, 0.0 }
 0x3ed   :  { %9621 = vmatpush3.bf16.msra.mxu0 %v9620_v15  ;;  %v2562_v15 = vld [vmem:[#allocation7 + $0x738] sm:$0xff] }
 0x3ee   :  { %9713 = vmatpush3.bf16.msra.mxu1 %v9712_v17  ;;  %9655 = vmatprep.subr.bf16.mxu0 %v9654_v53  ;;  %v9758_v17 = vpack.c.bf16 %v2888_v52, %v2887_v51  ;;  %v2872_v53 = vld [vmem:[#allocation7 + $0xa28] sm:$0xff]  ;;  %v2585_v51 = vld [vmem:[#allocation7 + $0x7f0] sm:$0xff]  ;;  %v2586_v52 = vld [vmem:[#allocation7 + $0x7f8] sm:$0xff] }
 0x3ef   :  { %9715 = vmatprep.subr.bf16.mxu1 %v9714_v58  ;;  %v9668_v58 = vpack.c.bf16 %v2562_v15, %v2561_v7  ;;  %v9760_v60 = vpack.c.bf16 %v2872_v53, %v2871_v30  ;;  %v9682_v15 = vpack.c.bf16 %v2586_v52, %v2585_v51  ;;  %v2569_v30 = vld [vmem:[#allocation7 + $0x770] sm:$0xff]  ;;  %v2879_v53 = vld [vmem:[#allocation7 + $0xa60] sm:$0xff] }
 0x3f0   :  { %2444 = vmatmul.mubr.f32.vlgmr.msra.gmra.mrb[22].mxu0 %v1807_v2  ;;  %v2874_v2 = vld [vmem:[#allocation7 + $0xa38] sm:$0xff] }
 0x3f1   :  { %9657 = vmatpush3.bf16.msra.mxu0 %v9656_v1  ;;  %2651 = vmatprep.mubr.f32.mxu0 %v1812_v18  ;;  %v9762_v1 = vpack.c.bf16 %v2890_v59, %v2889_v56  ;;  %v9672_v18 = vpack.c.bf16 %v2564_v11, %v2563_v63  ;;  %v2779_v56 = vld [vmem:[#allocation7 + $0x980] sm:$0xff]  ;;  %v2780_v59 = vld [vmem:[#allocation7 + $0x988] sm:$0xff]  ;;  %v9776_v63 = vpack.c.bf16 %v2880_v54, %v2879_v53  ;;  %v2769_v54 = vld [vmem:[#allocation7 + $0x930] sm:$0xff] }
 0x3f2   :  { %9717 = vmatpush3.bf16.msra.mxu1 %v9716_v38  ;;  %9659 = vmatprep.subr.bf16.mxu0 %v9658_v42  ;;  %v2581_v38 = vld [vmem:[#allocation7 + $0x7d0] sm:$0xff]  ;;  %v2582_v42 = vld [vmem:[#allocation7 + $0x7d8] sm:$0xff]  ;;  %v9718_v11 = vpack.c.bf16 %v2780_v59, %v2779_v56 }
 0x3f3   :  { %9751 = vmatprep.subr.bf16.mxu1 %v9750_v13  ;;  %v9764_v13 = vpack.c.bf16 %v2874_v2, %v2873_v14  ;;  %v9674_v32 = vpack.c.bf16 %v2582_v42, %v2581_v38  ;;  %v2763_v14 = vld [vmem:[#allocation7 + $0x900] sm:$0xff]  ;;  %v2881_v2 = vld [vmem:[#allocation7 + $0xa70] sm:$0xff]  ;;  %v2882_v42 = vld [vmem:[#allocation7 + $0xa78] sm:$0xff] }
 0x3f4   :  { %v9780_v21 = vpack.c.bf16 %v2882_v42, %v2881_v2  ;;  %v2770_v56 = vld [vmem:[#allocation7 + $0x938] sm:$0xff]  ;;  %v2771_v2 = vld [vmem:[#allocation7 + $0x940] sm:$0xff]  ;;  %v3081_v42 = vld [vmem:[#allocation7 + $0xc30] sm:$0xff] }
 0x3f5   :  { %2756 = vmatmul.mubr.f32.vlgmr.msra.gmra.mrb[54].mxu1 %v1813_v61  ;;  %9661 = vmatpush3.bf16.msra.mxu0 %v9660_v35  ;;  %v2583_v35 = vld [vmem:[#allocation7 + $0x7e0] sm:$0xff]  ;;  %v9768_v61 = vpack.c.bf16 %v2876_v55, %v2875_v34  ;;  %v9722_v34 = vpack.c.bf16 %v2782_v10, %v2781_v5  ;;  %v2766_v55 = vld [vmem:[#allocation7 + $0x918] sm:$0xff] }
 0x3f6   :  { %9753 = vmatpush3.bf16.msra.mxu1 %v9752_v39  ;;  %2963 = vmatprep.mubr.f32.mxu1 %v1818_v37  ;;  %v2584_v39 = vld [vmem:[#allocation7 + $0x7e8] sm:$0xff]  ;;  %v2878_v37 = vld [vmem:[#allocation7 + $0xa58] sm:$0xff] }
 0x3f7   :  { %9663 = vmatprep.subr.bf16.mxu0 %v9662_v43  ;;  %9755 = vmatprep.subr.bf16.mxu1 %v9754_v45  ;;  %v9678_v43 = vpack.c.bf16 %v2584_v39, %v2583_v35  ;;  %v2567_v45 = vld [vmem:[#allocation7 + $0x760] sm:$0xff]  ;;  %v9772_v7 = vpack.c.bf16 %v2878_v37, %v2877_v47  ;;  %v1816_v35 = vmax.f32 %v12023_v22, 0.0  ;;  %v3077_v37 = vld [vmem:[#allocation7 + $0xc10] sm:$0xff]  ;;  %v1817_v22 = vmax.f32 %v12026_v20, 0.0  ;;  %v3082_v10 = vld [vmem:[#allocation7 + $0xc38] sm:$0xff] }
 0x3f8   :  { %v2767_v47 = vld [vmem:[#allocation7 + $0x920] sm:$0xff] }
 0x3f9   :  { %9665 = vmatpush3.bf16.msra.mxu0 %v9664_v48  ;;  %v2895_v48 = vld [vmem:[#allocation7 + $0xae0] sm:$0xff] }
 0x3fa   :  { %9757 = vmatpush3.bf16.msra.mxu1 %v9756_v26  ;;  %9667 = vmatprep.subr.bf16.mxu0 %v9666_v8  ;;  %v2896_v26 = vld [vmem:[#allocation7 + $0xae8] sm:$0xff]  ;;  %v9680_v8 = vpack.c.bf16 %v2568_v46, %v2567_v45  ;;  %v3094_v45 = vld [vmem:[#allocation7 + $0xc98] sm:$0xff]  ;;  %v9816_v46 = vpack.c.bf16 %v3076_v41, %v3075_v40  ;;  %v3079_v20 = vld [vmem:[#allocation7 + $0xc20] sm:$0xff] }
 0x3fb   :  { %9759 = vmatprep.subr.bf16.mxu1 %v9758_v17  ;;  %v2570_v17 = vld [vmem:[#allocation7 + $0x778] sm:$0xff]  ;;  %v9774_v12 = vpack.c.bf16 %v2896_v26, %v2895_v48  ;;  %v2785_v26 = vld [vmem:[#allocation7 + $0x9b0] sm:$0xff]  ;;  %v3084_v41 = vld [vmem:[#allocation7 + $0xc48] sm:$0xff] }
 0x3fc   :  { %v3078_v48 = vld [vmem:[#allocation7 + $0xc18] sm:$0xff] }
 0x3fd   :  { %9669 = vmatpush3.bf16.msra.mxu0 %v9668_v58  ;;  %v2897_v58 = vld [vmem:[#allocation7 + $0xaf0] sm:$0xff]  ;;  %v9820_v53 = vpack.c.bf16 %v3078_v48, %v3077_v37  ;;  %v2776_v37 = vld [vmem:[#allocation7 + $0x968] sm:$0xff] }
 0x3fe   :  { %9761 = vmatpush3.bf16.msra.mxu1 %v9760_v60  ;;  %9671 = vmatprep.subr.bf16.mxu0 %v9670_v62  ;;  %v2898_v60 = vld [vmem:[#allocation7 + $0xaf8] sm:$0xff]  ;;  %v9684_v62 = vpack.c.bf16 %v2570_v17, %v2569_v30  ;;  %v3096_v30 = vld [vmem:[#allocation7 + $0xca8] sm:$0xff]  ;;  %v2793_v48 = vld [vmem:[#allocation7 + $0x9f0] sm:$0xff] }
 0x3ff   :  { %9763 = vmatprep.subr.bf16.mxu1 %v9762_v1  ;;  %v2764_v1 = vld [vmem:[#allocation7 + $0x908] sm:$0xff]  ;;  %v9778_v38 = vpack.c.bf16 %v2898_v60, %v2897_v58  ;;  %v2787_v60 = vld [vmem:[#allocation7 + $0x9c0] sm:$0xff] }
 0x400   :  { %v3080_v58 = vld [vmem:[#allocation7 + $0xc28] sm:$0xff] }
 0x401   :  { %9673 = vmatpush3.bf16.msra.mxu0 %v9672_v18  ;;  %v3091_v18 = vld [vmem:[#allocation7 + $0xc80] sm:$0xff] }
 0x402   :  { %9765 = vmatpush3.bf16.msra.mxu1 %v9764_v13  ;;  %9675 = vmatprep.subr.bf16.mxu0 %v9674_v32  ;;  %v3092_v13 = vld [vmem:[#allocation7 + $0xc88] sm:$0xff]  ;;  %v9720_v32 = vpack.c.bf16 %v2764_v1, %v2763_v14  ;;  %v9824_v14 = vpack.c.bf16 %v3080_v58, %v3079_v20 }
 0x403   :  { %9767 = vmatprep.subr.bf16.mxu1 %v9766_v36  ;;  %v2765_v36 = vld [vmem:[#allocation7 + $0x910] sm:$0xff]  ;;  %v9814_v39 = vpack.c.bf16 %v3092_v13, %v3091_v18  ;;  %v2790_v13 = vld [vmem:[#allocation7 + $0x9d8] sm:$0xff]  ;;  %v3088_v20 = vld [vmem:[#allocation7 + $0xc68] sm:$0xff] }
 0x404   :  { %v9724_v29 = vpack.c.bf16 %v2766_v55, %v2765_v36  ;;  %v2789_v18 = vld [vmem:[#allocation7 + $0x9d0] sm:$0xff]  ;;  %v2988_v58 = vld [vmem:[#allocation7 + $0xb88] sm:$0xff] }
 0x405   :  { %9677 = vmatpush3.bf16.msra.mxu0 %v9676_v49  ;;  %v2783_v49 = vld [vmem:[#allocation7 + $0x9a0] sm:$0xff]  ;;  %v9738_v36 = vpack.c.bf16 %v2790_v13, %v2789_v18  ;;  %v2773_v55 = vld [vmem:[#allocation7 + $0x950] sm:$0xff]  ;;  %v3300_v13 = vld [vmem:[#allocation7 + $0xe88] sm:$0xff] }
 0x406   :  { %9769 = vmatpush3.bf16.msra.mxu1 %v9768_v61  ;;  %9679 = vmatprep.subr.bf16.mxu0 %v9678_v43  ;;  %v2784_v61 = vld [vmem:[#allocation7 + $0x9a8] sm:$0xff]  ;;  %v3093_v43 = vld [vmem:[#allocation7 + $0xc90] sm:$0xff]  ;;  %v3299_v18 = vld [vmem:[#allocation7 + $0xe80] sm:$0xff] }
 0x407   :  { %9771 = vmatprep.subr.bf16.mxu1 %v9770_v24  ;;  %v2768_v24 = vld [vmem:[#allocation7 + $0x928] sm:$0xff]  ;;  %v9726_v51 = vpack.c.bf16 %v2784_v61, %v2783_v49  ;;  %v9818_v52 = vpack.c.bf16 %v3094_v45, %v3093_v43  ;;  %v2791_v49 = vld [vmem:[#allocation7 + $0x9e0] sm:$0xff]  ;;  %v3101_v43 = vld [vmem:[#allocation7 + $0xcd0] sm:$0xff] }
 0x408   :  { %v9728_v17 = vpack.c.bf16 %v2768_v24, %v2767_v47  ;;  %v2792_v61 = vld [vmem:[#allocation7 + $0x9e8] sm:$0xff]  ;;  %v3102_v45 = vld [vmem:[#allocation7 + $0xcd8] sm:$0xff]  ;;  %v2775_v24 = vld [vmem:[#allocation7 + $0x960] sm:$0xff] }
 0x409   :  { %9681 = vmatpush3.bf16.msra.mxu0 %v9680_v8  ;;  %v2786_v8 = vld [vmem:[#allocation7 + $0x9b8] sm:$0xff]  ;;  %v9742_v47 = vpack.c.bf16 %v2792_v61, %v2791_v49  ;;  %v2991_v49 = vld [vmem:[#allocation7 + $0xba0] sm:$0xff]  ;;  %v2992_v61 = vld [vmem:[#allocation7 + $0xba8] sm:$0xff] }
 0x40a   :  { %9773 = vmatpush3.bf16.msra.mxu1 %v9772_v7  ;;  %9683 = vmatprep.subr.bf16.mxu0 %v9682_v15  ;;  %v1822_v7 = vmax.f32 %v12045_v6, 0.0  ;;  %v3095_v15 = vld [vmem:[#allocation7 + $0xca0] sm:$0xff]  ;;  %v3098_v6 = vld [vmem:[#allocation7 + $0xcb8] sm:$0xff] }
 0x40b   :  { %9775 = vmatprep.subr.bf16.mxu1 %v9774_v12  ;;  %v9730_v12 = vpack.c.bf16 %v2786_v8, %v2785_v26  ;;  %v9822_v59 = vpack.c.bf16 %v3096_v30, %v3095_v15  ;;  %v2794_v26 = vld [vmem:[#allocation7 + $0x9f8] sm:$0xff]  ;;  %v3103_v8 = vld [vmem:[#allocation7 + $0xce0] sm:$0xff]  ;;  %v9744_v15 = vpack.c.bf16 %v2776_v37, %v2775_v24  ;;  %v3285_v24 = vld [vmem:[#allocation7 + $0xe10] sm:$0xff]  ;;  %v9790_v37 = vpack.c.bf16 %v2992_v61, %v2991_v49 }
 0x40d   :  { %9685 = vmatpush3.bf16.msra.mxu0 %v9684_v62  ;;  %v2788_v62 = vld [vmem:[#allocation7 + $0x9c8] sm:$0xff] }
 0x40e   :  { %9777 = vmatpush3.bf16.msra.mxu1 %v9776_v63  ;;  %9719 = vmatprep.subr.bf16.mxu0 %v9718_v11  ;;  %v3097_v63 = vld [vmem:[#allocation7 + $0xcb0] sm:$0xff]  ;;  %v9732_v11 = vpack.c.bf16 %v2770_v56, %v2769_v54  ;;  %v9734_v1 = vpack.c.bf16 %v2788_v62, %v2787_v60  ;;  %v3087_v54 = vld [vmem:[#allocation7 + $0xc60] sm:$0xff]  ;;  %v3106_v62 = vld [vmem:[#allocation7 + $0xcf8] sm:$0xff] }
 0x40f   :  { %9779 = vmatprep.subr.bf16.mxu1 %v9778_v38  ;;  %v2772_v38 = vld [vmem:[#allocation7 + $0x948] sm:$0xff]  ;;  %v9826_v5 = vpack.c.bf16 %v3098_v6, %v3097_v63  ;;  %v3105_v60 = vld [vmem:[#allocation7 + $0xcf0] sm:$0xff]  ;;  %v9840_v6 = vpack.c.bf16 %v3088_v20, %v3087_v54  ;;  %v2995_v20 = vld [vmem:[#allocation7 + $0xbc0] sm:$0xff] }
 0x410   :  { %2652 = vmatmul.mubr.f32.vlgmr.msra.gmra.mrb[24].mxu0 %v1811_v33  ;;  %v3100_v33 = vld [vmem:[#allocation7 + $0xcc8] sm:$0xff] }
 0x411   :  { %9721 = vmatpush3.bf16.msra.mxu0 %v9720_v32  ;;  %2859 = vmatprep.mubr.f32.mxu0 %v1816_v35  ;;  %v3099_v32 = vld [vmem:[#allocation7 + $0xcc0] sm:$0xff]  ;;  %v2774_v35 = vld [vmem:[#allocation7 + $0x958] sm:$0xff] }
 0x412   :  { %9781 = vmatpush3.bf16.msra.mxu1 %v9780_v21  ;;  %9723 = vmatprep.subr.bf16.mxu0 %v9722_v34  ;;  %v9736_v21 = vpack.c.bf16 %v2772_v38, %v2771_v2  ;;  %v9828_v34 = vpack.c.bf16 %v3082_v10, %v3081_v42  ;;  %v9830_v40 = vpack.c.bf16 %v3100_v33, %v3099_v32  ;;  %v3089_v2 = vld [vmem:[#allocation7 + $0xc70] sm:$0xff]  ;;  %v3090_v42 = vld [vmem:[#allocation7 + $0xc78] sm:$0xff]  ;;  %v1815_v33 = vmax.f32 %v12018_v23, 0.0 }
 0x413   :  { %9815 = vmatprep.subr.bf16.mxu1 %v9814_v39  ;;  %v3083_v39 = vld [vmem:[#allocation7 + $0xc40] sm:$0xff]  ;;  %v9842_v38 = vpack.c.bf16 %v3106_v62, %v3105_v60  ;;  %v2990_v10 = vld [vmem:[#allocation7 + $0xb98] sm:$0xff] }
 0x415   :  { %2964 = vmatmul.mubr.f32.vlgmr.msra.gmra.mrb[56].mxu1 %v1817_v22  ;;  %9725 = vmatpush3.bf16.msra.mxu0 %v9724_v29  ;;  %v9740_v29 = vpack.c.bf16 %v2774_v35, %v2773_v55  ;;  %v3085_v22 = vld [vmem:[#allocation7 + $0xc50] sm:$0xff]  ;;  %v2974_v55 = vld [vmem:[#allocation7 + $0xb18] sm:$0xff]  ;;  %v1820_v35 = vmax.f32 %v12039_v50, 0.0  ;;  %v1821_v50 = vmax.f32 %v12042_v16, 0.0  ;;  %v3287_v16 = vld [vmem:[#allocation7 + $0xe20] sm:$0xff] }
 0x416   :  { %9817 = vmatpush3.bf16.msra.mxu1 %v9816_v46  ;;  %3171 = vmatprep.mubr.f32.mxu1 %v1822_v7  ;;  %v9832_v46 = vpack.c.bf16 %v3084_v41, %v3083_v39  ;;  %v3104_v7 = vld [vmem:[#allocation7 + $0xce8] sm:$0xff]  ;;  %v9878_v39 = vpack.c.bf16 %v3300_v13, %v3299_v18 }
 0x417   :  { %9727 = vmatprep.subr.bf16.mxu0 %v9726_v51  ;;  %9819 = vmatprep.subr.bf16.mxu1 %v9818_v52  ;;  %v9834_v51 = vpack.c.bf16 %v3102_v45, %v3101_v43  ;;  %v3086_v52 = vld [vmem:[#allocation7 + $0xc58] sm:$0xff]  ;;  %v9838_v56 = vpack.c.bf16 %v3104_v7, %v3103_v8  ;;  %v3284_v41 = vld [vmem:[#allocation7 + $0xe08] sm:$0xff]  ;;  %v3301_v43 = vld [vmem:[#allocation7 + $0xe90] sm:$0xff] }
 0x418   :  { %v9836_v30 = vpack.c.bf16 %v3086_v52, %v3085_v22  ;;  %v3302_v45 = vld [vmem:[#allocation7 + $0xe98] sm:$0xff]  ;;  %v2993_v52 = vld [vmem:[#allocation7 + $0xbb0] sm:$0xff]  ;;  %v3303_v8 = vld [vmem:[#allocation7 + $0xea0] sm:$0xff] }
 0x419   :  { %9729 = vmatpush3.bf16.msra.mxu0 %v9728_v17  ;;  %v9746_v17 = vpack.c.bf16 %v2794_v26, %v2793_v48  ;;  %v9882_v22 = vpack.c.bf16 %v3302_v45, %v3301_v43  ;;  %v2994_v48 = vld [vmem:[#allocation7 + $0xbb8] sm:$0xff]  ;;  %v1826_v26 = vmax.f32 %v12057_v4, 0.0  ;;  %v3304_v7 = vld [vmem:[#allocation7 + $0xea8] sm:$0xff]  ;;  %v2983_v45 = vld [vmem:[#allocation7 + $0xb60] sm:$0xff] }
 0x41a   :  { %9821 = vmatpush3.bf16.msra.mxu1 %v9820_v53  ;;  %9731 = vmatprep.subr.bf16.mxu0 %v9730_v12  ;;  %v2777_v53 = vld [vmem:[#allocation7 + $0x970] sm:$0xff]  ;;  %v2778_v12 = vld [vmem:[#allocation7 + $0x978] sm:$0xff]  ;;  %v9886_v54 = vpack.c.bf16 %v3304_v7, %v3303_v8  ;;  %v3295_v7 = vld [vmem:[#allocation7 + $0xe60] sm:$0xff] }
 0x41b   :  { %9823 = vmatprep.subr.bf16.mxu1 %v9822_v59  ;;  %v2987_v59 = vld [vmem:[#allocation7 + $0xb80] sm:$0xff]  ;;  %v9748_v63 = vpack.c.bf16 %v2778_v12, %v2777_v53  ;;  %v2977_v53 = vld [vmem:[#allocation7 + $0xb30] sm:$0xff]  ;;  %v2978_v12 = vld [vmem:[#allocation7 + $0xb38] sm:$0xff] }
 0x41c   :  { %v3306_v4 = vld [vmem:[#allocation7 + $0xeb8] sm:$0xff]  ;;  %v9796_v60 = vpack.c.bf16 %v2978_v12, %v2977_v53  ;;  %v3196_v53 = vld [vmem:[#allocation7 + $0xd88] sm:$0xff]  ;;  %v3313_v12 = vld [vmem:[#allocation7 + $0xef0] sm:$0xff] }
 0x41d   :  { %9733 = vmatpush3.bf16.msra.mxu0 %v9732_v11  ;;  %v9782_v11 = vpack.c.bf16 %v2988_v58, %v2987_v59  ;;  %v2996_v59 = vld [vmem:[#allocation7 + $0xbc8] sm:$0xff]  ;;  %v3305_v58 = vld [vmem:[#allocation7 + $0xeb0] sm:$0xff]  ;;  %v2986_v8 = vld [vmem:[#allocation7 + $0xb78] sm:$0xff] }
 0x41e   :  { %9825 = vmatpush3.bf16.msra.mxu1 %v9824_v14  ;;  %9735 = vmatprep.subr.bf16.mxu0 %v9734_v1  ;;  %v2971_v14 = vld [vmem:[#allocation7 + $0xb00] sm:$0xff]  ;;  %v2972_v1 = vld [vmem:[#allocation7 + $0xb08] sm:$0xff] }
 0x41f   :  { %9827 = vmatprep.subr.bf16.mxu1 %v9826_v5  ;;  %v2989_v5 = vld [vmem:[#allocation7 + $0xb90] sm:$0xff]  ;;  %v9784_v32 = vpack.c.bf16 %v2972_v1, %v2971_v14  ;;  %v9890_v1 = vpack.c.bf16 %v3306_v4, %v3305_v58  ;;  %v3180_v58 = vld [vmem:[#allocation7 + $0xd08] sm:$0xff] }
 0x420   :  { %v3289_v14 = vld [vmem:[#allocation7 + $0xe30] sm:$0xff] }
 0x421   :  { %9737 = vmatpush3.bf16.msra.mxu0 %v9736_v21  ;;  %v9844_v21 = vpack.c.bf16 %v3090_v42, %v3089_v2  ;;  %v3290_v2 = vld [vmem:[#allocation7 + $0xe38] sm:$0xff]  ;;  %v3297_v4 = vld [vmem:[#allocation7 + $0xe70] sm:$0xff] }
 0x422   :  { %9829 = vmatpush3.bf16.msra.mxu1 %v9828_v34  ;;  %9739 = vmatprep.subr.bf16.mxu0 %v9738_v36  ;;  %v9786_v34 = vpack.c.bf16 %v2990_v10, %v2989_v5  ;;  %v2973_v36 = vld [vmem:[#allocation7 + $0xb10] sm:$0xff]  ;;  %v2998_v42 = vld [vmem:[#allocation7 + $0xbd8] sm:$0xff]  ;;  %v3307_v5 = vld [vmem:[#allocation7 + $0xec0] sm:$0xff]  ;;  %v9892_v13 = vpack.c.bf16 %v3290_v2, %v3289_v14  ;;  %v1819_v14 = vmax.f32 %v12036_v25, 0.0 }
 0x423   :  { %9831 = vmatprep.subr.bf16.mxu1 %v9830_v40  ;;  %v3283_v40 = vld [vmem:[#allocation7 + $0xe00] sm:$0xff]  ;;  %v9788_v23 = vpack.c.bf16 %v2974_v55, %v2973_v36  ;;  %v3308_v10 = vld [vmem:[#allocation7 + $0xec8] sm:$0xff] }
 0x424   :  { %v9894_v36 = vpack.c.bf16 %v3308_v10, %v3307_v5  ;;  %v3292_v55 = vld [vmem:[#allocation7 + $0xe48] sm:$0xff]  ;;  %v1824_v5 = vmax.f32 %v12051_v27, 0.0  ;;  %v7441_v10 = vld [vmem:[%s12798_s2 + $0x28] sm:$0x1f]  ;;  %v7421_v27 = vld [vmem:[%s12820_s19 + $0xa0] sm:$0xff] }
 0x425   :  { %9741 = vmatpush3.bf16.msra.mxu0 %v9740_v29  ;;  %v9880_v29 = vpack.c.bf16 %v3284_v41, %v3283_v40  ;;  %v3309_v40 = vld [vmem:[#allocation7 + $0xed0] sm:$0xff]  ;;  %v3310_v41 = vld [vmem:[#allocation7 + $0xed8] sm:$0xff]  ;;  %v3183_v25 = vld [vmem:[#allocation7 + $0xd20] sm:$0xff] }
 0x426   :  { %9833 = vmatpush3.bf16.msra.mxu1 %v9832_v46  ;;  %9743 = vmatprep.subr.bf16.mxu0 %v9742_v47  ;;  %v2975_v46 = vld [vmem:[#allocation7 + $0xb20] sm:$0xff]  ;;  %v2976_v47 = vld [vmem:[#allocation7 + $0xb28] sm:$0xff] }
 0x427   :  { %9835 = vmatprep.subr.bf16.mxu1 %v9834_v51  ;;  %v3286_v51 = vld [vmem:[#allocation7 + $0xe18] sm:$0xff] }
 0x429   :  { %9745 = vmatpush3.bf16.msra.mxu0 %v9744_v15  ;;  %v9792_v15 = vpack.c.bf16 %v2976_v47, %v2975_v46  ;;  %v9898_v46 = vpack.c.bf16 %v3310_v41, %v3309_v40  ;;  %v3294_v47 = vld [vmem:[#allocation7 + $0xe58] sm:$0xff]  ;;  %v3185_v40 = vld [vmem:[#allocation7 + $0xd30] sm:$0xff] }
 0x42a   :  { %9837 = vmatpush3.bf16.msra.mxu1 %v9836_v30  ;;  %9747 = vmatprep.subr.bf16.mxu0 %v9746_v17  ;;  %v9884_v30 = vpack.c.bf16 %v3286_v51, %v3285_v24  ;;  %v9794_v17 = vpack.c.bf16 %v2994_v48, %v2993_v52  ;;  %v3001_v24 = vld [vmem:[#allocation7 + $0xbf0] sm:$0xff]  ;;  %v3186_v41 = vld [vmem:[#allocation7 + $0xd38] sm:$0xff] }
 0x42b   :  { %9839 = vmatprep.subr.bf16.mxu1 %v9838_v56  ;;  %v3288_v56 = vld [vmem:[#allocation7 + $0xe28] sm:$0xff] }
 0x42c   :  { %v9888_v62 = vpack.c.bf16 %v3288_v56, %v3287_v16  ;;  %v3314_v16 = vld [vmem:[#allocation7 + $0xef8] sm:$0xff] }
 0x42d   :  { %9749 = vmatpush3.bf16.msra.mxu0 %v9748_v63  ;;  %v9798_v63 = vpack.c.bf16 %v2996_v59, %v2995_v20  ;;  %v3179_v59 = vld [vmem:[#allocation7 + $0xd00] sm:$0xff] }
 0x42e   :  { %9841 = vmatpush3.bf16.msra.mxu1 %v9840_v6  ;;  %9783 = vmatprep.subr.bf16.mxu0 %v9782_v11  ;;  %v2979_v6 = vld [vmem:[#allocation7 + $0xb40] sm:$0xff]  ;;  %v2980_v11 = vld [vmem:[#allocation7 + $0xb48] sm:$0xff] }
 0x42f   :  { %9843 = vmatprep.subr.bf16.mxu1 %v9842_v38  ;;  %v2997_v38 = vld [vmem:[#allocation7 + $0xbd0] sm:$0xff]  ;;  %v9800_v18 = vpack.c.bf16 %v2980_v11, %v2979_v6  ;;  %v3198_v6 = vld [vmem:[#allocation7 + $0xd98] sm:$0xff]  ;;  %v9848_v11 = vpack.c.bf16 %v3180_v58, %v3179_v59 }
 0x430   :  { %2860 = vmatmul.mubr.f32.vlgmr.msra.gmra.mrb[26].mxu0 %v1815_v33  ;;  %v2981_v33 = vld [vmem:[#allocation7 + $0xb50] sm:$0xff]  ;;  %v12155_v59 = vld [vmem:[%s12820_s19 + $0xe0] sm:$0xff] }
 0x431   :  { %9785 = vmatpush3.bf16.msra.mxu0 %v9784_v32  ;;  %3067 = vmatprep.mubr.f32.mxu0 %v1820_v35  ;;  %v9802_v32 = vpack.c.bf16 %v2998_v42, %v2997_v38  ;;  %v2999_v35 = vld [vmem:[#allocation7 + $0xbe0] sm:$0xff]  ;;  %v3181_v38 = vld [vmem:[#allocation7 + $0xd10] sm:$0xff]  ;;  %v3182_v42 = vld [vmem:[#allocation7 + $0xd18] sm:$0xff] }
 0x432   :  { %9845 = vmatpush3.bf16.msra.mxu1 %v9844_v21  ;;  %9787 = vmatprep.subr.bf16.mxu0 %v9786_v34  ;;  %v2982_v21 = vld [vmem:[#allocation7 + $0xb58] sm:$0xff]  ;;  %v3291_v34 = vld [vmem:[#allocation7 + $0xe40] sm:$0xff]  ;;  %v3209_v58 = vld [vmem:[#allocation7 + $0xdf0] sm:$0xff] }
 0x433   :  { %9879 = vmatprep.subr.bf16.mxu1 %v9878_v39  ;;  %v3000_v39 = vld [vmem:[#allocation7 + $0xbe8] sm:$0xff]  ;;  %v9804_v49 = vpack.c.bf16 %v2982_v21, %v2981_v33  ;;  %v9896_v61 = vpack.c.bf16 %v3292_v55, %v3291_v34  ;;  %v1825_v21 = vmax.f32 %v12054_v31, 0.0  ;;  %v3201_v55 = vld [vmem:[#allocation7 + $0xdb0] sm:$0xff] }
 0x434   :  { %v9806_v43 = vpack.c.bf16 %v3000_v39, %v2999_v35  ;;  %v3184_v33 = vld [vmem:[#allocation7 + $0xd28] sm:$0xff]  ;;  %v3202_v35 = vld [vmem:[#allocation7 + $0xdb8] sm:$0xff] }
 0x435   :  { %3172 = vmatmul.mubr.f32.vlgmr.msra.gmra.mrb[58].mxu1 %v1821_v50  ;;  %9789 = vmatpush3.bf16.msra.mxu0 %v9788_v23  ;;  %v2984_v23 = vld [vmem:[#allocation7 + $0xb68] sm:$0xff]  ;;  %v3002_v50 = vld [vmem:[#allocation7 + $0xbf8] sm:$0xff]  ;;  %v9856_v39 = vpack.c.bf16 %v3184_v33, %v3183_v25  ;;  %v3387_v33 = vld [vmem:[#allocation7 + $0xf00] sm:$0xff] }
 0x436   :  { %9881 = vmatpush3.bf16.msra.mxu1 %v9880_v29  ;;  %3379 = vmatprep.mubr.f32.mxu1 %v1826_v26  ;;  %v3293_v29 = vld [vmem:[#allocation7 + $0xe50] sm:$0xff]  ;;  %v9808_v51 = vpack.c.bf16 %v2984_v23, %v2983_v45  ;;  %v9810_v48 = vpack.c.bf16 %v3002_v50, %v3001_v24  ;;  %v12099_v31 = vld [vmem:[%s12820_s19 + $0xa8] sm:$0xff]  ;;  %v12110_v23 = vld [vmem:[%s12798_s2 + $0x40] sm:$0x1f] }
 0x437   :  { %9791 = vmatprep.subr.bf16.mxu0 %v9790_v37  ;;  %9883 = vmatprep.subr.bf16.mxu1 %v9882_v22  ;;  %v3311_v37 = vld [vmem:[#allocation7 + $0xee0] sm:$0xff]  ;;  %v3312_v22 = vld [vmem:[#allocation7 + $0xee8] sm:$0xff]  ;;  %v9900_v52 = vpack.c.bf16 %v3294_v47, %v3293_v29  ;;  %v2985_v26 = vld [vmem:[#allocation7 + $0xb70] sm:$0xff]  ;;  %v9860_v29 = vpack.c.bf16 %v3186_v41, %v3185_v40 }
 0x438   :  { %v3204_v45 = vld [vmem:[#allocation7 + $0xdc8] sm:$0xff]  ;;  %v3187_v24 = vld [vmem:[#allocation7 + $0xd40] sm:$0xff]  ;;  %v3389_v40 = vld [vmem:[#allocation7 + $0xf10] sm:$0xff] }
 0x439   :  { %9793 = vmatpush3.bf16.msra.mxu0 %v9792_v15  ;;  %v9902_v15 = vpack.c.bf16 %v3312_v22, %v3311_v37  ;;  %v3188_v50 = vld [vmem:[#allocation7 + $0xd48] sm:$0xff]  ;;  %v12125_v37 = vld [vmem:[%s12820_s19 + $0xc0] sm:$0xff]  ;;  %v3205_v22 = vld [vmem:[#allocation7 + $0xdd0] sm:$0xff] }
 0x43a   :  { %9885 = vmatpush3.bf16.msra.mxu1 %v9884_v30  ;;  %9795 = vmatprep.subr.bf16.mxu0 %v9794_v17  ;;  %v3296_v30 = vld [vmem:[#allocation7 + $0xe68] sm:$0xff]  ;;  %v3195_v17 = vld [vmem:[#allocation7 + $0xd80] sm:$0xff]  ;;  %v3390_v41 = vld [vmem:[#allocation7 + $0xf18] sm:$0xff] }
 0x43b   :  { %9887 = vmatprep.subr.bf16.mxu1 %v9886_v54  ;;  %v9812_v54 = vpack.c.bf16 %v2986_v8, %v2985_v26  ;;  %v9904_v56 = vpack.c.bf16 %v3296_v30, %v3295_v7  ;;  %v9846_v20 = vpack.c.bf16 %v3196_v53, %v3195_v17  ;;  %v3189_v8 = vld [vmem:[#allocation7 + $0xd50] sm:$0xff]  ;;  %v3190_v7 = vld [vmem:[#allocation7 + $0xd58] sm:$0xff]  ;;  %v3207_v30 = vld [vmem:[#allocation7 + $0xde0] sm:$0xff] }
 0x43c   :  { %v3208_v17 = vld [vmem:[#allocation7 + $0xde8] sm:$0xff]  ;;  %v9868_v53 = vpack.c.bf16 %v3190_v7, %v3189_v8  ;;  %v3393_v8 = vld [vmem:[#allocation7 + $0xf30] sm:$0xff]  ;;  %v3394_v7 = vld [vmem:[#allocation7 + $0xf38] sm:$0xff] }
 0x43d   :  { %9797 = vmatpush3.bf16.msra.mxu0 %v9796_v60  ;;  %v9906_v60 = vpack.c.bf16 %v3314_v16, %v3313_v12  ;;  %v12150_v12 = vld [vmem:[%s12820_s19 + $0xd8] sm:$0xff]  ;;  %v9870_v16 = vpack.c.bf16 %v3208_v17, %v3207_v30  ;;  %v3411_v17 = vld [vmem:[#allocation7 + $0xfc0] sm:$0xff] }
 0x43e   :  { %9889 = vmatpush3.bf16.msra.mxu1 %v9888_v62  ;;  %9799 = vmatprep.subr.bf16.mxu0 %v9798_v63  ;;  %v3298_v62 = vld [vmem:[#allocation7 + $0xe78] sm:$0xff]  ;;  %v3197_v63 = vld [vmem:[#allocation7 + $0xd90] sm:$0xff] }
 0x43f   :  { %9891 = vmatprep.subr.bf16.mxu1 %v9890_v1  ;;  %v9908_v1 = vpack.c.bf16 %v3298_v62, %v3297_v4  ;;  %v9850_v2 = vpack.c.bf16 %v3198_v6, %v3197_v63  ;;  %v3210_v4 = vld [vmem:[#allocation7 + $0xdf8] sm:$0xff]  ;;  %v12166_v6 = vld [vmem:[%s12820_s19 + $0xe8] sm:$0xff] }
 0x441   :  { %9801 = vmatpush3.bf16.msra.mxu0 %v9800_v18  ;;  %v3199_v18 = vld [vmem:[#allocation7 + $0xda0] sm:$0xff] }
 0x442   :  { %9893 = vmatpush3.bf16.msra.mxu1 %v9892_v13  ;;  %9803 = vmatprep.subr.bf16.mxu0 %v9802_v32  ;;  %v3200_v13 = vld [vmem:[#allocation7 + $0xda8] sm:$0xff]  ;;  %v9852_v32 = vpack.c.bf16 %v3182_v42, %v3181_v38  ;;  %v3403_v42 = vld [vmem:[#allocation7 + $0xf80] sm:$0xff] }
 0x443   :  { %9895 = vmatprep.subr.bf16.mxu1 %v9894_v36  ;;  %v9854_v34 = vpack.c.bf16 %v3200_v13, %v3199_v18  ;;  %v7477_v36 = vld [vmem:[%s12798_s2 + $0x38] sm:$0x1f]  ;;  %v12171_v38 = vld [vmem:[%s12820_s19 + $0xf0] sm:$0xff] }
 0x445   :  { %9805 = vmatpush3.bf16.msra.mxu0 %v9804_v49  ;;  %v12105_v49 = vld [vmem:[%s12820_s19 + $0xb0] sm:$0xff] }
 0x446   :  { %9897 = vmatpush3.bf16.msra.mxu1 %v9896_v61  ;;  %9807 = vmatprep.subr.bf16.mxu0 %v9806_v43  ;;  %v9858_v61 = vpack.c.bf16 %v3202_v35, %v3201_v55  ;;  %v3203_v43 = vld [vmem:[#allocation7 + $0xdc0] sm:$0xff]  ;;  %v1823_v35 = vmax.f32 %v12048_v57, 0.0  ;;  %v1828_v57 = vmax.f32 %v12063_v19, 0.0  ;;  %v3409_v19 = vld [vmem:[#allocation7 + $0xfb0] sm:$0xff] }
 0x447   :  { %9899 = vmatprep.subr.bf16.mxu1 %v9898_v46  ;;  %v12120_v46 = vld [vmem:[%s12820_s19 + $0xb8] sm:$0xff]  ;;  %v9862_v47 = vpack.c.bf16 %v3204_v45, %v3203_v43  ;;  %v3407_v45 = vld [vmem:[#allocation7 + $0xfa0] sm:$0xff] }
 0x449   :  { %9809 = vmatpush3.bf16.msra.mxu0 %v9808_v51  ;;  %v3206_v51 = vld [vmem:[#allocation7 + $0xdd8] sm:$0xff] }
 0x44a   :  { %9901 = vmatpush3.bf16.msra.mxu1 %v9900_v52  ;;  %9811 = vmatprep.subr.bf16.mxu0 %v9810_v48  ;;  %v9864_v52 = vpack.c.bf16 %v3188_v50, %v3187_v24  ;;  %v12136_v48 = vld [vmem:[%s12820_s19 + $0xc8] sm:$0xff]  ;;  %v9866_v26 = vpack.c.bf16 %v3206_v51, %v3205_v22  ;;  %v12212_v24 = vld [vmem:[%s12820_s19 + $0x118] sm:$0xff] }
 0x44b   :  { %9903 = vmatprep.subr.bf16.mxu1 %v9902_v15  ;;  %v12141_v15 = vld [vmem:[%s12820_s19 + $0xd0] sm:$0xff]  ;;  %v3391_v22 = vld [vmem:[#allocation7 + $0xf20] sm:$0xff] }
 0x44c   :  { %v3392_v51 = vld [vmem:[#allocation7 + $0xf28] sm:$0xff] }
 0x44d   :  { %9813 = vmatpush3.bf16.msra.mxu0 %v9812_v54  ;;  %v3191_v54 = vld [vmem:[#allocation7 + $0xd60] sm:$0xff] }
 0x44e   :  { %9905 = vmatpush3.bf16.msra.mxu1 %v9904_v56  ;;  %9847 = vmatprep.subr.bf16.mxu0 %v9846_v20  ;;  %v3192_v56 = vld [vmem:[#allocation7 + $0xd68] sm:$0xff] }
 0x44f   :  { %9907 = vmatprep.subr.bf16.mxu1 %v9906_v60  ;;  %v9872_v63 = vpack.c.bf16 %v3192_v56, %v3191_v54  ;;  %v9924_v54 = vpack.c.bf16 %v3394_v7, %v3393_v8  ;;  %v7439_v7 = vld [vmem:[%s12820_s19 + $0x130] sm:$0xff] }
 0x450   :  { %3068 = vmatmul.mubr.f32.vlgmr.msra.gmra.mrb[28].mxu0 %v1819_v14  ;;  %v3193_v14 = vld [vmem:[#allocation7 + $0xd70] sm:$0xff] }
 0x451   :  { %9849 = vmatpush3.bf16.msra.mxu0 %v9848_v11  ;;  %3275 = vmatprep.mubr.f32.mxu0 %v1824_v5  ;;  %v9874_v11 = vpack.c.bf16 %v3210_v4, %v3209_v58  ;;  %v3404_v5 = vld [vmem:[#allocation7 + $0xf88] sm:$0xff]  ;;  %v3413_v4 = vld [vmem:[#allocation7 + $0xfd0] sm:$0xff] }
 0x452   :  { %9909 = vmatpush3.bf16.msra.mxu1 %v9908_v1  ;;  %9851 = vmatprep.subr.bf16.mxu0 %v9850_v2  ;;  %v3194_v1 = vld [vmem:[#allocation7 + $0xd78] sm:$0xff]  ;;  %v9910_v25 = vpack.c.bf16 %v3404_v5, %v3403_v42  ;;  %v3396_v58 = vld [vmem:[#allocation7 + $0xf48] sm:$0xff] }
 0x453   :  { %9066 = vmatprep.subr.msk.mxu1 %vm294_vm0, %v7441_v10  ;;  %v9876_v13 = vpack.c.bf16 %v3194_v1, %v3193_v14  ;;  %v3398_v14 = vld [vmem:[#allocation7 + $0xf58] sm:$0xff]  ;;  %v3415_v1 = vld [vmem:[#allocation7 + $0xfe0] sm:$0xff] }
 0x455   :  { %3380 = vmatmul.mubr.f32.vlgmr.msra.gmra.mrb[60].mxu1 %v1825_v21  ;;  %9853 = vmatpush3.bf16.msra.mxu0 %v9852_v32  ;;  %v12182_v32 = vld [vmem:[%s12820_s19 + $0xf8] sm:$0xff]  ;;  %v3388_v21 = vld [vmem:[#allocation7 + $0xf08] sm:$0xff] }
 0x456   :  { %9067 = vmatpush3.msk.msra.mxu1 %vm294_vm0, %v7441_v10  ;;  %9068 = vmatprep.mubr.msk.f32.mxu1 %vm245_vm1, %v7421_v27  ;;  %v12187_v27 = vld [vmem:[%s12820_s19 + $0x100] sm:$0xff]  ;;  %v9912_v55 = vpack.c.bf16 %v3388_v21, %v3387_v33  ;;  %v3417_v33 = vld [vmem:[#allocation7 + $0xff0] sm:$0xff] }
 0x457   :  { %9855 = vmatprep.subr.bf16.mxu0 %v9854_v34  ;;  %9092 = vmatprep.subr.msk.mxu1 %vm294_vm0, %v7477_v36  ;;  %v3405_v34 = vld [vmem:[#allocation7 + $0xf90] sm:$0xff]  ;;  %v3418_v21 = vld [vmem:[#allocation7 + $0xff8] sm:$0xff] }
 0x459   :  { %9069 = vmatmul.mubr.msk.f32.vlgmr.msra.gmra.mrb[62].mxu1 %vm245_vm1, %v12099_v31  ;;  %9857 = vmatpush3.bf16.msra.mxu0 %v9856_v39  ;;  %v12197_v39 = vld [vmem:[%s12820_s19 + $0x108] sm:$0xff] }
 0x45a   :  { %9093 = vmatpush3.msk.msra.mxu1 %vm294_vm0, %v7477_v36  ;;  %9071 = vmatprep.mubr.msk.f32.mxu1 %vm245_vm1, %v12105_v49  ;;  %v3406_v36 = vld [vmem:[#allocation7 + $0xf98] sm:$0xff] }
 0x45b   :  { %9859 = vmatprep.subr.bf16.mxu0 %v9858_v61  ;;  %9118 = vmatprep.subr.msk.mxu1 %vm294_vm0, %v12110_v23  ;;  %v12202_v61 = vld [vmem:[%s12820_s19 + $0x110] sm:$0xff]  ;;  %v9914_v43 = vpack.c.bf16 %v3406_v36, %v3405_v34 }
 0x45d   :  { %9072 = vmatmul.mubr.msk.f32.gmra.mrb[64].mxu1 %vm245_vm1, %v12120_v46  ;;  %9861 = vmatpush3.bf16.msra.mxu0 %v9860_v29  ;;  %v3408_v29 = vld [vmem:[#allocation7 + $0xfa8] sm:$0xff] }
 0x45e   :  { %9074 = vmatprep.mubr.msk.f32.mxu1 %vm245_vm1, %v12125_v37  ;;  %9863 = vmatprep.subr.bf16.mxu0 %v9862_v47  ;;  %v9916_v47 = vpack.c.bf16 %v3390_v41, %v3389_v40  ;;  %v9918_v50 = vpack.c.bf16 %v3408_v29, %v3407_v45  ;;  %v3401_v40 = vld [vmem:[#allocation7 + $0xf70] sm:$0xff]  ;;  %v3402_v41 = vld [vmem:[#allocation7 + $0xf78] sm:$0xff] }
 0x461   :  { %9075 = vmatmul.mubr.msk.f32.gmra.mrb[66].mxu1 %vm245_vm1, %v12136_v48  ;;  %9865 = vmatpush3.bf16.msra.mxu0 %v9864_v52  ;;  %v3410_v52 = vld [vmem:[#allocation7 + $0xfb8] sm:$0xff] }
 0x462   :  { %9077 = vmatprep.mubr.msk.f32.mxu1 %vm245_vm1, %v12141_v15  ;;  %9867 = vmatprep.subr.bf16.mxu0 %v9866_v26  ;;  %v9920_v26 = vpack.c.bf16 %v3392_v51, %v3391_v22  ;;  %v9922_v30 = vpack.c.bf16 %v3410_v52, %v3409_v19  ;;  %v7442_v22 = vld [vmem:[%s12798_s2 + $0x30] sm:$0x1f] }
 0x463   :  { %v7658_v20 = vpop.f32.mrb[16].mxu0 }
 0x464   :  { %v7659_v60 = vpop.f32.mrb[17].mxu0 }
 0x465   :  { %9078 = vmatmul.mubr.msk.f32.gmra.mrb[68].mxu1 %vm245_vm1, %v12150_v12  ;;  %v12159_v62 = vadd.f32 %v7659_v60, %v7658_v20  ;;  %9869 = vmatpush3.bf16.msra.mxu0 %v9868_v53  ;;  %v3412_v53 = vld [vmem:[#allocation7 + $0xfc8] sm:$0xff]  ;;  %v3395_v20 = vld [vmem:[#allocation7 + $0xf40] sm:$0xff]  ;;  %v3414_v60 = vld [vmem:[#allocation7 + $0xfd8] sm:$0xff] }
 0x466   :  { %9080 = vmatprep.mubr.msk.f32.mxu1 %vm245_vm1, %v12155_v59  ;;  %9871 = vmatprep.subr.bf16.mxu0 %v9870_v16  ;;  %v12221_v16 = vld [vmem:[%s12798_s2 + $0x48] sm:$0x1f]  ;;  %v9926_v56 = vpack.c.bf16 %v3412_v53, %v3411_v17 }
 0x467   :  { %v7728_v2 = vpop.f32.mrb[48].mxu1  ;;  %v4444_v53 = vld [vmem:[#allocation4 + $0x408] sm:$0xff] }
 0x468   :  { %v7729_v10 = vpop.f32.mrb[49].mxu1 }
 0x469   :  { %9081 = vmatmul.mubr.msk.f32.gmra.mrb[70].mxu1 %vm245_vm1, %v12166_v6  ;;  %v12175_v18 = vadd.f32 %v7729_v10, %v7728_v2  ;;  %9873 = vmatpush3.bf16.msra.mxu0 %v9872_v63  ;;  %v9928_v63 = vpack.c.bf16 %v3396_v58, %v3395_v20  ;;  %v3416_v2 = vld [vmem:[#allocation7 + $0xfe8] sm:$0xff]  ;;  %v3399_v10 = vld [vmem:[#allocation7 + $0xf60] sm:$0xff] }
 0x46a   :  { %9083 = vmatprep.mubr.msk.f32.mxu1 %vm245_vm1, %v12171_v38  ;;  %9875 = vmatprep.subr.bf16.mxu0 %v9874_v11  ;;  %v3397_v11 = vld [vmem:[#allocation7 + $0xf50] sm:$0xff]  ;;  %v9934_v5 = vpack.c.bf16 %v3416_v2, %v3415_v1  ;;  %v4448_v58 = vld [vmem:[#allocation4 + $0x428] sm:$0xff] }
 0x46b   :  { %v9932_v42 = vpack.c.bf16 %v3398_v14, %v3397_v11  ;;  %v4445_v20 = vld [vmem:[#allocation4 + $0x410] sm:$0xff]  ;;  %v4447_v14 = vld [vmem:[#allocation4 + $0x420] sm:$0xff]  ;;  %v4452_v2 = vld [vmem:[#allocation4 + $0x448] sm:$0xff] }
 0x46c   :  { %v4449_v1 = vld [vmem:[#allocation4 + $0x430] sm:$0xff] }
 0x46d   :  { %9084 = vmatmul.mubr.msk.f32.gmra.mrb[72].mxu1 %vm245_vm1, %v12182_v32  ;;  %9877 = vmatpush3.bf16.msra.mxu0 %v9876_v13  ;;  %v3400_v13 = vld [vmem:[#allocation7 + $0xf68] sm:$0xff] }
 0x46e   :  { %9086 = vmatprep.mubr.msk.f32.mxu1 %vm245_vm1, %v12187_v27  ;;  %9911 = vmatprep.subr.bf16.mxu0 %v9910_v25 }
 0x470   :  { %3276 = vmatmul.mubr.f32.vlgmr.msra.gmra.mrb[30].mxu0 %v1823_v35  ;;  %v9938_v35 = vpack.c.bf16 %v3418_v21, %v3417_v33  ;;  %v4453_v33 = vld [vmem:[#allocation4 + $0x450] sm:$0xff]  ;;  %v4456_v21 = vld [vmem:[#allocation4 + $0x468] sm:$0xff] }
 0x471   :  { %9087 = vmatmul.mubr.msk.f32.gmra.mrb[74].mxu1 %vm245_vm1, %v12197_v39  ;;  %9913 = vmatpush3.bf16.msra.mxu0 %v9912_v55  ;;  %v9936_v55 = vpack.c.bf16 %v3400_v13, %v3399_v10  ;;  %v9948_v10 = vpack.c.bf16 %v4449_v1, %v4447_v14 }
 0x472   :  { %3483 = vmatprep.mubr.f32.mxu0 %v1828_v57  ;;  %9089 = vmatprep.mubr.msk.f32.mxu1 %vm245_vm1, %v12202_v61  ;;  %v9940_v57 = vpack.c.bf16 %v3402_v41, %v3401_v40  ;;  %v4457_v40 = vld [vmem:[#allocation4 + $0x470] sm:$0xff]  ;;  %v4460_v41 = vld [vmem:[#allocation4 + $0x488] sm:$0xff] }
 0x473   :  { %9915 = vmatprep.subr.bf16.mxu0 %v9914_v43 }
 0x475   :  { %9090 = vmatmul.mubr.msk.f32.gmra.mrb[76].mxu1 %vm245_vm1, %v12212_v24  ;;  %9917 = vmatpush3.bf16.msra.mxu0 %v9916_v47 }
 0x476   :  { %9094 = vmatprep.mubr.msk.f32.mxu1 %vm245_vm1, %v12105_v49  ;;  %9919 = vmatprep.subr.bf16.mxu0 %v9918_v50 }
 0x479   :  { %9095 = vmatmul.mubr.msk.f32.vlgmr.msra.gmra.mrb[62].mxu1 %vm245_vm1, %v12120_v46  ;;  %9921 = vmatpush3.bf16.msra.mxu0 %v9920_v26 }
 0x47a   :  { %9119 = vmatpush3.msk.msra.mxu1 %vm294_vm0, %v12110_v23  ;;  %9097 = vmatprep.mubr.msk.f32.mxu1 %vm245_vm1, %v12125_v37  ;;  %v9930_v23 = vpack.c.bf16 %v3414_v60, %v3413_v4  ;;  %v4450_v4 = vld [vmem:[#allocation4 + $0x438] sm:$0xff] }
 0x47b   :  { %9923 = vmatprep.subr.bf16.mxu0 %v9922_v30  ;;  %9144 = vmatprep.subr.msk.mxu1 %vm294_vm0, %v12221_v16  ;;  %v9946_v11 = vpack.c.bf16 %v4450_v4, %v4448_v58 }
 0x47d   :  { %9098 = vmatmul.mubr.msk.f32.gmra.mrb[64].mxu1 %vm245_vm1, %v12136_v48  ;;  %9925 = vmatpush3.bf16.msra.mxu0 %v9924_v54 }
 0x47e   :  { %9100 = vmatprep.mubr.msk.f32.mxu1 %vm245_vm1, %v12141_v15  ;;  %9927 = vmatprep.subr.bf16.mxu0 %v9926_v56 }
 0x481   :  { %9101 = vmatmul.mubr.msk.f32.gmra.mrb[66].mxu1 %vm245_vm1, %v12150_v12  ;;  %9929 = vmatpush3.bf16.msra.mxu0 %v9928_v63 }
 0x482   :  { %9103 = vmatprep.mubr.msk.f32.mxu1 %vm245_vm1, %v12155_v59  ;;  %9931 = vmatprep.subr.bf16.mxu0 %v9930_v23 }
 0x483   :  { %v7693_v25 = vpop.f32.mrb[18].mxu0 }
 0x484   :  { %v7694_v34 = vpop.f32.mrb[19].mxu0 }
 0x485   :  { %v7695_v36 = vadd.f32 %v7694_v34, %v7693_v25  ;;  %9104 = vmatmul.mubr.msk.f32.gmra.mrb[68].mxu1 %vm245_vm1, %v12166_v6  ;;  %9933 = vmatpush3.bf16.msra.mxu0 %v9932_v42  ;;  %v4451_v25 = vld [vmem:[#allocation4 + $0x440] sm:$0xff]  ;;  %v4458_v34 = vld [vmem:[#allocation4 + $0x478] sm:$0xff] }
 0x486   :  { %9106 = vmatprep.mubr.msk.f32.mxu1 %vm245_vm1, %v12171_v38  ;;  %9935 = vmatprep.subr.bf16.mxu0 %v9934_v5  ;;  %v4454_v5 = vld [vmem:[#allocation4 + $0x458] sm:$0xff] }
 0x487   :  { %v2031_v43 = vadd.f32 %v7695_v36, %v12159_v62  ;;  %v1827_v62 = vmax.f32 %v12060_v3, 0.0  ;;  %v12271_v3 = vld [vmem:[%s12820_s19 + $0x128] sm:$0xff]  ;;  %v9950_v13 = vpack.c.bf16 %v4454_v5, %v4452_v2  ;;  %v9952_v36 = vpack.c.bf16 %v4453_v33, %v4451_v25 }
 0x488   :  { %v7798_v45 = vpop.f32.mrb[50].mxu1 }
 0x489   :  { %v7799_v29 = vpop.f32.mrb[51].mxu1  ;;  %9107 = vmatmul.mubr.msk.f32.gmra.mrb[70].mxu1 %vm245_vm1, %v12182_v32  ;;  %9937 = vmatpush3.bf16.msra.mxu0 %v9936_v55  ;;  %v2137_v47 = vadd.f32 %v12175_v18, %v2031_v43  ;;  %v12261_v18 = vld [vmem:[%s12820_s19 + $0x120] sm:$0xff]  ;;  %v9954_v55 = vpack.c.bf16 %v4458_v34, %v4456_v21 }
 0x48a   :  { %v7800_v50 = vadd.f32 %v7799_v29, %v7798_v45  ;;  %9109 = vmatprep.mubr.msk.f32.mxu1 %vm245_vm1, %v12187_v27  ;;  %9939 = vmatprep.subr.bf16.mxu0 %v9938_v35  ;;  %v4455_v35 = vld [vmem:[#allocation4 + $0x460] sm:$0xff]  ;;  %v4462_v43 = vld [vmem:[#allocation4 + $0x498] sm:$0xff] }
 0x48b   :  { %v9956_v45 = vpack.c.bf16 %v4457_v40, %v4455_v35  ;;  %v9958_v29 = vpack.c.bf16 %v4462_v43, %v4460_v41 }
 0x48d   :  { %9110 = vmatmul.mubr.msk.f32.gmra.mrb[72].mxu1 %vm245_vm1, %v12197_v39  ;;  %9941 = vmatpush3.bf16.msra.mxu0 %v9940_v57  ;;  %v4459_v57 = vld [vmem:[#allocation4 + $0x480] sm:$0xff] }
 0x48e   :  { %9112 = vmatprep.mubr.msk.f32.mxu1 %vm245_vm1, %v12202_v61  ;;  %9040 = vmatprep.subr.msk.mxu0 %vm294_vm0, %v7442_v22 }
 0x490   :  { %3484 = vmatmul.mubr.f32.vlgmr.msra.gmra.mrb[32].mxu0 %v1827_v62 }
 0x491   :  { %9113 = vmatmul.mubr.msk.f32.gmra.mrb[74].mxu1 %vm245_vm1, %v12212_v24  ;;  %9041 = vmatpush3.msk.msra.mxu0 %vm294_vm0, %v7442_v22  ;;  %v4466_v22 = vld [vmem:[#allocation4 + $0x4b8] sm:$0xff] }
 0x492   :  { %9115 = vmatprep.mubr.msk.f32.mxu1 %vm245_vm1, %v12261_v18  ;;  %9042 = vmatprep.mubr.msk.f32.mxu0 %vm245_vm1, %v12099_v31 }
 0x494   :  { %9043 = vmatmul.mubr.msk.f32.vlgmr.msra.gmra.mrb[34].mxu0 %vm245_vm1, %v12105_v49 }
 0x495   :  { %9116 = vmatmul.mubr.msk.f32.gmra.mrb[76].mxu1 %vm245_vm1, %v12271_v3  ;;  %9045 = vmatprep.mubr.msk.f32.mxu0 %vm245_vm1, %v12120_v46 }
 0x496   :  { %9120 = vmatprep.mubr.msk.f32.mxu1 %vm245_vm1, %v12120_v46 }
 0x498   :  { %9046 = vmatmul.mubr.msk.f32.gmra.mrb[36].mxu0 %vm245_vm1, %v12125_v37 }
 0x499   :  { %9121 = vmatmul.mubr.msk.f32.vlgmr.msra.gmra.mrb[62].mxu1 %vm245_vm1, %v12125_v37  ;;  %9048 = vmatprep.mubr.msk.f32.mxu0 %vm245_vm1, %v12136_v48 }
 0x49a   :  { %9145 = vmatpush3.msk.msra.mxu1 %vm294_vm0, %v12221_v16  ;;  %9123 = vmatprep.mubr.msk.f32.mxu1 %vm245_vm1, %v12136_v48  ;;  %v4443_v16 = vld [vmem:[#allocation4 + $0x400] sm:$0xff] }
 0x49b   :  { %v9944_v23 = vpack.c.bf16 %v4445_v20, %v4443_v16 }
 0x49c   :  { %9049 = vmatmul.mubr.msk.f32.gmra.mrb[38].mxu0 %vm245_vm1, %v12141_v15 }
 0x49d   :  { %9124 = vmatmul.mubr.msk.f32.gmra.mrb[64].mxu1 %vm245_vm1, %v12141_v15  ;;  %9051 = vmatprep.mubr.msk.f32.mxu0 %vm245_vm1, %v12150_v12 }
 0x49e   :  { %9126 = vmatprep.mubr.msk.f32.mxu1 %vm245_vm1, %v12150_v12 }
 0x4a0   :  { %9052 = vmatmul.mubr.msk.f32.gmra.mrb[40].mxu0 %vm245_vm1, %v12155_v59 }
 0x4a1   :  { %9127 = vmatmul.mubr.msk.f32.gmra.mrb[66].mxu1 %vm245_vm1, %v12155_v59  ;;  %9054 = vmatprep.mubr.msk.f32.mxu0 %vm245_vm1, %v12166_v6 }
 0x4a2   :  { %9129 = vmatprep.mubr.msk.f32.mxu1 %vm245_vm1, %v12166_v6 }
 0x4a3   :  { %v7763_v31 = vpop.f32.mrb[20].mxu0 }
 0x4a4   :  { %v7764_v49 = vpop.f32.mrb[21].mxu0  ;;  %9055 = vmatmul.mubr.msk.f32.gmra.mrb[42].mxu0 %vm245_vm1, %v12171_v38 }
 0x4a5   :  { %v7765_v46 = vadd.f32 %v7764_v49, %v7763_v31  ;;  %9130 = vmatmul.mubr.msk.f32.gmra.mrb[68].mxu1 %vm245_vm1, %v12171_v38  ;;  %9057 = vmatprep.mubr.msk.f32.mxu0 %vm245_vm1, %v12182_v32  ;;  %v4465_v31 = vld [vmem:[#allocation4 + $0x4b0] sm:$0xff] }
 0x4a6   :  { %9132 = vmatprep.mubr.msk.f32.mxu1 %vm245_vm1, %v12182_v32 }
 0x4a7   :  { %v2241_v51 = vadd.f32 %v7765_v46, %v2137_v47  ;;  %v4461_v47 = vld [vmem:[#allocation4 + $0x490] sm:$0xff] }
 0x4a8   :  { %v7868_v19 = vpop.f32.mrb[52].mxu1  ;;  %9058 = vmatmul.mubr.msk.f32.gmra.mrb[44].mxu0 %vm245_vm1, %v12187_v27  ;;  %v9960_v62 = vpack.c.bf16 %v4461_v47, %v4459_v57 }
 0x4a9   :  { %v7869_v52 = vpop.f32.mrb[53].mxu1  ;;  %9133 = vmatmul.mubr.msk.f32.gmra.mrb[70].mxu1 %vm245_vm1, %v12187_v27  ;;  %v2345_v26 = vadd.f32 %v7800_v50, %v2241_v51  ;;  %9060 = vmatprep.mubr.msk.f32.mxu0 %vm245_vm1, %v12197_v39  ;;  %v4464_v50 = vld [vmem:[#allocation4 + $0x4a8] sm:$0xff] }
 0x4aa   :  { %v7870_v8 = vadd.f32 %v7869_v52, %v7868_v19  ;;  %9135 = vmatprep.mubr.msk.f32.mxu1 %vm245_vm1, %v12197_v39 }
 0x4ac   :  { %9061 = vmatmul.mubr.msk.f32.gmra.mrb[46].mxu0 %vm245_vm1, %v12202_v61 }
 0x4ad   :  { %9136 = vmatmul.mubr.msk.f32.gmra.mrb[72].mxu1 %vm245_vm1, %v12202_v61  ;;  %9063 = vmatprep.mubr.msk.f32.mxu0 %vm245_vm1, %v12212_v24 }
 0x4ae   :  { %9138 = vmatprep.mubr.msk.f32.mxu1 %vm245_vm1, %v12212_v24 }
 0x4b0   :  { %9064 = vmatmul.mubr.msk.f32.gmra.mrb[48].mxu0 %vm245_vm1, %v12261_v18 }
 0x4b1   :  { %9139 = vmatmul.mubr.msk.f32.gmra.mrb[74].mxu1 %vm245_vm1, %v12261_v18  ;;  %4539 = vmatprep.mubr.f32.mxu0 %v11257_v9 }
 0x4b2   :  { %9141 = vmatprep.mubr.msk.f32.mxu1 %vm245_vm1, %v12271_v3 }
 0x4b5   :  { %9142 = vmatmul.mubr.msk.f32.gmra.mrb[76].mxu1 %vm245_vm1, %v7439_v7 }
 0x4b6   :  { %9146 = vmatprep.mubr.msk.f32.mxu1 %vm245_vm1, %v12125_v37 }
 0x4b9   :  { %9147 = vmatmul.mubr.msk.f32.vlgmr.msra.gmra.mrb[62].mxu1 %vm245_vm1, %v12136_v48 }
 0x4ba   :  { %9149 = vmatprep.mubr.msk.f32.mxu1 %vm245_vm1, %v12141_v15 }
 0x4bd   :  { %9150 = vmatmul.mubr.msk.f32.gmra.mrb[64].mxu1 %vm245_vm1, %v12150_v12 }
 0x4be   :  { %9152 = vmatprep.mubr.msk.f32.mxu1 %vm245_vm1, %v12155_v59 }
 0x4c1   :  { %9153 = vmatmul.mubr.msk.f32.gmra.mrb[66].mxu1 %vm245_vm1, %v12166_v6 }
 0x4c2   :  { %9155 = vmatprep.mubr.msk.f32.mxu1 %vm245_vm1, %v12171_v38  ;;  %v7440_v38 = vld [vmem:[%s12820_s19 + $0x138] sm:$0xff] }
 0x4c3   :  { %v7833_v30 = vpop.f32.mrb[22].mxu0 }
 0x4c4   :  { %v7834_v37 = vpop.f32.mrb[23].mxu0 }
 0x4c5   :  { %v7835_v17 = vadd.f32 %v7834_v37, %v7833_v30  ;;  %9156 = vmatmul.mubr.msk.f32.gmra.mrb[68].mxu1 %vm245_vm1, %v12182_v32  ;;  %v4468_v30 = vld [vmem:[#allocation4 + $0x4c8] sm:$0xff]  ;;  %v4470_v37 = vld [vmem:[#allocation4 + $0x4d8] sm:$0xff] }
 0x4c6   :  { %9158 = vmatprep.mubr.msk.f32.mxu1 %vm245_vm1, %v12187_v27 }
 0x4c7   :  { %v2449_v48 = vadd.f32 %v7835_v17, %v2345_v26 }
 0x4c8   :  { %v7938_v15 = vpop.f32.mrb[54].mxu1 }
 0x4c9   :  { %v7939_v12 = vpop.f32.mrb[55].mxu1  ;;  %9159 = vmatmul.mubr.msk.f32.gmra.mrb[70].mxu1 %vm245_vm1, %v12197_v39  ;;  %v2553_v59 = vadd.f32 %v7870_v8, %v2449_v48  ;;  %v9966_v48 = vpack.c.bf16 %v4470_v37, %v4468_v30 }
 0x4ca   :  { %v7940_v6 = vadd.f32 %v7939_v12, %v7938_v15  ;;  %9161 = vmatprep.mubr.msk.f32.mxu1 %vm245_vm1, %v12202_v61  ;;  %v4467_v15 = vld [vmem:[#allocation4 + $0x4c0] sm:$0xff]  ;;  %v4469_v12 = vld [vmem:[#allocation4 + $0x4d0] sm:$0xff] }
 0x4cd   :  { %9162 = vmatmul.mubr.msk.f32.gmra.mrb[72].mxu1 %vm245_vm1, %v12212_v24  ;;  %v4446_v24 = vld [vmem:[#allocation4 + $0x418] sm:$0xff] }
 0x4ce   :  { %9164 = vmatprep.mubr.msk.f32.mxu1 %vm245_vm1, %v12261_v18  ;;  %v9942_v56 = vpack.c.bf16 %v4446_v24, %v4444_v53  ;;  %v9962_v18 = vpack.c.bf16 %v4466_v22, %v4464_v50  ;;  %v4411_v53 = vld [vmem:[#allocation4 + $0x308] sm:$0xff]  ;;  %v4413_v24 = vld [vmem:[#allocation4 + $0x318] sm:$0xff] }
 0x4cf   :  { %v9974_v16 = vpack.c.bf16 %v4413_v24, %v4411_v53 }
 0x4d0   :  { %9943 = vmatprep.subr.bf16.mxu0 %v9942_v56 }
 0x4d1   :  { %9165 = vmatmul.mubr.msk.f32.gmra.mrb[74].mxu1 %vm245_vm1, %v12271_v3  ;;  %9945 = vmatpush1.bf16.msra.mxu0 %v9944_v23  ;;  %v4463_v3 = vld [vmem:[#allocation4 + $0x4a0] sm:$0xff] }
 0x4d2   :  { %9167 = vmatprep.mubr.msk.f32.mxu1 %vm245_vm1, %v7439_v7  ;;  %9947 = vmatprep.subr.bf16.mxu0 %v9946_v11  ;;  %v9964_v49 = vpack.c.bf16 %v4465_v31, %v4463_v3  ;;  %v12395_v31 = vld [vmem:[#allocation2 + $0x1] ss:$0 sm:$0xff] }
 0x4d5   :  { %9168 = vmatmul.mubr.msk.f32.gmra.mrb[76].mxu1 %vm245_vm1, %v7440_v38  ;;  %9949 = vmatpush1.bf16.msra.mxu0 %v9948_v10  ;;  %v4474_v38 = vld [vmem:[#allocation4 + $0x4f8] sm:$0xff] }
 0x4d6   :  { %9951 = vmatprep.subr.bf16.mxu0 %v9950_v13 }
 0x4d9   :  { %9953 = vmatpush1.bf16.msra.mxu0 %v9952_v36 }
 0x4da   :  { %9955 = vmatprep.subr.bf16.mxu0 %v9954_v55 }
 0x4dd   :  { %9957 = vmatpush1.bf16.msra.mxu0 %v9956_v45 }
 0x4de   :  { %9959 = vmatprep.subr.bf16.mxu0 %v9958_v29 }
 0x4e1   :  { %9961 = vmatpush1.bf16.msra.mxu0 %v9960_v62 }
 0x4e2   :  { %9963 = vmatprep.subr.bf16.mxu0 %v9962_v18 }
 0x4e3   :  { %v7903_v32 = vpop.f32.mrb[24].mxu0 }
 0x4e4   :  { %v7904_v27 = vpop.f32.mrb[25].mxu0 }
 0x4e5   :  { %v7905_v39 = vadd.f32 %v7904_v27, %v7903_v32  ;;  %9965 = vmatpush1.bf16.msra.mxu0 %v9964_v49  ;;  %v4471_v27 = vld [vmem:[#allocation4 + $0x4e0] sm:$0xff] }
 0x4e6   :  { %9967 = vmatprep.subr.bf16.mxu0 %v9966_v48 }
 0x4e7   :  { %v2657_v61 = vadd.f32 %v7905_v39, %v2553_v59  ;;  %v9968_v59 = vpack.c.bf16 %v4469_v12, %v4467_v15  ;;  %v4473_v39 = vld [vmem:[#allocation4 + $0x4f0] sm:$0xff] }
 0x4e8   :  { %v8008_v54 = vpop.f32.mrb[56].mxu1 }
 0x4e9   :  { %v8009_v60 = vpop.f32.mrb[57].mxu1  ;;  %v2761_v63 = vadd.f32 %v7940_v6, %v2657_v61  ;;  %9969 = vmatpush1.bf16.msra.mxu0 %v9968_v59  ;;  %v4472_v6 = vld [vmem:[#allocation4 + $0x4e8] sm:$0xff]  ;;  %v9972_v61 = vpack.c.bf16 %v4473_v39, %v4471_v27  ;;  %v4421_v27 = vld [vmem:[#allocation4 + $0x358] sm:$0xff] }
 0x4ea   :  { %v8010_v42 = vadd.f32 %v8009_v60, %v8008_v54  ;;  %v9970_v32 = vpack.c.bf16 %v4474_v38, %v4472_v6  ;;  %v4414_v6 = vld [vmem:[#allocation4 + $0x320] sm:$0xff]  ;;  %v4416_v38 = vld [vmem:[#allocation4 + $0x330] sm:$0xff] }
 0x4eb   :  { %v9980_v24 = vpack.c.bf16 %v4416_v38, %v4414_v6  ;;  %v4435_v6 = vld [vmem:[#allocation4 + $0x3c8] sm:$0xff]  ;;  %v4437_v38 = vld [vmem:[#allocation4 + $0x3d8] sm:$0xff] }
 0x4ec   :  { %9971 = vmatprep.subr.bf16.mxu0 %v9970_v32  ;;  %v4419_v32 = vld [vmem:[#allocation4 + $0x348] sm:$0xff] }
 0x4ed   :  { %9973 = vmatpush1.bf16.msra.mxu0 %v9972_v61 }
 0x4ee   :  { %9975 = vmatprep.subr.bf16.mxu0 %v9974_v16 }
 0x503   :  { %v7973_v46 = vpop.f32.mrb[26].mxu0 }
 0x504   :  { %v7974_v51 = vpop.f32.mrb[27].mxu0 }
 0x505   :  { %v7975_v19 = vadd.f32 %v7974_v51, %v7973_v46  ;;  %v4410_v51 = vld [vmem:[#allocation4 + $0x300] sm:$0xff] }
 0x507   :  { %v2865_v52 = vadd.f32 %v7975_v19, %v2761_v63  ;;  %v4412_v19 = vld [vmem:[#allocation4 + $0x310] sm:$0xff] }
 0x508   :  { %v8078_v26 = vpop.f32.mrb[58].mxu1 }
 0x509   :  { %v8079_v8 = vpop.f32.mrb[59].mxu1  ;;  %v2969_v7 = vadd.f32 %v8010_v42, %v2865_v52  ;;  %v4415_v52 = vld [vmem:[#allocation4 + $0x328] sm:$0xff] }
 0x50a   :  { %v8080_v17 = vadd.f32 %v8079_v8, %v8078_v26  ;;  %v4417_v26 = vld [vmem:[#allocation4 + $0x338] sm:$0xff] }
 0x50b   :  { %v9978_v59 = vpack.c.bf16 %v4417_v26, %v4415_v52  ;;  %v4433_v52 = vld [vmem:[#allocation4 + $0x3b8] sm:$0xff] }
 0x523   :  { %v8043_v54 = vpop.f32.mrb[28].mxu0 }
 0x524   :  { %v8044_v56 = vpop.f32.mrb[29].mxu0 }
 0x525   :  { %v8045_v20 = vadd.f32 %v8044_v56, %v8043_v54 }
 0x527   :  { %v3073_v58 = vadd.f32 %v8045_v20, %v2969_v7  ;;  %v9982_v20 = vpack.c.bf16 %v4421_v27, %v4419_v32 }
 0x528   :  { %v8148_v4 = vpop.f32.mrb[60].mxu1 }
 0x529   :  { %v8149_v60 = vpop.f32.mrb[61].mxu1  ;;  %v3177_v63 = vadd.f32 %v8080_v17, %v3073_v58  ;;  %v9976_v17 = vpack.c.bf16 %v4412_v19, %v4410_v51  ;;  %v4418_v58 = vld [vmem:[#allocation4 + $0x340] sm:$0xff]  ;;  %v4428_v51 = vld [vmem:[#allocation4 + $0x390] sm:$0xff]  ;;  %v4431_v19 = vld [vmem:[#allocation4 + $0x3a8] sm:$0xff] }
 0x52a   :  { %v8150_v23 = vadd.f32 %v8149_v60, %v8148_v4  ;;  %v4420_v4 = vld [vmem:[#allocation4 + $0x350] sm:$0xff]  ;;  %v4423_v60 = vld [vmem:[#allocation4 + $0x368] sm:$0xff] }
 0x543   :  { %v8113_v11 = vpop.f32.mrb[30].mxu0 }
 0x544   :  { %v8114_v14 = vpop.f32.mrb[31].mxu0 }
 0x545   :  { %v8115_v1 = vadd.f32 %v8114_v14, %v8113_v11 }
 0x547   :  { %v3281_v2 = vadd.f32 %v8115_v1, %v3177_v63  ;;  %v4425_v63 = vld [vmem:[#allocation4 + $0x378] sm:$0xff]  ;;  %v9984_v1 = vpack.c.bf16 %v4420_v4, %v4418_v58 }
 0x548   :  { %v4441_v58 = vld [vmem:[#allocation4 + $0x3f8] sm:$0xff] }
 0x549   :  { %v3385_v42 = vadd.f32 %v8150_v23, %v3281_v2 }
 0x563   :  { %v8183_v5 = vpop.f32.mrb[32].mxu0 }
 0x564   :  { %v8184_v10 = vpop.f32.mrb[33].mxu0 }
 0x565   :  { %v8185_v13 = vadd.f32 %v8184_v10, %v8183_v5  ;;  %v9986_v10 = vpack.c.bf16 %v4425_v63, %v4423_v60 }
 0x567   :  { %v12377_v25 = vadd.f32 %v8185_v13, %v3385_v42  ;;  %v9044_v33 = vpop.f32.mrb[34].mxu0  ;;  %v4422_v13 = vld [vmem:[#allocation4 + $0x360] sm:$0xff] }
 0x568   :  { %v3632_v21 = vpop.f32.mrb[35].mxu0 }
 0x56b   :  { %v9047_v34 = vpop.f32.mrb[36].mxu0 }
 0x56c   :  { %v3642_v36 = vpop.f32.mrb[37].mxu0 }
 0x56f   :  { %v9050_v55 = vpop.f32.mrb[38].mxu0 }
 0x570   :  { %v3652_v35 = vpop.f32.mrb[39].mxu0 }
 0x573   :  { %v9053_v40 = vpop.f32.mrb[40].mxu0 }
 0x574   :  { %v3662_v41 = vpop.f32.mrb[41].mxu0 }
 0x577   :  { %v12379_v43 = vpop.f32.mrb[42].mxu0 }
 0x578   :  { %v12381_v45 = vpop.f32.mrb[43].mxu0 }
 0x57b   :  { %v12383_v29 = vpop.f32.mrb[44].mxu0 }
 0x57c   :  { %v12385_v57 = vpop.f32.mrb[45].mxu0 }
 0x57f   :  { %v12387_v47 = vpop.f32.mrb[46].mxu0 }
 0x580   :  { %v12389_v50 = vpop.f32.mrb[47].mxu0 }
 0x583   :  { %v12391_v22 = vpop.f32.mrb[48].mxu0 }
 0x584   :  { %v12393_v62 = vpop.f32.mrb[49].mxu0 }
 0x58c   :  { %v9148_v18 = vpop.f32.mrb[62].mxu1 }
 0x58d   :  { %v10674_v3 = vadd.f32 %v9148_v18, %v9044_v33  ;;  %v4274_v49 = vpop.f32.mrb[63].mxu1  ;;  %v4424_v33 = vld [vmem:[#allocation4 + $0x370] sm:$0xff] }
 0x58e   :  { %v10675_v46 = vadd.f32 %v4274_v49, %v3632_v21  ;;  %v4427_v21 = vld [vmem:[#allocation4 + $0x388] sm:$0xff] }
 0x58f   :  { %v4378_v48 = vadd.f32 %v10674_v3, %v12395_v31 }
 0x590   :  { %v12398_v8 = vadd.f32 %v10675_v46, %v12395_v31  ;;  %v9151_v7 = vpop.f32.mrb[64].mxu1  ;;  %v4426_v46 = vld [vmem:[#allocation4 + $0x380] sm:$0xff] }
 0x591   :  { %v10676_v30 = vadd.f32 %v9151_v7, %v9047_v34  ;;  %v4284_v37 = vpop.f32.mrb[65].mxu1  ;;  %v12405_v16 = vmax.f32 %v4378_v48, 0.0  ;;  %v4429_v34 = vld [vmem:[#allocation4 + $0x398] sm:$0xff]  ;;  %v9994_v48 = vpack.c.bf16 %v4433_v52, %v4431_v19 }
 0x592   :  { %v4393_v15 = vmax.f32 %v12398_v8, 0.0  ;;  %v10677_v12 = vadd.f32 %v4284_v37, %v3642_v36  ;;  %v9990_v49 = vpack.c.bf16 %v4429_v34, %v4427_v21  ;;  %v5138_v8 = vld [vmem:[#allocation7 + $0x1120] sm:$0xff] }
 0x593   :  { %v4380_v2 = vadd.f32 %v10676_v30, %v12395_v31  ;;  %v9992_v30 = vpack.c.bf16 %v4428_v51, %v4426_v46 }
 0x594   :  { %v9154_v39 = vpop.f32.mrb[66].mxu1  ;;  %4540 = vmatmul.mubr.f32.vlgmr.msra.gmra.mrb[50].mxu0 %v4393_v15  ;;  %v4379_v54 = vadd.f32 %v10677_v12, %v12395_v31  ;;  %v4430_v12 = vld [vmem:[#allocation4 + $0x3a0] sm:$0xff] }
 0x595   :  { %v10678_v61 = vadd.f32 %v9154_v39, %v9050_v55  ;;  %v4294_v53 = vpop.f32.mrb[67].mxu1  ;;  %9977 = vmatpush1.bf16.msra.mxu0 %v9976_v17  ;;  %4545 = vmatprep.mubr.f32.mxu0 %v11257_v9  ;;  %v12420_v18 = vmax.f32 %v4380_v2, 0.0  ;;  %v4438_v2 = vld [vmem:[#allocation4 + $0x3e0] sm:$0xff] }
 0x596   :  { %v10679_v56 = vadd.f32 %v4294_v53, %v3652_v35  ;;  %9979 = vmatprep.subr.bf16.mxu0 %v9978_v59  ;;  %v12413_v42 = vmax.f32 %v4379_v54, 0.0  ;;  %v4432_v59 = vld [vmem:[#allocation4 + $0x3b0] sm:$0xff]  ;;  %v4434_v54 = vld [vmem:[#allocation4 + $0x3c0] sm:$0xff] }
 0x597   :  { %v4382_v37 = vadd.f32 %v10678_v61, %v12395_v31  ;;  %v9996_v39 = vpack.c.bf16 %v4432_v59, %v4430_v12  ;;  %v4802_v12 = vld [vmem:[#allocation4 + $0x520] sm:$0xff]  ;;  %v4804_v59 = vld [vmem:[#allocation4 + $0x530] sm:$0xff] }
 0x598   :  { %v9157_v23 = vpop.f32.mrb[68].mxu1  ;;  %4546 = vmatmul.mubr.f32.gmra.mrb[52].mxu0 %v12405_v16 }
 0x599   :  { %v12409_v11 = vadd.f32 %v9157_v23, %v9053_v40  ;;  %v4304_v14 = vpop.f32.mrb[69].mxu1  ;;  %4551 = vmatprep.mubr.f32.mxu0 %v11257_v9  ;;  %9981 = vmatpush1.bf16.msra.mxu0 %v9980_v24  ;;  %v9988_v40 = vpack.c.bf16 %v4424_v33, %v4422_v13  ;;  %v12436_v61 = vmax.f32 %v4382_v37, 0.0  ;;  %v9998_v24 = vpack.c.bf16 %v4437_v38, %v4435_v6  ;;  %v4801_v13 = vld [vmem:[#allocation4 + $0x518] sm:$0xff]  ;;  %v4803_v37 = vld [vmem:[#allocation4 + $0x528] sm:$0xff] }
 0x59a   :  { %v10681_v5 = vadd.f32 %v4304_v14, %v3662_v41  ;;  %9983 = vmatprep.subr.bf16.mxu0 %v9982_v20  ;;  %v4381_v41 = vadd.f32 %v10679_v56, %v12395_v31  ;;  %v4436_v56 = vld [vmem:[#allocation4 + $0x3d0] sm:$0xff]  ;;  %v4439_v20 = vld [vmem:[#allocation4 + $0x3e8] sm:$0xff]  ;;  %v4809_v38 = vld [vmem:[#allocation4 + $0x558] sm:$0xff] }
 0x59b   :  { %v10000_v63 = vpack.c.bf16 %v4436_v56, %v4434_v54  ;;  %v4384_v23 = vadd.f32 %v12409_v11, %v12395_v31  ;;  %v4807_v6 = vld [vmem:[#allocation4 + $0x548] sm:$0xff] }
 0x59c   :  { %v9160_v36 = vpop.f32.mrb[70].mxu1  ;;  %4552 = vmatmul.mubr.f32.gmra.mrb[54].mxu0 %v12413_v42  ;;  %v10014_v54 = vpack.c.bf16 %v4809_v38, %v4807_v6  ;;  %v5158_v6 = vld [vmem:[#allocation7 + $0x11c0] sm:$0xff]  ;;  %v5159_v38 = vld [vmem:[#allocation7 + $0x11c8] sm:$0xff] }
 0x59d   :  { %v12417_v55 = vadd.f32 %v9160_v36, %v12379_v43  ;;  %v4314_v35 = vpop.f32.mrb[71].mxu1  ;;  %4557 = vmatprep.mubr.f32.mxu0 %v11257_v9  ;;  %9985 = vmatpush1.bf16.msra.mxu0 %v9984_v1  ;;  %v10002_v1 = vpack.c.bf16 %v4441_v58, %v4439_v20  ;;  %v12450_v33 = vmax.f32 %v4384_v23, 0.0  ;;  %v5134_v20 = vld [vmem:[#allocation7 + $0x1100] sm:$0xff]  ;;  %v5135_v58 = vld [vmem:[#allocation7 + $0x1108] sm:$0xff]  ;;  %v5137_v23 = vld [vmem:[#allocation7 + $0x1118] sm:$0xff] }
 0x59e   :  { %v10683_v3 = vadd.f32 %v4314_v35, %v12381_v45  ;;  %9987 = vmatprep.subr.bf16.mxu0 %v9986_v10  ;;  %v12430_v45 = vmax.f32 %v4381_v41, 0.0  ;;  %v4799_v10 = vld [vmem:[#allocation4 + $0x508] sm:$0xff] }
 0x59f   :  { %v10006_v21 = vpack.c.bf16 %v4801_v13, %v4799_v10  ;;  %v4810_v13 = vld [vmem:[#allocation4 + $0x560] sm:$0xff] }
 0x5a0   :  { %v9163_v26 = vpop.f32.mrb[72].mxu1  ;;  %4558 = vmatmul.mubr.f32.gmra.mrb[56].mxu0 %v12420_v18  ;;  %v4385_v11 = vadd.f32 %v10683_v3, %v12395_v31 }
 0x5a1   :  { %v12426_v43 = vadd.f32 %v9163_v26, %v12383_v29  ;;  %v4324_v7 = vpop.f32.mrb[73].mxu1  ;;  %4563 = vmatprep.mubr.f32.mxu0 %v11257_v9  ;;  %9989 = vmatpush1.bf16.msra.mxu0 %v9988_v40 }
 0x5a2   :  { %v10685_v17 = vadd.f32 %v4324_v7, %v12385_v57  ;;  %9991 = vmatprep.subr.bf16.mxu0 %v9990_v49  ;;  %v4383_v57 = vadd.f32 %v10681_v5, %v12395_v31  ;;  %v4440_v5 = vld [vmem:[#allocation4 + $0x3f0] sm:$0xff]  ;;  %v12457_v34 = vmax.f32 %v4385_v11, 0.0  ;;  %v4798_v7 = vld [vmem:[#allocation4 + $0x500] sm:$0xff]  ;;  %v4815_v11 = vld [vmem:[#allocation4 + $0x588] sm:$0xff] }
 0x5a3   :  { %v4388_v40 = vadd.f32 %v12426_v43, %v12395_v31 }
 0x5a4   :  { %v9166_v32 = vpop.f32.mrb[74].mxu1  ;;  %4564 = vmatmul.mubr.f32.gmra.mrb[58].mxu0 %v12430_v45  ;;  %v4387_v35 = vadd.f32 %v10685_v17, %v12395_v31  ;;  %v4805_v17 = vld [vmem:[#allocation4 + $0x538] sm:$0xff] }
 0x5a5   :  { %v10686_v29 = vadd.f32 %v9166_v32, %v12387_v47  ;;  %v4334_v27 = vpop.f32.mrb[75].mxu1  ;;  %4569 = vmatprep.mubr.f32.mxu0 %v11257_v9  ;;  %9993 = vmatpush1.bf16.msra.mxu0 %v9992_v30  ;;  %v4800_v30 = vld [vmem:[#allocation4 + $0x510] sm:$0xff]  ;;  %v4806_v32 = vld [vmem:[#allocation4 + $0x540] sm:$0xff] }
 0x5a6   :  { %v10687_v53 = vadd.f32 %v4334_v27, %v12389_v50  ;;  %9995 = vmatprep.subr.bf16.mxu0 %v9994_v48  ;;  %v12445_v50 = vmax.f32 %v4383_v57, 0.0  ;;  %v12468_v41 = vmax.f32 %v4387_v35, 0.0  ;;  %v10008_v48 = vpack.c.bf16 %v4800_v30, %v4798_v7  ;;  %v4813_v57 = vld [vmem:[#allocation4 + $0x578] sm:$0xff]  ;;  %v4814_v7 = vld [vmem:[#allocation4 + $0x580] sm:$0xff]  ;;  %v4816_v30 = vld [vmem:[#allocation4 + $0x590] sm:$0xff] }
 0x5a7   :  { %v4390_v49 = vadd.f32 %v10686_v29, %v12395_v31  ;;  %v4808_v29 = vld [vmem:[#allocation4 + $0x550] sm:$0xff]  ;;  %v10012_v27 = vpack.c.bf16 %v4804_v59, %v4802_v12  ;;  %v5141_v59 = vld [vmem:[#allocation7 + $0x1138] sm:$0xff] }
 0x5a8   :  { %v9169_v4 = vpop.f32.mrb[76].mxu1  ;;  %4570 = vmatmul.mubr.f32.gmra.mrb[60].mxu0 %v12436_v61  ;;  %v4389_v3 = vadd.f32 %v10687_v53, %v12395_v31  ;;  %v5150_v53 = vld [vmem:[#allocation7 + $0x1180] sm:$0xff]  ;;  %v5140_v12 = vld [vmem:[#allocation7 + $0x1130] sm:$0xff] }
 0x5a9   :  { %v10688_v47 = vadd.f32 %v9169_v4, %v12391_v22  ;;  %v4344_v60 = vpop.f32.mrb[77].mxu1  ;;  %4575 = vmatprep.mubr.f32.mxu0 %v11257_v9  ;;  %9997 = vmatpush1.bf16.msra.mxu0 %v9996_v39  ;;  %v10004_v22 = vpack.c.bf16 %v4440_v5, %v4438_v2  ;;  %v12482_v51 = vmax.f32 %v4390_v49, 0.0  ;;  %v4811_v39 = vld [vmem:[#allocation4 + $0x568] sm:$0xff]  ;;  %v5152_v4 = vld [vmem:[#allocation7 + $0x1190] sm:$0xff] }
 0x5aa   :  { %v10689_v14 = vadd.f32 %v4344_v60, %v12393_v62  ;;  %9999 = vmatprep.subr.bf16.mxu0 %v9998_v24  ;;  %v4386_v62 = vadd.f32 %v12417_v55, %v12395_v31  ;;  %v12472_v55 = vmax.f32 %v4388_v40, 0.0  ;;  %v12478_v46 = vmax.f32 %v4389_v3, 0.0  ;;  %v5151_v24 = vld [vmem:[#allocation7 + $0x1188] sm:$0xff]  ;;  %v5153_v60 = vld [vmem:[#allocation7 + $0x1198] sm:$0xff]  ;;  %v5154_v2 = vld [vmem:[#allocation7 + $0x11a0] sm:$0xff] }
 0x5ab   :  { %v12488_v52 = vadd.f32 %v10688_v47, %v12395_v31  ;;  %v10038_v56 = vpack.c.bf16 %v5151_v24, %v5150_v53  ;;  %v10040_v47 = vpack.c.bf16 %v5135_v58, %v5134_v20  ;;  %v5155_v5 = vld [vmem:[#allocation7 + $0x11a8] sm:$0xff]  ;;  %v10018_v10 = vpack.c.bf16 %v4813_v57, %v4811_v39  ;;  %v5156_v40 = vld [vmem:[#allocation7 + $0x11b0] sm:$0xff]  ;;  %v5157_v3 = vld [vmem:[#allocation7 + $0x11b8] sm:$0xff] }
 0x5ac   :  { %4576 = vmatmul.mubr.f32.gmra.mrb[62].mxu0 %v12445_v50  ;;  %v12461_v36 = vmax.f32 %v4386_v62, 0.0  ;;  %v4391_v19 = vadd.f32 %v10689_v14, %v12395_v31  ;;  %v10010_v31 = vpack.c.bf16 %v4805_v17, %v4803_v37  ;;  %v10042_v14 = vpack.c.bf16 %v5153_v60, %v5152_v4  ;;  %v4817_v62 = vld [vmem:[#allocation4 + $0x598] sm:$0xff]  ;;  %v4819_v37 = vld [vmem:[#allocation4 + $0x5a8] sm:$0xff]  ;;  %v4820_v39 = vld [vmem:[#allocation4 + $0x5b0] sm:$0xff] }
 0x5ad   :  { %4581 = vmatprep.mubr.f32.mxu0 %v11257_v9  ;;  %10001 = vmatpush1.bf16.msra.mxu0 %v10000_v63  ;;  %v4408_v43 = vmax.f32 %v12488_v52, 0.0  ;;  %v5136_v63 = vld [vmem:[#allocation7 + $0x1110] sm:$0xff]  ;;  %v10046_v35 = vpack.c.bf16 %v5155_v5, %v5154_v2  ;;  %v4823_v57 = vld [vmem:[#allocation4 + $0x5c8] sm:$0xff]  ;;  %v10052_v53 = vpack.c.bf16 %v5141_v59, %v5140_v12  ;;  %v5161_v4 = vld [vmem:[#allocation7 + $0x11d8] sm:$0xff] }
 0x5ae   :  { %10003 = vmatprep.subr.bf16.mxu0 %v10002_v1  ;;  %v12490_v26 = vmax.f32 %v4391_v19, 0.0  ;;  %10039 = vmatprep.subr.bf16.mxu1 %v10038_v56  ;;  %v10016_v1 = vpack.c.bf16 %v4808_v29, %v4806_v32  ;;  %v10022_v19 = vpack.c.bf16 %v4817_v62, %v4815_v11  ;;  %v10024_v32 = vpack.c.bf16 %v4816_v30, %v4814_v7  ;;  %v4825_v24 = vld [vmem:[#allocation4 + $0x5d8] sm:$0xff]  ;;  %v5142_v56 = vld [vmem:[#allocation7 + $0x1140] sm:$0xff]  ;;  %v5143_v20 = vld [vmem:[#allocation7 + $0x1148] sm:$0xff] }
 0x5af   :  { %10041 = vmatpush3.bf16.msra.mxu1 %v10040_v47  ;;  %v5160_v58 = vld [vmem:[#allocation7 + $0x11d0] sm:$0xff]  ;;  %v10030_v60 = vpack.c.bf16 %v4825_v24, %v4823_v57  ;;  %v5326_v30 = vld [vmem:[#allocation7 + $0x1298] sm:$0xff]  ;;  %v5327_v12 = vld [vmem:[#allocation7 + $0x12a0] sm:$0xff] }
 0x5b0   :  { %4582 = vmatmul.mubr.f32.gmra.mrb[64].mxu0 %v12450_v33  ;;  %10043 = vmatprep.subr.bf16.mxu1 %v10042_v14  ;;  %v4827_v14 = vld [vmem:[#allocation4 + $0x5e8] sm:$0xff]  ;;  %v4829_v2 = vld [vmem:[#allocation4 + $0x5f8] sm:$0xff]  ;;  %v10058_v5 = vpack.c.bf16 %v5161_v4, %v5160_v58  ;;  %v4828_v62 = vld [vmem:[#allocation4 + $0x5f0] sm:$0xff] }
 0x5b1   :  { %4587 = vmatprep.mubr.f32.mxu0 %v11257_v9  ;;  %10005 = vmatpush1.bf16.msra.mxu0 %v10004_v22  ;;  %v4812_v22 = vld [vmem:[#allocation4 + $0x570] sm:$0xff]  ;;  %v10034_v11 = vpack.c.bf16 %v4829_v2, %v4827_v14  ;;  %v5315_v4 = vld [vmem:[#allocation7 + $0x1240] sm:$0xff]  ;;  %v5149_v52 = vld [vmem:[#allocation7 + $0x1178] sm:$0xff] }
 0x5b2   :  { %10007 = vmatprep.subr.bf16.mxu0 %v10006_v21  ;;  %v10044_v21 = vpack.c.bf16 %v5137_v23, %v5136_v63  ;;  %v10020_v49 = vpack.c.bf16 %v4812_v22, %v4810_v13  ;;  %v4822_v63 = vld [vmem:[#allocation4 + $0x5c0] sm:$0xff]  ;;  %v4824_v23 = vld [vmem:[#allocation4 + $0x5d0] sm:$0xff] }
 0x5b3   :  { %v5145_v13 = vld [vmem:[#allocation7 + $0x1158] sm:$0xff]  ;;  %v10032_v22 = vpack.c.bf16 %v4824_v23, %v4822_v63  ;;  %v5325_v7 = vld [vmem:[#allocation7 + $0x1290] sm:$0xff]  ;;  %v5328_v59 = vld [vmem:[#allocation7 + $0x12a8] sm:$0xff] }
 0x5b4   :  { %4588 = vmatmul.mubr.f32.gmra.mrb[66].mxu0 %v12457_v34  ;;  %10045 = vmatpush3.bf16.msra.mxu1 %v10044_v21  ;;  %v4826_v21 = vld [vmem:[#allocation4 + $0x5e0] sm:$0xff]  ;;  %v5313_v24 = vld [vmem:[#allocation7 + $0x1230] sm:$0xff]  ;;  %v5336_v2 = vld [vmem:[#allocation7 + $0x12e8] sm:$0xff] }
 0x5b5   :  { %4593 = vmatprep.mubr.f32.mxu0 %v11257_v9  ;;  %10047 = vmatprep.subr.bf16.mxu1 %v10046_v35  ;;  %v5317_v14 = vld [vmem:[#allocation7 + $0x1250] sm:$0xff] }
 0x5b8   :  { %4594 = vmatmul.mubr.f32.gmra.mrb[68].mxu0 %v12461_v36 }
 0x5b9   :  { %4599 = vmatprep.mubr.f32.mxu0 %v11257_v9 }
 0x5bc   :  { %4600 = vmatmul.mubr.f32.gmra.mrb[70].mxu0 %v12468_v41 }
 0x5bd   :  { %4605 = vmatprep.mubr.f32.mxu0 %v11257_v9 }
 0x5c0   :  { %4606 = vmatmul.mubr.f32.gmra.mrb[72].mxu0 %v12472_v55 }
 0x5c1   :  { %4611 = vmatprep.mubr.f32.mxu0 %v11257_v9 }
 0x5c4   :  { %4612 = vmatmul.mubr.f32.gmra.mrb[74].mxu0 %v12478_v46 }
 0x5c5   :  { %4617 = vmatprep.mubr.f32.mxu0 %v11257_v9 }
 0x5c8   :  { %4618 = vmatmul.mubr.f32.gmra.mrb[76].mxu0 %v12482_v51 }
 0x5c9   :  { %4623 = vmatprep.mubr.f32.mxu0 %v11257_v9 }
 0x5cc   :  { %4624 = vmatmul.mubr.f32.gmra.mrb[78].mxu0 %v12490_v26 }
 0x5cd   :  { %4629 = vmatprep.mubr.f32.mxu0 %v11257_v9 }
 0x5d0   :  { %4630 = vmatmul.mubr.f32.gmra.mrb[80].mxu0 %v4408_v43 }
 0x5d1   :  { %4700 = vmatprep.mubr.f32.mxu0 %v11257_v9 }
 0x5d4   :  { %4701 = vmatmul.mubr.f32.vlgmr.msra.gmra.mrb[50].mxu0 %v11257_v9 }
 0x5d5   :  { %10009 = vmatpush1.bf16.msra.mxu0 %v10008_v48  ;;  %4706 = vmatprep.mubr.f32.mxu0 %v11257_v9  ;;  %v4821_v48 = vld [vmem:[#allocation4 + $0x5b8] sm:$0xff] }
 0x5d6   :  { %10011 = vmatprep.subr.bf16.mxu0 %v10010_v31  ;;  %v10050_v31 = vpack.c.bf16 %v5157_v3, %v5156_v40  ;;  %v10026_v29 = vpack.c.bf16 %v4821_v48, %v4819_v37  ;;  %v10036_v40 = vpack.c.bf16 %v4828_v62, %v4826_v21  ;;  %v5309_v48 = vld [vmem:[#allocation7 + $0x1210] sm:$0xff]  ;;  %v5338_v21 = vld [vmem:[#allocation7 + $0x12f8] sm:$0xff]  ;;  %v5117_v62 = vld [vmem:[#allocation7 + $0x1080] sm:$0xff] }
 0x5d8   :  { %4707 = vmatmul.mubr.f32.gmra.mrb[52].mxu0 %v4393_v15  ;;  %v5139_v15 = vld [vmem:[#allocation7 + $0x1128] sm:$0xff] }
 0x5d9   :  { %4712 = vmatprep.mubr.f32.mxu0 %v11257_v9  ;;  %10013 = vmatpush1.bf16.msra.mxu0 %v10012_v27  ;;  %v10048_v17 = vpack.c.bf16 %v5139_v15, %v5138_v8  ;;  %v4818_v27 = vld [vmem:[#allocation4 + $0x5a0] sm:$0xff]  ;;  %v5324_v15 = vld [vmem:[#allocation7 + $0x1288] sm:$0xff] }
 0x5da   :  { %10015 = vmatprep.subr.bf16.mxu0 %v10014_v54  ;;  %v10054_v54 = vpack.c.bf16 %v5159_v38, %v5158_v6  ;;  %v10028_v47 = vpack.c.bf16 %v4820_v39, %v4818_v27  ;;  %v5323_v8 = vld [vmem:[#allocation7 + $0x1280] sm:$0xff]  ;;  %v10110_v38 = vpack.c.bf16 %v5328_v59, %v5327_v12  ;;  %v5329_v27 = vld [vmem:[#allocation7 + $0x12b0] sm:$0xff]  ;;  %v5330_v39 = vld [vmem:[#allocation7 + $0x12b8] sm:$0xff] }
 0x5db   :  { %10049 = vmatpush3.bf16.msra.mxu1 %v10048_v17  ;;  %v10102_v3 = vpack.c.bf16 %v5324_v15, %v5323_v8  ;;  %v10106_v17 = vpack.c.bf16 %v5326_v30, %v5325_v7  ;;  %v5321_v8 = vld [vmem:[#allocation7 + $0x1270] sm:$0xff]  ;;  %v5322_v15 = vld [vmem:[#allocation7 + $0x1278] sm:$0xff]  ;;  %v5532_v7 = vld [vmem:[#allocation7 + $0x1488] sm:$0xff] }
 0x5dc   :  { %4713 = vmatmul.mubr.f32.gmra.mrb[54].mxu0 %v12405_v16  ;;  %10051 = vmatprep.subr.bf16.mxu1 %v10050_v31  ;;  %v5310_v31 = vld [vmem:[#allocation7 + $0x1218] sm:$0xff] }
 0x5dd   :  { %4718 = vmatprep.mubr.f32.mxu0 %v11257_v9  ;;  %10017 = vmatpush1.bf16.msra.mxu0 %v10016_v1  ;;  %v10056_v1 = vpack.c.bf16 %v5143_v20, %v5142_v56  ;;  %v10108_v6 = vpack.c.bf16 %v5310_v31, %v5309_v48  ;;  %v5332_v56 = vld [vmem:[#allocation7 + $0x12c8] sm:$0xff] }
 0x5de   :  { %10019 = vmatprep.subr.bf16.mxu0 %v10018_v10  ;;  %v5144_v10 = vld [vmem:[#allocation7 + $0x1150] sm:$0xff] }
 0x5df   :  { %10053 = vmatpush3.bf16.msra.mxu1 %v10052_v53  ;;  %v10060_v35 = vpack.c.bf16 %v5145_v13, %v5144_v10  ;;  %v10114_v53 = vpack.c.bf16 %v5330_v39, %v5329_v27  ;;  %v5148_v13 = vld [vmem:[#allocation7 + $0x1170] sm:$0xff] }
 0x5e0   :  { %4719 = vmatmul.mubr.f32.gmra.mrb[56].mxu0 %v12413_v42  ;;  %10055 = vmatprep.subr.bf16.mxu1 %v10054_v54  ;;  %v5331_v54 = vld [vmem:[#allocation7 + $0x12c0] sm:$0xff] }
 0x5e1   :  { %4724 = vmatprep.mubr.f32.mxu0 %v11257_v9  ;;  %10021 = vmatpush1.bf16.msra.mxu0 %v10020_v49  ;;  %v5307_v49 = vld [vmem:[#allocation7 + $0x1200] sm:$0xff]  ;;  %v10118_v58 = vpack.c.bf16 %v5332_v56, %v5331_v54  ;;  %v5103_v54 = vld [vmem:[#allocation7 + $0x1010] sm:$0xff]  ;;  %v5104_v56 = vld [vmem:[#allocation7 + $0x1018] sm:$0xff] }
 0x5e2   :  { %10023 = vmatprep.subr.bf16.mxu0 %v10022_v19  ;;  %v5308_v19 = vld [vmem:[#allocation7 + $0x1208] sm:$0xff] }
 0x5e3   :  { %10057 = vmatpush3.bf16.msra.mxu1 %v10056_v1  ;;  %v10104_v37 = vpack.c.bf16 %v5308_v19, %v5307_v49  ;;  %v5335_v1 = vld [vmem:[#allocation7 + $0x12e0] sm:$0xff] }
 0x5e4   :  { %4725 = vmatmul.mubr.f32.gmra.mrb[58].mxu0 %v12420_v18  ;;  %10059 = vmatprep.subr.bf16.mxu1 %v10058_v5  ;;  %v10126_v10 = vpack.c.bf16 %v5336_v2, %v5335_v1  ;;  %v5531_v19 = vld [vmem:[#allocation7 + $0x1480] sm:$0xff] }
 0x5e5   :  { %4730 = vmatprep.mubr.f32.mxu0 %v11257_v9  ;;  %10025 = vmatpush1.bf16.msra.mxu0 %v10024_v32  ;;  %v5311_v32 = vld [vmem:[#allocation7 + $0x1220] sm:$0xff]  ;;  %v10166_v30 = vpack.c.bf16 %v5532_v7, %v5531_v19  ;;  %v5126_v7 = vld [vmem:[#allocation7 + $0x10c8] sm:$0xff] }
 0x5e6   :  { %10027 = vmatprep.subr.bf16.mxu0 %v10026_v29  ;;  %v5312_v29 = vld [vmem:[#allocation7 + $0x1228] sm:$0xff] }
 0x5e7   :  { %10061 = vmatpush3.bf16.msra.mxu1 %v10060_v35  ;;  %v10112_v57 = vpack.c.bf16 %v5312_v29, %v5311_v32  ;;  %v5101_v32 = vld [vmem:[#allocation7 + $0x1000] sm:$0xff]  ;;  %v5102_v29 = vld [vmem:[#allocation7 + $0x1008] sm:$0xff] }
 0x5e8   :  { %4731 = vmatmul.mubr.f32.gmra.mrb[60].mxu0 %v12430_v45 }
 0x5e9   :  { %4736 = vmatprep.mubr.f32.mxu0 %v11257_v9  ;;  %10029 = vmatpush1.bf16.msra.mxu0 %v10028_v47  ;;  %v5333_v47 = vld [vmem:[#allocation7 + $0x12d0] sm:$0xff] }
 0x5ea   :  { %10031 = vmatprep.subr.bf16.mxu0 %v10030_v60  ;;  %v5334_v60 = vld [vmem:[#allocation7 + $0x12d8] sm:$0xff] }
 0x5eb   :  { %v10122_v23 = vpack.c.bf16 %v5334_v60, %v5333_v47  ;;  %v5121_v47 = vld [vmem:[#allocation7 + $0x10a0] sm:$0xff] }
 0x5ec   :  { %4737 = vmatmul.mubr.f32.gmra.mrb[62].mxu0 %v12436_v61 }
 0x5ed   :  { %4742 = vmatprep.mubr.f32.mxu0 %v11257_v9  ;;  %10033 = vmatpush1.bf16.msra.mxu0 %v10032_v22  ;;  %v10068_v22 = vpack.c.bf16 %v5149_v52, %v5148_v13  ;;  %v5535_v13 = vld [vmem:[#allocation7 + $0x14a0] sm:$0xff]  ;;  %v5536_v52 = vld [vmem:[#allocation7 + $0x14a8] sm:$0xff] }
 0x5ee   :  { %10035 = vmatprep.subr.bf16.mxu0 %v10034_v11  ;;  %v5337_v11 = vld [vmem:[#allocation7 + $0x12f0] sm:$0xff] }
 0x5ef   :  { %v10130_v35 = vpack.c.bf16 %v5338_v21, %v5337_v11  ;;  %v5107_v21 = vld [vmem:[#allocation7 + $0x1030] sm:$0xff] }
 0x5f0   :  { %4743 = vmatmul.mubr.f32.gmra.mrb[64].mxu0 %v12445_v50 }
 0x5f1   :  { %4748 = vmatprep.mubr.f32.mxu0 %v11257_v9  ;;  %10037 = vmatpush1.bf16.msra.mxu0 %v10036_v40  ;;  %v5118_v40 = vld [vmem:[#allocation7 + $0x1088] sm:$0xff] }
 0x5f2   :  { %10103 = vmatprep.subr.bf16.mxu0 %v10102_v3  ;;  %v10132_v3 = vpack.c.bf16 %v5322_v15, %v5321_v8  ;;  %v10070_v49 = vpack.c.bf16 %v5118_v40, %v5117_v62  ;;  %v5108_v62 = vld [vmem:[#allocation7 + $0x1038] sm:$0xff]  ;;  %v10174_v15 = vpack.c.bf16 %v5536_v52, %v5535_v13  ;;  %v5519_v40 = vld [vmem:[#allocation7 + $0x1420] sm:$0xff]  ;;  %v5525_v52 = vld [vmem:[#allocation7 + $0x1450] sm:$0xff] }
 0x5f4   :  { %4749 = vmatmul.mubr.f32.gmra.mrb[66].mxu0 %v12450_v33 }
 0x5f5   :  { %4754 = vmatprep.mubr.f32.mxu0 %v11257_v9 }
 0x5f8   :  { %4755 = vmatmul.mubr.f32.gmra.mrb[68].mxu0 %v12457_v34 }
 0x5f9   :  { %4760 = vmatprep.mubr.f32.mxu0 %v11257_v9 }
 0x5fc   :  { %4761 = vmatmul.mubr.f32.gmra.mrb[70].mxu0 %v12461_v36 }
 0x5fd   :  { %4766 = vmatprep.mubr.f32.mxu0 %v11257_v9 }
 0x600   :  { %4767 = vmatmul.mubr.f32.gmra.mrb[72].mxu0 %v12468_v41 }
 0x601   :  { %4772 = vmatprep.mubr.f32.mxu0 %v11257_v9 }
 0x604   :  { %4773 = vmatmul.mubr.f32.gmra.mrb[74].mxu0 %v12472_v55 }
 0x605   :  { %4778 = vmatprep.mubr.f32.mxu0 %v11257_v9 }
 0x608   :  { %4779 = vmatmul.mubr.f32.gmra.mrb[76].mxu0 %v12478_v46 }
 0x609   :  { %4784 = vmatprep.mubr.f32.mxu0 %v11257_v9 }
 0x60c   :  { %4785 = vmatmul.mubr.f32.gmra.mrb[78].mxu0 %v12482_v51 }
 0x60d   :  { %4790 = vmatprep.mubr.f32.mxu0 %v11257_v9 }
 0x610   :  { %4791 = vmatmul.mubr.f32.gmra.mrb[80].mxu0 %v12490_v26 }
 0x611   :  { %4894 = vmatprep.mubr.f32.mxu0 %v11257_v9 }
 0x614   :  { %4895 = vmatmul.mubr.f32.vlgmr.msra.gmra.mrb[50].mxu0 %v12405_v16  ;;  %v5314_v16 = vld [vmem:[#allocation7 + $0x1238] sm:$0xff] }
 0x615   :  { %4900 = vmatprep.mubr.f32.mxu0 %v11257_v9  ;;  %10105 = vmatpush3.bf16.msra.mxu0 %v10104_v37  ;;  %v10116_v20 = vpack.c.bf16 %v5314_v16, %v5313_v24  ;;  %v5024_v37 = vld [vmem:[#allocation6 + $0x2] sm:$0x3] }
 0x616   :  { %10107 = vmatprep.subr.bf16.mxu0 %v10106_v17  ;;  %v12567_v31 = vrot.slane %v5024_v37, %v1761_v0  ;;  %v12571_v12 = vrot.slane %v5024_v37, %v1757_v28  ;;  %v10072_v0 = vpack.c.bf16 %v5102_v29, %v5101_v32  ;;  %v5538_v37 = vld [vmem:[#allocation7 + $0x14b8] sm:$0xff]  ;;  %v5109_v32 = vld [vmem:[#allocation7 + $0x1040] sm:$0xff]  ;;  %v5110_v29 = vld [vmem:[#allocation7 + $0x1048] sm:$0xff] }
 0x618   :  { %4901 = vmatmul.mubr.f32.gmra.mrb[52].mxu0 %v12413_v42  ;;  %v5316_v42 = vld [vmem:[#allocation7 + $0x1248] sm:$0xff] }
 0x619   :  { %4906 = vmatprep.mubr.f32.mxu0 %v11257_v9  ;;  %10109 = vmatpush3.bf16.msra.mxu0 %v10108_v6  ;;  %v10120_v63 = vpack.c.bf16 %v5316_v42, %v5315_v4  ;;  %v5515_v4 = vld [vmem:[#allocation7 + $0x1400] sm:$0xff]  ;;  %v5516_v42 = vld [vmem:[#allocation7 + $0x1408] sm:$0xff] }
 0x61a   :  { %10111 = vmatprep.subr.bf16.mxu0 %v10110_v38 }
 0x61c   :  { %4907 = vmatmul.mubr.f32.gmra.mrb[54].mxu0 %v12420_v18  ;;  %v5318_v18 = vld [vmem:[#allocation7 + $0x1258] sm:$0xff] }
 0x61d   :  { %4912 = vmatprep.mubr.f32.mxu0 %v11257_v9  ;;  %10113 = vmatpush3.bf16.msra.mxu0 %v10112_v57  ;;  %v10124_v5 = vpack.c.bf16 %v5318_v18, %v5317_v14  ;;  %v5119_v57 = vld [vmem:[#allocation7 + $0x1090] sm:$0xff]  ;;  %v5534_v18 = vld [vmem:[#allocation7 + $0x1498] sm:$0xff] }
 0x61e   :  { %10115 = vmatprep.subr.bf16.mxu0 %v10114_v53  ;;  %v5120_v53 = vld [vmem:[#allocation7 + $0x1098] sm:$0xff]  ;;  %v5533_v14 = vld [vmem:[#allocation7 + $0x1490] sm:$0xff] }
 0x620   :  { %4913 = vmatmul.mubr.f32.gmra.mrb[56].mxu0 %v12430_v45  ;;  %v5162_v45 = vld [vmem:[#allocation7 + $0x11e0] sm:$0xff] }
 0x621   :  { %4918 = vmatprep.mubr.f32.mxu0 %v11257_v9  ;;  %10117 = vmatpush3.bf16.msra.mxu0 %v10116_v20 }
 0x622   :  { %10119 = vmatprep.subr.bf16.mxu0 %v10118_v58  ;;  %v10074_v58 = vpack.c.bf16 %v5120_v53, %v5119_v57 }
 0x624   :  { %4919 = vmatmul.mubr.f32.gmra.mrb[58].mxu0 %v12436_v61  ;;  %v5163_v61 = vld [vmem:[#allocation7 + $0x11e8] sm:$0xff] }
 0x625   :  { %4924 = vmatprep.mubr.f32.mxu0 %v11257_v9  ;;  %10121 = vmatpush3.bf16.msra.mxu0 %v10120_v63 }
 0x626   :  { %10123 = vmatprep.subr.bf16.mxu0 %v10122_v23  ;;  %v5122_v23 = vld [vmem:[#allocation7 + $0x10a8] sm:$0xff] }
 0x628   :  { %4925 = vmatmul.mubr.f32.gmra.mrb[60].mxu0 %v12445_v50  ;;  %v10062_v50 = vpack.c.bf16 %v5163_v61, %v5162_v45  ;;  %v5105_v45 = vld [vmem:[#allocation7 + $0x1020] sm:$0xff]  ;;  %v5106_v61 = vld [vmem:[#allocation7 + $0x1028] sm:$0xff] }
 0x629   :  { %4930 = vmatprep.mubr.f32.mxu0 %v11257_v9  ;;  %10125 = vmatpush3.bf16.msra.mxu0 %v10124_v5  ;;  %v10076_v5 = vpack.c.bf16 %v5104_v56, %v5103_v54  ;;  %v5128_v56 = vld [vmem:[#allocation7 + $0x10d8] sm:$0xff] }
 0x62a   :  { %10127 = vmatprep.subr.bf16.mxu0 %v10126_v10  ;;  %10063 = vmatprep.subr.bf16.mxu1 %v10062_v50  ;;  %v10168_v10 = vpack.c.bf16 %v5516_v42, %v5515_v4  ;;  %v5111_v42 = vld [vmem:[#allocation7 + $0x1050] sm:$0xff] }
 0x62c   :  { %4931 = vmatmul.mubr.f32.gmra.mrb[62].mxu0 %v12450_v33  ;;  %v5146_v33 = vld [vmem:[#allocation7 + $0x1160] sm:$0xff] }
 0x62d   :  { %4936 = vmatprep.mubr.f32.mxu0 %v11257_v9 }
 0x630   :  { %4937 = vmatmul.mubr.f32.gmra.mrb[64].mxu0 %v12457_v34  ;;  %v5147_v34 = vld [vmem:[#allocation7 + $0x1168] sm:$0xff] }
 0x631   :  { %4942 = vmatprep.mubr.f32.mxu0 %v11257_v9 }
 0x634   :  { %4943 = vmatmul.mubr.f32.gmra.mrb[66].mxu0 %v12461_v36  ;;  %v10064_v36 = vpack.c.bf16 %v5147_v34, %v5146_v33 }
 0x635   :  { %4948 = vmatprep.mubr.f32.mxu0 %v11257_v9 }
 0x636   :  { %10065 = vmatpush3.bf16.msra.mxu1 %v10064_v36  ;;  %v10078_v36 = vpack.c.bf16 %v5122_v23, %v5121_v47  ;;  %v5112_v47 = vld [vmem:[#allocation7 + $0x1058] sm:$0xff] }
 0x638   :  { %4949 = vmatmul.mubr.f32.gmra.mrb[68].mxu0 %v12468_v41  ;;  %v5319_v41 = vld [vmem:[#allocation7 + $0x1260] sm:$0xff] }
 0x639   :  { %4954 = vmatprep.mubr.f32.mxu0 %v11257_v9 }
 0x63c   :  { %4955 = vmatmul.mubr.f32.gmra.mrb[70].mxu0 %v12472_v55  ;;  %v5320_v55 = vld [vmem:[#allocation7 + $0x1268] sm:$0xff] }
 0x63d   :  { %4960 = vmatprep.mubr.f32.mxu0 %v11257_v9 }
 0x640   :  { %4961 = vmatmul.mubr.f32.gmra.mrb[72].mxu0 %v12478_v46  ;;  %v5164_v46 = vld [vmem:[#allocation7 + $0x11f0] sm:$0xff] }
 0x641   :  { %4966 = vmatprep.mubr.f32.mxu0 %v11257_v9 }
 0x644   :  { %4967 = vmatmul.mubr.f32.gmra.mrb[74].mxu0 %v12482_v51  ;;  %v10128_v51 = vpack.c.bf16 %v5320_v55, %v5319_v41  ;;  %v10170_v41 = vpack.c.bf16 %v5534_v18, %v5533_v14  ;;  %v5517_v55 = vld [vmem:[#allocation7 + $0x1410] sm:$0xff]  ;;  %v5523_v18 = vld [vmem:[#allocation7 + $0x1440] sm:$0xff] }
 0x645   :  { %4972 = vmatprep.mubr.f32.mxu0 %v11257_v9 }
 0x646   :  { %10129 = vmatpush3.bf16.msra.mxu0 %v10128_v51  ;;  %v5123_v51 = vld [vmem:[#allocation7 + $0x10b0] sm:$0xff] }
 0x647   :  { %10131 = vmatprep.subr.bf16.mxu0 %v10130_v35 }
 0x648   :  { %4973 = vmatmul.mubr.f32.gmra.mrb[76].mxu0 %v12490_v26  ;;  %v5165_v26 = vld [vmem:[#allocation7 + $0x11f8] sm:$0xff] }
 0x649   :  { %4978 = vmatprep.mubr.f32.mxu0 %v11257_v9 }
 0x64a   :  { %10133 = vmatpush3.bf16.msra.mxu0 %v10132_v3  ;;  %v5520_v3 = vld [vmem:[#allocation7 + $0x1428] sm:$0xff] }
 0x64b   :  { %10167 = vmatprep.subr.bf16.mxu0 %v10166_v30  ;;  %v5537_v30 = vld [vmem:[#allocation7 + $0x14b0] sm:$0xff] }
 0x64c   :  { %4979 = vmatmul.mubr.f32.gmra.mrb[78].mxu0 %v4408_v43  ;;  %v10066_v43 = vpack.c.bf16 %v5165_v26, %v5164_v46  ;;  %v5518_v46 = vld [vmem:[#allocation7 + $0x1418] sm:$0xff]  ;;  %v10178_v53 = vpack.c.bf16 %v5538_v37, %v5537_v30 }
 0x64d   :  { %4984 = vmatprep.mubr.f32.mxu0 %v11257_v9  ;;  %v5124_v26 = vld [vmem:[#allocation7 + $0x10b8] sm:$0xff]  ;;  %v10172_v11 = vpack.c.bf16 %v5518_v46, %v5517_v55  ;;  %v5114_v55 = vld [vmem:[#allocation7 + $0x1068] sm:$0xff] }
 0x64e   :  { %10067 = vmatprep.subr.bf16.mxu1 %v10066_v43  ;;  %v10082_v8 = vpack.c.bf16 %v5124_v26, %v5123_v51 }
 0x64f   :  { %10069 = vmatpush3.bf16.msra.mxu1 %v10068_v22  ;;  %v10080_v22 = vpack.c.bf16 %v5106_v61, %v5105_v45  ;;  %v5542_v45 = vld [vmem:[#allocation7 + $0x14d8] sm:$0xff] }
 0x650   :  { %4985 = vmatmul.mubr.f32.gmra.mrb[80].mxu0 %v11257_v9  ;;  %10071 = vmatprep.subr.bf16.mxu1 %v10070_v49  ;;  %v5125_v49 = vld [vmem:[#allocation7 + $0x10c0] sm:$0xff] }
 0x651   :  { %v10086_v57 = vpack.c.bf16 %v5126_v7, %v5125_v49  ;;  %v5115_v49 = vld [vmem:[#allocation7 + $0x1070] sm:$0xff]  ;;  %v5527_v7 = vld [vmem:[#allocation7 + $0x1460] sm:$0xff] }
 0x6e7   :  { %v12563_v17 = vpop.f32.mrb[50].mxu0 }
 0x6e8   :  { %v4898_v48 = vpop.f32.mrb[51].mxu0 }
 0x6e9   :  { %v5037_v27 = vadd.f32 %v12567_v31, %v4898_v48 }
 0x6eb   :  { %v4902_v59 = vpop.f32.mrb[52].mxu0  ;;  %v5069_v60 = vmax.f32 %v5037_v27, 0.0 }
 0x6ec   :  { %v5038_v6 = vadd.f32 %v12571_v12, %v4902_v59  ;;  %v4904_v38 = vpop.f32.mrb[53].mxu0 }
 0x6ed   :  { %v5039_v39 = vadd.f32 %v12567_v31, %v4904_v38  ;;  %v10176_v38 = vpack.c.bf16 %v5520_v3, %v5519_v40 }
 0x6ee   :  { %v5070_v44 = vmax.f32 %v5038_v6, 0.0  ;;  %v10084_v6 = vpack.c.bf16 %v5108_v62, %v5107_v21  ;;  %v5132_v62 = vld [vmem:[#allocation7 + $0x10f8] sm:$0xff] }
 0x6ef   :  { %v5071_v24 = vmax.f32 %v5039_v39, 0.0  ;;  %v4908_v16 = vpop.f32.mrb[54].mxu0 }
 0x6f0   :  { %v5040_v28 = vadd.f32 %v12571_v12, %v4908_v16  ;;  %v4910_v20 = vpop.f32.mrb[55].mxu0  ;;  %v5522_v16 = vld [vmem:[#allocation7 + $0x1438] sm:$0xff] }
 0x6f1   :  { %v5041_v63 = vadd.f32 %v12567_v31, %v4910_v20  ;;  %5230 = vmatprep.mubr.f32.mxu1 %v5071_v24  ;;  %v5521_v24 = vld [vmem:[#allocation7 + $0x1430] sm:$0xff] }
 0x6f2   :  { %5231 = vmatmul.mubr.f32.vlgmr.msra.gmra.mrb[78].mxu1 %v5070_v44  ;;  %v5072_v50 = vmax.f32 %v5040_v28, 0.0  ;;  %v5539_v44 = vld [vmem:[#allocation7 + $0x14c0] sm:$0xff]  ;;  %v5540_v28 = vld [vmem:[#allocation7 + $0x14c8] sm:$0xff]  ;;  %v10180_v4 = vpack.c.bf16 %v5522_v16, %v5521_v24 }
 0x6f3   :  { %v5073_v1 = vmax.f32 %v5041_v63, 0.0  ;;  %10073 = vmatpush3.bf16.msra.mxu1 %v10072_v0  ;;  %v4914_v2 = vpop.f32.mrb[56].mxu0  ;;  %5300 = vmatprep.mubr.f32.mxu1 %v5069_v60  ;;  %v5127_v0 = vld [vmem:[#allocation7 + $0x10d0] sm:$0xff]  ;;  %v10182_v14 = vpack.c.bf16 %v5540_v28, %v5539_v44 }
 0x6f4   :  { %v12579_v33 = vadd.f32 %v12571_v12, %v4914_v2  ;;  %v12581_v34 = vpop.f32.mrb[57].mxu0  ;;  %10075 = vmatprep.subr.bf16.mxu1 %v10074_v58  ;;  %v10088_v58 = vpack.c.bf16 %v5110_v29, %v5109_v32  ;;  %v10090_v23 = vpack.c.bf16 %v5128_v56, %v5127_v0  ;;  %v5129_v2 = vld [vmem:[#allocation7 + $0x10e0] sm:$0xff]  ;;  %v5428_v32 = vld [vmem:[#allocation7 + $0x1388] sm:$0xff]  ;;  %v5036_v56 = vadd.f32 %v12571_v12, %v12563_v17 }
 0x6f5   :  { %5403 = vmatprep.mubr.f32.mxu0 %v5073_v1  ;;  %v5524_v1 = vld [vmem:[#allocation7 + $0x1448] sm:$0xff]  ;;  %v5739_v17 = vld [vmem:[#allocation7 + $0x1680] sm:$0xff] }
 0x6f6   :  { %5404 = vmatmul.mubr.f32.vlgmr.msra.gmra.mrb[82].mxu0 %v5072_v50  ;;  %v10092_v50 = vpack.c.bf16 %v5112_v47, %v5111_v42  ;;  %v5529_v42 = vld [vmem:[#allocation7 + $0x1470] sm:$0xff]  ;;  %v5043_v47 = vadd.f32 %v12567_v31, %v12581_v34 }
 0x6f7   :  { %10077 = vmatpush3.bf16.msra.mxu1 %v10076_v5  ;;  %10169 = vmatpush3.bf16.msra.mxu0 %v10168_v10  ;;  %v12583_v43 = vpop.f32.mrb[58].mxu0  ;;  %v5130_v5 = vld [vmem:[#allocation7 + $0x10e8] sm:$0xff]  ;;  %v5541_v10 = vld [vmem:[#allocation7 + $0x14d0] sm:$0xff] }
 0x6f8   :  { %v4922_v35 = vpop.f32.mrb[59].mxu0  ;;  %10079 = vmatprep.subr.bf16.mxu1 %v10078_v36  ;;  %10171 = vmatprep.subr.bf16.mxu0 %v10170_v41  ;;  %v10184_v36 = vpack.c.bf16 %v5524_v1, %v5523_v18  ;;  %v5113_v41 = vld [vmem:[#allocation7 + $0x1060] sm:$0xff]  ;;  %v10094_v26 = vpack.c.bf16 %v5130_v5, %v5129_v2  ;;  %v10186_v13 = vpack.c.bf16 %v5542_v45, %v5541_v10  ;;  %v5429_v18 = vld [vmem:[#allocation7 + $0x1390] sm:$0xff]  ;;  %v5430_v1 = vld [vmem:[#allocation7 + $0x1398] sm:$0xff]  ;;  %v5068_v45 = vmax.f32 %v5036_v56, 0.0 }
 0x6f9   :  { %v5045_v19 = vadd.f32 %v12567_v31, %v4922_v35  ;;  %v5543_v35 = vld [vmem:[#allocation7 + $0x14e0] sm:$0xff]  ;;  %v10096_v40 = vpack.c.bf16 %v5114_v55, %v5113_v41  ;;  %v5740_v2 = vld [vmem:[#allocation7 + $0x1688] sm:$0xff]  ;;  %v5413_v41 = vld [vmem:[#allocation7 + $0x1310] sm:$0xff] }
 0x6fa   :  { %v5414_v55 = vld [vmem:[#allocation7 + $0x1318] sm:$0xff] }
 0x6fb   :  { %v5077_v48 = vmax.f32 %v5045_v19, 0.0  ;;  %10081 = vmatpush3.bf16.msra.mxu1 %v10080_v22  ;;  %10173 = vmatpush3.bf16.msra.mxu0 %v10172_v11  ;;  %v4926_v59 = vpop.f32.mrb[60].mxu0  ;;  %v5526_v22 = vld [vmem:[#allocation7 + $0x1458] sm:$0xff]  ;;  %v5131_v11 = vld [vmem:[#allocation7 + $0x10f0] sm:$0xff] }
 0x6fc   :  { %v12587_v27 = vadd.f32 %v12571_v12, %v4926_v59  ;;  %v4928_v39 = vpop.f32.mrb[61].mxu0  ;;  %10083 = vmatprep.subr.bf16.mxu1 %v10082_v8  ;;  %10175 = vmatprep.subr.bf16.mxu0 %v10174_v15  ;;  %v5544_v8 = vld [vmem:[#allocation7 + $0x14e8] sm:$0xff]  ;;  %v10188_v3 = vpack.c.bf16 %v5526_v22, %v5525_v52  ;;  %v5116_v19 = vld [vmem:[#allocation7 + $0x1078] sm:$0xff]  ;;  %v10230_v52 = vpack.c.bf16 %v5740_v2, %v5739_v17  ;;  %v5723_v22 = vld [vmem:[#allocation7 + $0x1600] sm:$0xff] }
 0x6fd   :  { %v12590_v54 = vadd.f32 %v12567_v31, %v4928_v39  ;;  %5611 = vmatprep.mubr.f32.mxu0 %v5077_v48  ;;  %v10098_v48 = vpack.c.bf16 %v5132_v62, %v5131_v11  ;;  %v10190_v59 = vpack.c.bf16 %v5544_v8, %v5543_v35  ;;  %v5545_v39 = vld [vmem:[#allocation7 + $0x14f0] sm:$0xff]  ;;  %v10100_v24 = vpack.c.bf16 %v5116_v19, %v5115_v49  ;;  %v5724_v11 = vld [vmem:[#allocation7 + $0x1608] sm:$0xff]  ;;  %v5431_v62 = vld [vmem:[#allocation7 + $0x13a0] sm:$0xff] }
 0x6fe   :  { %v5432_v8 = vld [vmem:[#allocation7 + $0x13a8] sm:$0xff]  ;;  %v10140_v49 = vpack.c.bf16 %v5414_v55, %v5413_v41 }
 0x6ff   :  { %10085 = vmatpush3.bf16.msra.mxu1 %v10084_v6  ;;  %10177 = vmatpush3.bf16.msra.mxu0 %v10176_v38  ;;  %v4932_v20 = vpop.f32.mrb[62].mxu0  ;;  %v5528_v6 = vld [vmem:[#allocation7 + $0x1468] sm:$0xff]  ;;  %v5427_v38 = vld [vmem:[#allocation7 + $0x1380] sm:$0xff] }
 0x700   :  { %v12593_v60 = vadd.f32 %v12571_v12, %v4932_v20  ;;  %v12595_v63 = vpop.f32.mrb[63].mxu0  ;;  %10087 = vmatprep.subr.bf16.mxu1 %v10086_v57  ;;  %10179 = vmatprep.subr.bf16.mxu0 %v10178_v53  ;;  %v5546_v57 = vld [vmem:[#allocation7 + $0x14f8] sm:$0xff]  ;;  %v10192_v16 = vpack.c.bf16 %v5528_v6, %v5527_v7  ;;  %v10134_v0 = vpack.c.bf16 %v5428_v32, %v5427_v38  ;;  %v5728_v2 = vld [vmem:[#allocation7 + $0x1628] sm:$0xff] }
 0x701   :  { %v10194_v20 = vpack.c.bf16 %v5546_v57, %v5545_v39  ;;  %v5049_v35 = vadd.f32 %v12567_v31, %v12595_v63  ;;  %v10232_v7 = vpack.c.bf16 %v5724_v11, %v5723_v22  ;;  %v10142_v38 = vpack.c.bf16 %v5432_v8, %v5431_v62  ;;  %v5726_v39 = vld [vmem:[#allocation7 + $0x1618] sm:$0xff]  ;;  %v5433_v57 = vld [vmem:[#allocation7 + $0x13b0] sm:$0xff]  ;;  %v5420_v22 = vld [vmem:[#allocation7 + $0x1348] sm:$0xff] }
 0x702   :  { %v5729_v11 = vld [vmem:[#allocation7 + $0x1630] sm:$0xff]  ;;  %v5730_v8 = vld [vmem:[#allocation7 + $0x1638] sm:$0xff] }
 0x703   :  { %10089 = vmatpush3.bf16.msra.mxu1 %v10088_v58  ;;  %10181 = vmatpush3.bf16.msra.mxu0 %v10180_v4  ;;  %v4938_v61 = vpop.f32.mrb[64].mxu0  ;;  %v5411_v58 = vld [vmem:[#allocation7 + $0x1300] sm:$0xff]  ;;  %v5412_v4 = vld [vmem:[#allocation7 + $0x1308] sm:$0xff] }
 0x704   :  { %v12598_v46 = vadd.f32 %v12571_v12, %v4938_v61  ;;  %v4940_v51 = vpop.f32.mrb[65].mxu0  ;;  %10091 = vmatprep.subr.bf16.mxu1 %v10090_v23  ;;  %10183 = vmatprep.subr.bf16.mxu0 %v10182_v14  ;;  %v5530_v14 = vld [vmem:[#allocation7 + $0x1478] sm:$0xff]  ;;  %v10136_v10 = vpack.c.bf16 %v5412_v4, %v5411_v58 }
 0x705   :  { %v12601_v21 = vadd.f32 %v12567_v31, %v4940_v51  ;;  %v10196_v34 = vpack.c.bf16 %v5530_v14, %v5529_v42  ;;  %v5075_v51 = vmax.f32 %v5043_v47, 0.0  ;;  %v5417_v47 = vld [vmem:[#allocation7 + $0x1330] sm:$0xff]  ;;  %v5418_v14 = vld [vmem:[#allocation7 + $0x1338] sm:$0xff] }
 0x707   :  { %10093 = vmatpush3.bf16.msra.mxu1 %v10092_v50  ;;  %10185 = vmatpush3.bf16.msra.mxu0 %v10184_v36  ;;  %v4944_v15 = vpop.f32.mrb[66].mxu0  ;;  %v10138_v36 = vpack.c.bf16 %v5430_v1, %v5429_v18  ;;  %v5727_v18 = vld [vmem:[#allocation7 + $0x1620] sm:$0xff] }
 0x708   :  { %v12604_v30 = vadd.f32 %v12571_v12, %v4944_v15  ;;  %v4946_v37 = vpop.f32.mrb[67].mxu0  ;;  %10095 = vmatprep.subr.bf16.mxu1 %v10094_v26  ;;  %10187 = vmatprep.subr.bf16.mxu0 %v10186_v13  ;;  %v5044_v26 = vadd.f32 %v12571_v12, %v12583_v43  ;;  %v5741_v15 = vld [vmem:[#allocation7 + $0x1690] sm:$0xff] }
 0x709   :  { %v12607_v29 = vadd.f32 %v12567_v31, %v4946_v37  ;;  %v5415_v37 = vld [vmem:[#allocation7 + $0x1320] sm:$0xff] }
 0x70a   :  { %v5076_v6 = vmax.f32 %v5044_v26, 0.0 }
 0x70b   :  { %10097 = vmatpush3.bf16.msra.mxu1 %v10096_v40  ;;  %10189 = vmatpush3.bf16.msra.mxu0 %v10188_v3  ;;  %v4950_v53 = vpop.f32.mrb[68].mxu0  ;;  %v5742_v40 = vld [vmem:[#allocation7 + $0x1698] sm:$0xff] }
 0x70c   :  { %v12612_v44 = vadd.f32 %v12571_v12, %v4950_v53  ;;  %v4952_v28 = vpop.f32.mrb[69].mxu0  ;;  %10099 = vmatprep.subr.bf16.mxu1 %v10098_v48  ;;  %10191 = vmatprep.subr.bf16.mxu0 %v10190_v59  ;;  %v5416_v48 = vld [vmem:[#allocation7 + $0x1328] sm:$0xff]  ;;  %v5725_v59 = vld [vmem:[#allocation7 + $0x1610] sm:$0xff]  ;;  %v10234_v32 = vpack.c.bf16 %v5742_v40, %v5741_v15  ;;  %v5434_v53 = vld [vmem:[#allocation7 + $0x13b8] sm:$0xff] }
 0x70d   :  { %v12617_v23 = vadd.f32 %v12567_v31, %v4952_v28  ;;  %v10144_v28 = vpack.c.bf16 %v5416_v48, %v5415_v37  ;;  %v10236_v4 = vpack.c.bf16 %v5726_v39, %v5725_v59  ;;  %v10146_v42 = vpack.c.bf16 %v5434_v53, %v5433_v57  ;;  %v5437_v15 = vld [vmem:[#allocation7 + $0x13d0] sm:$0xff]  ;;  %v5438_v40 = vld [vmem:[#allocation7 + $0x13d8] sm:$0xff]  ;;  %v5731_v39 = vld [vmem:[#allocation7 + $0x1640] sm:$0xff] }
 0x70e   :  { %v10244_v59 = vpack.c.bf16 %v5730_v8, %v5729_v11  ;;  %v5426_v11 = vld [vmem:[#allocation7 + $0x1378] sm:$0xff] }
 0x70f   :  { %10101 = vmatpush3.bf16.msra.mxu1 %v10100_v24  ;;  %10193 = vmatpush3.bf16.msra.mxu0 %v10192_v16  ;;  %v4956_v5 = vpop.f32.mrb[70].mxu0  ;;  %v5081_v24 = vmax.f32 %v5049_v35, 0.0  ;;  %v5743_v16 = vld [vmem:[#allocation7 + $0x16a0] sm:$0xff] }
 0x710   :  { %v12620_v61 = vadd.f32 %v12571_v12, %v4956_v5  ;;  %v4958_v50 = vpop.f32.mrb[71].mxu0  ;;  %10135 = vmatprep.subr.bf16.mxu1 %v10134_v0  ;;  %10195 = vmatprep.subr.bf16.mxu0 %v10194_v20  ;;  %v5744_v0 = vld [vmem:[#allocation7 + $0x16a8] sm:$0xff]  ;;  %v5435_v5 = vld [vmem:[#allocation7 + $0x13c0] sm:$0xff] }
 0x711   :  { %v12625_v13 = vadd.f32 %v12567_v31, %v4958_v50  ;;  %v10238_v17 = vpack.c.bf16 %v5744_v0, %v5743_v16  ;;  %v5746_v50 = vld [vmem:[#allocation7 + $0x16b8] sm:$0xff]  ;;  %v5439_v16 = vld [vmem:[#allocation7 + $0x13e0] sm:$0xff]  ;;  %v5440_v0 = vld [vmem:[#allocation7 + $0x13e8] sm:$0xff] }
 0x712   :  { %5301 = vmatmul.mubr.f32.vlgmr.msra.gmra.mrb[80].mxu1 %v5068_v45  ;;  %v5745_v45 = vld [vmem:[#allocation7 + $0x16b0] sm:$0xff] }
 0x713   :  { %10137 = vmatpush3.bf16.msra.mxu1 %v10136_v10  ;;  %5507 = vmatprep.mubr.f32.mxu1 %v5075_v51  ;;  %v4962_v3 = vpop.f32.mrb[72].mxu0  ;;  %v5436_v10 = vld [vmem:[#allocation7 + $0x13c8] sm:$0xff]  ;;  %v10240_v51 = vpack.c.bf16 %v5728_v2, %v5727_v18  ;;  %v10242_v35 = vpack.c.bf16 %v5746_v50, %v5745_v45  ;;  %v10158_v18 = vpack.c.bf16 %v5440_v0, %v5439_v16  ;;  %v5734_v50 = vld [vmem:[#allocation7 + $0x1658] sm:$0xff]  ;;  %v5947_v16 = vld [vmem:[#allocation7 + $0x1880] sm:$0xff] }
 0x714   :  { %10197 = vmatpush3.bf16.msra.mxu0 %v10196_v34  ;;  %v12630_v43 = vadd.f32 %v12571_v12, %v4962_v3  ;;  %v4964_v19 = vpop.f32.mrb[73].mxu0  ;;  %10139 = vmatprep.subr.bf16.mxu1 %v10138_v36  ;;  %v10148_v36 = vpack.c.bf16 %v5418_v14, %v5417_v47  ;;  %v10150_v26 = vpack.c.bf16 %v5436_v10, %v5435_v5  ;;  %v5747_v3 = vld [vmem:[#allocation7 + $0x16c0] sm:$0xff]  ;;  %v5424_v2 = vld [vmem:[#allocation7 + $0x1368] sm:$0xff]  ;;  %v5733_v5 = vld [vmem:[#allocation7 + $0x1650] sm:$0xff] }
 0x715   :  { %v12633_v63 = vadd.f32 %v12567_v31, %v4964_v19  ;;  %10231 = vmatprep.subr.bf16.mxu0 %v10230_v52  ;;  %v5419_v52 = vld [vmem:[#allocation7 + $0x1340] sm:$0xff]  ;;  %v5948_v0 = vld [vmem:[#allocation7 + $0x1888] sm:$0xff] }
 0x717   :  { %5612 = vmatmul.mubr.f32.vlgmr.msra.gmra.mrb[84].mxu0 %v5076_v6  ;;  %10141 = vmatpush3.bf16.msra.mxu1 %v10140_v49  ;;  %v4968_v56 = vpop.f32.mrb[74].mxu0  ;;  %v5748_v49 = vld [vmem:[#allocation7 + $0x16c8] sm:$0xff]  ;;  %v10154_v6 = vpack.c.bf16 %v5438_v40, %v5437_v15  ;;  %v5635_v15 = vld [vmem:[#allocation7 + $0x1580] sm:$0xff] }
 0x718   :  { %10233 = vmatpush3.bf16.msra.mxu0 %v10232_v7  ;;  %5819 = vmatprep.mubr.f32.mxu0 %v5081_v24  ;;  %v12636_v20 = vadd.f32 %v12571_v12, %v4968_v56  ;;  %v4970_v58 = vpop.f32.mrb[75].mxu0  ;;  %v10152_v7 = vpack.c.bf16 %v5420_v22, %v5419_v52  ;;  %v10246_v53 = vpack.c.bf16 %v5748_v49, %v5747_v3  ;;  %v5732_v24 = vld [vmem:[#allocation7 + $0x1648] sm:$0xff]  ;;  %v5749_v56 = vld [vmem:[#allocation7 + $0x16d0] sm:$0xff]  ;;  %v5754_v49 = vld [vmem:[#allocation7 + $0x16f8] sm:$0xff] }
 0x719   :  { %v12639_v1 = vadd.f32 %v12567_v31, %v4970_v58  ;;  %10143 = vmatprep.subr.bf16.mxu1 %v10142_v38  ;;  %10235 = vmatprep.subr.bf16.mxu0 %v10234_v32  ;;  %v5421_v38 = vld [vmem:[#allocation7 + $0x1350] sm:$0xff]  ;;  %v5422_v32 = vld [vmem:[#allocation7 + $0x1358] sm:$0xff]  ;;  %v10248_v14 = vpack.c.bf16 %v5732_v24, %v5731_v39  ;;  %v5636_v40 = vld [vmem:[#allocation7 + $0x1588] sm:$0xff] }
 0x71a   :  { %v5425_v22 = vld [vmem:[#allocation7 + $0x1370] sm:$0xff]  ;;  %v5738_v39 = vld [vmem:[#allocation7 + $0x1678] sm:$0xff] }
 0x71b   :  { %10145 = vmatpush3.bf16.msra.mxu1 %v10144_v28  ;;  %v4974_v34 = vpop.f32.mrb[76].mxu0  ;;  %v5750_v28 = vld [vmem:[#allocation7 + $0x16d8] sm:$0xff]  ;;  %v5753_v3 = vld [vmem:[#allocation7 + $0x16f0] sm:$0xff] }
 0x71c   :  { %10237 = vmatpush3.bf16.msra.mxu0 %v10236_v4  ;;  %v12642_v41 = vadd.f32 %v12571_v12, %v4974_v34  ;;  %v4976_v55 = vpop.f32.mrb[77].mxu0  ;;  %10147 = vmatprep.subr.bf16.mxu1 %v10146_v42  ;;  %v10156_v4 = vpack.c.bf16 %v5422_v32, %v5421_v38  ;;  %v10250_v45 = vpack.c.bf16 %v5750_v28, %v5749_v56  ;;  %v5441_v34 = vld [vmem:[#allocation7 + $0x13f0] sm:$0xff]  ;;  %v5638_v24 = vld [vmem:[#allocation7 + $0x1598] sm:$0xff]  ;;  %v5074_v28 = vmax.f32 %v12579_v33, 0.0 }
 0x71d   :  { %v12645_v62 = vadd.f32 %v12567_v31, %v4976_v55  ;;  %10239 = vmatprep.subr.bf16.mxu0 %v10238_v17  ;;  %v5423_v17 = vld [vmem:[#allocation7 + $0x1360] sm:$0xff]  ;;  %v5737_v38 = vld [vmem:[#allocation7 + $0x1670] sm:$0xff]  ;;  %v10258_v32 = vpack.c.bf16 %v5754_v49, %v5753_v3 }
 0x71e   :  { %v5751_v55 = vld [vmem:[#allocation7 + $0x16e0] sm:$0xff] }
 0x71f   :  { %10149 = vmatpush3.bf16.msra.mxu1 %v10148_v36  ;;  %v4980_v19 = vpop.f32.mrb[78].mxu0  ;;  %v5442_v36 = vld [vmem:[#allocation7 + $0x13f8] sm:$0xff] }
 0x720   :  { %10241 = vmatpush3.bf16.msra.mxu0 %v10240_v51  ;;  %v12648_v37 = vadd.f32 %v12571_v12, %v4980_v19  ;;  %v4982_v48 = vpop.f32.mrb[79].mxu0  ;;  %10151 = vmatprep.subr.bf16.mxu1 %v10150_v26  ;;  %v5752_v51 = vld [vmem:[#allocation7 + $0x16e8] sm:$0xff]  ;;  %v10252_v26 = vpack.c.bf16 %v5734_v50, %v5733_v5  ;;  %v10162_v52 = vpack.c.bf16 %v5442_v36, %v5441_v34  ;;  %v5949_v34 = vld [vmem:[#allocation7 + $0x1890] sm:$0xff]  ;;  %v5950_v36 = vld [vmem:[#allocation7 + $0x1898] sm:$0xff] }
 0x721   :  { %v12651_v57 = vadd.f32 %v12567_v31, %v4982_v48  ;;  %10243 = vmatprep.subr.bf16.mxu0 %v10242_v35  ;;  %v5735_v35 = vld [vmem:[#allocation7 + $0x1660] sm:$0xff]  ;;  %v10254_v8 = vpack.c.bf16 %v5752_v51, %v5751_v55  ;;  %v10164_v19 = vpack.c.bf16 %v5426_v11, %v5425_v22  ;;  %v10198_v48 = vpack.c.bf16 %v5636_v40, %v5635_v15  ;;  %v5932_v5 = vld [vmem:[#allocation7 + $0x1808] sm:$0xff]  ;;  %v5934_v11 = vld [vmem:[#allocation7 + $0x1818] sm:$0xff] }
 0x722   :  { %v5640_v50 = vld [vmem:[#allocation7 + $0x15a8] sm:$0xff]  ;;  %v5623_v51 = vld [vmem:[#allocation7 + $0x1520] sm:$0xff]  ;;  %v10298_v22 = vpack.c.bf16 %v5950_v36, %v5949_v34  ;;  %v5630_v34 = vld [vmem:[#allocation7 + $0x1558] sm:$0xff] }
 0x723   :  { %10153 = vmatpush3.bf16.msra.mxu1 %v10152_v7  ;;  %v4986_v58 = vpop.f32.mrb[80].mxu0  ;;  %v5951_v15 = vld [vmem:[#allocation7 + $0x18a0] sm:$0xff]  ;;  %v5952_v40 = vld [vmem:[#allocation7 + $0x18a8] sm:$0xff] }
 0x724   :  { %10245 = vmatpush3.bf16.msra.mxu0 %v10244_v59  ;;  %v12654_v42 = vadd.f32 %v12571_v12, %v4986_v58  ;;  %v4988_v47 = vpop.f32.mrb[81].mxu0  ;;  %10155 = vmatprep.subr.bf16.mxu1 %v10154_v6  ;;  %v10160_v12 = vpack.c.bf16 %v5424_v2, %v5423_v17  ;;  %v5619_v59 = vld [vmem:[#allocation7 + $0x1500] sm:$0xff]  ;;  %v5620_v6 = vld [vmem:[#allocation7 + $0x1508] sm:$0xff]  ;;  %v10260_v58 = vpack.c.bf16 %v5738_v39, %v5737_v38  ;;  %v5953_v39 = vld [vmem:[#allocation7 + $0x18b0] sm:$0xff] }
 0x725   :  { %v12657_v10 = vadd.f32 %v12567_v31, %v4988_v47  ;;  %10247 = vmatprep.subr.bf16.mxu0 %v10246_v53  ;;  %v5736_v31 = vld [vmem:[#allocation7 + $0x1668] sm:$0xff]  ;;  %v5637_v53 = vld [vmem:[#allocation7 + $0x1590] sm:$0xff]  ;;  %v10200_v56 = vpack.c.bf16 %v5620_v6, %v5619_v59  ;;  %v10294_v17 = vpack.c.bf16 %v5948_v0, %v5947_v16  ;;  %v5931_v2 = vld [vmem:[#allocation7 + $0x1800] sm:$0xff]  ;;  %v10302_v59 = vpack.c.bf16 %v5952_v40, %v5951_v15 }
 0x726   :  { %v10256_v7 = vpack.c.bf16 %v5736_v31, %v5735_v35  ;;  %v5621_v47 = vld [vmem:[#allocation7 + $0x1510] sm:$0xff]  ;;  %v10296_v55 = vpack.c.bf16 %v5932_v5, %v5931_v2  ;;  %v5085_v31 = vmax.f32 %v12607_v29, 0.0  ;;  %v5936_v6 = vld [vmem:[#allocation7 + $0x1828] sm:$0xff]  ;;  %v5643_v38 = vld [vmem:[#allocation7 + $0x15c0] sm:$0xff] }
 0x727   :  { %10157 = vmatpush3.bf16.msra.mxu1 %v10156_v4  ;;  %v10202_v4 = vpack.c.bf16 %v5638_v24, %v5637_v53  ;;  %v5641_v35 = vld [vmem:[#allocation7 + $0x15b0] sm:$0xff]  ;;  %v5954_v29 = vld [vmem:[#allocation7 + $0x18b8] sm:$0xff]  ;;  %v5627_v0 = vld [vmem:[#allocation7 + $0x1540] sm:$0xff] }
 0x728   :  { %10249 = vmatpush3.bf16.msra.mxu0 %v10248_v14  ;;  %10159 = vmatprep.subr.bf16.mxu1 %v10158_v18  ;;  %v5622_v14 = vld [vmem:[#allocation7 + $0x1518] sm:$0xff]  ;;  %v5079_v18 = vmax.f32 %v12590_v54, 0.0  ;;  %v5080_v54 = vmax.f32 %v12593_v60, 0.0  ;;  %v5935_v60 = vld [vmem:[#allocation7 + $0x1820] sm:$0xff] }
 0x729   :  { %10251 = vmatprep.subr.bf16.mxu0 %v10250_v45  ;;  %v5639_v45 = vld [vmem:[#allocation7 + $0x15a0] sm:$0xff]  ;;  %v10204_v33 = vpack.c.bf16 %v5622_v14, %v5621_v47  ;;  %v10304_v24 = vpack.c.bf16 %v5936_v6, %v5935_v60  ;;  %v5645_v47 = vld [vmem:[#allocation7 + $0x15d0] sm:$0xff]  ;;  %v5646_v14 = vld [vmem:[#allocation7 + $0x15d8] sm:$0xff] }
 0x72a   :  { %v5939_v36 = vld [vmem:[#allocation7 + $0x1840] sm:$0xff]  ;;  %v5942_v40 = vld [vmem:[#allocation7 + $0x1858] sm:$0xff]  ;;  %v5633_v6 = vld [vmem:[#allocation7 + $0x1570] sm:$0xff] }
 0x72b   :  { %10161 = vmatpush3.bf16.msra.mxu1 %v10160_v12  ;;  %v5624_v12 = vld [vmem:[#allocation7 + $0x1528] sm:$0xff] }
 0x72c   :  { %10253 = vmatpush3.bf16.msra.mxu0 %v10252_v26  ;;  %10163 = vmatprep.subr.bf16.mxu1 %v10162_v52  ;;  %v5933_v26 = vld [vmem:[#allocation7 + $0x1810] sm:$0xff]  ;;  %v10206_v52 = vpack.c.bf16 %v5640_v50, %v5639_v45  ;;  %v10208_v3 = vpack.c.bf16 %v5624_v12, %v5623_v51  ;;  %v10218_v45 = vpack.c.bf16 %v5646_v14, %v5645_v47  ;;  %v5647_v51 = vld [vmem:[#allocation7 + $0x15e0] sm:$0xff]  ;;  %v5648_v12 = vld [vmem:[#allocation7 + $0x15e8] sm:$0xff] }
 0x72d   :  { %10255 = vmatprep.subr.bf16.mxu0 %v10254_v8  ;;  %v5642_v8 = vld [vmem:[#allocation7 + $0x15b8] sm:$0xff]  ;;  %v10300_v49 = vpack.c.bf16 %v5934_v11, %v5933_v26  ;;  %v5629_v50 = vld [vmem:[#allocation7 + $0x1550] sm:$0xff]  ;;  %v10222_v11 = vpack.c.bf16 %v5648_v12, %v5647_v51  ;;  %v5828_v47 = vld [vmem:[#allocation7 + $0x1708] sm:$0xff] }
 0x72e   :  { %v5957_v26 = vld [vmem:[#allocation7 + $0x18d0] sm:$0xff]  ;;  %v5830_v12 = vld [vmem:[#allocation7 + $0x1718] sm:$0xff] }
 0x72f   :  { %10165 = vmatpush3.bf16.msra.mxu1 %v10164_v19  ;;  %v10210_v19 = vpack.c.bf16 %v5642_v8, %v5641_v35  ;;  %v5631_v35 = vld [vmem:[#allocation7 + $0x1560] sm:$0xff]  ;;  %v5632_v8 = vld [vmem:[#allocation7 + $0x1568] sm:$0xff]  ;;  %v5945_v14 = vld [vmem:[#allocation7 + $0x1870] sm:$0xff] }
 0x730   :  { %10257 = vmatpush3.bf16.msra.mxu0 %v10256_v7  ;;  %10199 = vmatprep.subr.bf16.mxu1 %v10198_v48  ;;  %v5625_v7 = vld [vmem:[#allocation7 + $0x1530] sm:$0xff]  ;;  %v5626_v48 = vld [vmem:[#allocation7 + $0x1538] sm:$0xff] }
 0x731   :  { %10259 = vmatprep.subr.bf16.mxu0 %v10258_v32  ;;  %v5644_v32 = vld [vmem:[#allocation7 + $0x15c8] sm:$0xff]  ;;  %v10212_v53 = vpack.c.bf16 %v5626_v48, %v5625_v7  ;;  %v10224_v48 = vpack.c.bf16 %v5632_v8, %v5631_v35  ;;  %v5829_v51 = vld [vmem:[#allocation7 + $0x1710] sm:$0xff] }
 0x732   :  { %5508 = vmatmul.mubr.f32.vlgmr.msra.gmra.mrb[82].mxu1 %v5074_v28  ;;  %v10214_v16 = vpack.c.bf16 %v5644_v32, %v5643_v38  ;;  %v5937_v28 = vld [vmem:[#allocation7 + $0x1830] sm:$0xff]  ;;  %v5960_v7 = vld [vmem:[#allocation7 + $0x18e8] sm:$0xff]  ;;  %v5634_v38 = vld [vmem:[#allocation7 + $0x1578] sm:$0xff] }
 0x733   :  { %10201 = vmatpush3.bf16.msra.mxu1 %v10200_v56  ;;  %5715 = vmatprep.mubr.f32.mxu1 %v5079_v18  ;;  %v5628_v56 = vld [vmem:[#allocation7 + $0x1548] sm:$0xff]  ;;  %v5955_v18 = vld [vmem:[#allocation7 + $0x18c0] sm:$0xff]  ;;  %v6157_v8 = vld [vmem:[#allocation7 + $0x1a90] sm:$0xff] }
 0x734   :  { %10261 = vmatpush3.bf16.msra.mxu0 %v10260_v58  ;;  %10203 = vmatprep.subr.bf16.mxu1 %v10202_v4  ;;  %v10306_v58 = vpack.c.bf16 %v5954_v29, %v5953_v39  ;;  %v5938_v4 = vld [vmem:[#allocation7 + $0x1838] sm:$0xff]  ;;  %v10216_v2 = vpack.c.bf16 %v5628_v56, %v5627_v0  ;;  %v5943_v32 = vld [vmem:[#allocation7 + $0x1860] sm:$0xff]  ;;  %v5944_v29 = vld [vmem:[#allocation7 + $0x1868] sm:$0xff]  ;;  %v10228_v56 = vpack.c.bf16 %v5634_v38, %v5633_v6  ;;  %v5089_v6 = vmax.f32 %v12625_v13, 0.0 }
 0x735   :  { %10295 = vmatprep.subr.bf16.mxu0 %v10294_v17  ;;  %v5956_v17 = vld [vmem:[#allocation7 + $0x18c8] sm:$0xff]  ;;  %v10308_v5 = vpack.c.bf16 %v5938_v4, %v5937_v28  ;;  %v5962_v0 = vld [vmem:[#allocation7 + $0x18f8] sm:$0xff]  ;;  %v10320_v28 = vpack.c.bf16 %v5944_v29, %v5943_v32  ;;  %v5827_v4 = vld [vmem:[#allocation7 + $0x1700] sm:$0xff] }
 0x736   :  { %v5848_v35 = vld [vmem:[#allocation7 + $0x17a8] sm:$0xff]  ;;  %v6159_v38 = vld [vmem:[#allocation7 + $0x1aa0] sm:$0xff]  ;;  %v6162_v13 = vld [vmem:[#allocation7 + $0x1ab8] sm:$0xff] }
 0x737   :  { %5820 = vmatmul.mubr.f32.vlgmr.msra.gmra.mrb[86].mxu0 %v5080_v54  ;;  %10205 = vmatpush3.bf16.msra.mxu1 %v10204_v33  ;;  %v10310_v33 = vpack.c.bf16 %v5956_v17, %v5955_v18  ;;  %v5958_v54 = vld [vmem:[#allocation7 + $0x18d8] sm:$0xff]  ;;  %v6160_v32 = vld [vmem:[#allocation7 + $0x1aa8] sm:$0xff] }
 0x738   :  { %10297 = vmatpush3.bf16.msra.mxu0 %v10296_v55  ;;  %6027 = vmatprep.mubr.f32.mxu0 %v5085_v31  ;;  %v5940_v55 = vld [vmem:[#allocation7 + $0x1848] sm:$0xff]  ;;  %v5941_v31 = vld [vmem:[#allocation7 + $0x1850] sm:$0xff]  ;;  %v10314_v15 = vpack.c.bf16 %v5958_v54, %v5957_v26  ;;  %v5946_v17 = vld [vmem:[#allocation7 + $0x1878] sm:$0xff]  ;;  %v5083_v26 = vmax.f32 %v12601_v21, 0.0  ;;  %v5084_v21 = vmax.f32 %v12604_v30, 0.0 }
 0x739   :  { %10207 = vmatprep.subr.bf16.mxu1 %v10206_v52  ;;  %10299 = vmatprep.subr.bf16.mxu0 %v10298_v22  ;;  %v10220_v52 = vpack.c.bf16 %v5630_v34, %v5629_v50  ;;  %v10312_v22 = vpack.c.bf16 %v5940_v55, %v5939_v36  ;;  %v10316_v60 = vpack.c.bf16 %v5942_v40, %v5941_v31  ;;  %v6156_v50 = vld [vmem:[#allocation7 + $0x1a88] sm:$0xff]  ;;  %v5078_v36 = vmax.f32 %v12587_v27, 0.0  ;;  %v6158_v31 = vld [vmem:[#allocation7 + $0x1a98] sm:$0xff]  ;;  %v5831_v40 = vld [vmem:[#allocation7 + $0x1720] sm:$0xff] }
 0x73a   :  { %v10264_v34 = vpack.c.bf16 %v5828_v47, %v5827_v4  ;;  %v10268_v27 = vpack.c.bf16 %v5830_v12, %v5829_v51  ;;  %v6143_v30 = vld [vmem:[#allocation7 + $0x1a20] sm:$0xff]  ;;  %v6161_v4 = vld [vmem:[#allocation7 + $0x1ab0] sm:$0xff] }
 0x73b   :  { %10209 = vmatpush3.bf16.msra.mxu1 %v10208_v3  ;;  %v5649_v3 = vld [vmem:[#allocation7 + $0x15f0] sm:$0xff] }
 0x73c   :  { %10301 = vmatpush3.bf16.msra.mxu0 %v10300_v49  ;;  %10211 = vmatprep.subr.bf16.mxu1 %v10210_v19  ;;  %v5650_v49 = vld [vmem:[#allocation7 + $0x15f8] sm:$0xff]  ;;  %v5959_v19 = vld [vmem:[#allocation7 + $0x18e0] sm:$0xff] }
 0x73d   :  { %10303 = vmatprep.subr.bf16.mxu0 %v10302_v59  ;;  %v10226_v59 = vpack.c.bf16 %v5650_v49, %v5649_v3  ;;  %v10318_v39 = vpack.c.bf16 %v5960_v7, %v5959_v19  ;;  %v5832_v3 = vld [vmem:[#allocation7 + $0x1728] sm:$0xff]  ;;  %v6141_v49 = vld [vmem:[#allocation7 + $0x1a10] sm:$0xff]  ;;  %v10362_v7 = vpack.c.bf16 %v6158_v31, %v6157_v8  ;;  %v5855_v8 = vld [vmem:[#allocation7 + $0x17e0] sm:$0xff] }
 0x73e   :  { %v5856_v31 = vld [vmem:[#allocation7 + $0x17e8] sm:$0xff] }
 0x73f   :  { %10213 = vmatpush3.bf16.msra.mxu1 %v10212_v53  ;;  %v5843_v53 = vld [vmem:[#allocation7 + $0x1780] sm:$0xff] }
 0x740   :  { %10305 = vmatpush3.bf16.msra.mxu0 %v10304_v24  ;;  %10215 = vmatprep.subr.bf16.mxu1 %v10214_v16  ;;  %v5844_v24 = vld [vmem:[#allocation7 + $0x1788] sm:$0xff]  ;;  %v5961_v16 = vld [vmem:[#allocation7 + $0x18f0] sm:$0xff] }
 0x741   :  { %10307 = vmatprep.subr.bf16.mxu0 %v10306_v58  ;;  %v10262_v58 = vpack.c.bf16 %v5844_v24, %v5843_v53  ;;  %v10322_v18 = vpack.c.bf16 %v5962_v0, %v5961_v16  ;;  %v5833_v24 = vld [vmem:[#allocation7 + $0x1730] sm:$0xff]  ;;  %v5834_v16 = vld [vmem:[#allocation7 + $0x1738] sm:$0xff]  ;;  %v10366_v0 = vpack.c.bf16 %v6160_v32, %v6159_v38  ;;  %v6167_v38 = vld [vmem:[#allocation7 + $0x1ae0] sm:$0xff] }
 0x742   :  { %v10276_v47 = vpack.c.bf16 %v5834_v16, %v5833_v24  ;;  %v6168_v32 = vld [vmem:[#allocation7 + $0x1ae8] sm:$0xff]  ;;  %v5841_v24 = vld [vmem:[#allocation7 + $0x1770] sm:$0xff]  ;;  %v5842_v16 = vld [vmem:[#allocation7 + $0x1778] sm:$0xff] }
 0x743   :  { %10217 = vmatpush3.bf16.msra.mxu1 %v10216_v2  ;;  %v5845_v2 = vld [vmem:[#allocation7 + $0x1790] sm:$0xff] }
 0x744   :  { %10309 = vmatpush3.bf16.msra.mxu0 %v10308_v5  ;;  %10219 = vmatprep.subr.bf16.mxu1 %v10218_v45  ;;  %v5846_v5 = vld [vmem:[#allocation7 + $0x1798] sm:$0xff]  ;;  %v6155_v45 = vld [vmem:[#allocation7 + $0x1a80] sm:$0xff] }
 0x745   :  { %10311 = vmatprep.subr.bf16.mxu0 %v10310_v33  ;;  %v10324_v33 = vpack.c.bf16 %v5946_v17, %v5945_v14  ;;  %v10266_v55 = vpack.c.bf16 %v5846_v5, %v5845_v2  ;;  %v10358_v54 = vpack.c.bf16 %v6156_v50, %v6155_v45  ;;  %v5835_v17 = vld [vmem:[#allocation7 + $0x1740] sm:$0xff]  ;;  %v5836_v2 = vld [vmem:[#allocation7 + $0x1748] sm:$0xff]  ;;  %v6145_v5 = vld [vmem:[#allocation7 + $0x1a30] sm:$0xff]  ;;  %v10370_v45 = vpack.c.bf16 %v6162_v13, %v6161_v4 }
 0x746   :  { %v6146_v50 = vld [vmem:[#allocation7 + $0x1a38] sm:$0xff]  ;;  %v10280_v51 = vpack.c.bf16 %v5836_v2, %v5835_v17  ;;  %v6169_v4 = vld [vmem:[#allocation7 + $0x1af0] sm:$0xff]  ;;  %v6035_v17 = vld [vmem:[#allocation7 + $0x1900] sm:$0xff] }
 0x747   :  { %10221 = vmatpush3.bf16.msra.mxu1 %v10220_v52  ;;  %v6139_v52 = vld [vmem:[#allocation7 + $0x1a00] sm:$0xff]  ;;  %v10372_v12 = vpack.c.bf16 %v6146_v50, %v6145_v5  ;;  %v6170_v13 = vld [vmem:[#allocation7 + $0x1af8] sm:$0xff]  ;;  %v6036_v2 = vld [vmem:[#allocation7 + $0x1908] sm:$0xff] }
 0x748   :  { %10313 = vmatpush3.bf16.msra.mxu0 %v10312_v22  ;;  %10223 = vmatprep.subr.bf16.mxu1 %v10222_v11  ;;  %v6140_v22 = vld [vmem:[#allocation7 + $0x1a08] sm:$0xff]  ;;  %v5847_v11 = vld [vmem:[#allocation7 + $0x17a0] sm:$0xff]  ;;  %v6153_v5 = vld [vmem:[#allocation7 + $0x1a70] sm:$0xff] }
 0x749   :  { %10315 = vmatprep.subr.bf16.mxu0 %v10314_v15  ;;  %v10360_v15 = vpack.c.bf16 %v6140_v22, %v6139_v52  ;;  %v10270_v19 = vpack.c.bf16 %v5848_v35, %v5847_v11  ;;  %v5838_v52 = vld [vmem:[#allocation7 + $0x1758] sm:$0xff]  ;;  %v6147_v22 = vld [vmem:[#allocation7 + $0x1a40] sm:$0xff]  ;;  %v6148_v35 = vld [vmem:[#allocation7 + $0x1a48] sm:$0xff] }
 0x74a   :  { %v6154_v50 = vld [vmem:[#allocation7 + $0x1a78] sm:$0xff] }
 0x74b   :  { %10225 = vmatpush3.bf16.msra.mxu1 %v10224_v48  ;;  %v6142_v48 = vld [vmem:[#allocation7 + $0x1a18] sm:$0xff] }
 0x74c   :  { %10317 = vmatpush3.bf16.msra.mxu0 %v10316_v60  ;;  %10227 = vmatprep.subr.bf16.mxu1 %v10226_v59  ;;  %v5849_v60 = vld [vmem:[#allocation7 + $0x17b0] sm:$0xff]  ;;  %v5850_v59 = vld [vmem:[#allocation7 + $0x17b8] sm:$0xff]  ;;  %v10364_v29 = vpack.c.bf16 %v6142_v48, %v6141_v49  ;;  %v10286_v49 = vpack.c.bf16 %v5856_v31, %v5855_v8  ;;  %v6347_v8 = vld [vmem:[#allocation7 + $0x1c00] sm:$0xff] }
 0x74d   :  { %10319 = vmatprep.subr.bf16.mxu0 %v10318_v39  ;;  %v10272_v39 = vpack.c.bf16 %v5832_v3, %v5831_v40  ;;  %v10274_v53 = vpack.c.bf16 %v5850_v59, %v5849_v60  ;;  %v10376_v3 = vpack.c.bf16 %v6148_v35, %v6147_v22  ;;  %v6150_v60 = vld [vmem:[#allocation7 + $0x1a58] sm:$0xff]  ;;  %v5857_v59 = vld [vmem:[#allocation7 + $0x17f0] sm:$0xff]  ;;  %v6348_v31 = vld [vmem:[#allocation7 + $0x1c08] sm:$0xff] }
 0x74e   :  { %v6038_v22 = vld [vmem:[#allocation7 + $0x1918] sm:$0xff] }
 0x74f   :  { %10229 = vmatpush3.bf16.msra.mxu1 %v10228_v56  ;;  %v6144_v56 = vld [vmem:[#allocation7 + $0x1a28] sm:$0xff] }
 0x750   :  { %10321 = vmatpush3.bf16.msra.mxu0 %v10320_v28  ;;  %10263 = vmatprep.subr.bf16.mxu1 %v10262_v58  ;;  %v5851_v28 = vld [vmem:[#allocation7 + $0x17c0] sm:$0xff]  ;;  %v5852_v58 = vld [vmem:[#allocation7 + $0x17c8] sm:$0xff]  ;;  %v10368_v14 = vpack.c.bf16 %v6144_v56, %v6143_v30 }
 0x751   :  { %10323 = vmatprep.subr.bf16.mxu0 %v10322_v18  ;;  %v10278_v18 = vpack.c.bf16 %v5852_v58, %v5851_v28  ;;  %v6151_v30 = vld [vmem:[#allocation7 + $0x1a60] sm:$0xff]  ;;  %v6152_v56 = vld [vmem:[#allocation7 + $0x1a68] sm:$0xff] }
 0x752   :  { %5716 = vmatmul.mubr.f32.vlgmr.msra.gmra.mrb[84].mxu1 %v5078_v36  ;;  %v5854_v36 = vld [vmem:[#allocation7 + $0x17d8] sm:$0xff]  ;;  %v6051_v28 = vld [vmem:[#allocation7 + $0x1980] sm:$0xff]  ;;  %v6052_v58 = vld [vmem:[#allocation7 + $0x1988] sm:$0xff] }
 0x753   :  { %10265 = vmatpush3.bf16.msra.mxu1 %v10264_v34  ;;  %5923 = vmatprep.mubr.f32.mxu1 %v5083_v26  ;;  %v5853_v34 = vld [vmem:[#allocation7 + $0x17d0] sm:$0xff] }
 0x754   :  { %10325 = vmatpush3.bf16.msra.mxu0 %v10324_v33  ;;  %10267 = vmatprep.subr.bf16.mxu1 %v10266_v55  ;;  %v6163_v33 = vld [vmem:[#allocation7 + $0x1ac0] sm:$0xff]  ;;  %v6164_v55 = vld [vmem:[#allocation7 + $0x1ac8] sm:$0xff]  ;;  %v10282_v26 = vpack.c.bf16 %v5854_v36, %v5853_v34  ;;  %v6053_v34 = vld [vmem:[#allocation7 + $0x1990] sm:$0xff] }
 0x755   :  { %10359 = vmatprep.subr.bf16.mxu0 %v10358_v54  ;;  %v5837_v54 = vld [vmem:[#allocation7 + $0x1750] sm:$0xff]  ;;  %v10374_v11 = vpack.c.bf16 %v6164_v55, %v6163_v33  ;;  %v6054_v36 = vld [vmem:[#allocation7 + $0x1998] sm:$0xff]  ;;  %v6363_v33 = vld [vmem:[#allocation7 + $0x1c80] sm:$0xff] }
 0x756   :  { %v10284_v40 = vpack.c.bf16 %v5838_v52, %v5837_v54  ;;  %v6364_v55 = vld [vmem:[#allocation7 + $0x1c88] sm:$0xff]  ;;  %v10330_v54 = vpack.c.bf16 %v6054_v36, %v6053_v34  ;;  %v6037_v52 = vld [vmem:[#allocation7 + $0x1910] sm:$0xff]  ;;  %v6062_v36 = vld [vmem:[#allocation7 + $0x19d8] sm:$0xff] }
 0x757   :  { %6028 = vmatmul.mubr.f32.vlgmr.msra.gmra.mrb[88].mxu0 %v5084_v21  ;;  %10269 = vmatpush3.bf16.msra.mxu1 %v10268_v27  ;;  %v6165_v27 = vld [vmem:[#allocation7 + $0x1ad0] sm:$0xff]  ;;  %v5839_v21 = vld [vmem:[#allocation7 + $0x1760] sm:$0xff]  ;;  %v10422_v35 = vpack.c.bf16 %v6364_v55, %v6363_v33  ;;  %v6372_v55 = vld [vmem:[#allocation7 + $0x1cc8] sm:$0xff] }
 0x758   :  { %10361 = vmatpush3.bf16.msra.mxu0 %v10360_v15  ;;  %6235 = vmatprep.mubr.f32.mxu0 %v5089_v6  ;;  %v6166_v15 = vld [vmem:[#allocation7 + $0x1ad8] sm:$0xff]  ;;  %v6061_v34 = vld [vmem:[#allocation7 + $0x19d0] sm:$0xff]  ;;  %v6371_v33 = vld [vmem:[#allocation7 + $0x1cc0] sm:$0xff] }
 0x759   :  { %10271 = vmatprep.subr.bf16.mxu1 %v10270_v19  ;;  %10363 = vmatprep.subr.bf16.mxu0 %v10362_v7  ;;  %v5840_v19 = vld [vmem:[#allocation7 + $0x1768] sm:$0xff]  ;;  %v6149_v7 = vld [vmem:[#allocation7 + $0x1a50] sm:$0xff]  ;;  %v10378_v48 = vpack.c.bf16 %v6166_v15, %v6165_v27  ;;  %v5858_v6 = vld [vmem:[#allocation7 + $0x17f8] sm:$0xff] }
 0x75a   :  { %v6055_v27 = vld [vmem:[#allocation7 + $0x19a0] sm:$0xff]  ;;  %v6056_v15 = vld [vmem:[#allocation7 + $0x19a8] sm:$0xff] }
 0x75b   :  { %10273 = vmatpush3.bf16.msra.mxu1 %v10272_v39  ;;  %v10288_v39 = vpack.c.bf16 %v5840_v19, %v5839_v21  ;;  %v6039_v21 = vld [vmem:[#allocation7 + $0x1920] sm:$0xff]  ;;  %v6040_v19 = vld [vmem:[#allocation7 + $0x1928] sm:$0xff] }
 0x75c   :  { %10365 = vmatpush3.bf16.msra.mxu0 %v10364_v29  ;;  %10275 = vmatprep.subr.bf16.mxu1 %v10274_v53  ;;  %v10380_v29 = vpack.c.bf16 %v6150_v60, %v6149_v7  ;;  %v10290_v53 = vpack.c.bf16 %v5858_v6, %v5857_v59  ;;  %v6349_v7 = vld [vmem:[#allocation7 + $0x1c10] sm:$0xff]  ;;  %v6350_v59 = vld [vmem:[#allocation7 + $0x1c18] sm:$0xff] }
 0x75d   :  { %10367 = vmatprep.subr.bf16.mxu0 %v10366_v0  ;;  %v10382_v0 = vpack.c.bf16 %v6168_v32, %v6167_v38  ;;  %v6057_v6 = vld [vmem:[#allocation7 + $0x19b0] sm:$0xff]  ;;  %v6058_v38 = vld [vmem:[#allocation7 + $0x19b8] sm:$0xff]  ;;  %v5093_v32 = vmax.f32 %v12639_v1, 0.0 }
 0x75e   :  { %v6370_v1 = vld [vmem:[#allocation7 + $0x1cb8] sm:$0xff] }
 0x75f   :  { %10277 = vmatpush3.bf16.msra.mxu1 %v10276_v47  ;;  %v10292_v47 = vpack.c.bf16 %v5842_v16, %v5841_v24  ;;  %v10428_v24 = vpack.c.bf16 %v6350_v59, %v6349_v7  ;;  %v10338_v16 = vpack.c.bf16 %v6058_v38, %v6057_v6  ;;  %v6375_v59 = vld [vmem:[#allocation7 + $0x1ce0] sm:$0xff]  ;;  %v6376_v6 = vld [vmem:[#allocation7 + $0x1ce8] sm:$0xff] }
 0x760   :  { %10369 = vmatpush3.bf16.msra.mxu0 %v10368_v14  ;;  %10279 = vmatprep.subr.bf16.mxu1 %v10278_v18  ;;  %v10384_v14 = vpack.c.bf16 %v6152_v56, %v6151_v30  ;;  %v10326_v18 = vpack.c.bf16 %v6052_v58, %v6051_v28  ;;  %v6041_v30 = vld [vmem:[#allocation7 + $0x1930] sm:$0xff]  ;;  %v6352_v28 = vld [vmem:[#allocation7 + $0x1c28] sm:$0xff]  ;;  %v6059_v58 = vld [vmem:[#allocation7 + $0x19c0] sm:$0xff] }
 0x761   :  { %10371 = vmatprep.subr.bf16.mxu0 %v10370_v45  ;;  %v10386_v45 = vpack.c.bf16 %v6170_v13, %v6169_v4  ;;  %v6060_v4 = vld [vmem:[#allocation7 + $0x19c8] sm:$0xff]  ;;  %v6369_v13 = vld [vmem:[#allocation7 + $0x1cb0] sm:$0xff] }
 0x763   :  { %10281 = vmatpush3.bf16.msra.mxu1 %v10280_v51  ;;  %v10328_v51 = vpack.c.bf16 %v6036_v2, %v6035_v17  ;;  %v6043_v17 = vld [vmem:[#allocation7 + $0x1940] sm:$0xff]  ;;  %v6044_v2 = vld [vmem:[#allocation7 + $0x1948] sm:$0xff] }
 0x764   :  { %10373 = vmatpush3.bf16.msra.mxu0 %v10372_v12  ;;  %10283 = vmatprep.subr.bf16.mxu1 %v10282_v26  ;;  %v5082_v12 = vmax.f32 %v12598_v46, 0.0  ;;  %v10388_v26 = vpack.c.bf16 %v6154_v50, %v6153_v5  ;;  %v10332_v46 = vpack.c.bf16 %v6038_v22, %v6037_v52  ;;  %v6353_v5 = vld [vmem:[#allocation7 + $0x1c30] sm:$0xff]  ;;  %v6354_v50 = vld [vmem:[#allocation7 + $0x1c38] sm:$0xff]  ;;  %v6355_v22 = vld [vmem:[#allocation7 + $0x1c40] sm:$0xff] }
 0x765   :  { %10375 = vmatprep.subr.bf16.mxu0 %v10374_v11  ;;  %v5087_v11 = vmax.f32 %v12617_v23, 0.0  ;;  %v5088_v23 = vmax.f32 %v12620_v61, 0.0  ;;  %v6351_v61 = vld [vmem:[#allocation7 + $0x1c20] sm:$0xff]  ;;  %v6046_v52 = vld [vmem:[#allocation7 + $0x1958] sm:$0xff] }
 0x767   :  { %10285 = vmatpush3.bf16.msra.mxu1 %v10284_v40  ;;  %v6365_v40 = vld [vmem:[#allocation7 + $0x1c90] sm:$0xff] }
 0x768   :  { %10377 = vmatpush3.bf16.msra.mxu0 %v10376_v3  ;;  %10287 = vmatprep.subr.bf16.mxu1 %v10286_v49  ;;  %v6366_v3 = vld [vmem:[#allocation7 + $0x1c98] sm:$0xff]  ;;  %v10424_v49 = vpack.c.bf16 %v6348_v31, %v6347_v8  ;;  %v6063_v8 = vld [vmem:[#allocation7 + $0x19e0] sm:$0xff]  ;;  %v6064_v31 = vld [vmem:[#allocation7 + $0x19e8] sm:$0xff] }
 0x769   :  { %10379 = vmatprep.subr.bf16.mxu0 %v10378_v48  ;;  %v10334_v48 = vpack.c.bf16 %v6056_v15, %v6055_v27  ;;  %v10426_v60 = vpack.c.bf16 %v6366_v3, %v6365_v40  ;;  %v6373_v27 = vld [vmem:[#allocation7 + $0x1cd0] sm:$0xff]  ;;  %v6374_v15 = vld [vmem:[#allocation7 + $0x1cd8] sm:$0xff] }
 0x76a   :  { %v10442_v7 = vpack.c.bf16 %v6374_v15, %v6373_v27  ;;  %v6247_v15 = vld [vmem:[#allocation7 + $0x1b20] sm:$0xff] }
 0x76b   :  { %10289 = vmatpush3.bf16.msra.mxu1 %v10288_v39  ;;  %v6367_v39 = vld [vmem:[#allocation7 + $0x1ca0] sm:$0xff] }
 0x76c   :  { %10381 = vmatpush3.bf16.msra.mxu0 %v10380_v29  ;;  %10291 = vmatprep.subr.bf16.mxu1 %v10290_v53  ;;  %v6368_v29 = vld [vmem:[#allocation7 + $0x1ca8] sm:$0xff]  ;;  %v10336_v53 = vpack.c.bf16 %v6040_v19, %v6039_v21  ;;  %v6357_v19 = vld [vmem:[#allocation7 + $0x1c50] sm:$0xff] }
 0x76d   :  { %10383 = vmatprep.subr.bf16.mxu0 %v10382_v0  ;;  %v6042_v0 = vld [vmem:[#allocation7 + $0x1938] sm:$0xff]  ;;  %v10430_v56 = vpack.c.bf16 %v6368_v29, %v6367_v39  ;;  %v6048_v21 = vld [vmem:[#allocation7 + $0x1968] sm:$0xff]  ;;  %v6049_v29 = vld [vmem:[#allocation7 + $0x1970] sm:$0xff] }
 0x76f   :  { %10293 = vmatpush3.bf16.msra.mxu1 %v10292_v47  ;;  %v10340_v47 = vpack.c.bf16 %v6042_v0, %v6041_v30  ;;  %v6360_v30 = vld [vmem:[#allocation7 + $0x1c68] sm:$0xff]  ;;  %v6259_v0 = vld [vmem:[#allocation7 + $0x1b80] sm:$0xff] }
 0x770   :  { %10385 = vmatpush3.bf16.msra.mxu0 %v10384_v14  ;;  %10327 = vmatprep.subr.bf16.mxu1 %v10326_v18  ;;  %v10432_v14 = vpack.c.bf16 %v6352_v28, %v6351_v61  ;;  %v10342_v18 = vpack.c.bf16 %v6060_v4, %v6059_v58  ;;  %v6260_v61 = vld [vmem:[#allocation7 + $0x1b88] sm:$0xff]  ;;  %v6378_v28 = vld [vmem:[#allocation7 + $0x1cf8] sm:$0xff] }
 0x771   :  { %10387 = vmatprep.subr.bf16.mxu0 %v10386_v45  ;;  %v10434_v45 = vpack.c.bf16 %v6370_v1, %v6369_v13  ;;  %v10390_v13 = vpack.c.bf16 %v6260_v61, %v6259_v0  ;;  %v6243_v1 = vld [vmem:[#allocation7 + $0x1b00] sm:$0xff] }
 0x772   :  { %5924 = vmatmul.mubr.f32.vlgmr.msra.gmra.mrb[86].mxu1 %v5082_v12  ;;  %v10436_v12 = vpack.c.bf16 %v6354_v50, %v6353_v5  ;;  %v6262_v5 = vld [vmem:[#allocation7 + $0x1b98] sm:$0xff]  ;;  %v6572_v50 = vld [vmem:[#allocation7 + $0x1e88] sm:$0xff] }
 0x773   :  { %10329 = vmatpush3.bf16.msra.mxu1 %v10328_v51  ;;  %6131 = vmatprep.mubr.f32.mxu1 %v5087_v11  ;;  %v10344_v51 = vpack.c.bf16 %v6044_v2, %v6043_v17  ;;  %v10438_v11 = vpack.c.bf16 %v6372_v55, %v6371_v33  ;;  %v6362_v17 = vld [vmem:[#allocation7 + $0x1c78] sm:$0xff]  ;;  %v6261_v2 = vld [vmem:[#allocation7 + $0x1b90] sm:$0xff] }
 0x774   :  { %10389 = vmatpush3.bf16.msra.mxu0 %v10388_v26  ;;  %10331 = vmatprep.subr.bf16.mxu1 %v10330_v54  ;;  %v10346_v26 = vpack.c.bf16 %v6062_v36, %v6061_v34  ;;  %v6045_v54 = vld [vmem:[#allocation7 + $0x1950] sm:$0xff]  ;;  %v5086_v36 = vmax.f32 %v12612_v44, 0.0  ;;  %v10394_v55 = vpack.c.bf16 %v6262_v5, %v6261_v2 }
 0x775   :  { %10423 = vmatprep.subr.bf16.mxu0 %v10422_v35  ;;  %v6356_v35 = vld [vmem:[#allocation7 + $0x1c48] sm:$0xff]  ;;  %v10348_v40 = vpack.c.bf16 %v6046_v52, %v6045_v54  ;;  %v6555_v52 = vld [vmem:[#allocation7 + $0x1e00] sm:$0xff] }
 0x776   :  { %v10440_v3 = vpack.c.bf16 %v6356_v35, %v6355_v22  ;;  %v6556_v22 = vld [vmem:[#allocation7 + $0x1e08] sm:$0xff] }
 0x777   :  { %6236 = vmatmul.mubr.f32.vlgmr.msra.gmra.mrb[90].mxu0 %v5088_v23  ;;  %10333 = vmatpush3.bf16.msra.mxu1 %v10332_v46  ;;  %v10350_v46 = vpack.c.bf16 %v6064_v31, %v6063_v8  ;;  %v6358_v23 = vld [vmem:[#allocation7 + $0x1c58] sm:$0xff]  ;;  %v6264_v35 = vld [vmem:[#allocation7 + $0x1ba8] sm:$0xff]  ;;  %v6573_v8 = vld [vmem:[#allocation7 + $0x1e90] sm:$0xff]  ;;  %v10488_v27 = vpack.c.bf16 %v6556_v22, %v6555_v52 }
 0x778   :  { %10425 = vmatpush3.bf16.msra.mxu0 %v10424_v49  ;;  %6443 = vmatprep.mubr.f32.mxu0 %v5093_v32  ;;  %v6047_v49 = vld [vmem:[#allocation7 + $0x1960] sm:$0xff]  ;;  %v10444_v32 = vpack.c.bf16 %v6358_v23, %v6357_v19  ;;  %v6574_v31 = vld [vmem:[#allocation7 + $0x1e98] sm:$0xff]  ;;  %v6265_v19 = vld [vmem:[#allocation7 + $0x1bb0] sm:$0xff]  ;;  %v5097_v23 = vmax.f32 %v12651_v57, 0.0 }
 0x779   :  { %10335 = vmatprep.subr.bf16.mxu1 %v10334_v48  ;;  %10427 = vmatprep.subr.bf16.mxu0 %v10426_v60  ;;  %v6065_v48 = vld [vmem:[#allocation7 + $0x19f0] sm:$0xff]  ;;  %v6066_v60 = vld [vmem:[#allocation7 + $0x19f8] sm:$0xff]  ;;  %v10352_v38 = vpack.c.bf16 %v6048_v21, %v6047_v49  ;;  %v10490_v49 = vpack.c.bf16 %v6574_v31, %v6573_v8  ;;  %v6256_v8 = vld [vmem:[#allocation7 + $0x1b68] sm:$0xff] }
 0x77a   :  { %v10354_v39 = vpack.c.bf16 %v6066_v60, %v6065_v48  ;;  %v6558_v21 = vld [vmem:[#allocation7 + $0x1e18] sm:$0xff]  ;;  %v6575_v48 = vld [vmem:[#allocation7 + $0x1ea0] sm:$0xff]  ;;  %v6576_v60 = vld [vmem:[#allocation7 + $0x1ea8] sm:$0xff] }
 0x77b   :  { %10337 = vmatpush3.bf16.msra.mxu1 %v10336_v53  ;;  %v6050_v53 = vld [vmem:[#allocation7 + $0x1978] sm:$0xff]  ;;  %v6565_v31 = vld [vmem:[#allocation7 + $0x1e50] sm:$0xff] }
 0x77c   :  { %10429 = vmatpush3.bf16.msra.mxu0 %v10428_v24  ;;  %10339 = vmatprep.subr.bf16.mxu1 %v10338_v16  ;;  %v6359_v24 = vld [vmem:[#allocation7 + $0x1c60] sm:$0xff]  ;;  %v10446_v16 = vpack.c.bf16 %v6376_v6, %v6375_v59  ;;  %v10356_v58 = vpack.c.bf16 %v6050_v53, %v6049_v29  ;;  %v10494_v29 = vpack.c.bf16 %v6576_v60, %v6575_v48  ;;  %v6560_v53 = vld [vmem:[#allocation7 + $0x1e28] sm:$0xff]  ;;  %v6578_v57 = vld [vmem:[#allocation7 + $0x1eb8] sm:$0xff] }
 0x77d   :  { %10431 = vmatprep.subr.bf16.mxu0 %v10430_v56  ;;  %v6377_v56 = vld [vmem:[#allocation7 + $0x1cf0] sm:$0xff]  ;;  %v10448_v4 = vpack.c.bf16 %v6360_v30, %v6359_v24  ;;  %v6267_v24 = vld [vmem:[#allocation7 + $0x1bc0] sm:$0xff]  ;;  %v6568_v60 = vld [vmem:[#allocation7 + $0x1e68] sm:$0xff] }
 0x77e   :  { %v6577_v30 = vld [vmem:[#allocation7 + $0x1eb0] sm:$0xff] }
 0x77f   :  { %10341 = vmatpush3.bf16.msra.mxu1 %v10340_v47  ;;  %v6244_v47 = vld [vmem:[#allocation7 + $0x1b08] sm:$0xff] }
 0x780   :  { %10433 = vmatpush3.bf16.msra.mxu0 %v10432_v14  ;;  %10343 = vmatprep.subr.bf16.mxu1 %v10342_v18  ;;  %v6361_v14 = vld [vmem:[#allocation7 + $0x1c70] sm:$0xff]  ;;  %v10450_v18 = vpack.c.bf16 %v6378_v28, %v6377_v56  ;;  %v10392_v34 = vpack.c.bf16 %v6244_v47, %v6243_v1  ;;  %v6251_v28 = vld [vmem:[#allocation7 + $0x1b40] sm:$0xff]  ;;  %v6562_v1 = vld [vmem:[#allocation7 + $0x1e38] sm:$0xff] }
 0x781   :  { %10435 = vmatprep.subr.bf16.mxu0 %v10434_v45  ;;  %v6571_v45 = vld [vmem:[#allocation7 + $0x1e80] sm:$0xff]  ;;  %v10452_v33 = vpack.c.bf16 %v6362_v17, %v6361_v14  ;;  %v6269_v47 = vld [vmem:[#allocation7 + $0x1bd0] sm:$0xff]  ;;  %v6270_v14 = vld [vmem:[#allocation7 + $0x1bd8] sm:$0xff] }
 0x782   :  { %v10486_v54 = vpack.c.bf16 %v6572_v50, %v6571_v45  ;;  %v6580_v17 = vld [vmem:[#allocation7 + $0x1ec8] sm:$0xff]  ;;  %v10410_v45 = vpack.c.bf16 %v6270_v14, %v6269_v47  ;;  %v6253_v50 = vld [vmem:[#allocation7 + $0x1b50] sm:$0xff]  ;;  %v5095_v47 = vmax.f32 %v12645_v62, 0.0  ;;  %v6471_v14 = vld [vmem:[#allocation7 + $0x1da0] sm:$0xff] }
 0x783   :  { %10345 = vmatpush3.bf16.msra.mxu1 %v10344_v51  ;;  %v6245_v51 = vld [vmem:[#allocation7 + $0x1b10] sm:$0xff]  ;;  %v6474_v62 = vld [vmem:[#allocation7 + $0x1db8] sm:$0xff] }
 0x784   :  { %10437 = vmatpush3.bf16.msra.mxu0 %v10436_v12  ;;  %10347 = vmatprep.subr.bf16.mxu1 %v10346_v26  ;;  %v6246_v12 = vld [vmem:[#allocation7 + $0x1b18] sm:$0xff]  ;;  %v5091_v26 = vmax.f32 %v12633_v63, 0.0  ;;  %v5092_v63 = vmax.f32 %v12636_v20, 0.0  ;;  %v6559_v20 = vld [vmem:[#allocation7 + $0x1e20] sm:$0xff] }
 0x785   :  { %10439 = vmatprep.subr.bf16.mxu0 %v10438_v11  ;;  %v6263_v11 = vld [vmem:[#allocation7 + $0x1ba0] sm:$0xff]  ;;  %v10396_v44 = vpack.c.bf16 %v6246_v12, %v6245_v51  ;;  %v10496_v61 = vpack.c.bf16 %v6560_v53, %v6559_v20  ;;  %v6272_v12 = vld [vmem:[#allocation7 + $0x1be8] sm:$0xff] }
 0x786   :  { %v6271_v51 = vld [vmem:[#allocation7 + $0x1be0] sm:$0xff] }
 0x787   :  { %10349 = vmatpush3.bf16.msra.mxu1 %v10348_v40  ;;  %v6248_v40 = vld [vmem:[#allocation7 + $0x1b28] sm:$0xff]  ;;  %v6451_v53 = vld [vmem:[#allocation7 + $0x1d00] sm:$0xff] }
 0x788   :  { %10441 = vmatpush3.bf16.msra.mxu0 %v10440_v3  ;;  %10351 = vmatprep.subr.bf16.mxu1 %v10350_v46  ;;  %v6557_v3 = vld [vmem:[#allocation7 + $0x1e10] sm:$0xff]  ;;  %v10398_v46 = vpack.c.bf16 %v6264_v35, %v6263_v11  ;;  %v10400_v59 = vpack.c.bf16 %v6248_v40, %v6247_v15  ;;  %v10414_v11 = vpack.c.bf16 %v6272_v12, %v6271_v51  ;;  %v6255_v35 = vld [vmem:[#allocation7 + $0x1b60] sm:$0xff]  ;;  %v6274_v40 = vld [vmem:[#allocation7 + $0x1bf8] sm:$0xff] }
 0x789   :  { %10443 = vmatprep.subr.bf16.mxu0 %v10442_v7  ;;  %v6266_v7 = vld [vmem:[#allocation7 + $0x1bb8] sm:$0xff]  ;;  %v10492_v6 = vpack.c.bf16 %v6558_v21, %v6557_v3  ;;  %v6273_v15 = vld [vmem:[#allocation7 + $0x1bf0] sm:$0xff]  ;;  %v6583_v3 = vld [vmem:[#allocation7 + $0x1ee0] sm:$0xff] }
 0x78a   :  { %v10418_v21 = vpack.c.bf16 %v6274_v40, %v6273_v15  ;;  %v6458_v51 = vld [vmem:[#allocation7 + $0x1d38] sm:$0xff]  ;;  %v6475_v12 = vld [vmem:[#allocation7 + $0x1dc0] sm:$0xff] }
 0x78b   :  { %10353 = vmatpush3.bf16.msra.mxu1 %v10352_v38  ;;  %v10402_v38 = vpack.c.bf16 %v6266_v7, %v6265_v19  ;;  %v6257_v19 = vld [vmem:[#allocation7 + $0x1b70] sm:$0xff]  ;;  %v6258_v7 = vld [vmem:[#allocation7 + $0x1b78] sm:$0xff]  ;;  %v6479_v40 = vld [vmem:[#allocation7 + $0x1de0] sm:$0xff] }
 0x78c   :  { %10445 = vmatpush3.bf16.msra.mxu0 %v10444_v32  ;;  %10355 = vmatprep.subr.bf16.mxu1 %v10354_v39  ;;  %v6249_v32 = vld [vmem:[#allocation7 + $0x1b30] sm:$0xff]  ;;  %v6250_v39 = vld [vmem:[#allocation7 + $0x1b38] sm:$0xff] }
 0x78d   :  { %10447 = vmatprep.subr.bf16.mxu0 %v10446_v16  ;;  %v6268_v16 = vld [vmem:[#allocation7 + $0x1bc8] sm:$0xff]  ;;  %v10404_v0 = vpack.c.bf16 %v6250_v39, %v6249_v32  ;;  %v6586_v32 = vld [vmem:[#allocation7 + $0x1ef8] sm:$0xff]  ;;  %v10420_v39 = vpack.c.bf16 %v6258_v7, %v6257_v19  ;;  %v6481_v7 = vld [vmem:[#allocation7 + $0x1df0] sm:$0xff] }
 0x78e   :  { %v10406_v56 = vpack.c.bf16 %v6268_v16, %v6267_v24  ;;  %v6452_v24 = vld [vmem:[#allocation7 + $0x1d08] sm:$0xff]  ;;  %v6569_v16 = vld [vmem:[#allocation7 + $0x1e70] sm:$0xff]  ;;  %v6462_v15 = vld [vmem:[#allocation7 + $0x1d58] sm:$0xff] }
 0x78f   :  { %10357 = vmatpush3.bf16.msra.mxu1 %v10356_v58  ;;  %v6252_v58 = vld [vmem:[#allocation7 + $0x1b48] sm:$0xff] }
 0x790   :  { %10449 = vmatpush3.bf16.msra.mxu0 %v10448_v4  ;;  %10391 = vmatprep.subr.bf16.mxu1 %v10390_v13  ;;  %v6561_v4 = vld [vmem:[#allocation7 + $0x1e30] sm:$0xff]  ;;  %v10498_v13 = vpack.c.bf16 %v6578_v57, %v6577_v30  ;;  %v10408_v2 = vpack.c.bf16 %v6252_v58, %v6251_v28  ;;  %v6570_v57 = vld [vmem:[#allocation7 + $0x1e78] sm:$0xff]  ;;  %v5090_v28 = vmax.f32 %v12630_v43, 0.0  ;;  %v6455_v43 = vld [vmem:[#allocation7 + $0x1d20] sm:$0xff] }
 0x791   :  { %10451 = vmatprep.subr.bf16.mxu0 %v10450_v18  ;;  %v6579_v18 = vld [vmem:[#allocation7 + $0x1ec0] sm:$0xff]  ;;  %v10500_v5 = vpack.c.bf16 %v6562_v1, %v6561_v4  ;;  %v10516_v58 = vpack.c.bf16 %v6570_v57, %v6569_v16  ;;  %v6454_v1 = vld [vmem:[#allocation7 + $0x1d18] sm:$0xff] }
 0x792   :  { %6132 = vmatmul.mubr.f32.vlgmr.msra.gmra.mrb[88].mxu1 %v5086_v36  ;;  %v6563_v36 = vld [vmem:[#allocation7 + $0x1e40] sm:$0xff] }
 0x793   :  { %10393 = vmatpush3.bf16.msra.mxu1 %v10392_v34  ;;  %6339 = vmatprep.mubr.f32.mxu1 %v5091_v26  ;;  %v6254_v34 = vld [vmem:[#allocation7 + $0x1b58] sm:$0xff]  ;;  %v6581_v26 = vld [vmem:[#allocation7 + $0x1ed0] sm:$0xff]  ;;  %v6659_v57 = vld [vmem:[#allocation7 + $0x1f00] sm:$0xff] }
 0x794   :  { %10453 = vmatpush3.bf16.msra.mxu0 %v10452_v33  ;;  %10395 = vmatprep.subr.bf16.mxu1 %v10394_v55  ;;  %v10502_v33 = vpack.c.bf16 %v6580_v17, %v6579_v18  ;;  %v6564_v55 = vld [vmem:[#allocation7 + $0x1e48] sm:$0xff]  ;;  %v10412_v52 = vpack.c.bf16 %v6254_v34, %v6253_v50  ;;  %v6473_v34 = vld [vmem:[#allocation7 + $0x1db0] sm:$0xff] }
 0x795   :  { %10487 = vmatprep.subr.bf16.mxu0 %v10486_v54  ;;  %v6582_v54 = vld [vmem:[#allocation7 + $0x1ed8] sm:$0xff]  ;;  %v10504_v22 = vpack.c.bf16 %v6564_v55, %v6563_v36  ;;  %v6472_v18 = vld [vmem:[#allocation7 + $0x1da8] sm:$0xff]  ;;  %v6457_v55 = vld [vmem:[#allocation7 + $0x1d30] sm:$0xff] }
 0x796   :  { %v10462_v50 = vpack.c.bf16 %v6472_v18, %v6471_v14  ;;  %v6679_v14 = vld [vmem:[#allocation7 + $0x1fa0] sm:$0xff]  ;;  %v6680_v18 = vld [vmem:[#allocation7 + $0x1fa8] sm:$0xff] }
 0x797   :  { %6444 = vmatmul.mubr.f32.vlgmr.msra.gmra.mrb[92].mxu0 %v5092_v63  ;;  %10397 = vmatpush3.bf16.msra.mxu1 %v10396_v44  ;;  %v10506_v44 = vpack.c.bf16 %v6582_v54, %v6581_v26  ;;  %v6584_v63 = vld [vmem:[#allocation7 + $0x1ee8] sm:$0xff]  ;;  %v10468_v54 = vpack.c.bf16 %v6458_v51, %v6457_v55  ;;  %v6667_v51 = vld [vmem:[#allocation7 + $0x1f40] sm:$0xff] }
 0x798   :  { %10489 = vmatpush3.bf16.msra.mxu0 %v10488_v27  ;;  %6651 = vmatprep.mubr.f32.mxu0 %v5097_v23  ;;  %v6566_v27 = vld [vmem:[#allocation7 + $0x1e58] sm:$0xff]  ;;  %v6567_v23 = vld [vmem:[#allocation7 + $0x1e60] sm:$0xff]  ;;  %v10510_v48 = vpack.c.bf16 %v6584_v63, %v6583_v3  ;;  %v6476_v26 = vld [vmem:[#allocation7 + $0x1dc8] sm:$0xff] }
 0x799   :  { %10399 = vmatprep.subr.bf16.mxu1 %v10398_v46  ;;  %10491 = vmatprep.subr.bf16.mxu0 %v10490_v49  ;;  %v10416_v46 = vpack.c.bf16 %v6256_v8, %v6255_v35  ;;  %v10508_v49 = vpack.c.bf16 %v6566_v27, %v6565_v31  ;;  %v10512_v20 = vpack.c.bf16 %v6568_v60, %v6567_v23  ;;  %v6477_v35 = vld [vmem:[#allocation7 + $0x1dd0] sm:$0xff]  ;;  %v6478_v8 = vld [vmem:[#allocation7 + $0x1dd8] sm:$0xff]  ;;  %v6480_v3 = vld [vmem:[#allocation7 + $0x1de8] sm:$0xff] }
 0x79a   :  { %v6461_v27 = vld [vmem:[#allocation7 + $0x1d50] sm:$0xff]  ;;  %v6482_v23 = vld [vmem:[#allocation7 + $0x1df8] sm:$0xff] }
 0x79b   :  { %10401 = vmatpush3.bf16.msra.mxu1 %v10400_v59  ;;  %v6467_v59 = vld [vmem:[#allocation7 + $0x1d80] sm:$0xff]  ;;  %v10476_v63 = vpack.c.bf16 %v6462_v15, %v6461_v27 }
 0x79c   :  { %10493 = vmatpush3.bf16.msra.mxu0 %v10492_v6  ;;  %10403 = vmatprep.subr.bf16.mxu1 %v10402_v38  ;;  %v6468_v6 = vld [vmem:[#allocation7 + $0x1d88] sm:$0xff]  ;;  %v6585_v38 = vld [vmem:[#allocation7 + $0x1ef0] sm:$0xff]  ;;  %v6671_v15 = vld [vmem:[#allocation7 + $0x1f60] sm:$0xff] }
 0x79d   :  { %10495 = vmatprep.subr.bf16.mxu0 %v10494_v29  ;;  %v10454_v29 = vpack.c.bf16 %v6468_v6, %v6467_v59  ;;  %v10514_v30 = vpack.c.bf16 %v6586_v32, %v6585_v38  ;;  %v10482_v6 = vpack.c.bf16 %v6482_v23, %v6481_v7  ;;  %v6465_v38 = vld [vmem:[#allocation7 + $0x1d70] sm:$0xff]  ;;  %v6466_v32 = vld [vmem:[#allocation7 + $0x1d78] sm:$0xff] }
 0x79e   :  { %v10484_v16 = vpack.c.bf16 %v6466_v32, %v6465_v38  ;;  %v6673_v23 = vld [vmem:[#allocation7 + $0x1f70] sm:$0xff] }
 0x79f   :  { %10405 = vmatpush3.bf16.msra.mxu1 %v10404_v0  ;;  %v6469_v0 = vld [vmem:[#allocation7 + $0x1d90] sm:$0xff] }
 0x7a0   :  { %10497 = vmatpush3.bf16.msra.mxu0 %v10496_v61  ;;  %10407 = vmatprep.subr.bf16.mxu1 %v10406_v56  ;;  %v6470_v61 = vld [vmem:[#allocation7 + $0x1d98] sm:$0xff]  ;;  %v10456_v56 = vpack.c.bf16 %v6452_v24, %v6451_v53 }
 0x7a1   :  { %10499 = vmatprep.subr.bf16.mxu0 %v10498_v13  ;;  %v10458_v4 = vpack.c.bf16 %v6470_v61, %v6469_v0  ;;  %v6453_v13 = vld [vmem:[#allocation7 + $0x1d10] sm:$0xff]  ;;  %v6660_v0 = vld [vmem:[#allocation7 + $0x1f08] sm:$0xff] }
 0x7a2   :  { %v10460_v17 = vpack.c.bf16 %v6454_v1, %v6453_v13  ;;  %v6677_v61 = vld [vmem:[#allocation7 + $0x1f90] sm:$0xff]  ;;  %v6662_v1 = vld [vmem:[#allocation7 + $0x1f18] sm:$0xff] }
 0x7a3   :  { %10409 = vmatpush3.bf16.msra.mxu1 %v10408_v2  ;;  %v5096_v2 = vmax.f32 %v12648_v37, 0.0  ;;  %v6762_v37 = vld [vmem:[%s12821_s0] sm:$0xff]  ;;  %v6661_v13 = vld [vmem:[#allocation7 + $0x1f10] sm:$0xff] }
 0x7a4   :  { %10501 = vmatpush3.bf16.msra.mxu0 %v10500_v5  ;;  %10411 = vmatprep.subr.bf16.mxu1 %v10410_v45  ;;  %v6456_v5 = vld [vmem:[#allocation7 + $0x1d28] sm:$0xff]  ;;  %v6763_v45 = vld [vmem:[#allocation12] sm:$0xf] }
 0x7a5   :  { %10503 = vmatprep.subr.bf16.mxu0 %v10502_v33  ;;  %v10464_v36 = vpack.c.bf16 %v6456_v5, %v6455_v43  ;;  %v10466_v33 = vpack.c.bf16 %v6474_v62, %v6473_v34  ;;  %v6663_v43 = vld [vmem:[#allocation7 + $0x1f20] sm:$0xff]  ;;  %v6664_v5 = vld [vmem:[#allocation7 + $0x1f28] sm:$0xff]  ;;  %v6665_v62 = vld [vmem:[#allocation7 + $0x1f30] sm:$0xff] }
 0x7a7   :  { %10413 = vmatpush3.bf16.msra.mxu1 %v10412_v52  ;;  %v10470_v52 = vpack.c.bf16 %v6476_v26, %v6475_v12  ;;  %v6668_v12 = vld [vmem:[#allocation7 + $0x1f48] sm:$0xff]  ;;  %v6685_v26 = vld [vmem:[#allocation7 + $0x1fd0] sm:$0xff] }
 0x7a8   :  { %10505 = vmatpush3.bf16.msra.mxu0 %v10504_v22  ;;  %10415 = vmatprep.subr.bf16.mxu1 %v10414_v11  ;;  %v6459_v22 = vld [vmem:[#allocation7 + $0x1d40] sm:$0xff]  ;;  %v6460_v11 = vld [vmem:[#allocation7 + $0x1d48] sm:$0xff] }
 0x7a9   :  { %10507 = vmatprep.subr.bf16.mxu0 %v10506_v44  ;;  %v10472_v31 = vpack.c.bf16 %v6460_v11, %v6459_v22  ;;  %v10474_v44 = vpack.c.bf16 %v6478_v8, %v6477_v35  ;;  %v6669_v11 = vld [vmem:[#allocation7 + $0x1f50] sm:$0xff]  ;;  %v6670_v35 = vld [vmem:[#allocation7 + $0x1f58] sm:$0xff]  ;;  %v6687_v8 = vld [vmem:[#allocation7 + $0x1fe0] sm:$0xff] }
 0x7ab   :  { %10417 = vmatpush3.bf16.msra.mxu1 %v10416_v46  ;;  %v10478_v46 = vpack.c.bf16 %v6480_v3, %v6479_v40  ;;  %v6672_v40 = vld [vmem:[#allocation7 + $0x1f68] sm:$0xff] }
 0x7ac   :  { %10509 = vmatpush3.bf16.msra.mxu0 %v10508_v49  ;;  %10419 = vmatprep.subr.bf16.mxu1 %v10418_v21  ;;  %v6463_v49 = vld [vmem:[#allocation7 + $0x1d60] sm:$0xff]  ;;  %v6464_v21 = vld [vmem:[#allocation7 + $0x1d68] sm:$0xff] }
 0x7ad   :  { %10511 = vmatprep.subr.bf16.mxu0 %v10510_v48  ;;  %v10480_v59 = vpack.c.bf16 %v6464_v21, %v6463_v49 }
 0x7af   :  { %10421 = vmatpush3.bf16.msra.mxu1 %v10420_v39 }
 0x7b0   :  { %10513 = vmatpush3.bf16.msra.mxu0 %v10512_v20  ;;  %10455 = vmatprep.subr.bf16.mxu1 %v10454_v29  ;;  %v6675_v20 = vld [vmem:[#allocation7 + $0x1f80] sm:$0xff]  ;;  %v6676_v29 = vld [vmem:[#allocation7 + $0x1f88] sm:$0xff] }
 0x7b1   :  { %10515 = vmatprep.subr.bf16.mxu0 %v10514_v30  ;;  %v10518_v30 = vpack.c.bf16 %v6676_v29, %v6675_v20  ;;  %v6850_v29 = vld [vmem:[#allocation15] sm:$0xff] }
 0x7b2   :  { %6340 = vmatmul.mubr.f32.vlgmr.msra.gmra.mrb[90].mxu1 %v5090_v28  ;;  %v10520_v28 = vpack.c.bf16 %v6660_v0, %v6659_v57  ;;  %v5098_v57 = vmax.f32 %v12654_v42, 0.0  ;;  %v6853_v0 = vld [vmem:[#allocation15 + $0x18] sm:$0xff]  ;;  %v6854_v42 = vld [vmem:[#allocation15 + $0x20] sm:$0xff] }
 0x7b3   :  { %10457 = vmatpush3.bf16.msra.mxu1 %v10456_v56  ;;  %6547 = vmatprep.mubr.f32.mxu1 %v5095_v47  ;;  %v6678_v56 = vld [vmem:[#allocation7 + $0x1f98] sm:$0xff]  ;;  %v5099_v47 = vmax.f32 %v12657_v10, 0.0  ;;  %v6684_v10 = vld [vmem:[#allocation7 + $0x1fc8] sm:$0xff] }
 0x7b4   :  { %10517 = vmatpush3.bf16.msra.mxu0 %v10516_v58  ;;  %10459 = vmatprep.subr.bf16.mxu1 %v10458_v4  ;;  %v5094_v58 = vmax.f32 %v12642_v41, 0.0  ;;  %v10522_v4 = vpack.c.bf16 %v6678_v56, %v6677_v61  ;;  %v10528_v41 = vpack.c.bf16 %v6664_v5, %v6663_v43 }
 0x7b5   :  { %9170 = vmatprep.subr.mxu0 %v11257_v9 }
 0x7b7   :  { %6652 = vmatmul.mubr.f32.vlgmr.msra.gmra.mrb[94].mxu0 %v5096_v2  ;;  %10461 = vmatpush3.bf16.msra.mxu1 %v10460_v17  ;;  %v10524_v17 = vpack.c.bf16 %v6662_v1, %v6661_v13  ;;  %v10526_v2 = vpack.c.bf16 %v6680_v18, %v6679_v14 }
 0x7b8   :  { %9171 = vmatpush3.msk.msra.mxu0 %vm6775_vm2, %v6763_v45  ;;  %9172 = vmatprep.mubr.msk.f32.mxu0 %vm11258_vm3, %v11257_v9  ;;  %v6681_v45 = vld [vmem:[#allocation7 + $0x1fb0] sm:$0xff] }
 0x7b9   :  { %10463 = vmatprep.subr.bf16.mxu1 %v10462_v50  ;;  %v6682_v50 = vld [vmem:[#allocation7 + $0x1fb8] sm:$0xff] }
 0x7ba   :  { %v10530_v34 = vpack.c.bf16 %v6682_v50, %v6681_v45 }
 0x7bb   :  { %9173 = vmatmul.mubr.msk.f32.vlgmr.msra.gmra.mrb[96].mxu0 %vm6771_vm4, %v6762_v37  ;;  %10465 = vmatpush3.bf16.msra.mxu1 %v10464_v36  ;;  %v6666_v36 = vld [vmem:[#allocation7 + $0x1f38] sm:$0xff]  ;;  %v6683_v37 = vld [vmem:[#allocation7 + $0x1fc0] sm:$0xff] }
 0x7bc   :  { %10467 = vmatprep.subr.bf16.mxu1 %v10466_v33  ;;  %9226 = vmatprep.mubr.msk.f32.mxu0 %vm11258_vm3, %v11257_v9  ;;  %v10532_v33 = vpack.c.bf16 %v6666_v36, %v6665_v62  ;;  %v10534_v55 = vpack.c.bf16 %v6684_v10, %v6683_v37 }
 0x7bf   :  { %10469 = vmatpush3.bf16.msra.mxu1 %v10468_v54  ;;  %v6686_v54 = vld [vmem:[#allocation7 + $0x1fd8] sm:$0xff] }
 0x7c0   :  { %10471 = vmatprep.subr.bf16.mxu1 %v10470_v52  ;;  %v10536_v52 = vpack.c.bf16 %v6668_v12, %v6667_v51  ;;  %v10538_v22 = vpack.c.bf16 %v6686_v54, %v6685_v26  ;;  %v6940_v12 = vld [vmem:[#allocation9] sm:$0xff]  ;;  %v6941_v26 = vld [vmem:[#allocation9 + $0x8] sm:$0xff]  ;;  %v6942_v54 = vld [vmem:[#allocation9 + $0x10] sm:$0xff] }
 0x7c3   :  { %10473 = vmatpush3.bf16.msra.mxu1 %v10472_v31  ;;  %v6688_v31 = vld [vmem:[#allocation7 + $0x1fe8] sm:$0xff] }
 0x7c4   :  { %10475 = vmatprep.subr.bf16.mxu1 %v10474_v44  ;;  %v10540_v44 = vpack.c.bf16 %v6670_v35, %v6669_v11  ;;  %v10542_v27 = vpack.c.bf16 %v6688_v31, %v6687_v8  ;;  %v6943_v11 = vld [vmem:[#allocation9 + $0x18] sm:$0xff] }
 0x7c5   :  { %v8303_v19 = vpop.f32.mrb[78].mxu1 }
 0x7c6   :  { %v8304_v48 = vpop.f32.mrb[79].mxu1 }
 0x7c7   :  { %v12687_v60 = vadd.f32 %v8304_v48, %v8303_v19  ;;  %10477 = vmatpush3.bf16.msra.mxu1 %v10476_v63  ;;  %v6689_v63 = vld [vmem:[#allocation7 + $0x1ff0] sm:$0xff]  ;;  %v10544_v19 = vpack.c.bf16 %v6672_v40, %v6671_v15  ;;  %v6674_v48 = vld [vmem:[#allocation7 + $0x1f78] sm:$0xff]  ;;  %v6945_v15 = vld [vmem:[#allocation9 + $0x28] sm:$0xff] }
 0x7c8   :  { %10479 = vmatprep.subr.bf16.mxu1 %v10478_v46  ;;  %v6690_v46 = vld [vmem:[#allocation7 + $0x1ff8] sm:$0xff]  ;;  %v10548_v32 = vpack.c.bf16 %v6674_v48, %v6673_v23 }
 0x7c9   :  { %v8373_v39 = vpop.f32.mrb[82].mxu0  ;;  %v10546_v7 = vpack.c.bf16 %v6690_v46, %v6689_v63  ;;  %v6947_v63 = vld [vmem:[#allocation9 + $0x38] sm:$0xff] }
 0x7ca   :  { %v8374_v53 = vpop.f32.mrb[83].mxu0  ;;  %v6951_v23 = vld [vmem:[#allocation9 + $0x58] sm:$0xff] }
 0x7cb   :  { %v12689_v24 = vadd.f32 %v8374_v53, %v8373_v39  ;;  %10481 = vmatpush3.bf16.msra.mxu1 %v10480_v59  ;;  %v6851_v53 = vld [vmem:[#allocation15 + $0x8] sm:$0xff] }
 0x7cc   :  { %10483 = vmatprep.subr.bf16.mxu1 %v10482_v6 }
 0x7cf   :  { %10485 = vmatpush3.bf16.msra.mxu1 %v10484_v16  ;;  %v11259_v16 = vmov 0.0|0.0  }
 0x7d0   :  { %10519 = vmatprep.subr.bf16.mxu1 %v10518_v30  ;;  %10562 = vmatprep.subr.bf16.mxu0 %v11259_v16  ;;  %v10551_v30 = vpack.c.bf16 %v6851_v53, %v6850_v29 }
 0x7d2   :  { %6548 = vmatmul.mubr.f32.vlgmr.msra.gmra.mrb[92].mxu1 %v5094_v58 }
 0x7d3   :  { %10521 = vmatpush3.bf16.msra.mxu1 %v10520_v28  ;;  %6755 = vmatprep.mubr.f32.mxu1 %v5099_v47 }
 0x7d4   :  { %10523 = vmatprep.subr.bf16.mxu1 %v10522_v4  ;;  %v6855_v4 = vld [vmem:[#allocation15 + $0x28] sm:$0xff] }
 0x7d5   :  { %v10557_v1 = vpack.c.bf16 %v6855_v4, %v6854_v42 }
 0x7d7   :  { %10525 = vmatpush3.bf16.msra.mxu1 %v10524_v17  ;;  %v6856_v17 = vld [vmem:[#allocation15 + $0x30] sm:$0xff] }
 0x7d8   :  { %10527 = vmatprep.subr.bf16.mxu1 %v10526_v2  ;;  %v6857_v2 = vld [vmem:[#allocation15 + $0x38] sm:$0xff] }
 0x7d9   :  { %v10560_v43 = vpack.c.bf16 %v6857_v2, %v6856_v17 }
 0x7db   :  { %10529 = vmatpush3.bf16.msra.mxu1 %v10528_v41 }
 0x7dc   :  { %10531 = vmatprep.subr.bf16.mxu1 %v10530_v34 }
 0x7df   :  { %10533 = vmatpush3.bf16.msra.mxu1 %v10532_v33 }
 0x7e0   :  { %10535 = vmatprep.subr.bf16.mxu1 %v10534_v55 }
 0x7e3   :  { %10537 = vmatpush3.bf16.msra.mxu1 %v10536_v52 }
 0x7e4   :  { %10539 = vmatprep.subr.bf16.mxu1 %v10538_v22  ;;  %v10563_v22 = vpack.c.bf16 %v6941_v26, %v6940_v12  ;;  %v7038_v12 = vld [vmem:[#allocation18 + $0x10] sm:$0xff] }
 0x7e5   :  { %v8338_v3 = vpop.f32.mrb[80].mxu1 }
 0x7e6   :  { %v8339_v49 = vpop.f32.mrb[81].mxu1  ;;  %10564 = vmatpush3.bf16.msra.mxu0 %v10563_v22  ;;  %v7040_v22 = vld [vmem:[#allocation18 + $0x20] sm:$0xff] }
 0x7e7   :  { %v8340_v21 = vadd.f32 %v8339_v49, %v8338_v3  ;;  %10541 = vmatpush3.bf16.msra.mxu1 %v10540_v44  ;;  %v10566_v44 = vpack.c.bf16 %v6943_v11, %v6942_v54  ;;  %10565 = vmatprep.subr.bf16.mxu0 %v11259_v16  ;;  %v6946_v3 = vld [vmem:[#allocation9 + $0x30] sm:$0xff]  ;;  %v6948_v49 = vld [vmem:[#allocation9 + $0x40] sm:$0xff] }
 0x7e8   :  { %10543 = vmatprep.subr.bf16.mxu1 %v10542_v27  ;;  %v6944_v27 = vld [vmem:[#allocation9 + $0x20] sm:$0xff]  ;;  %v10572_v46 = vpack.c.bf16 %v6947_v63, %v6946_v3  ;;  %v7041_v11 = vld [vmem:[#allocation18 + $0x28] sm:$0xff] }
 0x7e9   :  { %v5303_v59 = vadd.f32 %v8340_v21, %v12687_v60  ;;  %v10569_v40 = vpack.c.bf16 %v6945_v15, %v6944_v27  ;;  %v6949_v21 = vld [vmem:[#allocation9 + $0x48] sm:$0xff]  ;;  %v7045_v27 = vld [vmem:[#allocation18 + $0x48] sm:$0xff] }
 0x7ea   :  { %v8443_v6 = vpop.f32.mrb[84].mxu0  ;;  %10567 = vmatpush3.bf16.msra.mxu0 %v10566_v44  ;;  %v7039_v54 = vld [vmem:[#allocation18 + $0x18] sm:$0xff]  ;;  %v7044_v44 = vld [vmem:[#allocation18 + $0x40] sm:$0xff] }
 0x7eb   :  { %v8444_v38 = vpop.f32.mrb[85].mxu0  ;;  %10545 = vmatpush3.bf16.msra.mxu1 %v10544_v19  ;;  %v5409_v39 = vadd.f32 %v12689_v24, %v5303_v59  ;;  %v6852_v24 = vld [vmem:[#allocation15 + $0x10] sm:$0xff]  ;;  %10568 = vmatprep.subr.bf16.mxu0 %v11259_v16  ;;  %v10575_v19 = vpack.c.bf16 %v6949_v21, %v6948_v49  ;;  %v6952_v59 = vld [vmem:[#allocation9 + $0x60] sm:$0xff]  ;;  %v10599_v15 = vpack.c.bf16 %v7045_v27, %v7044_v44 }
 0x7ec   :  { %v8445_v20 = vadd.f32 %v8444_v38, %v8443_v6  ;;  %10547 = vmatprep.subr.bf16.mxu1 %v10546_v7  ;;  %v10554_v56 = vpack.c.bf16 %v6853_v0, %v6852_v24  ;;  %v6950_v7 = vld [vmem:[#allocation9 + $0x50] sm:$0xff]  ;;  %v6953_v6 = vld [vmem:[#allocation9 + $0x68] sm:$0xff]  ;;  %v7238_v27 = vld [vmem:[%s12811_s15 + $0x60] sm:$0xff] }
 0x7ed   :  { %v10578_v48 = vpack.c.bf16 %v6951_v23, %v6950_v7  ;;  %v10581_v38 = vpack.c.bf16 %v6953_v6, %v6952_v59  ;;  %v7047_v3 = vld [vmem:[#allocation18 + $0x58] sm:$0xff]  ;;  %v7048_v7 = vld [vmem:[#allocation18 + $0x60] sm:$0xff]  ;;  %v7049_v23 = vld [vmem:[#allocation18 + $0x68] sm:$0xff] }
 0x7ee   :  { %10570 = vmatpush3.bf16.msra.mxu0 %v10569_v40  ;;  %v7046_v40 = vld [vmem:[#allocation18 + $0x50] sm:$0xff]  ;;  %v7051_v6 = vld [vmem:[#allocation18 + $0x78] sm:$0xff] }
 0x7ef   :  { %10549 = vmatpush3.bf16.msra.mxu1 %v10548_v32  ;;  %10571 = vmatprep.subr.bf16.mxu0 %v11259_v16  ;;  %v10602_v63 = vpack.c.bf16 %v7047_v3, %v7046_v40  ;;  %v7050_v59 = vld [vmem:[#allocation18 + $0x70] sm:$0xff]  ;;  %v7538_v3 = vld [vmem:[#allocation19] ss:$0 sm:$0xff] }
 0x7f0   :  { %10550 = vmatprep.subr.bf16.mxu1 %v11259_v16 }
 0x7f2   :  { %6756 = vmatmul.mubr.f32.vlgmr.msra.gmra.mrb[94].mxu1 %v5098_v57  ;;  %10573 = vmatpush3.bf16.msra.mxu0 %v10572_v46  ;;  %v7535_v46 = vld [vmem:[#allocation16] ss:$0 sm:$0xff] }
 0x7f3   :  { %10552 = vmatpush3.bf16.msra.mxu1 %v10551_v30  ;;  %9191 = vmatprep.mubr.msk.f32.mxu1 %vm11258_vm3, %v11257_v9 }
 0x7f4   :  { %10553 = vmatprep.subr.bf16.mxu1 %v11259_v16  ;;  %10574 = vmatprep.subr.bf16.mxu0 %v11259_v16 }
 0x7f6   :  { %10576 = vmatpush3.bf16.msra.mxu0 %v10575_v19 }
 0x7f7   :  { %10555 = vmatpush3.bf16.msra.mxu1 %v10554_v56  ;;  %10577 = vmatprep.subr.bf16.mxu0 %v11259_v16 }
 0x7f8   :  { %10556 = vmatprep.subr.bf16.mxu1 %v11259_v16 }
 0x7fa   :  { %10579 = vmatpush3.bf16.msra.mxu0 %v10578_v48  ;;  %v10605_v48 = vpack.c.bf16 %v7049_v23, %v7048_v7  ;;  %v7241_v7 = vld [vmem:[%s12811_s15 + $0x78] sm:$0xff] }
 0x7fb   :  { %10558 = vmatpush3.bf16.msra.mxu1 %v10557_v1  ;;  %10580 = vmatprep.subr.bf16.mxu0 %v11259_v16 }
 0x7fc   :  { %10559 = vmatprep.subr.bf16.mxu1 %v11259_v16 }
 0x7fe   :  { %10582 = vmatpush3.bf16.msra.mxu0 %v10581_v38  ;;  %v10608_v38 = vpack.c.bf16 %v7051_v6, %v7050_v59 }
 0x7ff   :  { %10561 = vmatpush3.bf16.msra.mxu1 %v10560_v43  ;;  %10583 = vmatprep.subr.bf16.mxu0 %v11259_v16 }
 0x800   :  { %10586 = vmatprep.subr.bf16.mxu1 %v11259_v16 }
 0x805   :  { %v8408_v60 = vpop.f32.mrb[82].mxu1 }
 0x806   :  { %v8409_v61 = vpop.f32.mrb[83].mxu1 }
 0x807   :  { %v8410_v28 = vadd.f32 %v8409_v61, %v8408_v60 }
 0x809   :  { %v5513_v58 = vadd.f32 %v8410_v28, %v5409_v39 }
 0x80a   :  { %v8513_v13 = vpop.f32.mrb[86].mxu0 }
 0x80b   :  { %v8514_v47 = vpop.f32.mrb[87].mxu0  ;;  %v5617_v14 = vadd.f32 %v8445_v20, %v5513_v58 }
 0x80c   :  { %v8515_v18 = vadd.f32 %v8514_v47, %v8513_v13  ;;  %v7532_v13 = vld [vmem:[#allocation13] ss:$0 sm:$0xff] }
 0x825   :  { %v8478_v5 = vpop.f32.mrb[84].mxu1 }
 0x826   :  { %v8479_v45 = vpop.f32.mrb[85].mxu1 }
 0x827   :  { %v8480_v50 = vadd.f32 %v8479_v45, %v8478_v5 }
 0x829   :  { %v5721_v41 = vadd.f32 %v8480_v50, %v5617_v14 }
 0x82a   :  { %v8583_v34 = vpop.f32.mrb[88].mxu0 }
 0x82b   :  { %v8584_v62 = vpop.f32.mrb[89].mxu0  ;;  %v5825_v36 = vadd.f32 %v8515_v18, %v5721_v41 }
 0x82c   :  { %v8585_v37 = vadd.f32 %v8584_v62, %v8583_v34 }
 0x845   :  { %v8548_v10 = vpop.f32.mrb[86].mxu1 }
 0x846   :  { %v8549_v33 = vpop.f32.mrb[87].mxu1 }
 0x847   :  { %v8550_v55 = vadd.f32 %v8549_v33, %v8548_v10  ;;  %v6955_v10 = vld [vmem:[#allocation9 + $0x78] sm:$0xff] }
 0x849   :  { %v5929_v51 = vadd.f32 %v8550_v55, %v5825_v36  ;;  %v7036_v55 = vld [vmem:[#allocation18] sm:$0xff] }
 0x84a   :  { %v8653_v52 = vpop.f32.mrb[90].mxu0 }
 0x84b   :  { %v8654_v35 = vpop.f32.mrb[91].mxu0  ;;  %v6033_v8 = vadd.f32 %v8585_v37, %v5929_v51  ;;  %v6954_v37 = vld [vmem:[#allocation9 + $0x70] sm:$0xff] }
 0x84c   :  { %v8655_v31 = vadd.f32 %v8654_v35, %v8653_v52  ;;  %v10584_v33 = vpack.c.bf16 %v6955_v10, %v6954_v37  ;;  %v7037_v51 = vld [vmem:[#allocation18 + $0x8] sm:$0xff]  ;;  %v10590_v52 = vpack.c.bf16 %v7039_v54, %v7038_v12  ;;  %v7042_v35 = vld [vmem:[#allocation18 + $0x30] sm:$0xff]  ;;  %v7227_v10 = vld [vmem:[%s12811_s15 + $0x8] sm:$0xff] }
 0x84d   :  { %v10587_v26 = vpack.c.bf16 %v7037_v51, %v7036_v55  ;;  %v7226_v37 = vld [vmem:[%s12811_s15] sm:$0xff]  ;;  %v7231_v12 = vld [vmem:[%s12811_s15 + $0x28] sm:$0xff]  ;;  %v7232_v54 = vld [vmem:[%s12811_s15 + $0x30] sm:$0xff] }
 0x84e   :  { %10585 = vmatpush3.bf16.msra.mxu0 %v10584_v33  ;;  %v10635_v33 = vpack.c.bf16 %v7227_v10, %v7226_v37  ;;  %v7230_v51 = vld [vmem:[%s12811_s15 + $0x20] sm:$0xff] }
 0x84f   :  { %10610 = vmatprep.subr.bf16.mxu0 %v11259_v16 }
 0x865   :  { %v8618_v32 = vpop.f32.mrb[88].mxu1 }
 0x866   :  { %v8619_v39 = vpop.f32.mrb[89].mxu1 }
 0x867   :  { %v8620_v20 = vadd.f32 %v8619_v39, %v8618_v32  ;;  %v7131_v32 = vld [vmem:[#allocation18 + $0x80] sm:$0xff]  ;;  %v7132_v39 = vld [vmem:[#allocation18 + $0x88] sm:$0xff] }
 0x869   :  { %v6137_v29 = vadd.f32 %v8620_v20, %v6033_v8  ;;  %v7043_v8 = vld [vmem:[#allocation18 + $0x38] sm:$0xff]  ;;  %v7133_v20 = vld [vmem:[#allocation18 + $0x90] sm:$0xff] }
 0x86a   :  { %v8723_v53 = vpop.f32.mrb[92].mxu0 }
 0x86b   :  { %v8724_v30 = vpop.f32.mrb[93].mxu0  ;;  %v6241_v57 = vadd.f32 %v8655_v31, %v6137_v29  ;;  %v10596_v31 = vpack.c.bf16 %v7043_v8, %v7042_v35  ;;  %v10611_v29 = vpack.c.bf16 %v7132_v39, %v7131_v32  ;;  %v7236_v8 = vld [vmem:[%s12811_s15 + $0x50] sm:$0xff] }
 0x86c   :  { %v8725_v60 = vadd.f32 %v8724_v30, %v8723_v53  ;;  %v7134_v53 = vld [vmem:[#allocation18 + $0x98] sm:$0xff]  ;;  %v7540_v32 = vld [vmem:[#allocation21] ss:$0 sm:$0xff] }
 0x86d   :  { %v10614_v30 = vpack.c.bf16 %v7134_v53, %v7133_v20 }
 0x885   :  { %v8688_v24 = vpop.f32.mrb[90].mxu1 }
 0x886   :  { %v8689_v0 = vpop.f32.mrb[91].mxu1 }
 0x887   :  { %v8690_v61 = vadd.f32 %v8689_v0, %v8688_v24  ;;  %v7137_v0 = vld [vmem:[#allocation18 + $0xb0] sm:$0xff] }
 0x889   :  { %v6345_v56 = vadd.f32 %v8690_v61, %v6241_v57  ;;  %v7135_v57 = vld [vmem:[#allocation18 + $0xa0] sm:$0xff]  ;;  %v7138_v61 = vld [vmem:[#allocation18 + $0xb8] sm:$0xff] }
 0x88a   :  { %v8793_v28 = vpop.f32.mrb[94].mxu0 }
 0x88b   :  { %v8794_v58 = vpop.f32.mrb[95].mxu0  ;;  %v6449_v42 = vadd.f32 %v8725_v60, %v6345_v56  ;;  %v7136_v60 = vld [vmem:[#allocation18 + $0xa8] sm:$0xff]  ;;  %v10620_v56 = vpack.c.bf16 %v7138_v61, %v7137_v0 }
 0x88c   :  { %v8795_v4 = vadd.f32 %v8794_v58, %v8793_v28  ;;  %v10617_v24 = vpack.c.bf16 %v7136_v60, %v7135_v57  ;;  %v7139_v28 = vld [vmem:[#allocation18 + $0xc0] sm:$0xff]  ;;  %v7140_v58 = vld [vmem:[#allocation18 + $0xc8] sm:$0xff] }
 0x88e   :  { %v6845_v1 = vpop.f32.mrb[96].mxu0 }
 0x88f   :  { %v6846_v47 = vadd.f32 %v7532_v13, %v6845_v1  ;;  %v9174_v14 = vpop.f32.mrb[97].mxu0  ;;  %v7142_v13 = vld [vmem:[#allocation18 + $0xd8] sm:$0xff] }
 0x890   :  { %v7144_v14 = vld [vmem:[#allocation18 + $0xe8] sm:$0xff] }
 0x891   :  { %v6849_v18 = vmax.f32 %v6846_v47, 0.0  ;;  %v7143_v47 = vld [vmem:[#allocation18 + $0xe0] sm:$0xff] }
 0x893   :  { %9192 = vmatmul.mubr.msk.f32.vlgmr.msra.gmra.mrb[96].mxu1 %vm6865_vm5, %v6849_v18  ;;  %v10629_v18 = vpack.c.bf16 %v7144_v14, %v7143_v47 }
 0x894   :  { %9261 = vmatprep.mubr.msk.f32.mxu1 %vm11258_vm3, %v11257_v9  ;;  %10588 = vmatpush3.bf16.msra.mxu1 %v10587_v26  ;;  %v10641_v26 = vpack.c.bf16 %v7231_v12, %v7230_v51 }
 0x895   :  { %10589 = vmatprep.subr.bf16.mxu1 %v11259_v16 }
 0x898   :  { %10591 = vmatpush3.bf16.msra.mxu1 %v10590_v52  ;;  %v7233_v52 = vld [vmem:[%s12811_s15 + $0x38] sm:$0xff] }
 0x899   :  { %10592 = vmatprep.subr.bf16.mxu1 %v11259_v16 }
 0x8a5   :  { %v8758_v17 = vpop.f32.mrb[92].mxu1 }
 0x8a6   :  { %v8759_v2 = vpop.f32.mrb[93].mxu1 }
 0x8a7   :  { %v8760_v43 = vadd.f32 %v8759_v2, %v8758_v17  ;;  %v7537_v2 = vld [vmem:[#allocation10] ss:$0 sm:$0xff] }
 0x8a9   :  { %v6553_v5 = vadd.f32 %v8760_v43, %v6449_v42  ;;  %v10623_v42 = vpack.c.bf16 %v7140_v58, %v7139_v28 }
 0x8ab   :  { %v6657_v45 = vadd.f32 %v8795_v4, %v6553_v5  ;;  %v7141_v4 = vld [vmem:[#allocation18 + $0xd0] sm:$0xff] }
 0x8ac   :  { %v10626_v1 = vpack.c.bf16 %v7142_v13, %v7141_v4 }
 0x8c5   :  { %v8828_v50 = vpop.f32.mrb[94].mxu1 }
 0x8c6   :  { %v8829_v41 = vpop.f32.mrb[95].mxu1 }
 0x8c7   :  { %v8830_v34 = vadd.f32 %v8829_v41, %v8828_v50  ;;  %v7145_v41 = vld [vmem:[#allocation18 + $0xf0] sm:$0xff] }
 0x8c9   :  { %v6761_v62 = vadd.f32 %v8830_v34, %v6657_v45  ;;  %v7146_v34 = vld [vmem:[#allocation18 + $0xf8] sm:$0xff] }
 0x8cb   :  { %v12714_v36 = vadd.f32 %v6761_v62, %v12377_v25  ;;  %v10593_v25 = vpack.c.bf16 %v7041_v11, %v7040_v22  ;;  %v10632_v62 = vpack.c.bf16 %v7146_v34, %v7145_v41  ;;  %v10644_v22 = vpack.c.bf16 %v7233_v52, %v7232_v54  ;;  %v7234_v11 = vld [vmem:[%s12811_s15 + $0x40] sm:$0xff] }
 0x8cd   :  { %10594 = vmatpush3.bf16.msra.mxu1 %v10593_v25  ;;  %v7235_v25 = vld [vmem:[%s12811_s15 + $0x48] sm:$0xff] }
 0x8ce   :  { %10595 = vmatprep.subr.bf16.mxu1 %v11259_v16  ;;  %v10647_v35 = vpack.c.bf16 %v7235_v25, %v7234_v11 }
 0x8d1   :  { %10597 = vmatpush3.bf16.msra.mxu1 %v10596_v31  ;;  %v7237_v31 = vld [vmem:[%s12811_s15 + $0x58] sm:$0xff] }
 0x8d2   :  { %10598 = vmatprep.subr.bf16.mxu1 %v11259_v16  ;;  %v10650_v44 = vpack.c.bf16 %v7237_v31, %v7236_v8 }
 0x8d5   :  { %10600 = vmatpush3.bf16.msra.mxu1 %v10599_v15  ;;  %v7239_v15 = vld [vmem:[%s12811_s15 + $0x68] sm:$0xff] }
 0x8d6   :  { %10601 = vmatprep.subr.bf16.mxu1 %v11259_v16  ;;  %v10653_v40 = vpack.c.bf16 %v7239_v15, %v7238_v27 }
 0x8d9   :  { %10603 = vmatpush3.bf16.msra.mxu1 %v10602_v63 }
 0x8da   :  { %10604 = vmatprep.subr.bf16.mxu1 %v11259_v16 }
 0x8dd   :  { %10606 = vmatpush3.bf16.msra.mxu1 %v10605_v48  ;;  %v7539_v48 = vld [vmem:[#allocation19 + $0x1] ss:$0 sm:$0xff] }
 0x8de   :  { %10607 = vmatprep.subr.bf16.mxu1 %v11259_v16 }
 0x8e1   :  { %10609 = vmatpush3.bf16.msra.mxu1 %v10608_v38 }
 0x8e2   :  { %10634 = vmatprep.subr.bf16.mxu1 %v11259_v16 }
 0x966   :  { %v6935_v49 = vpop.f32.mrb[96].mxu1 }
 0x967   :  { %v6936_v21 = vadd.f32 %v7535_v46, %v6935_v49  ;;  %v9193_v19 = vpop.f32.mrb[97].mxu1 }
 0x968   :  { %v7240_v19 = vld [vmem:[%s12811_s15 + $0x70] sm:$0xff] }
 0x969   :  { %9227 = vmatmul.mubr.f32.vlgmr.msra.gmra.mrb[98].mxu0 %v6936_v21  ;;  %v10656_v23 = vpack.c.bf16 %v7241_v7, %v7240_v19 }
 0x96a   :  { %9296 = vmatprep.mubr.msk.f32.mxu0 %vm11258_vm3, %v11257_v9  ;;  %10612 = vmatpush3.bf16.msra.mxu0 %v10611_v29 }
 0x96b   :  { %10613 = vmatprep.subr.bf16.mxu0 %v11259_v16 }
 0x96e   :  { %10615 = vmatpush3.bf16.msra.mxu0 %v10614_v30 }
 0x96f   :  { %10616 = vmatprep.subr.bf16.mxu0 %v11259_v16 }
 0x972   :  { %10618 = vmatpush3.bf16.msra.mxu0 %v10617_v24 }
 0x973   :  { %10619 = vmatprep.subr.bf16.mxu0 %v11259_v16 }
 0x976   :  { %10621 = vmatpush3.bf16.msra.mxu0 %v10620_v56 }
 0x977   :  { %10622 = vmatprep.subr.bf16.mxu0 %v11259_v16 }
 0x97a   :  { %10624 = vmatpush3.bf16.msra.mxu0 %v10623_v42 }
 0x97b   :  { %10625 = vmatprep.subr.bf16.mxu0 %v11259_v16 }
 0x97e   :  { %10627 = vmatpush3.bf16.msra.mxu0 %v10626_v1 }
 0x97f   :  { %10628 = vmatprep.subr.bf16.mxu0 %v11259_v16 }
 0x982   :  { %10630 = vmatpush3.bf16.msra.mxu0 %v10629_v18 }
 0x983   :  { %10631 = vmatprep.subr.bf16.mxu0 %v11259_v16 }
 0x986   :  { %10633 = vmatpush3.bf16.msra.mxu0 %v10632_v62 }
 0xa3c   :  { %v7022_v17 = vpop.f32.mrb[98].mxu0 }
 0xa3d   :  { %v7026_v43 = vadd.f32 %v7022_v17, %v12714_v36  ;;  %v9228_v5 = vpop.f32.mrb[99].mxu0  ;;  %v7228_v36 = vld [vmem:[%s12811_s15 + $0x10] sm:$0xff] }
 0xa3f   :  { %v7034_v45 = vadd.f32 %v7537_v2, %v7026_v43 }
 0xa41   :  { %v7035_v50 = vmax.f32 %v7034_v45, 0.0 }
 0xa43   :  { %9262 = vmatmul.mubr.f32.vlgmr.msra.gmra.mrb[98].mxu1 %v7035_v50 }
 0xa44   :  { %9331 = vmatprep.mubr.msk.f32.mxu1 %vm11258_vm3, %v11257_v9  ;;  %v7229_v9 = vld [vmem:[%s12811_s15 + $0x18] sm:$0xff]  ;;  %10636 = vmatpush3.bf16.msra.mxu1 %v10635_v33 }
 0xa45   :  { %v10638_v55 = vpack.c.bf16 %v7229_v9, %v7228_v36  ;;  %10637 = vmatprep.subr.bf16.mxu1 %v11259_v16 }
 0xa48   :  { %10639 = vmatpush3.bf16.msra.mxu1 %v10638_v55 }
 0xa49   :  { %10640 = vmatprep.subr.bf16.mxu1 %v11259_v16 }
 0xa4c   :  { %10642 = vmatpush3.bf16.msra.mxu1 %v10641_v26 }
 0xa4d   :  { %10643 = vmatprep.subr.bf16.mxu1 %v11259_v16 }
 0xa50   :  { %10645 = vmatpush3.bf16.msra.mxu1 %v10644_v22 }
 0xa51   :  { %10646 = vmatprep.subr.bf16.mxu1 %v11259_v16 }
 0xa54   :  { %10648 = vmatpush3.bf16.msra.mxu1 %v10647_v35 }
 0xa55   :  { %10649 = vmatprep.subr.bf16.mxu1 %v11259_v16 }
 0xa58   :  { %10651 = vmatpush3.bf16.msra.mxu1 %v10650_v44 }
 0xa59   :  { %10652 = vmatprep.subr.bf16.mxu1 %v11259_v16 }
 0xa5c   :  { %10654 = vmatpush3.bf16.msra.mxu1 %v10653_v40 }
 0xa5d   :  { %10655 = vmatprep.subr.bf16.mxu1 %v11259_v16 }
 0xa60   :  { %10657 = vmatpush3.bf16.msra.mxu1 %v10656_v23 }
 0xb16   :  { %v7125_v63 = vpop.f32.mrb[98].mxu1 }
 0xb17   :  { %v7126_v46 = vadd.f32 %v7538_v3, %v7125_v63  ;;  %v9263_v49 = vpop.f32.mrb[99].mxu1 }
 0xb19   :  { %v7129_v21 = vmax.f32 %v7126_v46, 0.0 }
 0xb1b   :  { %9297 = vmatmul.mubr.f32.vlgmr.msra.gmra.mrb[100].mxu0 %v7129_v21 }
 0xbee   :  { %v7221_v59 = vpop.f32.mrb[100].mxu0 }
 0xbef   :  { %v7222_v6 = vadd.f32 %v7539_v48, %v7221_v59  ;;  %v9298_v16 = vpop.f32.mrb[101].mxu0 }
 0xbf1   :  { %v7225_v38 = vmax.f32 %v7222_v6, 0.0 }
 0xbf3   :  { %9332 = vmatmul.mubr.f32.vlgmr.msra.gmra.mrb[100].mxu1 %v7225_v38 }
 0xcc6   :  { %v7315_v39 = vpop.f32.mrb[100].mxu1 }
 0xcc7   :  { %v7316_v20 = vadd.f32 %v7540_v32, %v7315_v39  ;;  %v9333_v29 = vpop.f32.mrb[101].mxu1 }
 0xcc9   :  { %7319 = vst.msk [vmem:[%s12813_s17] sm:$0xff] %vm6771_vm4, %v7316_v20 }
 0xcca   :  { %7324 = vsyncpa [#allocation3], 1 }
 0xccb   :  { %7325 = vsyncpa [#allocation5], 1 }
 0xccc   :  { %7326 = vsyncpa [#allocation8], 1 }
 0xccd   :  { %7327 = vsyncpa [#allocation11], 1 }
 0xcce   :  { %7328 = vsyncpa [#allocation14], 1 }
 0xccf   :  { %7329 = vsyncpa [#allocation17], 1 }
 0xcd0   :  { %7330 = vsyncpa [#allocation20], 1 }

</bundles_post_ra>
